<compile_context>
chip_gen: v7x
topology: tpu7x:2x2x1
jax: 0.10.0
libtpu: 0.0.40
codegen_flags: <defaults>
</compile_context>

<pallas_src>
import functools

import jax
import jax.numpy as jnp
from jax.experimental import pallas as pl
from jax.experimental.pallas import tpu as pltpu

OUT_SCALE = 0.2


def scale_head_kernel(z_ref, x_ref, out_ref, *, out_scale):
    """One grid step handles a block of NB batch elements.

    z_ref:   (NB, C, S, Hz, Wz)  template SES features
    x_ref:   (NB, C, S, Hx, Wx)  search   SES features
    out_ref: (NB, Ho, Wo)        scaled correlation maps
    """
    NB, C, S, Hz, Wz = z_ref.shape
    _, _, _, Hx, Wx = x_ref.shape
    Ho = Hx - Hz + 1
    Wo = Wx - Wz + 1

    for n in range(NB):                      # small static batch block -> unrolled
        # ses_max_projection: max over the scale axis.
        zp = jnp.max(z_ref[n], axis=1)       # (C, Hz, Wz)
        xp = jnp.max(x_ref[n], axis=1)       # (C, Hx, Wx)

        # Valid cross-correlation (PyTorch conv2d does NOT flip the kernel),
        # summed over channels:
        #   out[p, q] = sum_{c, dh, dw} zp[c, dh, dw] * xp[c, p+dh, q+dw]
        # dw (lane axis) is the OUTER loop so the unaligned lane slice happens only
        # Wz times; the inner loop takes cheap sublane (dh) slices.
        acc = jnp.zeros((Ho, Wo), jnp.float32)
        for dw in range(Wz):
            x_dw = xp[:, :, dw:dw + Wo]          # (C, Hx, Wo)  hoisted lane slice
            z_dw = zp[:, :, dw:dw + 1]           # (C, Hz, 1)
            for dh in range(Hz):                 # small static template extent -> unrolled
                patch = x_dw[:, dh:dh + Ho, :]   # (C, Ho, Wo)  sublane slice only
                w = z_dw[:, dh:dh + 1, :]        # (C, 1, 1) -> broadcast over (Ho, Wo)
                acc = acc + jnp.sum(patch * w, axis=0)

        out_ref[n] = (acc * out_scale).astype(out_ref.dtype)


def scale_head_forward(z, x, out_scale=OUT_SCALE, batch_block=8):
    """z: (N, C, S, Hz, Wz), x: (N, C, S, Hx, Wx) -> (pooled, heatmaps), each (N, 1, Ho, Wo)."""
    N, C, S, Hz, Wz = z.shape
    Nx, Cx, Sx, Hx, Wx = x.shape
    assert N == Nx and C == Cx and S == Sx, "corr head requires matched batch/channel/scale"
    Ho, Wo = Hx - Hz + 1, Wx - Wz + 1

    # Block several batch elements into one grid step (collapses to a single step for
    # small N); pad N so the grid divides evenly (padded rows are zeros, sliced off).
    nb = min(N, batch_block)
    n_blocks = pl.cdiv(N, nb)
    n_pad = n_blocks * nb
    if n_pad != N:
        pad = ((0, n_pad - N), (0, 0), (0, 0), (0, 0), (0, 0))
        z = jnp.pad(z, pad)
        x = jnp.pad(x, pad)

    kernel = functools.partial(scale_head_kernel, out_scale=out_scale)

    corr = pl.pallas_call(
        kernel,
        out_shape=jax.ShapeDtypeStruct((n_pad, Ho, Wo), jnp.float32),
        grid_spec=pltpu.PrefetchScalarGridSpec(
            num_scalar_prefetch=0,
            grid=(n_blocks,),
            in_specs=[
                pl.BlockSpec((nb, C, S, Hz, Wz), lambda n: (n, 0, 0, 0, 0)),
                pl.BlockSpec((nb, C, S, Hx, Wx), lambda n: (n, 0, 0, 0, 0)),
            ],
            out_specs=pl.BlockSpec((nb, Ho, Wo), lambda n: (n, 0, 0)),
        ),
        # Batch axis is independent -> "parallel" (shards grid steps across the two
        # TensorCores on v7x-class parts; harmless on v5e/v6e).
        # NOTE: at realistic channel counts the whole (C,S,H,W) block may not
        # double-buffer inside the default scoped-VMEM limit on v5e (16 MiB) / v7x
        # (32 MiB): tile C as a trailing "arbitrary" reduction axis with a VMEM f32
        # accumulator, or raise vmem_limit_bytes here with headroom.
        compiler_params=pltpu.CompilerParams(dimension_semantics=("parallel",)),
    )(z, x)

    pooled = corr[:N].reshape(N, 1, Ho, Wo)
    # TODO(synk): PyTorch returns torch.empty_like(out) (uninitialized memory); emit
    # deterministic zeros from the wrapper instead of wasting kernel stores on it.
    heatmaps = jnp.zeros_like(pooled)
    return pooled, heatmaps


if __name__ == "__main__":
    key = jax.random.PRNGKey(0)
    kz, kx = jax.random.split(key)

    # Small shapes consistent with the forward pass: 5-D SES features (N, C, S, H, W).
    N, C, S = 2, 4, 3
    Hz, Wz = 6, 6
    Hx, Wx = 16, 16

    z = jax.random.normal(kz, (N, C, S, Hz, Wz), dtype=jnp.float32)
    x = jax.random.normal(kx, (N, C, S, Hx, Wx), dtype=jnp.float32)

    pooled, heat = scale_head_forward(z, x)
    jax.block_until_ready((pooled, heat))

    # Pure-JAX reference (mirrors the PyTorch grouped-conv trick in _fast_xcorr).
    zp = jnp.max(z, axis=2)  # (N, C, Hz, Wz)
    xp = jnp.max(x, axis=2)  # (N, C, Hx, Wx)
    ref = jax.lax.conv_general_dilated(
        xp.reshape(1, N * C, Hx, Wx), zp,
        window_strides=(1, 1), padding="VALID",
        dimension_numbers=("NCHW", "OIHW", "NCHW"),
        feature_group_count=N,
    ).reshape(N, 1, Hx - Hz + 1, Wx - Wz + 1) * OUT_SCALE

    assert pooled.shape == ref.shape == heat.shape
    assert jnp.allclose(pooled, ref, atol=1e-3, rtol=1e-3), "mismatch vs reference"
    print("KERNEL_OK")
</pallas_src>

<mosaic_0001>
module attributes {stable_mosaic.version = 11 : i64} {
  func.func @scale_head_kernel(%arg0: i32, %arg1: memref<2x4x3x6x6xf32, #tpu.memory_space<vmem>>, %arg2: memref<2x4x3x16x16xf32, #tpu.memory_space<vmem>>, %arg3: memref<2x11x11xf32, #tpu.memory_space<vmem>>) attributes {dimension_semantics = [#tpu.dimension_semantics<parallel>], iteration_bounds = array<i64: 1>, scalar_prefetch = 0 : i64, scratch_operands = 0 : i64, tpu.core_type = #tpu.core_type<tc>, window_params = [{transform_indices = @transform_0, window_bounds = array<i64: 2, 4, 3, 6, 6>}, {transform_indices = @transform_1, window_bounds = array<i64: 2, 4, 3, 16, 16>}, {transform_indices = @transform_2, window_bounds = array<i64: 2, 11, 11>}]} {
    %c0 = arith.constant 0 : index
    %c0_0 = arith.constant 0 : index
    %c0_1 = arith.constant 0 : index
    %c0_2 = arith.constant 0 : index
    %c0_3 = arith.constant 0 : index
    %0 = vector.load %arg1[%c0, %c0_0, %c0_1, %c0_2, %c0_3] : memref<2x4x3x6x6xf32, #tpu.memory_space<vmem>>, vector<1x4x3x6x6xf32>
    %1 = vector.shape_cast %0 : vector<1x4x3x6x6xf32> to vector<4x3x6x6xf32>
    %cst = arith.constant dense<0xFF800000> : vector<4x6x6xf32>
    %2 = vector.multi_reduction <maximumf>, %1, %cst [1] : vector<4x3x6x6xf32> to vector<4x6x6xf32>
    %c0_4 = arith.constant 0 : index
    %c0_5 = arith.constant 0 : index
    %c0_6 = arith.constant 0 : index
    %c0_7 = arith.constant 0 : index
    %c0_8 = arith.constant 0 : index
    %3 = vector.load %arg2[%c0_4, %c0_5, %c0_6, %c0_7, %c0_8] : memref<2x4x3x16x16xf32, #tpu.memory_space<vmem>>, vector<1x4x3x16x16xf32>
    %4 = vector.shape_cast %3 : vector<1x4x3x16x16xf32> to vector<4x3x16x16xf32>
    %cst_9 = arith.constant dense<0xFF800000> : vector<4x16x16xf32>
    %5 = vector.multi_reduction <maximumf>, %4, %cst_9 [1] : vector<4x3x16x16xf32> to vector<4x16x16xf32>
    %cst_10 = arith.constant 0.000000e+00 : f32
    %6 = vector.broadcast %cst_10 : f32 to vector<11x11xf32>
    %7 = vector.extract_strided_slice %5 {offsets = [0, 0, 0], sizes = [4, 16, 11], strides = [1, 1, 1]} : vector<4x16x16xf32> to vector<4x16x11xf32>
    %8 = vector.extract_strided_slice %2 {offsets = [0, 0, 0], sizes = [4, 6, 1], strides = [1, 1, 1]} : vector<4x6x6xf32> to vector<4x6x1xf32>
    %9 = vector.extract_strided_slice %7 {offsets = [0, 0, 0], sizes = [4, 11, 11], strides = [1, 1, 1]} : vector<4x16x11xf32> to vector<4x11x11xf32>
    %10 = vector.extract_strided_slice %8 {offsets = [0, 0, 0], sizes = [4, 1, 1], strides = [1, 1, 1]} : vector<4x6x1xf32> to vector<4x1x1xf32>
    %11 = vector.broadcast %10 : vector<4x1x1xf32> to vector<4x11x11xf32>
    %12 = arith.mulf %9, %11 : vector<4x11x11xf32>
    %cst_11 = arith.constant dense<0.000000e+00> : vector<11x11xf32>
    %13 = vector.multi_reduction <add>, %12, %cst_11 [0] : vector<4x11x11xf32> to vector<11x11xf32>
    %14 = arith.addf %6, %13 : vector<11x11xf32>
    %15 = vector.extract_strided_slice %7 {offsets = [0, 1, 0], sizes = [4, 11, 11], strides = [1, 1, 1]} : vector<4x16x11xf32> to vector<4x11x11xf32>
    %16 = vector.extract_strided_slice %8 {offsets = [0, 1, 0], sizes = [4, 1, 1], strides = [1, 1, 1]} : vector<4x6x1xf32> to vector<4x1x1xf32>
    %17 = vector.broadcast %16 : vector<4x1x1xf32> to vector<4x11x11xf32>
    %18 = arith.mulf %15, %17 : vector<4x11x11xf32>
    %cst_12 = arith.constant dense<0.000000e+00> : vector<11x11xf32>
    %19 = vector.multi_reduction <add>, %18, %cst_12 [0] : vector<4x11x11xf32> to vector<11x11xf32>
    %20 = arith.addf %14, %19 : vector<11x11xf32>
    %21 = vector.extract_strided_slice %7 {offsets = [0, 2, 0], sizes = [4, 11, 11], strides = [1, 1, 1]} : vector<4x16x11xf32> to vector<4x11x11xf32>
    %22 = vector.extract_strided_slice %8 {offsets = [0, 2, 0], sizes = [4, 1, 1], strides = [1, 1, 1]} : vector<4x6x1xf32> to vector<4x1x1xf32>
    %23 = vector.broadcast %22 : vector<4x1x1xf32> to vector<4x11x11xf32>
    %24 = arith.mulf %21, %23 : vector<4x11x11xf32>
    %cst_13 = arith.constant dense<0.000000e+00> : vector<11x11xf32>
    %25 = vector.multi_reduction <add>, %24, %cst_13 [0] : vector<4x11x11xf32> to vector<11x11xf32>
    %26 = arith.addf %20, %25 : vector<11x11xf32>
    %27 = vector.extract_strided_slice %7 {offsets = [0, 3, 0], sizes = [4, 11, 11], strides = [1, 1, 1]} : vector<4x16x11xf32> to vector<4x11x11xf32>
    %28 = vector.extract_strided_slice %8 {offsets = [0, 3, 0], sizes = [4, 1, 1], strides = [1, 1, 1]} : vector<4x6x1xf32> to vector<4x1x1xf32>
    %29 = vector.broadcast %28 : vector<4x1x1xf32> to vector<4x11x11xf32>
    %30 = arith.mulf %27, %29 : vector<4x11x11xf32>
    %cst_14 = arith.constant dense<0.000000e+00> : vector<11x11xf32>
    %31 = vector.multi_reduction <add>, %30, %cst_14 [0] : vector<4x11x11xf32> to vector<11x11xf32>
    %32 = arith.addf %26, %31 : vector<11x11xf32>
    %33 = vector.extract_strided_slice %7 {offsets = [0, 4, 0], sizes = [4, 11, 11], strides = [1, 1, 1]} : vector<4x16x11xf32> to vector<4x11x11xf32>
    %34 = vector.extract_strided_slice %8 {offsets = [0, 4, 0], sizes = [4, 1, 1], strides = [1, 1, 1]} : vector<4x6x1xf32> to vector<4x1x1xf32>
    %35 = vector.broadcast %34 : vector<4x1x1xf32> to vector<4x11x11xf32>
    %36 = arith.mulf %33, %35 : vector<4x11x11xf32>
    %cst_15 = arith.constant dense<0.000000e+00> : vector<11x11xf32>
    %37 = vector.multi_reduction <add>, %36, %cst_15 [0] : vector<4x11x11xf32> to vector<11x11xf32>
    %38 = arith.addf %32, %37 : vector<11x11xf32>
    %39 = vector.extract_strided_slice %7 {offsets = [0, 5, 0], sizes = [4, 11, 11], strides = [1, 1, 1]} : vector<4x16x11xf32> to vector<4x11x11xf32>
    %40 = vector.extract_strided_slice %8 {offsets = [0, 5, 0], sizes = [4, 1, 1], strides = [1, 1, 1]} : vector<4x6x1xf32> to vector<4x1x1xf32>
    %41 = vector.broadcast %40 : vector<4x1x1xf32> to vector<4x11x11xf32>
    %42 = arith.mulf %39, %41 : vector<4x11x11xf32>
    %cst_16 = arith.constant dense<0.000000e+00> : vector<11x11xf32>
    %43 = vector.multi_reduction <add>, %42, %cst_16 [0] : vector<4x11x11xf32> to vector<11x11xf32>
    %44 = arith.addf %38, %43 : vector<11x11xf32>
    %45 = vector.extract_strided_slice %5 {offsets = [0, 0, 1], sizes = [4, 16, 11], strides = [1, 1, 1]} : vector<4x16x16xf32> to vector<4x16x11xf32>
    %46 = vector.extract_strided_slice %2 {offsets = [0, 0, 1], sizes = [4, 6, 1], strides = [1, 1, 1]} : vector<4x6x6xf32> to vector<4x6x1xf32>
    %47 = vector.extract_strided_slice %45 {offsets = [0, 0, 0], sizes = [4, 11, 11], strides = [1, 1, 1]} : vector<4x16x11xf32> to vector<4x11x11xf32>
    %48 = vector.extract_strided_slice %46 {offsets = [0, 0, 0], sizes = [4, 1, 1], strides = [1, 1, 1]} : vector<4x6x1xf32> to vector<4x1x1xf32>
    %49 = vector.broadcast %48 : vector<4x1x1xf32> to vector<4x11x11xf32>
    %50 = arith.mulf %47, %49 : vector<4x11x11xf32>
    %cst_17 = arith.constant dense<0.000000e+00> : vector<11x11xf32>
    %51 = vector.multi_reduction <add>, %50, %cst_17 [0] : vector<4x11x11xf32> to vector<11x11xf32>
    %52 = arith.addf %44, %51 : vector<11x11xf32>
    %53 = vector.extract_strided_slice %45 {offsets = [0, 1, 0], sizes = [4, 11, 11], strides = [1, 1, 1]} : vector<4x16x11xf32> to vector<4x11x11xf32>
    %54 = vector.extract_strided_slice %46 {offsets = [0, 1, 0], sizes = [4, 1, 1], strides = [1, 1, 1]} : vector<4x6x1xf32> to vector<4x1x1xf32>
    %55 = vector.broadcast %54 : vector<4x1x1xf32> to vector<4x11x11xf32>
    %56 = arith.mulf %53, %55 : vector<4x11x11xf32>
    %cst_18 = arith.constant dense<0.000000e+00> : vector<11x11xf32>
    %57 = vector.multi_reduction <add>, %56, %cst_18 [0] : vector<4x11x11xf32> to vector<11x11xf32>
    %58 = arith.addf %52, %57 : vector<11x11xf32>
    %59 = vector.extract_strided_slice %45 {offsets = [0, 2, 0], sizes = [4, 11, 11], strides = [1, 1, 1]} : vector<4x16x11xf32> to vector<4x11x11xf32>
    %60 = vector.extract_strided_slice %46 {offsets = [0, 2, 0], sizes = [4, 1, 1], strides = [1, 1, 1]} : vector<4x6x1xf32> to vector<4x1x1xf32>
    %61 = vector.broadcast %60 : vector<4x1x1xf32> to vector<4x11x11xf32>
    %62 = arith.mulf %59, %61 : vector<4x11x11xf32>
    %cst_19 = arith.constant dense<0.000000e+00> : vector<11x11xf32>
    %63 = vector.multi_reduction <add>, %62, %cst_19 [0] : vector<4x11x11xf32> to vector<11x11xf32>
    %64 = arith.addf %58, %63 : vector<11x11xf32>
    %65 = vector.extract_strided_slice %45 {offsets = [0, 3, 0], sizes = [4, 11, 11], strides = [1, 1, 1]} : vector<4x16x11xf32> to vector<4x11x11xf32>
    %66 = vector.extract_strided_slice %46 {offsets = [0, 3, 0], sizes = [4, 1, 1], strides = [1, 1, 1]} : vector<4x6x1xf32> to vector<4x1x1xf32>
    %67 = vector.broadcast %66 : vector<4x1x1xf32> to vector<4x11x11xf32>
    %68 = arith.mulf %65, %67 : vector<4x11x11xf32>
    %cst_20 = arith.constant dense<0.000000e+00> : vector<11x11xf32>
    %69 = vector.multi_reduction <add>, %68, %cst_20 [0] : vector<4x11x11xf32> to vector<11x11xf32>
    %70 = arith.addf %64, %69 : vector<11x11xf32>
    %71 = vector.extract_strided_slice %45 {offsets = [0, 4, 0], sizes = [4, 11, 11], strides = [1, 1, 1]} : vector<4x16x11xf32> to vector<4x11x11xf32>
    %72 = vector.extract_strided_slice %46 {offsets = [0, 4, 0], sizes = [4, 1, 1], strides = [1, 1, 1]} : vector<4x6x1xf32> to vector<4x1x1xf32>
    %73 = vector.broadcast %72 : vector<4x1x1xf32> to vector<4x11x11xf32>
    %74 = arith.mulf %71, %73 : vector<4x11x11xf32>
    %cst_21 = arith.constant dense<0.000000e+00> : vector<11x11xf32>
    %75 = vector.multi_reduction <add>, %74, %cst_21 [0] : vector<4x11x11xf32> to vector<11x11xf32>
    %76 = arith.addf %70, %75 : vector<11x11xf32>
    %77 = vector.extract_strided_slice %45 {offsets = [0, 5, 0], sizes = [4, 11, 11], strides = [1, 1, 1]} : vector<4x16x11xf32> to vector<4x11x11xf32>
    %78 = vector.extract_strided_slice %46 {offsets = [0, 5, 0], sizes = [4, 1, 1], strides = [1, 1, 1]} : vector<4x6x1xf32> to vector<4x1x1xf32>
    %79 = vector.broadcast %78 : vector<4x1x1xf32> to vector<4x11x11xf32>
    %80 = arith.mulf %77, %79 : vector<4x11x11xf32>
    %cst_22 = arith.constant dense<0.000000e+00> : vector<11x11xf32>
    %81 = vector.multi_reduction <add>, %80, %cst_22 [0] : vector<4x11x11xf32> to vector<11x11xf32>
    %82 = arith.addf %76, %81 : vector<11x11xf32>
    %83 = vector.extract_strided_slice %5 {offsets = [0, 0, 2], sizes = [4, 16, 11], strides = [1, 1, 1]} : vector<4x16x16xf32> to vector<4x16x11xf32>
    %84 = vector.extract_strided_slice %2 {offsets = [0, 0, 2], sizes = [4, 6, 1], strides = [1, 1, 1]} : vector<4x6x6xf32> to vector<4x6x1xf32>
    %85 = vector.extract_strided_slice %83 {offsets = [0, 0, 0], sizes = [4, 11, 11], strides = [1, 1, 1]} : vector<4x16x11xf32> to vector<4x11x11xf32>
    %86 = vector.extract_strided_slice %84 {offsets = [0, 0, 0], sizes = [4, 1, 1], strides = [1, 1, 1]} : vector<4x6x1xf32> to vector<4x1x1xf32>
    %87 = vector.broadcast %86 : vector<4x1x1xf32> to vector<4x11x11xf32>
    %88 = arith.mulf %85, %87 : vector<4x11x11xf32>
    %cst_23 = arith.constant dense<0.000000e+00> : vector<11x11xf32>
    %89 = vector.multi_reduction <add>, %88, %cst_23 [0] : vector<4x11x11xf32> to vector<11x11xf32>
    %90 = arith.addf %82, %89 : vector<11x11xf32>
    %91 = vector.extract_strided_slice %83 {offsets = [0, 1, 0], sizes = [4, 11, 11], strides = [1, 1, 1]} : vector<4x16x11xf32> to vector<4x11x11xf32>
    %92 = vector.extract_strided_slice %84 {offsets = [0, 1, 0], sizes = [4, 1, 1], strides = [1, 1, 1]} : vector<4x6x1xf32> to vector<4x1x1xf32>
    %93 = vector.broadcast %92 : vector<4x1x1xf32> to vector<4x11x11xf32>
    %94 = arith.mulf %91, %93 : vector<4x11x11xf32>
    %cst_24 = arith.constant dense<0.000000e+00> : vector<11x11xf32>
    %95 = vector.multi_reduction <add>, %94, %cst_24 [0] : vector<4x11x11xf32> to vector<11x11xf32>
    %96 = arith.addf %90, %95 : vector<11x11xf32>
    %97 = vector.extract_strided_slice %83 {offsets = [0, 2, 0], sizes = [4, 11, 11], strides = [1, 1, 1]} : vector<4x16x11xf32> to vector<4x11x11xf32>
    %98 = vector.extract_strided_slice %84 {offsets = [0, 2, 0], sizes = [4, 1, 1], strides = [1, 1, 1]} : vector<4x6x1xf32> to vector<4x1x1xf32>
    %99 = vector.broadcast %98 : vector<4x1x1xf32> to vector<4x11x11xf32>
    %100 = arith.mulf %97, %99 : vector<4x11x11xf32>
    %cst_25 = arith.constant dense<0.000000e+00> : vector<11x11xf32>
    %101 = vector.multi_reduction <add>, %100, %cst_25 [0] : vector<4x11x11xf32> to vector<11x11xf32>
    %102 = arith.addf %96, %101 : vector<11x11xf32>
    %103 = vector.extract_strided_slice %83 {offsets = [0, 3, 0], sizes = [4, 11, 11], strides = [1, 1, 1]} : vector<4x16x11xf32> to vector<4x11x11xf32>
    %104 = vector.extract_strided_slice %84 {offsets = [0, 3, 0], sizes = [4, 1, 1], strides = [1, 1, 1]} : vector<4x6x1xf32> to vector<4x1x1xf32>
    %105 = vector.broadcast %104 : vector<4x1x1xf32> to vector<4x11x11xf32>
    %106 = arith.mulf %103, %105 : vector<4x11x11xf32>
    %cst_26 = arith.constant dense<0.000000e+00> : vector<11x11xf32>
    %107 = vector.multi_reduction <add>, %106, %cst_26 [0] : vector<4x11x11xf32> to vector<11x11xf32>
    %108 = arith.addf %102, %107 : vector<11x11xf32>
    %109 = vector.extract_strided_slice %83 {offsets = [0, 4, 0], sizes = [4, 11, 11], strides = [1, 1, 1]} : vector<4x16x11xf32> to vector<4x11x11xf32>
    %110 = vector.extract_strided_slice %84 {offsets = [0, 4, 0], sizes = [4, 1, 1], strides = [1, 1, 1]} : vector<4x6x1xf32> to vector<4x1x1xf32>
    %111 = vector.broadcast %110 : vector<4x1x1xf32> to vector<4x11x11xf32>
    %112 = arith.mulf %109, %111 : vector<4x11x11xf32>
    %cst_27 = arith.constant dense<0.000000e+00> : vector<11x11xf32>
    %113 = vector.multi_reduction <add>, %112, %cst_27 [0] : vector<4x11x11xf32> to vector<11x11xf32>
    %114 = arith.addf %108, %113 : vector<11x11xf32>
    %115 = vector.extract_strided_slice %83 {offsets = [0, 5, 0], sizes = [4, 11, 11], strides = [1, 1, 1]} : vector<4x16x11xf32> to vector<4x11x11xf32>
    %116 = vector.extract_strided_slice %84 {offsets = [0, 5, 0], sizes = [4, 1, 1], strides = [1, 1, 1]} : vector<4x6x1xf32> to vector<4x1x1xf32>
    %117 = vector.broadcast %116 : vector<4x1x1xf32> to vector<4x11x11xf32>
    %118 = arith.mulf %115, %117 : vector<4x11x11xf32>
    %cst_28 = arith.constant dense<0.000000e+00> : vector<11x11xf32>
    %119 = vector.multi_reduction <add>, %118, %cst_28 [0] : vector<4x11x11xf32> to vector<11x11xf32>
    %120 = arith.addf %114, %119 : vector<11x11xf32>
    %121 = vector.extract_strided_slice %5 {offsets = [0, 0, 3], sizes = [4, 16, 11], strides = [1, 1, 1]} : vector<4x16x16xf32> to vector<4x16x11xf32>
    %122 = vector.extract_strided_slice %2 {offsets = [0, 0, 3], sizes = [4, 6, 1], strides = [1, 1, 1]} : vector<4x6x6xf32> to vector<4x6x1xf32>
    %123 = vector.extract_strided_slice %121 {offsets = [0, 0, 0], sizes = [4, 11, 11], strides = [1, 1, 1]} : vector<4x16x11xf32> to vector<4x11x11xf32>
    %124 = vector.extract_strided_slice %122 {offsets = [0, 0, 0], sizes = [4, 1, 1], strides = [1, 1, 1]} : vector<4x6x1xf32> to vector<4x1x1xf32>
    %125 = vector.broadcast %124 : vector<4x1x1xf32> to vector<4x11x11xf32>
    %126 = arith.mulf %123, %125 : vector<4x11x11xf32>
    %cst_29 = arith.constant dense<0.000000e+00> : vector<11x11xf32>
    %127 = vector.multi_reduction <add>, %126, %cst_29 [0] : vector<4x11x11xf32> to vector<11x11xf32>
    %128 = arith.addf %120, %127 : vector<11x11xf32>
    %129 = vector.extract_strided_slice %121 {offsets = [0, 1, 0], sizes = [4, 11, 11], strides = [1, 1, 1]} : vector<4x16x11xf32> to vector<4x11x11xf32>
    %130 = vector.extract_strided_slice %122 {offsets = [0, 1, 0], sizes = [4, 1, 1], strides = [1, 1, 1]} : vector<4x6x1xf32> to vector<4x1x1xf32>
    %131 = vector.broadcast %130 : vector<4x1x1xf32> to vector<4x11x11xf32>
    %132 = arith.mulf %129, %131 : vector<4x11x11xf32>
    %cst_30 = arith.constant dense<0.000000e+00> : vector<11x11xf32>
    %133 = vector.multi_reduction <add>, %132, %cst_30 [0] : vector<4x11x11xf32> to vector<11x11xf32>
    %134 = arith.addf %128, %133 : vector<11x11xf32>
    %135 = vector.extract_strided_slice %121 {offsets = [0, 2, 0], sizes = [4, 11, 11], strides = [1, 1, 1]} : vector<4x16x11xf32> to vector<4x11x11xf32>
    %136 = vector.extract_strided_slice %122 {offsets = [0, 2, 0], sizes = [4, 1, 1], strides = [1, 1, 1]} : vector<4x6x1xf32> to vector<4x1x1xf32>
    %137 = vector.broadcast %136 : vector<4x1x1xf32> to vector<4x11x11xf32>
    %138 = arith.mulf %135, %137 : vector<4x11x11xf32>
    %cst_31 = arith.constant dense<0.000000e+00> : vector<11x11xf32>
    %139 = vector.multi_reduction <add>, %138, %cst_31 [0] : vector<4x11x11xf32> to vector<11x11xf32>
    %140 = arith.addf %134, %139 : vector<11x11xf32>
    %141 = vector.extract_strided_slice %121 {offsets = [0, 3, 0], sizes = [4, 11, 11], strides = [1, 1, 1]} : vector<4x16x11xf32> to vector<4x11x11xf32>
    %142 = vector.extract_strided_slice %122 {offsets = [0, 3, 0], sizes = [4, 1, 1], strides = [1, 1, 1]} : vector<4x6x1xf32> to vector<4x1x1xf32>
    %143 = vector.broadcast %142 : vector<4x1x1xf32> to vector<4x11x11xf32>
    %144 = arith.mulf %141, %143 : vector<4x11x11xf32>
    %cst_32 = arith.constant dense<0.000000e+00> : vector<11x11xf32>
    %145 = vector.multi_reduction <add>, %144, %cst_32 [0] : vector<4x11x11xf32> to vector<11x11xf32>
    %146 = arith.addf %140, %145 : vector<11x11xf32>
    %147 = vector.extract_strided_slice %121 {offsets = [0, 4, 0], sizes = [4, 11, 11], strides = [1, 1, 1]} : vector<4x16x11xf32> to vector<4x11x11xf32>
    %148 = vector.extract_strided_slice %122 {offsets = [0, 4, 0], sizes = [4, 1, 1], strides = [1, 1, 1]} : vector<4x6x1xf32> to vector<4x1x1xf32>
    %149 = vector.broadcast %148 : vector<4x1x1xf32> to vector<4x11x11xf32>
    %150 = arith.mulf %147, %149 : vector<4x11x11xf32>
    %cst_33 = arith.constant dense<0.000000e+00> : vector<11x11xf32>
    %151 = vector.multi_reduction <add>, %150, %cst_33 [0] : vector<4x11x11xf32> to vector<11x11xf32>
    %152 = arith.addf %146, %151 : vector<11x11xf32>
    %153 = vector.extract_strided_slice %121 {offsets = [0, 5, 0], sizes = [4, 11, 11], strides = [1, 1, 1]} : vector<4x16x11xf32> to vector<4x11x11xf32>
    %154 = vector.extract_strided_slice %122 {offsets = [0, 5, 0], sizes = [4, 1, 1], strides = [1, 1, 1]} : vector<4x6x1xf32> to vector<4x1x1xf32>
    %155 = vector.broadcast %154 : vector<4x1x1xf32> to vector<4x11x11xf32>
    %156 = arith.mulf %153, %155 : vector<4x11x11xf32>
    %cst_34 = arith.constant dense<0.000000e+00> : vector<11x11xf32>
    %157 = vector.multi_reduction <add>, %156, %cst_34 [0] : vector<4x11x11xf32> to vector<11x11xf32>
    %158 = arith.addf %152, %157 : vector<11x11xf32>
    %159 = vector.extract_strided_slice %5 {offsets = [0, 0, 4], sizes = [4, 16, 11], strides = [1, 1, 1]} : vector<4x16x16xf32> to vector<4x16x11xf32>
    %160 = vector.extract_strided_slice %2 {offsets = [0, 0, 4], sizes = [4, 6, 1], strides = [1, 1, 1]} : vector<4x6x6xf32> to vector<4x6x1xf32>
    %161 = vector.extract_strided_slice %159 {offsets = [0, 0, 0], sizes = [4, 11, 11], strides = [1, 1, 1]} : vector<4x16x11xf32> to vector<4x11x11xf32>
    %162 = vector.extract_strided_slice %160 {offsets = [0, 0, 0], sizes = [4, 1, 1], strides = [1, 1, 1]} : vector<4x6x1xf32> to vector<4x1x1xf32>
    %163 = vector.broadcast %162 : vector<4x1x1xf32> to vector<4x11x11xf32>
    %164 = arith.mulf %161, %163 : vector<4x11x11xf32>
    %cst_35 = arith.constant dense<0.000000e+00> : vector<11x11xf32>
    %165 = vector.multi_reduction <add>, %164, %cst_35 [0] : vector<4x11x11xf32> to vector<11x11xf32>
    %166 = arith.addf %158, %165 : vector<11x11xf32>
    %167 = vector.extract_strided_slice %159 {offsets = [0, 1, 0], sizes = [4, 11, 11], strides = [1, 1, 1]} : vector<4x16x11xf32> to vector<4x11x11xf32>
    %168 = vector.extract_strided_slice %160 {offsets = [0, 1, 0], sizes = [4, 1, 1], strides = [1, 1, 1]} : vector<4x6x1xf32> to vector<4x1x1xf32>
    %169 = vector.broadcast %168 : vector<4x1x1xf32> to vector<4x11x11xf32>
    %170 = arith.mulf %167, %169 : vector<4x11x11xf32>
    %cst_36 = arith.constant dense<0.000000e+00> : vector<11x11xf32>
    %171 = vector.multi_reduction <add>, %170, %cst_36 [0] : vector<4x11x11xf32> to vector<11x11xf32>
    %172 = arith.addf %166, %171 : vector<11x11xf32>
    %173 = vector.extract_strided_slice %159 {offsets = [0, 2, 0], sizes = [4, 11, 11], strides = [1, 1, 1]} : vector<4x16x11xf32> to vector<4x11x11xf32>
    %174 = vector.extract_strided_slice %160 {offsets = [0, 2, 0], sizes = [4, 1, 1], strides = [1, 1, 1]} : vector<4x6x1xf32> to vector<4x1x1xf32>
    %175 = vector.broadcast %174 : vector<4x1x1xf32> to vector<4x11x11xf32>
    %176 = arith.mulf %173, %175 : vector<4x11x11xf32>
    %cst_37 = arith.constant dense<0.000000e+00> : vector<11x11xf32>
    %177 = vector.multi_reduction <add>, %176, %cst_37 [0] : vector<4x11x11xf32> to vector<11x11xf32>
    %178 = arith.addf %172, %177 : vector<11x11xf32>
    %179 = vector.extract_strided_slice %159 {offsets = [0, 3, 0], sizes = [4, 11, 11], strides = [1, 1, 1]} : vector<4x16x11xf32> to vector<4x11x11xf32>
    %180 = vector.extract_strided_slice %160 {offsets = [0, 3, 0], sizes = [4, 1, 1], strides = [1, 1, 1]} : vector<4x6x1xf32> to vector<4x1x1xf32>
    %181 = vector.broadcast %180 : vector<4x1x1xf32> to vector<4x11x11xf32>
    %182 = arith.mulf %179, %181 : vector<4x11x11xf32>
    %cst_38 = arith.constant dense<0.000000e+00> : vector<11x11xf32>
    %183 = vector.multi_reduction <add>, %182, %cst_38 [0] : vector<4x11x11xf32> to vector<11x11xf32>
    %184 = arith.addf %178, %183 : vector<11x11xf32>
    %185 = vector.extract_strided_slice %159 {offsets = [0, 4, 0], sizes = [4, 11, 11], strides = [1, 1, 1]} : vector<4x16x11xf32> to vector<4x11x11xf32>
    %186 = vector.extract_strided_slice %160 {offsets = [0, 4, 0], sizes = [4, 1, 1], strides = [1, 1, 1]} : vector<4x6x1xf32> to vector<4x1x1xf32>
    %187 = vector.broadcast %186 : vector<4x1x1xf32> to vector<4x11x11xf32>
    %188 = arith.mulf %185, %187 : vector<4x11x11xf32>
    %cst_39 = arith.constant dense<0.000000e+00> : vector<11x11xf32>
    %189 = vector.multi_reduction <add>, %188, %cst_39 [0] : vector<4x11x11xf32> to vector<11x11xf32>
    %190 = arith.addf %184, %189 : vector<11x11xf32>
    %191 = vector.extract_strided_slice %159 {offsets = [0, 5, 0], sizes = [4, 11, 11], strides = [1, 1, 1]} : vector<4x16x11xf32> to vector<4x11x11xf32>
    %192 = vector.extract_strided_slice %160 {offsets = [0, 5, 0], sizes = [4, 1, 1], strides = [1, 1, 1]} : vector<4x6x1xf32> to vector<4x1x1xf32>
    %193 = vector.broadcast %192 : vector<4x1x1xf32> to vector<4x11x11xf32>
    %194 = arith.mulf %191, %193 : vector<4x11x11xf32>
    %cst_40 = arith.constant dense<0.000000e+00> : vector<11x11xf32>
    %195 = vector.multi_reduction <add>, %194, %cst_40 [0] : vector<4x11x11xf32> to vector<11x11xf32>
    %196 = arith.addf %190, %195 : vector<11x11xf32>
    %197 = vector.extract_strided_slice %5 {offsets = [0, 0, 5], sizes = [4, 16, 11], strides = [1, 1, 1]} : vector<4x16x16xf32> to vector<4x16x11xf32>
    %198 = vector.extract_strided_slice %2 {offsets = [0, 0, 5], sizes = [4, 6, 1], strides = [1, 1, 1]} : vector<4x6x6xf32> to vector<4x6x1xf32>
    %199 = vector.extract_strided_slice %197 {offsets = [0, 0, 0], sizes = [4, 11, 11], strides = [1, 1, 1]} : vector<4x16x11xf32> to vector<4x11x11xf32>
    %200 = vector.extract_strided_slice %198 {offsets = [0, 0, 0], sizes = [4, 1, 1], strides = [1, 1, 1]} : vector<4x6x1xf32> to vector<4x1x1xf32>
    %201 = vector.broadcast %200 : vector<4x1x1xf32> to vector<4x11x11xf32>
    %202 = arith.mulf %199, %201 : vector<4x11x11xf32>
    %cst_41 = arith.constant dense<0.000000e+00> : vector<11x11xf32>
    %203 = vector.multi_reduction <add>, %202, %cst_41 [0] : vector<4x11x11xf32> to vector<11x11xf32>
    %204 = arith.addf %196, %203 : vector<11x11xf32>
    %205 = vector.extract_strided_slice %197 {offsets = [0, 1, 0], sizes = [4, 11, 11], strides = [1, 1, 1]} : vector<4x16x11xf32> to vector<4x11x11xf32>
    %206 = vector.extract_strided_slice %198 {offsets = [0, 1, 0], sizes = [4, 1, 1], strides = [1, 1, 1]} : vector<4x6x1xf32> to vector<4x1x1xf32>
    %207 = vector.broadcast %206 : vector<4x1x1xf32> to vector<4x11x11xf32>
    %208 = arith.mulf %205, %207 : vector<4x11x11xf32>
    %cst_42 = arith.constant dense<0.000000e+00> : vector<11x11xf32>
    %209 = vector.multi_reduction <add>, %208, %cst_42 [0] : vector<4x11x11xf32> to vector<11x11xf32>
    %210 = arith.addf %204, %209 : vector<11x11xf32>
    %211 = vector.extract_strided_slice %197 {offsets = [0, 2, 0], sizes = [4, 11, 11], strides = [1, 1, 1]} : vector<4x16x11xf32> to vector<4x11x11xf32>
    %212 = vector.extract_strided_slice %198 {offsets = [0, 2, 0], sizes = [4, 1, 1], strides = [1, 1, 1]} : vector<4x6x1xf32> to vector<4x1x1xf32>
    %213 = vector.broadcast %212 : vector<4x1x1xf32> to vector<4x11x11xf32>
    %214 = arith.mulf %211, %213 : vector<4x11x11xf32>
    %cst_43 = arith.constant dense<0.000000e+00> : vector<11x11xf32>
    %215 = vector.multi_reduction <add>, %214, %cst_43 [0] : vector<4x11x11xf32> to vector<11x11xf32>
    %216 = arith.addf %210, %215 : vector<11x11xf32>
    %217 = vector.extract_strided_slice %197 {offsets = [0, 3, 0], sizes = [4, 11, 11], strides = [1, 1, 1]} : vector<4x16x11xf32> to vector<4x11x11xf32>
    %218 = vector.extract_strided_slice %198 {offsets = [0, 3, 0], sizes = [4, 1, 1], strides = [1, 1, 1]} : vector<4x6x1xf32> to vector<4x1x1xf32>
    %219 = vector.broadcast %218 : vector<4x1x1xf32> to vector<4x11x11xf32>
    %220 = arith.mulf %217, %219 : vector<4x11x11xf32>
    %cst_44 = arith.constant dense<0.000000e+00> : vector<11x11xf32>
    %221 = vector.multi_reduction <add>, %220, %cst_44 [0] : vector<4x11x11xf32> to vector<11x11xf32>
    %222 = arith.addf %216, %221 : vector<11x11xf32>
    %223 = vector.extract_strided_slice %197 {offsets = [0, 4, 0], sizes = [4, 11, 11], strides = [1, 1, 1]} : vector<4x16x11xf32> to vector<4x11x11xf32>
    %224 = vector.extract_strided_slice %198 {offsets = [0, 4, 0], sizes = [4, 1, 1], strides = [1, 1, 1]} : vector<4x6x1xf32> to vector<4x1x1xf32>
    %225 = vector.broadcast %224 : vector<4x1x1xf32> to vector<4x11x11xf32>
    %226 = arith.mulf %223, %225 : vector<4x11x11xf32>
    %cst_45 = arith.constant dense<0.000000e+00> : vector<11x11xf32>
    %227 = vector.multi_reduction <add>, %226, %cst_45 [0] : vector<4x11x11xf32> to vector<11x11xf32>
    %228 = arith.addf %222, %227 : vector<11x11xf32>
    %229 = vector.extract_strided_slice %197 {offsets = [0, 5, 0], sizes = [4, 11, 11], strides = [1, 1, 1]} : vector<4x16x11xf32> to vector<4x11x11xf32>
    %230 = vector.extract_strided_slice %198 {offsets = [0, 5, 0], sizes = [4, 1, 1], strides = [1, 1, 1]} : vector<4x6x1xf32> to vector<4x1x1xf32>
    %231 = vector.broadcast %230 : vector<4x1x1xf32> to vector<4x11x11xf32>
    %232 = arith.mulf %229, %231 : vector<4x11x11xf32>
    %cst_46 = arith.constant dense<0.000000e+00> : vector<11x11xf32>
    %233 = vector.multi_reduction <add>, %232, %cst_46 [0] : vector<4x11x11xf32> to vector<11x11xf32>
    %234 = arith.addf %228, %233 : vector<11x11xf32>
    %cst_47 = arith.constant 2.000000e-01 : f32
    %235 = vector.broadcast %cst_47 : f32 to vector<11x11xf32>
    %236 = arith.mulf %234, %235 : vector<11x11xf32>
    %c0_48 = arith.constant 0 : index
    %c0_49 = arith.constant 0 : index
    %c0_50 = arith.constant 0 : index
    %237 = vector.load %arg3[%c0_48, %c0_49, %c0_50] : memref<2x11x11xf32, #tpu.memory_space<vmem>>, vector<1x11x11xf32>
    %238 = vector.shape_cast %237 : vector<1x11x11xf32> to vector<11x11xf32>
    %239 = vector.shape_cast %236 : vector<11x11xf32> to vector<1x11x11xf32>
    tpu.vector_store %arg3[%c0_48, %c0_49, %c0_50], %239 {strides = array<i32>} : memref<2x11x11xf32, #tpu.memory_space<vmem>>, vector<1x11x11xf32>,
    %c1 = arith.constant 1 : index
    %c0_51 = arith.constant 0 : index
    %c0_52 = arith.constant 0 : index
    %c0_53 = arith.constant 0 : index
    %c0_54 = arith.constant 0 : index
    %240 = vector.load %arg1[%c1, %c0_51, %c0_52, %c0_53, %c0_54] : memref<2x4x3x6x6xf32, #tpu.memory_space<vmem>>, vector<1x4x3x6x6xf32>
    %241 = vector.shape_cast %240 : vector<1x4x3x6x6xf32> to vector<4x3x6x6xf32>
    %cst_55 = arith.constant dense<0xFF800000> : vector<4x6x6xf32>
    %242 = vector.multi_reduction <maximumf>, %241, %cst_55 [1] : vector<4x3x6x6xf32> to vector<4x6x6xf32>
    %c1_56 = arith.constant 1 : index
    %c0_57 = arith.constant 0 : index
    %c0_58 = arith.constant 0 : index
    %c0_59 = arith.constant 0 : index
    %c0_60 = arith.constant 0 : index
    %243 = vector.load %arg2[%c1_56, %c0_57, %c0_58, %c0_59, %c0_60] : memref<2x4x3x16x16xf32, #tpu.memory_space<vmem>>, vector<1x4x3x16x16xf32>
    %244 = vector.shape_cast %243 : vector<1x4x3x16x16xf32> to vector<4x3x16x16xf32>
    %cst_61 = arith.constant dense<0xFF800000> : vector<4x16x16xf32>
    %245 = vector.multi_reduction <maximumf>, %244, %cst_61 [1] : vector<4x3x16x16xf32> to vector<4x16x16xf32>
    %cst_62 = arith.constant 0.000000e+00 : f32
    %246 = vector.broadcast %cst_62 : f32 to vector<11x11xf32>
    %247 = vector.extract_strided_slice %245 {offsets = [0, 0, 0], sizes = [4, 16, 11], strides = [1, 1, 1]} : vector<4x16x16xf32> to vector<4x16x11xf32>
    %248 = vector.extract_strided_slice %242 {offsets = [0, 0, 0], sizes = [4, 6, 1], strides = [1, 1, 1]} : vector<4x6x6xf32> to vector<4x6x1xf32>
    %249 = vector.extract_strided_slice %247 {offsets = [0, 0, 0], sizes = [4, 11, 11], strides = [1, 1, 1]} : vector<4x16x11xf32> to vector<4x11x11xf32>
    %250 = vector.extract_strided_slice %248 {offsets = [0, 0, 0], sizes = [4, 1, 1], strides = [1, 1, 1]} : vector<4x6x1xf32> to vector<4x1x1xf32>
    %251 = vector.broadcast %250 : vector<4x1x1xf32> to vector<4x11x11xf32>
    %252 = arith.mulf %249, %251 : vector<4x11x11xf32>
    %cst_63 = arith.constant dense<0.000000e+00> : vector<11x11xf32>
    %253 = vector.multi_reduction <add>, %252, %cst_63 [0] : vector<4x11x11xf32> to vector<11x11xf32>
    %254 = arith.addf %246, %253 : vector<11x11xf32>
    %255 = vector.extract_strided_slice %247 {offsets = [0, 1, 0], sizes = [4, 11, 11], strides = [1, 1, 1]} : vector<4x16x11xf32> to vector<4x11x11xf32>
    %256 = vector.extract_strided_slice %248 {offsets = [0, 1, 0], sizes = [4, 1, 1], strides = [1, 1, 1]} : vector<4x6x1xf32> to vector<4x1x1xf32>
    %257 = vector.broadcast %256 : vector<4x1x1xf32> to vector<4x11x11xf32>
    %258 = arith.mulf %255, %257 : vector<4x11x11xf32>
    %cst_64 = arith.constant dense<0.000000e+00> : vector<11x11xf32>
    %259 = vector.multi_reduction <add>, %258, %cst_64 [0] : vector<4x11x11xf32> to vector<11x11xf32>
    %260 = arith.addf %254, %259 : vector<11x11xf32>
    %261 = vector.extract_strided_slice %247 {offsets = [0, 2, 0], sizes = [4, 11, 11], strides = [1, 1, 1]} : vector<4x16x11xf32> to vector<4x11x11xf32>
    %262 = vector.extract_strided_slice %248 {offsets = [0, 2, 0], sizes = [4, 1, 1], strides = [1, 1, 1]} : vector<4x6x1xf32> to vector<4x1x1xf32>
    %263 = vector.broadcast %262 : vector<4x1x1xf32> to vector<4x11x11xf32>
    %264 = arith.mulf %261, %263 : vector<4x11x11xf32>
    %cst_65 = arith.constant dense<0.000000e+00> : vector<11x11xf32>
    %265 = vector.multi_reduction <add>, %264, %cst_65 [0] : vector<4x11x11xf32> to vector<11x11xf32>
    %266 = arith.addf %260, %265 : vector<11x11xf32>
    %267 = vector.extract_strided_slice %247 {offsets = [0, 3, 0], sizes = [4, 11, 11], strides = [1, 1, 1]} : vector<4x16x11xf32> to vector<4x11x11xf32>
    %268 = vector.extract_strided_slice %248 {offsets = [0, 3, 0], sizes = [4, 1, 1], strides = [1, 1, 1]} : vector<4x6x1xf32> to vector<4x1x1xf32>
    %269 = vector.broadcast %268 : vector<4x1x1xf32> to vector<4x11x11xf32>
    %270 = arith.mulf %267, %269 : vector<4x11x11xf32>
    %cst_66 = arith.constant dense<0.000000e+00> : vector<11x11xf32>
    %271 = vector.multi_reduction <add>, %270, %cst_66 [0] : vector<4x11x11xf32> to vector<11x11xf32>
    %272 = arith.addf %266, %271 : vector<11x11xf32>
    %273 = vector.extract_strided_slice %247 {offsets = [0, 4, 0], sizes = [4, 11, 11], strides = [1, 1, 1]} : vector<4x16x11xf32> to vector<4x11x11xf32>
    %274 = vector.extract_strided_slice %248 {offsets = [0, 4, 0], sizes = [4, 1, 1], strides = [1, 1, 1]} : vector<4x6x1xf32> to vector<4x1x1xf32>
    %275 = vector.broadcast %274 : vector<4x1x1xf32> to vector<4x11x11xf32>
    %276 = arith.mulf %273, %275 : vector<4x11x11xf32>
    %cst_67 = arith.constant dense<0.000000e+00> : vector<11x11xf32>
    %277 = vector.multi_reduction <add>, %276, %cst_67 [0] : vector<4x11x11xf32> to vector<11x11xf32>
    %278 = arith.addf %272, %277 : vector<11x11xf32>
    %279 = vector.extract_strided_slice %247 {offsets = [0, 5, 0], sizes = [4, 11, 11], strides = [1, 1, 1]} : vector<4x16x11xf32> to vector<4x11x11xf32>
    %280 = vector.extract_strided_slice %248 {offsets = [0, 5, 0], sizes = [4, 1, 1], strides = [1, 1, 1]} : vector<4x6x1xf32> to vector<4x1x1xf32>
    %281 = vector.broadcast %280 : vector<4x1x1xf32> to vector<4x11x11xf32>
    %282 = arith.mulf %279, %281 : vector<4x11x11xf32>
    %cst_68 = arith.constant dense<0.000000e+00> : vector<11x11xf32>
    %283 = vector.multi_reduction <add>, %282, %cst_68 [0] : vector<4x11x11xf32> to vector<11x11xf32>
    %284 = arith.addf %278, %283 : vector<11x11xf32>
    %285 = vector.extract_strided_slice %245 {offsets = [0, 0, 1], sizes = [4, 16, 11], strides = [1, 1, 1]} : vector<4x16x16xf32> to vector<4x16x11xf32>
    %286 = vector.extract_strided_slice %242 {offsets = [0, 0, 1], sizes = [4, 6, 1], strides = [1, 1, 1]} : vector<4x6x6xf32> to vector<4x6x1xf32>
    %287 = vector.extract_strided_slice %285 {offsets = [0, 0, 0], sizes = [4, 11, 11], strides = [1, 1, 1]} : vector<4x16x11xf32> to vector<4x11x11xf32>
    %288 = vector.extract_strided_slice %286 {offsets = [0, 0, 0], sizes = [4, 1, 1], strides = [1, 1, 1]} : vector<4x6x1xf32> to vector<4x1x1xf32>
    %289 = vector.broadcast %288 : vector<4x1x1xf32> to vector<4x11x11xf32>
    %290 = arith.mulf %287, %289 : vector<4x11x11xf32>
    %cst_69 = arith.constant dense<0.000000e+00> : vector<11x11xf32>
    %291 = vector.multi_reduction <add>, %290, %cst_69 [0] : vector<4x11x11xf32> to vector<11x11xf32>
    %292 = arith.addf %284, %291 : vector<11x11xf32>
    %293 = vector.extract_strided_slice %285 {offsets = [0, 1, 0], sizes = [4, 11, 11], strides = [1, 1, 1]} : vector<4x16x11xf32> to vector<4x11x11xf32>
    %294 = vector.extract_strided_slice %286 {offsets = [0, 1, 0], sizes = [4, 1, 1], strides = [1, 1, 1]} : vector<4x6x1xf32> to vector<4x1x1xf32>
    %295 = vector.broadcast %294 : vector<4x1x1xf32> to vector<4x11x11xf32>
    %296 = arith.mulf %293, %295 : vector<4x11x11xf32>
    %cst_70 = arith.constant dense<0.000000e+00> : vector<11x11xf32>
    %297 = vector.multi_reduction <add>, %296, %cst_70 [0] : vector<4x11x11xf32> to vector<11x11xf32>
    %298 = arith.addf %292, %297 : vector<11x11xf32>
    %299 = vector.extract_strided_slice %285 {offsets = [0, 2, 0], sizes = [4, 11, 11], strides = [1, 1, 1]} : vector<4x16x11xf32> to vector<4x11x11xf32>
    %300 = vector.extract_strided_slice %286 {offsets = [0, 2, 0], sizes = [4, 1, 1], strides = [1, 1, 1]} : vector<4x6x1xf32> to vector<4x1x1xf32>
    %301 = vector.broadcast %300 : vector<4x1x1xf32> to vector<4x11x11xf32>
    %302 = arith.mulf %299, %301 : vector<4x11x11xf32>
    %cst_71 = arith.constant dense<0.000000e+00> : vector<11x11xf32>
    %303 = vector.multi_reduction <add>, %302, %cst_71 [0] : vector<4x11x11xf32> to vector<11x11xf32>
    %304 = arith.addf %298, %303 : vector<11x11xf32>
    %305 = vector.extract_strided_slice %285 {offsets = [0, 3, 0], sizes = [4, 11, 11], strides = [1, 1, 1]} : vector<4x16x11xf32> to vector<4x11x11xf32>
    %306 = vector.extract_strided_slice %286 {offsets = [0, 3, 0], sizes = [4, 1, 1], strides = [1, 1, 1]} : vector<4x6x1xf32> to vector<4x1x1xf32>
    %307 = vector.broadcast %306 : vector<4x1x1xf32> to vector<4x11x11xf32>
    %308 = arith.mulf %305, %307 : vector<4x11x11xf32>
    %cst_72 = arith.constant dense<0.000000e+00> : vector<11x11xf32>
    %309 = vector.multi_reduction <add>, %308, %cst_72 [0] : vector<4x11x11xf32> to vector<11x11xf32>
    %310 = arith.addf %304, %309 : vector<11x11xf32>
    %311 = vector.extract_strided_slice %285 {offsets = [0, 4, 0], sizes = [4, 11, 11], strides = [1, 1, 1]} : vector<4x16x11xf32> to vector<4x11x11xf32>
    %312 = vector.extract_strided_slice %286 {offsets = [0, 4, 0], sizes = [4, 1, 1], strides = [1, 1, 1]} : vector<4x6x1xf32> to vector<4x1x1xf32>
    %313 = vector.broadcast %312 : vector<4x1x1xf32> to vector<4x11x11xf32>
    %314 = arith.mulf %311, %313 : vector<4x11x11xf32>
    %cst_73 = arith.constant dense<0.000000e+00> : vector<11x11xf32>
    %315 = vector.multi_reduction <add>, %314, %cst_73 [0] : vector<4x11x11xf32> to vector<11x11xf32>
    %316 = arith.addf %310, %315 : vector<11x11xf32>
    %317 = vector.extract_strided_slice %285 {offsets = [0, 5, 0], sizes = [4, 11, 11], strides = [1, 1, 1]} : vector<4x16x11xf32> to vector<4x11x11xf32>
    %318 = vector.extract_strided_slice %286 {offsets = [0, 5, 0], sizes = [4, 1, 1], strides = [1, 1, 1]} : vector<4x6x1xf32> to vector<4x1x1xf32>
    %319 = vector.broadcast %318 : vector<4x1x1xf32> to vector<4x11x11xf32>
    %320 = arith.mulf %317, %319 : vector<4x11x11xf32>
    %cst_74 = arith.constant dense<0.000000e+00> : vector<11x11xf32>
    %321 = vector.multi_reduction <add>, %320, %cst_74 [0] : vector<4x11x11xf32> to vector<11x11xf32>
    %322 = arith.addf %316, %321 : vector<11x11xf32>
    %323 = vector.extract_strided_slice %245 {offsets = [0, 0, 2], sizes = [4, 16, 11], strides = [1, 1, 1]} : vector<4x16x16xf32> to vector<4x16x11xf32>
    %324 = vector.extract_strided_slice %242 {offsets = [0, 0, 2], sizes = [4, 6, 1], strides = [1, 1, 1]} : vector<4x6x6xf32> to vector<4x6x1xf32>
    %325 = vector.extract_strided_slice %323 {offsets = [0, 0, 0], sizes = [4, 11, 11], strides = [1, 1, 1]} : vector<4x16x11xf32> to vector<4x11x11xf32>
    %326 = vector.extract_strided_slice %324 {offsets = [0, 0, 0], sizes = [4, 1, 1], strides = [1, 1, 1]} : vector<4x6x1xf32> to vector<4x1x1xf32>
    %327 = vector.broadcast %326 : vector<4x1x1xf32> to vector<4x11x11xf32>
    %328 = arith.mulf %325, %327 : vector<4x11x11xf32>
    %cst_75 = arith.constant dense<0.000000e+00> : vector<11x11xf32>
    %329 = vector.multi_reduction <add>, %328, %cst_75 [0] : vector<4x11x11xf32> to vector<11x11xf32>
    %330 = arith.addf %322, %329 : vector<11x11xf32>
    %331 = vector.extract_strided_slice %323 {offsets = [0, 1, 0], sizes = [4, 11, 11], strides = [1, 1, 1]} : vector<4x16x11xf32> to vector<4x11x11xf32>
    %332 = vector.extract_strided_slice %324 {offsets = [0, 1, 0], sizes = [4, 1, 1], strides = [1, 1, 1]} : vector<4x6x1xf32> to vector<4x1x1xf32>
    %333 = vector.broadcast %332 : vector<4x1x1xf32> to vector<4x11x11xf32>
    %334 = arith.mulf %331, %333 : vector<4x11x11xf32>
    %cst_76 = arith.constant dense<0.000000e+00> : vector<11x11xf32>
    %335 = vector.multi_reduction <add>, %334, %cst_76 [0] : vector<4x11x11xf32> to vector<11x11xf32>
    %336 = arith.addf %330, %335 : vector<11x11xf32>
    %337 = vector.extract_strided_slice %323 {offsets = [0, 2, 0], sizes = [4, 11, 11], strides = [1, 1, 1]} : vector<4x16x11xf32> to vector<4x11x11xf32>
    %338 = vector.extract_strided_slice %324 {offsets = [0, 2, 0], sizes = [4, 1, 1], strides = [1, 1, 1]} : vector<4x6x1xf32> to vector<4x1x1xf32>
    %339 = vector.broadcast %338 : vector<4x1x1xf32> to vector<4x11x11xf32>
    %340 = arith.mulf %337, %339 : vector<4x11x11xf32>
    %cst_77 = arith.constant dense<0.000000e+00> : vector<11x11xf32>
    %341 = vector.multi_reduction <add>, %340, %cst_77 [0] : vector<4x11x11xf32> to vector<11x11xf32>
    %342 = arith.addf %336, %341 : vector<11x11xf32>
    %343 = vector.extract_strided_slice %323 {offsets = [0, 3, 0], sizes = [4, 11, 11], strides = [1, 1, 1]} : vector<4x16x11xf32> to vector<4x11x11xf32>
    %344 = vector.extract_strided_slice %324 {offsets = [0, 3, 0], sizes = [4, 1, 1], strides = [1, 1, 1]} : vector<4x6x1xf32> to vector<4x1x1xf32>
    %345 = vector.broadcast %344 : vector<4x1x1xf32> to vector<4x11x11xf32>
    %346 = arith.mulf %343, %345 : vector<4x11x11xf32>
    %cst_78 = arith.constant dense<0.000000e+00> : vector<11x11xf32>
    %347 = vector.multi_reduction <add>, %346, %cst_78 [0] : vector<4x11x11xf32> to vector<11x11xf32>
    %348 = arith.addf %342, %347 : vector<11x11xf32>
    %349 = vector.extract_strided_slice %323 {offsets = [0, 4, 0], sizes = [4, 11, 11], strides = [1, 1, 1]} : vector<4x16x11xf32> to vector<4x11x11xf32>
    %350 = vector.extract_strided_slice %324 {offsets = [0, 4, 0], sizes = [4, 1, 1], strides = [1, 1, 1]} : vector<4x6x1xf32> to vector<4x1x1xf32>
    %351 = vector.broadcast %350 : vector<4x1x1xf32> to vector<4x11x11xf32>
    %352 = arith.mulf %349, %351 : vector<4x11x11xf32>
    %cst_79 = arith.constant dense<0.000000e+00> : vector<11x11xf32>
    %353 = vector.multi_reduction <add>, %352, %cst_79 [0] : vector<4x11x11xf32> to vector<11x11xf32>
    %354 = arith.addf %348, %353 : vector<11x11xf32>
    %355 = vector.extract_strided_slice %323 {offsets = [0, 5, 0], sizes = [4, 11, 11], strides = [1, 1, 1]} : vector<4x16x11xf32> to vector<4x11x11xf32>
    %356 = vector.extract_strided_slice %324 {offsets = [0, 5, 0], sizes = [4, 1, 1], strides = [1, 1, 1]} : vector<4x6x1xf32> to vector<4x1x1xf32>
    %357 = vector.broadcast %356 : vector<4x1x1xf32> to vector<4x11x11xf32>
    %358 = arith.mulf %355, %357 : vector<4x11x11xf32>
    %cst_80 = arith.constant dense<0.000000e+00> : vector<11x11xf32>
    %359 = vector.multi_reduction <add>, %358, %cst_80 [0] : vector<4x11x11xf32> to vector<11x11xf32>
    %360 = arith.addf %354, %359 : vector<11x11xf32>
    %361 = vector.extract_strided_slice %245 {offsets = [0, 0, 3], sizes = [4, 16, 11], strides = [1, 1, 1]} : vector<4x16x16xf32> to vector<4x16x11xf32>
    %362 = vector.extract_strided_slice %242 {offsets = [0, 0, 3], sizes = [4, 6, 1], strides = [1, 1, 1]} : vector<4x6x6xf32> to vector<4x6x1xf32>
    %363 = vector.extract_strided_slice %361 {offsets = [0, 0, 0], sizes = [4, 11, 11], strides = [1, 1, 1]} : vector<4x16x11xf32> to vector<4x11x11xf32>
    %364 = vector.extract_strided_slice %362 {offsets = [0, 0, 0], sizes = [4, 1, 1], strides = [1, 1, 1]} : vector<4x6x1xf32> to vector<4x1x1xf32>
    %365 = vector.broadcast %364 : vector<4x1x1xf32> to vector<4x11x11xf32>
    %366 = arith.mulf %363, %365 : vector<4x11x11xf32>
    %cst_81 = arith.constant dense<0.000000e+00> : vector<11x11xf32>
    %367 = vector.multi_reduction <add>, %366, %cst_81 [0] : vector<4x11x11xf32> to vector<11x11xf32>
    %368 = arith.addf %360, %367 : vector<11x11xf32>
    %369 = vector.extract_strided_slice %361 {offsets = [0, 1, 0], sizes = [4, 11, 11], strides = [1, 1, 1]} : vector<4x16x11xf32> to vector<4x11x11xf32>
    %370 = vector.extract_strided_slice %362 {offsets = [0, 1, 0], sizes = [4, 1, 1], strides = [1, 1, 1]} : vector<4x6x1xf32> to vector<4x1x1xf32>
    %371 = vector.broadcast %370 : vector<4x1x1xf32> to vector<4x11x11xf32>
    %372 = arith.mulf %369, %371 : vector<4x11x11xf32>
    %cst_82 = arith.constant dense<0.000000e+00> : vector<11x11xf32>
    %373 = vector.multi_reduction <add>, %372, %cst_82 [0] : vector<4x11x11xf32> to vector<11x11xf32>
    %374 = arith.addf %368, %373 : vector<11x11xf32>
    %375 = vector.extract_strided_slice %361 {offsets = [0, 2, 0], sizes = [4, 11, 11], strides = [1, 1, 1]} : vector<4x16x11xf32> to vector<4x11x11xf32>
    %376 = vector.extract_strided_slice %362 {offsets = [0, 2, 0], sizes = [4, 1, 1], strides = [1, 1, 1]} : vector<4x6x1xf32> to vector<4x1x1xf32>
    %377 = vector.broadcast %376 : vector<4x1x1xf32> to vector<4x11x11xf32>
    %378 = arith.mulf %375, %377 : vector<4x11x11xf32>
    %cst_83 = arith.constant dense<0.000000e+00> : vector<11x11xf32>
    %379 = vector.multi_reduction <add>, %378, %cst_83 [0] : vector<4x11x11xf32> to vector<11x11xf32>
    %380 = arith.addf %374, %379 : vector<11x11xf32>
    %381 = vector.extract_strided_slice %361 {offsets = [0, 3, 0], sizes = [4, 11, 11], strides = [1, 1, 1]} : vector<4x16x11xf32> to vector<4x11x11xf32>
    %382 = vector.extract_strided_slice %362 {offsets = [0, 3, 0], sizes = [4, 1, 1], strides = [1, 1, 1]} : vector<4x6x1xf32> to vector<4x1x1xf32>
    %383 = vector.broadcast %382 : vector<4x1x1xf32> to vector<4x11x11xf32>
    %384 = arith.mulf %381, %383 : vector<4x11x11xf32>
    %cst_84 = arith.constant dense<0.000000e+00> : vector<11x11xf32>
    %385 = vector.multi_reduction <add>, %384, %cst_84 [0] : vector<4x11x11xf32> to vector<11x11xf32>
    %386 = arith.addf %380, %385 : vector<11x11xf32>
    %387 = vector.extract_strided_slice %361 {offsets = [0, 4, 0], sizes = [4, 11, 11], strides = [1, 1, 1]} : vector<4x16x11xf32> to vector<4x11x11xf32>
    %388 = vector.extract_strided_slice %362 {offsets = [0, 4, 0], sizes = [4, 1, 1], strides = [1, 1, 1]} : vector<4x6x1xf32> to vector<4x1x1xf32>
    %389 = vector.broadcast %388 : vector<4x1x1xf32> to vector<4x11x11xf32>
    %390 = arith.mulf %387, %389 : vector<4x11x11xf32>
    %cst_85 = arith.constant dense<0.000000e+00> : vector<11x11xf32>
    %391 = vector.multi_reduction <add>, %390, %cst_85 [0] : vector<4x11x11xf32> to vector<11x11xf32>
    %392 = arith.addf %386, %391 : vector<11x11xf32>
    %393 = vector.extract_strided_slice %361 {offsets = [0, 5, 0], sizes = [4, 11, 11], strides = [1, 1, 1]} : vector<4x16x11xf32> to vector<4x11x11xf32>
    %394 = vector.extract_strided_slice %362 {offsets = [0, 5, 0], sizes = [4, 1, 1], strides = [1, 1, 1]} : vector<4x6x1xf32> to vector<4x1x1xf32>
    %395 = vector.broadcast %394 : vector<4x1x1xf32> to vector<4x11x11xf32>
    %396 = arith.mulf %393, %395 : vector<4x11x11xf32>
    %cst_86 = arith.constant dense<0.000000e+00> : vector<11x11xf32>
    %397 = vector.multi_reduction <add>, %396, %cst_86 [0] : vector<4x11x11xf32> to vector<11x11xf32>
    %398 = arith.addf %392, %397 : vector<11x11xf32>
    %399 = vector.extract_strided_slice %245 {offsets = [0, 0, 4], sizes = [4, 16, 11], strides = [1, 1, 1]} : vector<4x16x16xf32> to vector<4x16x11xf32>
    %400 = vector.extract_strided_slice %242 {offsets = [0, 0, 4], sizes = [4, 6, 1], strides = [1, 1, 1]} : vector<4x6x6xf32> to vector<4x6x1xf32>
    %401 = vector.extract_strided_slice %399 {offsets = [0, 0, 0], sizes = [4, 11, 11], strides = [1, 1, 1]} : vector<4x16x11xf32> to vector<4x11x11xf32>
    %402 = vector.extract_strided_slice %400 {offsets = [0, 0, 0], sizes = [4, 1, 1], strides = [1, 1, 1]} : vector<4x6x1xf32> to vector<4x1x1xf32>
    %403 = vector.broadcast %402 : vector<4x1x1xf32> to vector<4x11x11xf32>
    %404 = arith.mulf %401, %403 : vector<4x11x11xf32>
    %cst_87 = arith.constant dense<0.000000e+00> : vector<11x11xf32>
    %405 = vector.multi_reduction <add>, %404, %cst_87 [0] : vector<4x11x11xf32> to vector<11x11xf32>
    %406 = arith.addf %398, %405 : vector<11x11xf32>
    %407 = vector.extract_strided_slice %399 {offsets = [0, 1, 0], sizes = [4, 11, 11], strides = [1, 1, 1]} : vector<4x16x11xf32> to vector<4x11x11xf32>
    %408 = vector.extract_strided_slice %400 {offsets = [0, 1, 0], sizes = [4, 1, 1], strides = [1, 1, 1]} : vector<4x6x1xf32> to vector<4x1x1xf32>
    %409 = vector.broadcast %408 : vector<4x1x1xf32> to vector<4x11x11xf32>
    %410 = arith.mulf %407, %409 : vector<4x11x11xf32>
    %cst_88 = arith.constant dense<0.000000e+00> : vector<11x11xf32>
    %411 = vector.multi_reduction <add>, %410, %cst_88 [0] : vector<4x11x11xf32> to vector<11x11xf32>
    %412 = arith.addf %406, %411 : vector<11x11xf32>
    %413 = vector.extract_strided_slice %399 {offsets = [0, 2, 0], sizes = [4, 11, 11], strides = [1, 1, 1]} : vector<4x16x11xf32> to vector<4x11x11xf32>
    %414 = vector.extract_strided_slice %400 {offsets = [0, 2, 0], sizes = [4, 1, 1], strides = [1, 1, 1]} : vector<4x6x1xf32> to vector<4x1x1xf32>
    %415 = vector.broadcast %414 : vector<4x1x1xf32> to vector<4x11x11xf32>
    %416 = arith.mulf %413, %415 : vector<4x11x11xf32>
    %cst_89 = arith.constant dense<0.000000e+00> : vector<11x11xf32>
    %417 = vector.multi_reduction <add>, %416, %cst_89 [0] : vector<4x11x11xf32> to vector<11x11xf32>
    %418 = arith.addf %412, %417 : vector<11x11xf32>
    %419 = vector.extract_strided_slice %399 {offsets = [0, 3, 0], sizes = [4, 11, 11], strides = [1, 1, 1]} : vector<4x16x11xf32> to vector<4x11x11xf32>
    %420 = vector.extract_strided_slice %400 {offsets = [0, 3, 0], sizes = [4, 1, 1], strides = [1, 1, 1]} : vector<4x6x1xf32> to vector<4x1x1xf32>
    %421 = vector.broadcast %420 : vector<4x1x1xf32> to vector<4x11x11xf32>
    %422 = arith.mulf %419, %421 : vector<4x11x11xf32>
    %cst_90 = arith.constant dense<0.000000e+00> : vector<11x11xf32>
    %423 = vector.multi_reduction <add>, %422, %cst_90 [0] : vector<4x11x11xf32> to vector<11x11xf32>
    %424 = arith.addf %418, %423 : vector<11x11xf32>
    %425 = vector.extract_strided_slice %399 {offsets = [0, 4, 0], sizes = [4, 11, 11], strides = [1, 1, 1]} : vector<4x16x11xf32> to vector<4x11x11xf32>
    %426 = vector.extract_strided_slice %400 {offsets = [0, 4, 0], sizes = [4, 1, 1], strides = [1, 1, 1]} : vector<4x6x1xf32> to vector<4x1x1xf32>
    %427 = vector.broadcast %426 : vector<4x1x1xf32> to vector<4x11x11xf32>
    %428 = arith.mulf %425, %427 : vector<4x11x11xf32>
    %cst_91 = arith.constant dense<0.000000e+00> : vector<11x11xf32>
    %429 = vector.multi_reduction <add>, %428, %cst_91 [0] : vector<4x11x11xf32> to vector<11x11xf32>
    %430 = arith.addf %424, %429 : vector<11x11xf32>
    %431 = vector.extract_strided_slice %399 {offsets = [0, 5, 0], sizes = [4, 11, 11], strides = [1, 1, 1]} : vector<4x16x11xf32> to vector<4x11x11xf32>
    %432 = vector.extract_strided_slice %400 {offsets = [0, 5, 0], sizes = [4, 1, 1], strides = [1, 1, 1]} : vector<4x6x1xf32> to vector<4x1x1xf32>
    %433 = vector.broadcast %432 : vector<4x1x1xf32> to vector<4x11x11xf32>
    %434 = arith.mulf %431, %433 : vector<4x11x11xf32>
    %cst_92 = arith.constant dense<0.000000e+00> : vector<11x11xf32>
    %435 = vector.multi_reduction <add>, %434, %cst_92 [0] : vector<4x11x11xf32> to vector<11x11xf32>
    %436 = arith.addf %430, %435 : vector<11x11xf32>
    %437 = vector.extract_strided_slice %245 {offsets = [0, 0, 5], sizes = [4, 16, 11], strides = [1, 1, 1]} : vector<4x16x16xf32> to vector<4x16x11xf32>
    %438 = vector.extract_strided_slice %242 {offsets = [0, 0, 5], sizes = [4, 6, 1], strides = [1, 1, 1]} : vector<4x6x6xf32> to vector<4x6x1xf32>
    %439 = vector.extract_strided_slice %437 {offsets = [0, 0, 0], sizes = [4, 11, 11], strides = [1, 1, 1]} : vector<4x16x11xf32> to vector<4x11x11xf32>
    %440 = vector.extract_strided_slice %438 {offsets = [0, 0, 0], sizes = [4, 1, 1], strides = [1, 1, 1]} : vector<4x6x1xf32> to vector<4x1x1xf32>
    %441 = vector.broadcast %440 : vector<4x1x1xf32> to vector<4x11x11xf32>
    %442 = arith.mulf %439, %441 : vector<4x11x11xf32>
    %cst_93 = arith.constant dense<0.000000e+00> : vector<11x11xf32>
    %443 = vector.multi_reduction <add>, %442, %cst_93 [0] : vector<4x11x11xf32> to vector<11x11xf32>
    %444 = arith.addf %436, %443 : vector<11x11xf32>
    %445 = vector.extract_strided_slice %437 {offsets = [0, 1, 0], sizes = [4, 11, 11], strides = [1, 1, 1]} : vector<4x16x11xf32> to vector<4x11x11xf32>
    %446 = vector.extract_strided_slice %438 {offsets = [0, 1, 0], sizes = [4, 1, 1], strides = [1, 1, 1]} : vector<4x6x1xf32> to vector<4x1x1xf32>
    %447 = vector.broadcast %446 : vector<4x1x1xf32> to vector<4x11x11xf32>
    %448 = arith.mulf %445, %447 : vector<4x11x11xf32>
    %cst_94 = arith.constant dense<0.000000e+00> : vector<11x11xf32>
    %449 = vector.multi_reduction <add>, %448, %cst_94 [0] : vector<4x11x11xf32> to vector<11x11xf32>
    %450 = arith.addf %444, %449 : vector<11x11xf32>
    %451 = vector.extract_strided_slice %437 {offsets = [0, 2, 0], sizes = [4, 11, 11], strides = [1, 1, 1]} : vector<4x16x11xf32> to vector<4x11x11xf32>
    %452 = vector.extract_strided_slice %438 {offsets = [0, 2, 0], sizes = [4, 1, 1], strides = [1, 1, 1]} : vector<4x6x1xf32> to vector<4x1x1xf32>
    %453 = vector.broadcast %452 : vector<4x1x1xf32> to vector<4x11x11xf32>
    %454 = arith.mulf %451, %453 : vector<4x11x11xf32>
    %cst_95 = arith.constant dense<0.000000e+00> : vector<11x11xf32>
    %455 = vector.multi_reduction <add>, %454, %cst_95 [0] : vector<4x11x11xf32> to vector<11x11xf32>
    %456 = arith.addf %450, %455 : vector<11x11xf32>
    %457 = vector.extract_strided_slice %437 {offsets = [0, 3, 0], sizes = [4, 11, 11], strides = [1, 1, 1]} : vector<4x16x11xf32> to vector<4x11x11xf32>
    %458 = vector.extract_strided_slice %438 {offsets = [0, 3, 0], sizes = [4, 1, 1], strides = [1, 1, 1]} : vector<4x6x1xf32> to vector<4x1x1xf32>
    %459 = vector.broadcast %458 : vector<4x1x1xf32> to vector<4x11x11xf32>
    %460 = arith.mulf %457, %459 : vector<4x11x11xf32>
    %cst_96 = arith.constant dense<0.000000e+00> : vector<11x11xf32>
    %461 = vector.multi_reduction <add>, %460, %cst_96 [0] : vector<4x11x11xf32> to vector<11x11xf32>
    %462 = arith.addf %456, %461 : vector<11x11xf32>
    %463 = vector.extract_strided_slice %437 {offsets = [0, 4, 0], sizes = [4, 11, 11], strides = [1, 1, 1]} : vector<4x16x11xf32> to vector<4x11x11xf32>
    %464 = vector.extract_strided_slice %438 {offsets = [0, 4, 0], sizes = [4, 1, 1], strides = [1, 1, 1]} : vector<4x6x1xf32> to vector<4x1x1xf32>
    %465 = vector.broadcast %464 : vector<4x1x1xf32> to vector<4x11x11xf32>
    %466 = arith.mulf %463, %465 : vector<4x11x11xf32>
    %cst_97 = arith.constant dense<0.000000e+00> : vector<11x11xf32>
    %467 = vector.multi_reduction <add>, %466, %cst_97 [0] : vector<4x11x11xf32> to vector<11x11xf32>
    %468 = arith.addf %462, %467 : vector<11x11xf32>
    %469 = vector.extract_strided_slice %437 {offsets = [0, 5, 0], sizes = [4, 11, 11], strides = [1, 1, 1]} : vector<4x16x11xf32> to vector<4x11x11xf32>
    %470 = vector.extract_strided_slice %438 {offsets = [0, 5, 0], sizes = [4, 1, 1], strides = [1, 1, 1]} : vector<4x6x1xf32> to vector<4x1x1xf32>
    %471 = vector.broadcast %470 : vector<4x1x1xf32> to vector<4x11x11xf32>
    %472 = arith.mulf %469, %471 : vector<4x11x11xf32>
    %cst_98 = arith.constant dense<0.000000e+00> : vector<11x11xf32>
    %473 = vector.multi_reduction <add>, %472, %cst_98 [0] : vector<4x11x11xf32> to vector<11x11xf32>
    %474 = arith.addf %468, %473 : vector<11x11xf32>
    %cst_99 = arith.constant 2.000000e-01 : f32
    %475 = vector.broadcast %cst_99 : f32 to vector<11x11xf32>
    %476 = arith.mulf %474, %475 : vector<11x11xf32>
    %c1_100 = arith.constant 1 : index
    %c0_101 = arith.constant 0 : index
    %c0_102 = arith.constant 0 : index
    %477 = vector.load %arg3[%c1_100, %c0_101, %c0_102] : memref<2x11x11xf32, #tpu.memory_space<vmem>>, vector<1x11x11xf32>
    %478 = vector.shape_cast %477 : vector<1x11x11xf32> to vector<11x11xf32>
    %479 = vector.shape_cast %476 : vector<11x11xf32> to vector<1x11x11xf32>
    tpu.vector_store %arg3[%c1_100, %c0_101, %c0_102], %479 {strides = array<i32>} : memref<2x11x11xf32, #tpu.memory_space<vmem>>, vector<1x11x11xf32>,
    return
  }
  func.func @transform_0(%arg0: i32) -> (i32, i32, i32, i32, i32) {
    %c0_i32 = arith.constant 0 : i32
    %c0_i32_0 = arith.constant 0 : i32
    %c0_i32_1 = arith.constant 0 : i32
    %c0_i32_2 = arith.constant 0 : i32
    %c0_i32_3 = arith.constant 0 : i32
    return %arg0, %c0_i32, %c0_i32_0, %c0_i32_1, %c0_i32_2 : i32, i32, i32, i32, i32
  }
  func.func @transform_1(%arg0: i32) -> (i32, i32, i32, i32, i32) {
    %c0_i32 = arith.constant 0 : i32
    %c0_i32_0 = arith.constant 0 : i32
    %c0_i32_1 = arith.constant 0 : i32
    %c0_i32_2 = arith.constant 0 : i32
    %c0_i32_3 = arith.constant 0 : i32
    return %arg0, %c0_i32, %c0_i32_0, %c0_i32_1, %c0_i32_2 : i32, i32, i32, i32, i32
  }
  func.func @transform_2(%arg0: i32) -> (i32, i32, i32) {
    %c0_i32 = arith.constant 0 : i32
    %c0_i32_0 = arith.constant 0 : i32
    %c0_i32_1 = arith.constant 0 : i32
    return %arg0, %c0_i32, %c0_i32_0 : i32, i32, i32
  }
}

</mosaic_0001>

<bundles_post_ra>
// kernel: tpu_custom_call.1
= control target key start
LH: loop header
LB: loop body
LE: loop exit
PB: predicated region body
PF: predicated region fallthrough
CT: control target
= control target key end

     0   :  { %s7651_s0 = inlined_call_operand.vmem [shape: f32[2,4,3,6,6], index: 0, kind: input, shape index: {}]   ;;  %s7652_s1 = inlined_call_operand.hbm [shape: f32[2,4,3,16,16], index: 1, kind: input, shape index: {}]   ;;  %s7653_s2 = inlined_call_operand.vmem [shape: f32[2,11,11], index: 2, kind: output, shape index: {}]  }
   0x1   :  { %7769 = sst [smem:[#allocation70_spill]] %s7653_s2 }
   0x2   :  { %7 = vsyncpa [#allocation3], 0  ;;  %s4748_s9 = smov [#allocation2]   ;;  %s4724_s13 = scalar_lea.hbm %s7652_s1, 6144 }
   0x3   :  { %s15_s10 = sshll.u32 %s4748_s9, 4  ;;  %p4725_p0 = scmp.ne.s32.totalorder %s7652_s1, %s4724_s13  ;;  %s16_s10 = int_to_ptr.vmem [resolvable:$true] %s15_s10 }
   0x4   :  { %p4728_p1 = scmp.lt.u32.totalorder %s4724_s13, %s7652_s1 }
   0x6   :  { %p4730_p2 = pnand %p4728_p1, %p4725_p0 }
   0x8   :  { %4733 = shalt.err (!%p4730_p2)
}
   0x9   :  { %s4734_s18 = scalar_lea.vmem %s16_s10, 6144  ;;  %p4739_p4 = scmp.lt.s32.totalorder %s16_s10, %s16_s10 }
   0xa   :  { %p4735_p3 = scmp.ne.s32.totalorder %s16_s10, %s4734_s18  ;;  %p4740_p5 = scmp.lt.s32.totalorder %s4734_s18, %s4734_s18 }
   0xc   :  { %p4741_p6 = por %p4740_p5, %p4739_p4 }
   0xe   :  { %p4742_p7 = pnand %p4741_p6, %p4735_p3 }
  0x10   :  { %4745 = shalt.err (!%p4742_p7)
}
  0x11   :  { %s4749_s19 = smov 128   ;;  %s4750_s20 = smov 8  }
  0x12   :  { %21 = dma.hbm_to_vmem [thread:$0]  %s7652_s1, 6144, %s16_s10, [#allocation3], %s4749_s19, %s4749_s19, %s4750_s20  }
  0x13   :  { %4746 = dma.done.wait [#allocation3], 6144  }
  0x14   :  { %4747 = vsyncadd [#allocation3], 4294961152  ;;  %vm37_vm0 = vcmask 46080   ;;  %v31_v0 = vld [vmem:[%s7651_s0 + $0x30] sm:$0x3f]  ;;  %s7658_s18 = smov 127  }
  0x15   :  { %v32_v1 = vld [vmem:[%s7651_s0 + $0x38] sm:$0x3f]  ;;  %v33_v2 = vld [vmem:[%s7651_s0 + $0x40] sm:$0x3f]  ;;  %v48_v3 = vsel %vm37_vm0, %v31_v0, -inf  ;;  %s7656_s19 = smov 126  }
  0x16   :  { %v49_v4 = vsel %vm37_vm0, %v32_v1, -inf  ;;  %v51_v5 = vsel %vm37_vm0, %v33_v2, -inf  ;;  %v25_v6 = vld [vmem:[%s7651_s0] sm:$0x3f]  ;;  %v26_v8 = vld [vmem:[%s7651_s0 + $0x8] sm:$0x3f] }
  0x17   :  { %v50_v7 = vmax.f32 %v48_v3, %v49_v4  ;;  %v27_v9 = vld [vmem:[%s7651_s0 + $0x10] sm:$0x3f]  ;;  %v38_v10 = vsel %vm37_vm0, %v25_v6, -inf  ;;  %v39_v11 = vsel %vm37_vm0, %v26_v8, -inf  ;;  %v34_v13 = vld [vmem:[%s7651_s0 + $0x48] sm:$0x3f] }
  0x18   :  { %v41_v12 = vsel %vm37_vm0, %v27_v9, -inf  ;;  %v35_v14 = vld [vmem:[%s7651_s0 + $0x50] sm:$0x3f]  ;;  %v40_v16 = vmax.f32 %v38_v10, %v39_v11  ;;  %v36_v17 = vld [vmem:[%s7651_s0 + $0x58] sm:$0x3f]  ;;  %v53_v18 = vsel %vm37_vm0, %v34_v13, -inf }
  0x19   :  { %v4813_v15 = vmax.f32 %v50_v7, %v51_v5  ;;  %v54_v19 = vsel %vm37_vm0, %v35_v14, -inf  ;;  %v28_v20 = vld [vmem:[%s7651_s0 + $0x18] sm:$0x3f]  ;;  %v56_v22 = vsel %vm37_vm0, %v36_v17, -inf  ;;  %v29_v23 = vld [vmem:[%s7651_s0 + $0x20] sm:$0x3f] }
  0x1a   :  { %v55_v21 = vmax.f32 %v53_v18, %v54_v19  ;;  %v30_v24 = vld [vmem:[%s7651_s0 + $0x28] sm:$0x3f]  ;;  %v43_v25 = vsel %vm37_vm0, %v28_v20, -inf  ;;  %v4833_v26 = vmax.f32 %v40_v16, %v41_v12  ;;  %v44_v27 = vsel %vm37_vm0, %v29_v23, -inf  ;;  %s7654_s20 = smov 125   ;;  %v58_v8 = vld [vmem:[#allocation2] sm:$0xff] }
  0x1b   :  { %418 = vrot.lane.b32.xlu1 %v4813_v15, %s7658_s18  ;;  %v46_v28 = vsel %vm37_vm0, %v30_v24, -inf  ;;  %v45_v30 = vmax.f32 %v43_v25, %v44_v27  ;;  %v4863_v35 = vrot.slane %v4813_v15, 1  ;;  %v4880_v38 = vrot.slane %v4813_v15, 2  ;;  %v60_v9 = vld [vmem:[#allocation2 + $0x10] sm:$0xff]  ;;  %v59_v11 = vld [vmem:[#allocation2 + $0x8] sm:$0xff]  ;;  %v61_v12 = vld [vmem:[#allocation2 + $0x18] sm:$0xff] }
  0x1c   :  { %v4837_v29 = vmax.f32 %v55_v21, %v56_v22  ;;  %414 = vrot.lane.b32.xlu0 %v4833_v26, %s7658_s18  ;;  %4140 = vpush %v4833_v26  ;;  %v4853_v33 = vrot.slane %v4833_v26, 1  ;;  %v4870_v36 = vrot.slane %v4833_v26, 2  ;;  %v4890_v40 = vrot.slane %v4833_v26, 3  ;;  %v62_v17 = vld [vmem:[#allocation2 + $0x20] sm:$0xff]  ;;  %v64_v20 = vld [vmem:[#allocation2 + $0x30] sm:$0xff]  ;;  %v65_v21 = vld [vmem:[#allocation2 + $0x38] sm:$0xff] }
  0x1d   :  { %v4842_v31 = vmax.f32 %v45_v30, %v46_v28  ;;  %7773 = vst [vmem:[#allocation8_spill] sm:$0xff] %v4880_v38  ;;  %v4900_v42 = vrot.slane %v4813_v15, 3  ;;  %v4910_v44 = vrot.slane %v4833_v26, 4  ;;  %v4920_v46 = vrot.slane %v4813_v15, 4  ;;  %v66_v23 = vld [vmem:[#allocation2 + $0x40] sm:$0xff]  ;;  %v67_v24 = vld [vmem:[#allocation2 + $0x48] sm:$0xff] }
  0x1e   :  { %v4860_v34 = vrot.slane %v4837_v29, 1  ;;  %7771 = vst [vmem:[#allocation6_spill] sm:$0xff] %v4870_v36  ;;  %v4884_v39 = vrot.slane %v4837_v29, 2  ;;  %7775 = vst [vmem:[#allocation10_spill] sm:$0xff] %v4890_v40  ;;  %v4904_v43 = vrot.slane %v4837_v29, 3  ;;  %v4924_v47 = vrot.slane %v4837_v29, 4 }
  0x1f   :  { %420 = vrot.lane.b32.xlu1 %v4837_v29, %s7658_s18  ;;  %v4847_v32 = vrot.slane %v4842_v31, 1  ;;  %4142 = vpush %v4842_v31  ;;  %v4874_v37 = vrot.slane %v4842_v31, 2  ;;  %v4894_v41 = vrot.slane %v4842_v31, 3  ;;  %7777 = vst [vmem:[#allocation12_spill] sm:$0xff] %v4900_v42  ;;  %v4914_v45 = vrot.slane %v4842_v31, 4  ;;  %v70_v25 = vld [vmem:[#allocation2 + $0x60] sm:$0xff] }
  0x20   :  { %416 = vrot.lane.b32.xlu0 %v4842_v31, %s7658_s18  ;;  %4144 = vpush %v4813_v15  ;;  %7770 = vst [vmem:[#allocation5_spill] sm:$0xff] %v4860_v34  ;;  %v4930_v48 = vrot.slane %v4833_v26, 5  ;;  %v4934_v49 = vrot.slane %v4842_v31, 5  ;;  %v4940_v50 = vrot.slane %v4813_v15, 5  ;;  %v4944_v51 = vrot.slane %v4837_v29, 5  ;;  %v71_v28 = vld [vmem:[#allocation2 + $0x68] sm:$0xff] }
  0x21   :  { %4146 = vpush %v4837_v29  ;;  %7772 = vst [vmem:[#allocation7_spill] sm:$0xff] %v4874_v37  ;;  %vm82_vm1 = vcmask 130048   ;;  %v72_v30 = vld [vmem:[#allocation2 + $0x70] sm:$0xff]  ;;  %vm7689_vm2 = vcmask 97288   ;;  %vm7685_vm3 = vcmask 92168   ;;  %vm7678_vm4 = vcmask 93192  }
  0x22   :  { %4148 = vpush %v4853_v33  ;;  %7774 = vst [vmem:[#allocation9_spill] sm:$0xff] %v4884_v39  ;;  %v83_v14 = vsel %vm82_vm1, %v58_v8, -inf  ;;  %v84_v16 = vsel %vm82_vm1, %v60_v9, -inf  ;;  %v88_v18 = vsel %vm82_vm1, %v59_v11, -inf  ;;  %v89_v19 = vsel %vm82_vm1, %v61_v12, -inf  ;;  %v75_v11 = vld [vmem:[#allocation2 + $0x88] sm:$0xff] }
  0x23   :  { %470 = vrot.lane.b32.xlu1 %v4847_v32, %s7658_s18  ;;  %4150 = vpush %v4847_v32  ;;  %7776 = vst [vmem:[#allocation11_spill] sm:$0xff] %v4894_v41  ;;  %v85_v27 = vmax.f32 %v83_v14, %v84_v16  ;;  %vm7679_vm5 = vcmask 97289   ;;  %vm7677_vm6 = vcmask 97290   ;;  %vm7676_vm7 = vcmask 94216  }
  0x24   :  { %468 = vrot.lane.b32.xlu0 %v4853_v33, %s7658_s18  ;;  %4152 = vpush %v4863_v35  ;;  %7778 = vst [vmem:[#allocation13_spill] sm:$0xff] %v4904_v43  ;;  %vm7750_vm8 = vcmask 105488   ;;  %vm7663_vm9 = vcmask 100368   ;;  %vm7675_vm10 = vcmask 97291   ;;  %vm7674_vm11 = vcmask 95240  }
  0x25   :  { %4154 = vpush %v4860_v34  ;;  %7779 = vst [vmem:[#allocation14_spill] sm:$0xff] %v4910_v44  ;;  %vm7680_vm12 = vcmask 97292   ;;  %vm7684_vm13 = vcmask 96264   ;;  %vm7683_vm14 = vcmask 97293   ;;  %vm7682_vm15 = vcmask 105489  }
  0x26   :  { %4156 = vpush %v4870_v36  ;;  %7780 = vst [vmem:[#allocation15_spill] sm:$0xff] %v4914_v45 }
  0x27   :  { %474 = vrot.lane.b32.xlu1 %v4860_v34, %s7658_s18  ;;  %4158 = vpush %v4874_v37 }
  0x28   :  { %472 = vrot.lane.b32.xlu0 %v4863_v35, %s7658_s18  ;;  %4160 = vpush %v4880_v38 }
  0x29   :  { %4162 = vpush %v4884_v39 }
  0x2a   :  { %4164 = vpush %v4890_v40 }
  0x2b   :  { %527 = vrot.lane.b32.xlu1 %v4874_v37, %s7658_s18  ;;  %4166 = vpush %v4894_v41 }
  0x2c   :  { %525 = vrot.lane.b32.xlu0 %v4870_v36, %s7658_s18  ;;  %4168 = vpush %v4900_v42 }
  0x2d   :  { %4170 = vpush %v4904_v43 }
  0x2e   :  { %4172 = vpush %v4910_v44 }
  0x2f   :  { %531 = vrot.lane.b32.xlu1 %v4884_v39, %s7658_s18  ;;  %4174 = vpush %v4914_v45 }
  0x30   :  { %529 = vrot.lane.b32.xlu0 %v4880_v38, %s7658_s18  ;;  %4176 = vpush %v4920_v46 }
  0x31   :  { %4178 = vpush %v4924_v47 }
  0x32   :  { %4180 = vpush %v4930_v48 }
  0x33   :  { %584 = vrot.lane.b32.xlu1 %v4894_v41, %s7658_s18  ;;  %4182 = vpush %v4934_v49 }
  0x34   :  { %582 = vrot.lane.b32.xlu0 %v4890_v40, %s7658_s18  ;;  %4184 = vpush %v4940_v50 }
  0x35   :  { %4186 = vpush %v4944_v51 }
  0x37   :  { %588 = vrot.lane.b32.xlu1 %v4904_v43, %s7658_s18 }
  0x38   :  { %586 = vrot.lane.b32.xlu0 %v4900_v42, %s7658_s18 }
  0x3b   :  { %641 = vrot.lane.b32.xlu1 %v4914_v45, %s7658_s18 }
  0x3c   :  { %639 = vrot.lane.b32.xlu0 %v4910_v44, %s7658_s18 }
  0x3f   :  { %645 = vrot.lane.b32.xlu1 %v4924_v47, %s7658_s18 }
  0x40   :  { %643 = vrot.lane.b32.xlu0 %v4920_v46, %s7658_s18 }
  0x43   :  { %698 = vrot.lane.b32.xlu1 %v4934_v49, %s7658_s18 }
  0x44   :  { %696 = vrot.lane.b32.xlu0 %v4930_v48, %s7658_s18 }
  0x47   :  { %702 = vrot.lane.b32.xlu1 %v4944_v51, %s7658_s18 }
  0x48   :  { %700 = vrot.lane.b32.xlu0 %v4940_v50, %s7658_s18 }
  0x4b   :  { %754 = vrot.lane.b32.xlu1 %v4842_v31, %s7656_s19 }
  0x4c   :  { %752 = vrot.lane.b32.xlu0 %v4833_v26, %s7656_s19 }
  0x4d   :  { %s5043_s21 = spop %4140 }
  0x4f   :  { %758 = vrot.lane.b32.xlu1 %v4837_v29, %s7656_s19 }
  0x50   :  { %756 = vrot.lane.b32.xlu0 %v4813_v15, %s7656_s19  ;;  %s5047_s22 = spop %4142 }
  0x51   :  { %s5051_s23 = spop %4144 }
  0x52   :  { %s5055_s24 = spop %4146 }
  0x53   :  { %808 = vrot.lane.b32.xlu1 %v4847_v32, %s7656_s19  ;;  %s5059_s25 = spop %4148 }
  0x54   :  { %806 = vrot.lane.b32.xlu0 %v4853_v33, %s7656_s19  ;;  %s5061_s26 = spop %4150 }
  0x55   :  { %s5065_s27 = spop %4152 }
  0x56   :  { %s5069_s28 = spop %4154 }
  0x57   :  { %812 = vrot.lane.b32.xlu1 %v4860_v34, %s7656_s19  ;;  %s5071_s1 = spop %4156 }
  0x58   :  { %810 = vrot.lane.b32.xlu0 %v4863_v35, %s7656_s19  ;;  %s5073_s29 = spop %4158 }
  0x59   :  { %s5075_s30 = spop %4160 }
  0x5a   :  { %s5077_s3 = spop %4162 }
  0x5b   :  { %865 = vrot.lane.b32.xlu1 %v4874_v37, %s7656_s19  ;;  %s5079_s4 = spop %4164 }
  0x5c   :  { %863 = vrot.lane.b32.xlu0 %v4870_v36, %s7656_s19  ;;  %s5081_s5 = spop %4166 }
  0x5d   :  { %s5083_s6 = spop %4168 }
  0x5e   :  { %7781 = sst [smem:[#allocation16_spill]] %s5083_s6  ;;  %s5085_s7 = spop %4170 }
  0x5f   :  { %869 = vrot.lane.b32.xlu1 %v4884_v39, %s7656_s19  ;;  %7782 = sst [smem:[#allocation17_spill]] %s5085_s7  ;;  %s5087_s8 = spop %4172 }
  0x60   :  { %867 = vrot.lane.b32.xlu0 %v4880_v38, %s7656_s19  ;;  %7783 = sst [smem:[#allocation18_spill]] %s5087_s8  ;;  %s5089_s9 = spop %4174 }
  0x61   :  { %7784 = sst [smem:[#allocation19_spill]] %s5089_s9  ;;  %s5091_s10 = spop %4176 }
  0x62   :  { %7785 = sst [smem:[#allocation20_spill]] %s5091_s10  ;;  %s5095_s11 = spop %4178 }
  0x63   :  { %922 = vrot.lane.b32.xlu1 %v4894_v41, %s7656_s19  ;;  %7786 = sst [smem:[#allocation21_spill]] %s5095_s11  ;;  %s5099_s12 = spop %4180 }
  0x64   :  { %920 = vrot.lane.b32.xlu0 %v4890_v40, %s7656_s19  ;;  %7787 = sst [smem:[#allocation22_spill]] %s5099_s12  ;;  %s5102_s13 = spop %4182 }
  0x65   :  { %7788 = sst [smem:[#allocation23_spill]] %s5102_s13  ;;  %s5112_s14 = spop %4184 }
  0x66   :  { %7789 = sst [smem:[#allocation24_spill]] %s5112_s14  ;;  %s5121_s15 = spop %4186 }
  0x67   :  { %926 = vrot.lane.b32.xlu1 %v4904_v43, %s7656_s19  ;;  %7790 = sst [smem:[#allocation25_spill]] %s5121_s15 }
  0x68   :  { %924 = vrot.lane.b32.xlu0 %v4900_v42, %s7656_s19 }
  0x6b   :  { %979 = vrot.lane.b32.xlu1 %v4914_v45, %s7656_s19 }
  0x6c   :  { %977 = vrot.lane.b32.xlu0 %v4910_v44, %s7656_s19 }
  0x6f   :  { %983 = vrot.lane.b32.xlu1 %v4924_v47, %s7656_s19 }
  0x70   :  { %981 = vrot.lane.b32.xlu0 %v4920_v46, %s7656_s19 }
  0x73   :  { %1036 = vrot.lane.b32.xlu1 %v4934_v49, %s7656_s19 }
  0x74   :  { %1034 = vrot.lane.b32.xlu0 %v4930_v48, %s7656_s19 }
  0x77   :  { %1040 = vrot.lane.b32.xlu1 %v4944_v51, %s7656_s19 }
  0x78   :  { %1038 = vrot.lane.b32.xlu0 %v4940_v50, %s7656_s19 }
  0x7b   :  { %1092 = vrot.lane.b32.xlu1 %v4842_v31, %s7654_s20 }
  0x7c   :  { %1090 = vrot.lane.b32.xlu0 %v4833_v26, %s7654_s20 }
  0x7f   :  { %1096 = vrot.lane.b32.xlu1 %v4837_v29, %s7654_s20 }
  0x80   :  { %1094 = vrot.lane.b32.xlu0 %v4813_v15, %s7654_s20 }
  0x83   :  { %1146 = vrot.lane.b32.xlu1 %v4847_v32, %s7654_s20 }
  0x84   :  { %1144 = vrot.lane.b32.xlu0 %v4853_v33, %s7654_s20 }
  0x87   :  { %1150 = vrot.lane.b32.xlu1 %v4860_v34, %s7654_s20 }
  0x88   :  { %1148 = vrot.lane.b32.xlu0 %v4863_v35, %s7654_s20 }
  0x8b   :  { %1203 = vrot.lane.b32.xlu1 %v4874_v37, %s7654_s20 }
  0x8c   :  { %1201 = vrot.lane.b32.xlu0 %v4870_v36, %s7654_s20 }
  0x8d   :  { %v419_v52 = vpop.permute.xlu1 %418 }
  0x8e   :  { %v415_v53 = vpop.permute.xlu0 %414 }
  0x8f   :  { %1207 = vrot.lane.b32.xlu1 %v4884_v39, %s7654_s20  ;;  %4188 = vpush %v415_v53 }
  0x90   :  { %1205 = vrot.lane.b32.xlu0 %v4880_v38, %s7654_s20 }
  0x91   :  { %v421_v54 = vpop.permute.xlu1 %420 }
  0x92   :  { %v417_v55 = vpop.permute.xlu0 %416 }
  0x93   :  { %1260 = vrot.lane.b32.xlu1 %v4894_v41, %s7654_s20  ;;  %4190 = vpush %v417_v55  ;;  %v86_v55 = vsel %vm82_vm1, %v62_v17, -inf }
  0x94   :  { %4192 = vpush %v419_v52  ;;  %1258 = vrot.lane.b32.xlu0 %v4890_v40, %s7654_s20  ;;  %v73_v52 = vld [vmem:[#allocation2 + $0x78] sm:$0xff]  ;;  %v5114_v8 = vmax.f32 %v85_v27, %v86_v55 }
  0x95   :  { %v471_v56 = vpop.permute.xlu1 %470  ;;  %4194 = vpush %v421_v54  ;;  %v63_v54 = vld [vmem:[#allocation2 + $0x28] sm:$0xff] }
  0x96   :  { %v469_v57 = vpop.permute.xlu0 %468  ;;  %v91_v9 = vsel %vm82_vm1, %v63_v54, -inf }
  0x97   :  { %1264 = vrot.lane.b32.xlu1 %v4904_v43, %s7654_s20  ;;  %4196 = vpush %v469_v57  ;;  %v77_v57 = vld [vmem:[#allocation2 + $0x98] sm:$0xff] }
  0x98   :  { %4198 = vpush %v471_v56  ;;  %1262 = vrot.lane.b32.xlu0 %v4900_v42, %s7654_s20  ;;  %v90_v56 = vmax.f32 %v88_v18, %v89_v19  ;;  %v118_v12 = vsel %vm82_vm1, %v77_v57, -inf }
  0x99   :  { %v475_v58 = vpop.permute.xlu1 %474 }
  0x9a   :  { %v473_v59 = vpop.permute.xlu0 %472 }
  0x9b   :  { %1317 = vrot.lane.b32.xlu1 %v4914_v45, %s7654_s20  ;;  %4200 = vpush %v473_v59  ;;  %v68_v59 = vld [vmem:[#allocation2 + $0x50] sm:$0xff] }
  0x9c   :  { %4202 = vpush %v475_v58  ;;  %1315 = vrot.lane.b32.xlu0 %v4910_v44, %s7654_s20  ;;  %v79_v58 = vld [vmem:[#allocation2 + $0xa8] sm:$0xff]  ;;  %v96_v17 = vsel %vm82_vm1, %v68_v59, -inf }
  0x9d   :  { %v528_v60 = vpop.permute.xlu1 %527 }
  0x9e   :  { %v526_v61 = vpop.permute.xlu0 %525 }
  0x9f   :  { %4204 = vpush %v526_v61  ;;  %v93_v61 = vsel %vm82_vm1, %v64_v20, -inf  ;;  %v81_v20 = vld [vmem:[#allocation2 + $0xb8] sm:$0xff] }
  0xa0   :  { %4206 = vpush %v528_v60  ;;  %v69_v60 = vld [vmem:[#allocation2 + $0x58] sm:$0xff]  ;;  %v121_v54 = vsel %vm82_vm1, %v81_v20, -inf }
  0xa1   :  { %v532_v62 = vpop.permute.xlu1 %531  ;;  %v101_v19 = vsel %vm82_vm1, %v69_v60, -inf }
  0xa2   :  { %v530_v63 = vpop.permute.xlu0 %529 }
  0xa3   :  { %4208 = vpush %v530_v63  ;;  %v98_v63 = vsel %vm82_vm1, %v65_v21, -inf }
  0xa4   :  { %4210 = vpush %v532_v62  ;;  %v94_v62 = vsel %vm82_vm1, %v66_v23, -inf }
  0xa5   :  { %v585_v0 = vpop.permute.xlu1 %584  ;;  %v95_v16 = vmax.f32 %v93_v61, %v94_v62 }
  0xa6   :  { %v583_v1 = vpop.permute.xlu0 %582 }
  0xa7   :  { %4212 = vpush %v583_v1  ;;  %v5130_v57 = vmax.f32 %v95_v16, %v96_v17 }
  0xa8   :  { %4214 = vpush %v585_v0  ;;  %v99_v0 = vsel %vm82_vm1, %v67_v24, -inf }
  0xa9   :  { %v589_v2 = vpop.permute.xlu1 %588  ;;  %v100_v18 = vmax.f32 %v98_v63, %v99_v0 }
  0xaa   :  { %v587_v3 = vpop.permute.xlu0 %586 }
  0xab   :  { %4216 = vpush %v587_v3  ;;  %v104_v3 = vsel %vm82_vm1, %v72_v30, -inf  ;;  %v80_v30 = vld [vmem:[#allocation2 + $0xb0] sm:$0xff] }
  0xac   :  { %4218 = vpush %v589_v2  ;;  %v103_v2 = vsel %vm82_vm1, %v70_v25, -inf  ;;  %v5125_v25 = vmax.f32 %v90_v56, %v91_v9  ;;  %v116_v62 = vsel %vm82_vm1, %v80_v30, -inf }
  0xad   :  { %v642_v4 = vpop.permute.xlu1 %641  ;;  %v105_v21 = vmax.f32 %v103_v2, %v104_v3 }
  0xae   :  { %v640_v5 = vpop.permute.xlu0 %639 }
  0xaf   :  { %4220 = vpush %v640_v5  ;;  %v109_v5 = vsel %vm82_vm1, %v73_v52, -inf }
  0xb0   :  { %4222 = vpush %v642_v4  ;;  %v108_v4 = vsel %vm82_vm1, %v71_v28, -inf  ;;  %v111_v28 = vsel %vm82_vm1, %v75_v11, -inf }
  0xb1   :  { %v646_v6 = vpop.permute.xlu1 %645 }
  0xb2   :  { %v644_v7 = vpop.permute.xlu0 %643 }
  0xb3   :  { %4224 = vpush %v644_v7  ;;  %v78_v7 = vld [vmem:[#allocation2 + $0xa0] sm:$0xff] }
  0xb4   :  { %4226 = vpush %v646_v6  ;;  %v76_v6 = vld [vmem:[#allocation2 + $0x90] sm:$0xff]  ;;  %v114_v24 = vsel %vm82_vm1, %v78_v7, -inf }
  0xb5   :  { %v699_v10 = vpop.permute.xlu1 %698  ;;  %v113_v23 = vsel %vm82_vm1, %v76_v6, -inf }
  0xb6   :  { %v697_v13 = vpop.permute.xlu0 %696  ;;  %v115_v59 = vmax.f32 %v113_v23, %v114_v24 }
  0xb7   :  { %4228 = vpush %v697_v13  ;;  %v119_v13 = vsel %vm82_vm1, %v79_v58, -inf  ;;  %v5132_v58 = vmax.f32 %v100_v18, %v101_v19 }
  0xb8   :  { %4230 = vpush %v699_v10  ;;  %v74_v10 = vld [vmem:[#allocation2 + $0x80] sm:$0xff]  ;;  %v120_v52 = vmax.f32 %v118_v12, %v119_v13 }
  0xb9   :  { %v703_v22 = vpop.permute.xlu1 %702  ;;  %v106_v27 = vsel %vm82_vm1, %v74_v10, -inf }
  0xba   :  { %v701_v53 = vpop.permute.xlu0 %700  ;;  %v5134_v61 = vmax.f32 %v105_v21, %v106_v27  ;;  %v5140_v0 = vmax.f32 %v120_v52, %v121_v54 }
  0xbb   :  { %4232 = vpush %v701_v53 }
  0xbc   :  { %4234 = vpush %v703_v22  ;;  %v110_v22 = vmax.f32 %v108_v4, %v109_v5  ;;  %v5143_v4 = vmax.f32 %v115_v59, %v116_v62 }
  0xbd   :  { %v755_v1 = vpop.permute.xlu1 %754 }
  0xbe   :  { %v753_v14 = vpop.permute.xlu0 %752  ;;  %v5136_v56 = vmax.f32 %v110_v22, %v111_v28 }
  0xbf   :  { %4236 = vpush %v753_v14 }
  0xc0   :  { %4238 = vpush %v755_v1  ;;  %s4189_s16 = spop %4188 }
  0xc1   :  { %v759_v53 = vpop.permute.xlu1 %758  ;;  %v423_v55 = vstv %s4189_s16 }
  0xc2   :  { %v757_v60 = vpop.permute.xlu0 %756  ;;  %v434_v63 = vmul.f32 %v423_v55, %v5114_v8  ;;  %v435_v1 = vmul.f32 %v423_v55, %v5125_v25 }
  0xc3   :  { %4240 = vpush %v757_v60 }
  0xc4   :  { %s4191_s17 = spop %4190  ;;  %4242 = vpush %v759_v53  ;;  %v443_v10 = vsel %vm7689_vm2, %v434_v63, 0.0  ;;  %v451_v14 = vsel %vm7685_vm3, %v435_v1, 0.0 }
  0xc5   :  { %v809_v2 = vpop.permute.xlu1 %808  ;;  %v426_v3 = vstv %s4191_s17  ;;  %s4193_s16 = spop %4192 }
  0xc6   :  { %v436_v5 = vmul.f32 %v426_v3, %v5130_v57  ;;  %v437_v6 = vmul.f32 %v426_v3, %v5132_v58  ;;  %v429_v7 = vstv %s4193_s16  ;;  %v807_v9 = vpop.permute.xlu0 %806  ;;  %s4195_s20 = spop %4194 }
  0xc7   :  { %v438_v11 = vmul.f32 %v429_v7, %v5134_v61  ;;  %v439_v12 = vmul.f32 %v429_v7, %v5136_v56  ;;  %v432_v13 = vstv %s4195_s20  ;;  %4244 = vpush %v807_v9 }
  0xc8   :  { %v444_v16 = vsel %vm7689_vm2, %v436_v5, 0.0  ;;  %v452_v17 = vsel %vm7685_vm3, %v437_v6, 0.0  ;;  %v441_v18 = vmul.f32 %v432_v13, %v5140_v0  ;;  %4246 = vpush %v809_v2  ;;  %v440_v24 = vmul.f32 %v432_v13, %v5143_v4  ;;  %s5161_s20 = spop %4196 }
  0xc9   :  { %v813_v19 = vpop.permute.xlu1 %812  ;;  %v445_v20 = vadd.f32 %v444_v16, %v443_v10  ;;  %v453_v21 = vadd.f32 %v452_v17, %v451_v14  ;;  %v446_v22 = vsel %vm7689_vm2, %v438_v11, 0.0  ;;  %v454_v23 = vsel %vm7685_vm3, %v439_v12, 0.0  ;;  %s5163_s17 = spop %4198 }
  0xca   :  { %v811_v27 = vpop.permute.xlu0 %810  ;;  %v456_v52 = vsel %vm7685_vm3, %v441_v18, 0.0  ;;  %v448_v55 = vsel %vm7689_vm2, %v440_v24, 0.0  ;;  %v477_v10 = vstv %s5161_s20  ;;  %v480_v11 = vstv %s5163_s17 }
  0xcb   :  { %v447_v28 = vadd.f32 %v446_v22, %v445_v20  ;;  %v455_v30 = vadd.f32 %v454_v23, %v453_v21  ;;  %4248 = vpush %v811_v27  ;;  %v489_v16 = vmul.f32 %v477_v10, %v5125_v25  ;;  %v491_v17 = vmul.f32 %v480_v11, %v5132_v58 }
  0xcc   :  { %4250 = vpush %v813_v19  ;;  %s5165_s16 = spop %4200  ;;  %v488_v20 = vmul.f32 %v477_v10, %v5114_v8  ;;  %v490_v21 = vmul.f32 %v480_v11, %v5130_v57  ;;  %vm7705_vm3 = vcmask 104464  }
  0xcd   :  { %v866_v53 = vpop.permute.xlu1 %865  ;;  %v457_v54 = vadd.f32 %v456_v52, %v455_v30  ;;  %v449_v60 = vadd.f32 %v448_v55, %v447_v28  ;;  %s5167_s19 = spop %4202  ;;  %v483_v13 = vstv %s5165_s16  ;;  %v505_v24 = vsel %vm7678_vm4, %v489_v16, 0.0 }
  0xce   :  { %v864_v59 = vpop.permute.xlu0 %863  ;;  %v493_v19 = vmul.f32 %v483_v13, %v5136_v56  ;;  %v486_v22 = vstv %s5167_s19  ;;  %v506_v27 = vsel %vm7678_vm4, %v491_v17, 0.0  ;;  %v492_v28 = vmul.f32 %v483_v13, %v5134_v61 }
  0xcf   :  { %4252 = vpush %v864_v59  ;;  %462 = vrot.lane.b32.xlu1 %v457_v54, %s7658_s18  ;;  %460 = vrot.lane.b32.xlu0 %v449_v60, %s7658_s18  ;;  %v497_v54 = vsel %vm7679_vm5, %v488_v20, 0.0  ;;  %v498_v55 = vsel %vm7679_vm5, %v490_v21, 0.0  ;;  %v507_v59 = vadd.f32 %v506_v27, %v505_v24 }
  0xd0   :  { %4254 = vpush %v866_v53  ;;  %s5169_s18 = spop %4204  ;;  %v508_v52 = vsel %vm7678_vm4, %v493_v19, 0.0  ;;  %v495_v53 = vmul.f32 %v486_v22, %v5140_v0 }
  0xd1   :  { %v870_v62 = vpop.permute.xlu1 %869  ;;  %s5171_s2 = spop %4206  ;;  %v534_v60 = vstv %s5169_s18 }
  0xd2   :  { %v868_v63 = vpop.permute.xlu0 %867  ;;  %v546_v10 = vmul.f32 %v534_v60, %v5125_v25 }
  0xd3   :  { %4256 = vpush %v868_v63  ;;  %v500_v63 = vsel %vm7679_vm5, %v492_v28, 0.0 }
  0xd4   :  { %4258 = vpush %v870_v62  ;;  %s5173_s15 = spop %4208 }
  0xd5   :  { %v923_v1 = vpop.permute.xlu1 %922  ;;  %s5175_s14 = spop %4210 }
  0xd6   :  { %v921_v2 = vpop.permute.xlu0 %920 }
  0xd7   :  { %4260 = vpush %v921_v2  ;;  %v494_v2 = vmul.f32 %v486_v22, %v5143_v4  ;;  %v562_v22 = vsel %vm7676_vm7, %v546_v10, 0.0 }
  0xd8   :  { %4262 = vpush %v923_v1  ;;  %s5177_s11 = spop %4212  ;;  %v509_v1 = vadd.f32 %v508_v52, %v507_v59 }
  0xd9   :  { %v927_v3 = vpop.permute.xlu1 %926  ;;  %s5181_s13 = spop %4214  ;;  %v502_v16 = vsel %vm7679_vm5, %v494_v2, 0.0  ;;  %v591_v59 = vstv %s5177_s11  ;;  %s7791_s11 = smov 126   ;;  %vm357_vm5 = vcmask 1043456  }
  0xda   :  { %v925_v5 = vpop.permute.xlu0 %924 }
  0xdb   :  { %4264 = vpush %v925_v5 }
  0xdc   :  { %4266 = vpush %v927_v3  ;;  %s5184_s12 = spop %4216  ;;  %v537_v3 = vstv %s5171_s2 }
  0xdd   :  { %v980_v6 = vpop.permute.xlu1 %979  ;;  %s5188_s10 = spop %4218  ;;  %v547_v13 = vmul.f32 %v537_v3, %v5130_v57 }
  0xde   :  { %v978_v7 = vpop.permute.xlu0 %977 }
  0xdf   :  { %4268 = vpush %v978_v7  ;;  %v510_v7 = vsel %vm7678_vm4, %v495_v53, 0.0  ;;  %vm307_vm4 = vcmask 1044480  }
  0xe0   :  { %4270 = vpush %v980_v6  ;;  %s5190_s7 = spop %4220  ;;  %v499_v6 = vadd.f32 %v498_v55, %v497_v54  ;;  %v5228_v20 = vadd.f32 %v510_v7, %v509_v1  ;;  %v555_v54 = vsel %vm7677_vm6, %v547_v13, 0.0  ;;  %v540_v55 = vstv %s5173_s15 }
  0xe1   :  { %v984_v9 = vpop.permute.xlu1 %983  ;;  %s5196_s20 = spop %4222 }
  0xe2   :  { %v982_v12 = vpop.permute.xlu0 %981 }
  0xe3   :  { %4272 = vpush %v982_v12  ;;  %v501_v12 = vadd.f32 %v500_v63, %v499_v6 }
  0xe4   :  { %4274 = vpush %v984_v9  ;;  %s5200_s17 = spop %4224  ;;  %v545_v9 = vmul.f32 %v534_v60, %v5114_v8 }
  0xe5   :  { %v1037_v14 = vpop.permute.xlu1 %1036  ;;  %s5203_s16 = spop %4226 }
  0xe6   :  { %v1035_v18 = vpop.permute.xlu0 %1034  ;;  %v554_v21 = vsel %vm7677_vm6, %v545_v9, 0.0 }
  0xe7   :  { %4276 = vpush %v1035_v18 }
  0xe8   :  { %4278 = vpush %v1037_v14  ;;  %s5207_s19 = spop %4228 }
  0xe9   :  { %v1041_v23 = vpop.permute.xlu1 %1040  ;;  %s5212_s9 = spop %4230  ;;  %v705_v44 = vstv %s5207_s19 }
  0xea   :  { %v1039_v30 = vpop.permute.xlu0 %1038 }
  0xeb   :  { %4280 = vpush %v1039_v30 }
  0xec   :  { %4282 = vpush %v1041_v23  ;;  %s5217_s8 = spop %4232  ;;  %v548_v23 = vmul.f32 %v537_v3, %v5132_v58 }
  0xed   :  { %v1093_v62 = vpop.permute.xlu1 %1092  ;;  %s5222_s18 = spop %4234 }
  0xee   :  { %v1091_v5 = vpop.permute.xlu0 %1090 }
  0xef   :  { %4284 = vpush %v1091_v5  ;;  %v594_v5 = vstv %s5181_s13 }
  0xf0   :  { %4286 = vpush %v1093_v62  ;;  %s4237_s6 = spop %4236 }
  0xf1   :  { %v1097_v11 = vpop.permute.xlu1 %1096  ;;  %v761_v14 = vstv %s4237_s6  ;;  %s4239_s2 = spop %4238 }
  0xf2   :  { %v772_v17 = vmul.f32 %v761_v14, %v5114_v8  ;;  %v773_v18 = vmul.f32 %v761_v14, %v5125_v25  ;;  %v1095_v19 = vpop.permute.xlu0 %1094  ;;  %v764_v24 = vstv %s4239_s2 }
  0xf3   :  { %4288 = vpush %v1095_v19  ;;  %v774_v30 = vmul.f32 %v764_v24, %v5130_v57  ;;  %v775_v52 = vmul.f32 %v764_v24, %v5132_v58  ;;  %v549_v19 = vmul.f32 %v540_v55, %v5134_v61 }
  0xf4   :  { %v781_v27 = vsel %vm7750_vm8, %v772_v17, 0.0  ;;  %v789_v28 = vsel %vm7663_vm9, %v773_v18, 0.0  ;;  %s4241_s6 = spop %4240  ;;  %4290 = vpush %v1097_v11  ;;  %v563_v18 = vsel %vm7676_vm7, %v548_v23, 0.0  ;;  %v604_v23 = vmul.f32 %v594_v5, %v5130_v57 }
  0xf5   :  { %v1147_v53 = vpop.permute.xlu1 %1146  ;;  %v767_v60 = vstv %s4241_s6  ;;  %s4243_s2 = spop %4242  ;;  %v782_v62 = vsel %vm7750_vm8, %v774_v30, 0.0  ;;  %v790_v63 = vsel %vm7663_vm9, %v775_v52, 0.0  ;;  %v543_v30 = vstv %s5175_s14 }
  0xf6   :  { %v776_v1 = vmul.f32 %v767_v60, %v5134_v61  ;;  %v777_v2 = vmul.f32 %v767_v60, %v5136_v56  ;;  %v1145_v3 = vpop.permute.xlu0 %1144  ;;  %v783_v6 = vadd.f32 %v782_v62, %v781_v27  ;;  %v791_v7 = vadd.f32 %v790_v63, %v789_v28 }
  0xf7   :  { %v770_v9 = vstv %s4243_s2  ;;  %4292 = vpush %v1145_v3  ;;  %v550_v28 = vmul.f32 %v540_v55, %v5136_v56  ;;  %v603_v55 = vmul.f32 %v591_v59, %v5125_v25  ;;  %v605_v3 = vmul.f32 %v594_v5, %v5132_v58 }
  0xf8   :  { %v784_v10 = vsel %vm7750_vm8, %v776_v1, 0.0  ;;  %v792_v11 = vsel %vm7663_vm9, %v777_v2, 0.0  ;;  %v778_v13 = vmul.f32 %v770_v9, %v5143_v4  ;;  %v779_v14 = vmul.f32 %v770_v9, %v5140_v0  ;;  %4294 = vpush %v1147_v53 }
  0xf9   :  { %v1151_v17 = vpop.permute.xlu1 %1150  ;;  %v785_v24 = vadd.f32 %v784_v10, %v783_v6  ;;  %v793_v27 = vadd.f32 %v792_v11, %v791_v7  ;;  %v602_v53 = vmul.f32 %v591_v59, %v5114_v8  ;;  %v5257_v2 = vadd.f32 %v502_v16, %v501_v12 }
  0xfa   :  { %v786_v52 = vsel %vm7750_vm8, %v778_v13, 0.0  ;;  %v794_v60 = vsel %vm7663_vm9, %v779_v14, 0.0  ;;  %v1149_v62 = vpop.permute.xlu0 %1148  ;;  %v597_v6 = vstv %s5184_s12  ;;  %v556_v9 = vadd.f32 %v555_v54, %v554_v21 }
  0xfb   :  { %v795_v63 = vadd.f32 %v794_v60, %v793_v27  ;;  %v787_v1 = vadd.f32 %v786_v52, %v785_v24  ;;  %4296 = vpush %v1149_v62  ;;  %v564_v10 = vadd.f32 %v563_v18, %v562_v22  ;;  %v648_v11 = vstv %s5190_s7  ;;  %s5291_s7 = spop %4244 }
  0xfc   :  { %4298 = vpush %v1151_v17  ;;  %v557_v12 = vsel %vm7677_vm6, %v549_v19, 0.0  ;;  %v565_v16 = vsel %vm7676_vm7, %v550_v28, 0.0  ;;  %v552_v59 = vmul.f32 %v543_v30, %v5140_v0  ;;  %v651_v5 = vstv %s5196_s20 }
  0xfd   :  { %v1204_v7 = vpop.permute.xlu1 %1203  ;;  %800 = vrot.lane.b32.xlu1 %v795_v63, %s7791_s11  ;;  %798 = vrot.lane.b32.xlu0 %v787_v1, %s7791_s11  ;;  %v611_v17 = vsel %vm7675_vm10, %v602_v53, 0.0  ;;  %v612_v21 = vsel %vm7675_vm10, %v604_v23, 0.0  ;;  %v606_v22 = vmul.f32 %v597_v6, %v5134_v61  ;;  %v607_v54 = vmul.f32 %v597_v6, %v5136_v56 }
  0xfe   :  { %v1202_v14 = vpop.permute.xlu0 %1201  ;;  %v619_v18 = vsel %vm7674_vm11, %v603_v55, 0.0  ;;  %v620_v19 = vsel %vm7674_vm11, %v605_v3, 0.0  ;;  %v600_v24 = vstv %s5188_s10  ;;  %v659_v27 = vmul.f32 %v648_v11, %v5114_v8 }
  0xff   :  { %4300 = vpush %v1202_v14  ;;  %v551_v52 = vmul.f32 %v543_v30, %v5143_v4  ;;  %v660_v60 = vmul.f32 %v648_v11, %v5125_v25  ;;  %v661_v62 = vmul.f32 %v651_v5, %v5130_v57  ;;  %v662_v53 = vmul.f32 %v651_v5, %v5132_v58 }
 0x100   :  { %4302 = vpush %v1204_v7  ;;  %v566_v23 = vadd.f32 %v565_v16, %v564_v10  ;;  %v567_v63 = vsel %vm7676_vm7, %v552_v59, 0.0  ;;  %v613_v1 = vadd.f32 %v612_v21, %v611_v17  ;;  %v654_v55 = vstv %s5200_s17 }
 0x101   :  { %v1208_v28 = vpop.permute.xlu1 %1207  ;;  %v621_v6 = vadd.f32 %v620_v19, %v619_v18  ;;  %v614_v7 = vsel %vm7675_vm10, %v606_v22, 0.0  ;;  %v622_v14 = vsel %vm7674_vm11, %v607_v54, 0.0  ;;  %v608_v30 = vmul.f32 %v600_v24, %v5143_v4 }
 0x102   :  { %v1206_v3 = vpop.permute.xlu0 %1205  ;;  %v609_v11 = vmul.f32 %v600_v24, %v5140_v0  ;;  %v668_v13 = vsel %vm7680_vm12, %v659_v27, 0.0  ;;  %v708_v5 = vstv %s5212_s9  ;;  %v676_v16 = vsel %vm7684_vm13, %v660_v60, 0.0  ;;  %s5303_s9 = spop %4246 }
 0x103   :  { %4304 = vpush %v1206_v3  ;;  %v669_v59 = vsel %vm7680_vm12, %v661_v62, 0.0  ;;  %v677_v17 = vsel %vm7684_vm13, %v662_v53, 0.0  ;;  %v663_v21 = vmul.f32 %v654_v55, %v5134_v61  ;;  %vm7681_vm9 = vcmask 101392   ;;  %s5319_s10 = spop %4248 }
 0x104   :  { %4306 = vpush %v1208_v28  ;;  %v5297_v22 = vadd.f32 %v557_v12, %v556_v9  ;;  %v5300_v54 = vsel %vm7677_vm6, %v551_v52, 0.0  ;;  %v664_v18 = vmul.f32 %v654_v55, %v5136_v56  ;;  %v5305_v24 = vadd.f32 %v567_v63, %v566_v23  ;;  %s5333_s12 = spop %4250 }
 0x105   :  { %v1261_v10 = vpop.permute.xlu1 %1260  ;;  %v5307_v27 = vadd.f32 %v614_v7, %v613_v1  ;;  %v5309_v28 = vadd.f32 %v622_v14, %v621_v6  ;;  %v716_v9 = vmul.f32 %v705_v44, %v5114_v8  ;;  %v718_v12 = vmul.f32 %v708_v5, %v5130_v57 }
 0x106   :  { %v1259_v19 = vpop.permute.xlu0 %1258  ;;  %v5314_v52 = vsel %vm7675_vm10, %v608_v30, 0.0  ;;  %v5317_v60 = vsel %vm7674_vm11, %v609_v11, 0.0  ;;  %v670_v62 = vadd.f32 %v669_v59, %v668_v13  ;;  %v678_v53 = vadd.f32 %v677_v17, %v676_v16 }
 0x107   :  { %4308 = vpush %v1259_v19  ;;  %v671_v23 = vsel %vm7680_vm12, %v663_v21, 0.0  ;;  %v657_v63 = vstv %s5203_s16  ;;  %v815_v1 = vstv %s5291_s7  ;;  %v818_v55 = vstv %s5303_s9 }
 0x108   :  { %4310 = vpush %v1261_v10  ;;  %v679_v6 = vsel %vm7684_vm13, %v664_v18, 0.0  ;;  %v717_v7 = vmul.f32 %v705_v44, %v5125_v25  ;;  %v719_v14 = vmul.f32 %v708_v5, %v5132_v58  ;;  %v711_v30 = vstv %s5217_s8  ;;  %s5339_s8 = spop %4252 }
 0x109   :  { %v1265_v3 = vpop.permute.xlu1 %1264  ;;  %v725_v11 = vsel %vm7683_vm14, %v716_v9, 0.0  ;;  %v726_v16 = vsel %vm7683_vm14, %v718_v12, 0.0  ;;  %v714_v59 = vstv %s5222_s18  ;;  %v821_v10 = vstv %s5319_s10  ;;  %s5349_s13 = spop %4254 }
 0x10a   :  { %v1263_v13 = vpop.permute.xlu0 %1262  ;;  %v826_v17 = vmul.f32 %v815_v1, %v5114_v8  ;;  %v827_v21 = vmul.f32 %v815_v1, %v5125_v25  ;;  %v828_v18 = vmul.f32 %v818_v55, %v5130_v57  ;;  %v829_v44 = vmul.f32 %v818_v55, %v5132_v58  ;;  %s5353_s14 = spop %4256 }
 0x10b   :  { %4312 = vpush %v1263_v13  ;;  %v665_v5 = vmul.f32 %v657_v63, %v5143_v4  ;;  %v666_v19 = vmul.f32 %v657_v63, %v5140_v0  ;;  %v720_v9 = vmul.f32 %v711_v30, %v5134_v61  ;;  %v721_v12 = vmul.f32 %v711_v30, %v5136_v56  ;;  %s5359_s15 = spop %4258 }
 0x10c   :  { %4314 = vpush %v1265_v3  ;;  %v732_v13 = vsel %vm7689_vm2, %v717_v7, 0.0  ;;  %v733_v1 = vsel %vm7689_vm2, %v719_v14, 0.0  ;;  %v830_v45 = vmul.f32 %v821_v10, %v5134_v61  ;;  %v831_v55 = vmul.f32 %v821_v10, %v5136_v56  ;;  %s5364_s20 = spop %4260 }
 0x10d   :  { %v672_v3 = vadd.f32 %v671_v23, %v670_v62  ;;  %v727_v43 = vadd.f32 %v726_v16, %v725_v11  ;;  %v722_v40 = vmul.f32 %v714_v59, %v5143_v4  ;;  %v824_v63 = vstv %s5333_s12  ;;  %v1318_v41 = vpop.permute.xlu1 %1317  ;;  %s5371_s17 = spop %4262 }
 0x10e   :  { %v1316_v42 = vpop.permute.xlu0 %1315  ;;  %v835_v7 = vsel %vm7682_vm15, %v826_v17, 0.0  ;;  %v843_v14 = vsel %vm7681_vm9, %v827_v21, 0.0  ;;  %v836_v30 = vsel %vm7682_vm15, %v828_v18, 0.0  ;;  %v844_v10 = vsel %vm7681_vm9, %v829_v44, 0.0  ;;  %s5375_s16 = spop %4264 }
 0x10f   :  { %4316 = vpush %v1316_v42  ;;  %v734_v62 = vadd.f32 %v733_v1, %v732_v13  ;;  %v728_v23 = vsel %vm7683_vm14, %v720_v9, 0.0  ;;  %v735_v11 = vsel %vm7689_vm2, %v721_v12, 0.0  ;;  %v723_v16 = vmul.f32 %v714_v59, %v5140_v0  ;;  %s5379_s19 = spop %4266 }
 0x110   :  { %4318 = vpush %v1318_v41  ;;  %vm7749_vm11 = vcmask 105490   ;;  %v838_v42 = vsel %vm7682_vm15, %v830_v45, 0.0  ;;  %v846_v17 = vsel %vm7681_vm9, %v831_v55, 0.0  ;;  %v832_v21 = vmul.f32 %v824_v63, %v5143_v4  ;;  %s5386_s18 = spop %4268 }
 0x111   :  { %v833_v18 = vmul.f32 %v824_v63, %v5140_v0  ;;  %v680_v44 = vadd.f32 %v679_v6, %v678_v53  ;;  %v673_v41 = vsel %vm7680_vm12, %v665_v5, 0.0  ;;  %v837_v13 = vadd.f32 %v836_v30, %v835_v7  ;;  %s5397_s6 = spop %4270 }
 0x112   :  { %v845_v9 = vadd.f32 %v844_v10, %v843_v14  ;;  %vm7708_vm10 = vcmask 102416   ;;  %vm207_vm7 = vcmask 1046528   ;;  %v681_v59 = vsel %vm7684_vm13, %v666_v19, 0.0 }
 0x113   :  { %v729_v12 = vadd.f32 %v728_v23, %v727_v43  ;;  %v736_v45 = vadd.f32 %v735_v11, %v734_v62  ;;  %v730_v1 = vsel %vm7683_vm14, %v722_v40, 0.0  ;;  %vm257_vm6 = vcmask 1045504  }
 0x114   :  { %v737_v53 = vsel %vm7689_vm2, %v723_v16, 0.0  ;;  %v839_v6 = vadd.f32 %v838_v42, %v837_v13  ;;  %v847_v5 = vadd.f32 %v846_v17, %v845_v9  ;;  %v872_v55 = vstv %s5339_s8  ;;  %s5403_s2 = spop %4272 }
 0x115   :  { %vm7766_vm12 = vcmask 1042432   ;;  %v560_v43 = vadd.f32 %v5300_v54, %v5297_v22  ;;  %v840_v19 = vsel %vm7682_vm15, %v832_v21, 0.0  ;;  %v848_v40 = vsel %vm7681_vm9, %v833_v18, 0.0  ;;  %s5411_s7 = spop %4274 }
 0x116   :  { %v875_v63 = vstv %s5349_s13  ;;  %v617_v7 = vadd.f32 %v5314_v52, %v5307_v27  ;;  %v674_v14 = vadd.f32 %v673_v41, %v672_v3  ;;  %v5392_v30 = vadd.f32 %v5317_v60, %v5309_v28 }
 0x117   :  { %v5394_v10 = vadd.f32 %v681_v59, %v680_v44  ;;  %v731_v62 = vadd.f32 %v730_v1, %v729_v12  ;;  %v883_v22 = vmul.f32 %v872_v55, %v5114_v8  ;;  %v514_v54 = vrot.slane %v5257_v2, 1 }
 0x118   :  { %v5400_v23 = vadd.f32 %v737_v53, %v736_v45  ;;  %v841_v11 = vadd.f32 %v840_v19, %v839_v6  ;;  %v885_v27 = vmul.f32 %v875_v63, %v5130_v57  ;;  %v7691_v52 = vrot.slane %v5305_v24, 2  ;;  %s5413_s9 = spop %4276 }
 0x119   :  { %v5406_v28 = vadd.f32 %v848_v40, %v847_v5  ;;  %v884_v60 = vmul.f32 %v872_v55, %v5125_v25  ;;  %v886_v3 = vmul.f32 %v875_v63, %v5132_v58  ;;  %v878_v16 = vstv %s5353_s14  ;;  %s5421_s10 = spop %4278 }
 0x11a   :  { %v571_v42 = vrot.slane %v560_v43, 2  ;;  %v7690_v2 = vrot.slane %v5392_v30, 3  ;;  %v628_v17 = vrot.slane %v617_v7, 3  ;;  %v7688_v21 = vrot.slane %v5394_v10, 4 }
 0x11b   :  { %v685_v18 = vrot.slane %v674_v14, 4  ;;  %v892_v44 = vsel %vm7749_vm11, %v883_v22, 0.0  ;;  %vm7742_vm9 = vcmask 113688   ;;  %v7687_v41 = vrot.slane %v5400_v23, 5 }
 0x11c   :  { %v741_v13 = vrot.slane %v731_v62, 5  ;;  %v893_v9 = vsel %vm7749_vm11, %v885_v27, 0.0  ;;  %v887_v59 = vmul.f32 %v878_v16, %v5134_v61  ;;  %v7686_v12 = vrot.slane %v5406_v28, 1  ;;  %s5427_s12 = spop %4280 }
 0x11d   :  { %v852_v45 = vrot.slane %v841_v11, 1  ;;  %v900_v1 = vsel %vm7708_vm10, %v884_v60, 0.0  ;;  %v901_v53 = vsel %vm7708_vm10, %v886_v3, 0.0  ;;  %v888_v6 = vmul.f32 %v878_v16, %v5136_v56  ;;  %s5429_s8 = spop %4282 }
 0x11e   :  { %vm7702_vm15 = vcmask 108568   ;;  %v7792_v5 = vrot.slane %v5228_v20, 1  ;;  %v5439_v43 = vsel %vm257_vm6, %v571_v42, %v7691_v52  ;;  %v5444_v19 = vsel %vm307_vm4, %v628_v17, %v7690_v2 }
 0x11f   :  { %v5449_v40 = vsel %vm357_vm5, %v685_v18, %v7688_v21  ;;  %v5451_v63 = vadd.f32 %v893_v9, %v892_v44  ;;  %v881_v7 = vstv %s5359_s15  ;;  %v929_v14 = vstv %s5364_s20 }
 0x120   :  { %v5434_v55 = vsel %vm207_vm7, %v514_v54, %v7792_v5  ;;  %s4285_s13 = spop %4284  ;;  %v5458_v62 = vsel %vm7766_vm12, %v741_v13, %v7687_v41  ;;  %v902_v22 = vadd.f32 %v901_v53, %v900_v1  ;;  %v895_v54 = vsel %vm7749_vm11, %v887_v59, 0.0 }
 0x121   :  { %vm7704_vm14 = vcmask 105491   ;;  %vm7703_vm13 = vcmask 103440   ;;  %v1099_v11 = vstv %s4285_s13  ;;  %s4287_s14 = spop %4286  ;;  %v5464_v27 = vsel %vm207_vm7, %v852_v45, %v7686_v12 }
 0x122   :  { %v903_v60 = vsel %vm7708_vm10, %v888_v6, 0.0  ;;  %v932_v3 = vstv %s5371_s17  ;;  %v1110_v16 = vmul.f32 %v1099_v11, %v5114_v8  ;;  %v1111_v42 = vmul.f32 %v1099_v11, %v5125_v25  ;;  %s7793_s17 = smov 125  }
 0x123   :  { %v889_v17 = vmul.f32 %v881_v7, %v5143_v4  ;;  %v890_v18 = vmul.f32 %v881_v7, %v5140_v0  ;;  %v940_v44 = vmul.f32 %v929_v14, %v5114_v8  ;;  %v1102_v13 = vstv %s4287_s14 }
 0x124   :  { %v1119_v9 = vsel %vm7742_vm9, %v1110_v16, 0.0  ;;  %v1127_v59 = vsel %vm7702_vm15, %v1111_v42, 0.0  ;;  %v1112_v45 = vmul.f32 %v1102_v13, %v5130_v57  ;;  %v1113_v1 = vmul.f32 %v1102_v13, %v5132_v58  ;;  %s4289_s15 = spop %4288 }
 0x125   :  { %v941_v53 = vmul.f32 %v929_v14, %v5125_v25  ;;  %v942_v6 = vmul.f32 %v932_v3, %v5130_v57  ;;  %v935_v5 = vstv %s5375_s16  ;;  %v1105_v11 = vstv %s4289_s15  ;;  %s4291_s20 = spop %4290  ;;  %s7794_s16 = smov 127  }
 0x126   :  { %v1120_v7 = vsel %vm7742_vm9, %v1112_v45, 0.0  ;;  %v1128_v12 = vsel %vm7702_vm15, %v1113_v1, 0.0  ;;  %v1114_v16 = vmul.f32 %v1105_v11, %v5134_v61  ;;  %v1115_v42 = vmul.f32 %v1105_v11, %v5136_v56 }
 0x127   :  { %v943_v13 = vmul.f32 %v932_v3, %v5132_v58  ;;  %v1121_v41 = vadd.f32 %v1120_v7, %v1119_v9  ;;  %v1129_v14 = vadd.f32 %v1128_v12, %v1127_v59  ;;  %v1108_v21 = vstv %s4291_s20 }
 0x128   :  { %vm7706_vm2 = vcmask 105492   ;;  %v1122_v2 = vsel %vm7742_vm9, %v1114_v16, 0.0  ;;  %v1130_v52 = vsel %vm7702_vm15, %v1115_v42, 0.0  ;;  %v1116_v45 = vmul.f32 %v1108_v21, %v5143_v4 }
 0x129   :  { %v1117_v1 = vmul.f32 %v1108_v21, %v5140_v0  ;;  %v944_v38 = vmul.f32 %v935_v5, %v5134_v61  ;;  %v945_v39 = vmul.f32 %v935_v5, %v5136_v56  ;;  %v1123_v11 = vadd.f32 %v1122_v2, %v1121_v41 }
 0x12a   :  { %v1131_v36 = vadd.f32 %v1130_v52, %v1129_v14  ;;  %v986_v3 = vstv %s5386_s18  ;;  %v989_v12 = vstv %s5397_s6  ;;  %v1124_v9 = vsel %vm7742_vm9, %v1116_v45, 0.0 }
 0x12b   :  { %v1132_v59 = vsel %vm7702_vm15, %v1117_v1, 0.0  ;;  %v904_v7 = vadd.f32 %v903_v60, %v902_v22  ;;  %v905_v16 = vsel %vm7708_vm10, %v890_v18, 0.0  ;;  %v1125_v37 = vadd.f32 %v1124_v9, %v1123_v11 }
 0x12c   :  { %v1133_v42 = vadd.f32 %v1132_v59, %v1131_v36  ;;  %v949_v21 = vsel %vm7704_vm14, %v940_v44, 0.0  ;;  %v957_v34 = vsel %vm7703_vm13, %v941_v53, 0.0  ;;  %v950_v5 = vsel %vm7704_vm14, %v942_v6, 0.0 }
 0x12d   :  { %v938_v2 = vstv %s5379_s19  ;;  %v958_v52 = vsel %vm7703_vm13, %v943_v13, 0.0  ;;  %v998_v41 = vmul.f32 %v986_v3, %v5125_v25  ;;  %v1000_v14 = vmul.f32 %v989_v12, %v5132_v58  ;;  %1136 = vrot.lane.b32.xlu0 %v1125_v37, %s7793_s17  ;;  %s5546_s19 = spop %4292 }
 0x12e   :  { %v992_v45 = vstv %s5403_s2  ;;  %1138 = vrot.lane.b32.xlu1 %v1133_v42, %s7793_s17  ;;  %v896_v36 = vadd.f32 %v895_v54, %v5451_v63  ;;  %v897_v22 = vsel %vm7749_vm11, %v889_v17, 0.0  ;;  %v952_v60 = vsel %vm7704_vm14, %v944_v38, 0.0  ;;  %s5554_s18 = spop %4294 }
 0x12f   :  { %v960_v18 = vsel %vm7703_vm13, %v945_v39, 0.0  ;;  %vm7707_vm15 = vcmask 105493   ;;  %v946_v44 = vmul.f32 %v938_v2, %v5143_v4  ;;  %v947_v53 = vmul.f32 %v938_v2, %v5140_v0  ;;  %s5568_s6 = spop %4296 }
 0x130   :  { %v997_v6 = vmul.f32 %v986_v3, %v5114_v8  ;;  %v999_v37 = vmul.f32 %v989_v12, %v5130_v57  ;;  %v951_v13 = vadd.f32 %v950_v5, %v949_v21  ;;  %v959_v63 = vadd.f32 %v958_v52, %v957_v34  ;;  %s5571_s2 = spop %4298 }
 0x131   :  { %v1002_v54 = vmul.f32 %v992_v45, %v5136_v56  ;;  %v5515_v17 = vadd.f32 %v905_v16, %v904_v7  ;;  %v1014_v38 = vsel %vm7705_vm3, %v998_v41, 0.0  ;;  %v1015_v39 = vsel %vm7705_vm3, %v1000_v14, 0.0  ;;  %517 = vrot.lane.b32.xlu0 %v5434_v55, %s7794_s16 }
 0x132   :  { %v1001_v1 = vmul.f32 %v992_v45, %v5134_v61  ;;  %v995_v11 = vstv %s5411_s7  ;;  %v7795_v9 = vrot.slane %v5228_v20, 1  ;;  %v953_v34 = vadd.f32 %v952_v60, %v951_v13  ;;  %s5580_s7 = spop %4300 }
 0x133   :  { %v961_v3 = vadd.f32 %v960_v18, %v959_v63  ;;  %v1043_v12 = vstv %s5413_s9  ;;  %v1046_v59 = vstv %s5421_s10  ;;  %v954_v7 = vsel %vm7704_vm14, %v946_v44, 0.0  ;;  %s4303_s9 = spop %4302 }
 0x134   :  { %519 = vrot.lane.b32.xlu1 %v7795_v9, %s7794_s16  ;;  %v962_v16 = vsel %vm7703_vm13, %v947_v53, 0.0  ;;  %v1006_v42 = vsel %vm7706_vm2, %v997_v6, 0.0  ;;  %v1007_v21 = vsel %vm7706_vm2, %v999_v37, 0.0  ;;  %v1016_v5 = vadd.f32 %v1015_v39, %v1014_v38  ;;  %s5597_s10 = spop %4304 }
 0x135   :  { %v1017_v20 = vsel %vm7705_vm3, %v1002_v54, 0.0  ;;  %v1003_v2 = vmul.f32 %v995_v11, %v5143_v4  ;;  %v1004_v55 = vmul.f32 %v995_v11, %v5140_v0  ;;  %v1009_v52 = vsel %vm7706_vm2, %v1001_v1, 0.0  ;;  %574 = vrot.lane.b32.xlu0 %v5439_v43, %s7794_s16 }
 0x136   :  { %v1054_v41 = vmul.f32 %v1043_v12, %v5114_v8  ;;  %v1056_v14 = vmul.f32 %v1046_v59, %v5130_v57  ;;  %v1049_v45 = vstv %s5427_s12  ;;  %v7796_v60 = vrot.slane %v5305_v24, 2  ;;  %s5607_s12 = spop %4306 }
 0x137   :  { %v898_v18 = vadd.f32 %v897_v22, %v896_v36  ;;  %v1008_v44 = vadd.f32 %v1007_v21, %v1006_v42  ;;  %v1055_v53 = vmul.f32 %v1043_v12, %v5125_v25  ;;  %v1057_v6 = vmul.f32 %v1046_v59, %v5132_v58 }
 0x138   :  { %576 = vrot.lane.b32.xlu1 %v7796_v60, %s7794_s16  ;;  %vm7737_vm13 = vcmask 113689   ;;  %v955_v37 = vadd.f32 %v954_v7, %v953_v34  ;;  %v1018_v13 = vadd.f32 %v1017_v20, %v1016_v5  ;;  %vm7736_vm14 = vcmask 109592  }
 0x139   :  { %v910_v24 = vrot.slane %v5515_v17, 2  ;;  %v5549_v63 = vadd.f32 %v962_v16, %v961_v3  ;;  %v1010_v54 = vadd.f32 %v1009_v52, %v1008_v44  ;;  %v1011_v43 = vsel %vm7706_vm2, %v1003_v2, 0.0  ;;  %631 = vrot.lane.b32.xlu0 %v5444_v19, %s7794_s16 }
 0x13a   :  { %v1019_v36 = vsel %vm7705_vm3, %v1004_v55, 0.0  ;;  %v1058_v22 = vmul.f32 %v1049_v45, %v5134_v61  ;;  %v1063_v38 = vsel %vm7707_vm15, %v1054_v41, 0.0  ;;  %v1064_v39 = vsel %vm7707_vm15, %v1056_v14, 0.0 }
 0x13b   :  { %v1059_v1 = vmul.f32 %v1049_v45, %v5136_v56  ;;  %v1052_v11 = vstv %s5429_s8  ;;  %v7797_v9 = vrot.slane %v5392_v30, 3  ;;  %v1070_v34 = vsel %vm7750_vm8, %v1055_v53, 0.0  ;;  %s5618_s8 = spop %4308 }
 0x13c   :  { %v1071_v3 = vsel %vm7750_vm8, %v1057_v6, 0.0  ;;  %v1153_v12 = vstv %s5546_s19  ;;  %v909_v59 = vrot.slane %v898_v18, 2  ;;  %v1156_v7 = vstv %s5554_s18  ;;  %s4311_s13 = spop %4310 }
 0x13d   :  { %633 = vrot.lane.b32.xlu1 %v7797_v9, %s7794_s16  ;;  %v967_v16 = vrot.slane %v5549_v63, 3  ;;  %v966_v42 = vrot.slane %v955_v37, 3  ;;  %v5574_v21 = vadd.f32 %v1019_v36, %v1018_v13  ;;  %v5576_v30 = vadd.f32 %v1011_v43, %v1010_v54  ;;  %688 = vrot.lane.b32.xlu0 %v5449_v40, %s7794_s16  ;;  %s4313_s14 = spop %4312 }
 0x13e   :  { %v1065_v19 = vadd.f32 %v1064_v39, %v1063_v38  ;;  %v1066_v5 = vsel %vm7707_vm15, %v1058_v22, 0.0  ;;  %v1060_v20 = vmul.f32 %v1052_v11, %v5143_v4  ;;  %vm7735_vm3 = vcmask 113690   ;;  %s4315_s15 = spop %4314 }
 0x13f   :  { %vm7715_vm2 = vcmask 110616   ;;  %v1072_v2 = vadd.f32 %v1071_v3, %v1070_v34  ;;  %v1073_v55 = vsel %vm7750_vm8, %v1059_v1, 0.0  ;;  %v1061_v52 = vmul.f32 %v1052_v11, %v5140_v0 }
 0x140   :  { %v7798_v41 = vrot.slane %v5394_v10, 4  ;;  %v1164_v14 = vmul.f32 %v1153_v12, %v5114_v8  ;;  %v1165_v45 = vmul.f32 %v1153_v12, %v5125_v25  ;;  %v1166_v60 = vmul.f32 %v1156_v7, %v5130_v57  ;;  %s4317_s20 = spop %4316 }
 0x141   :  { %v1167_v18 = vmul.f32 %v1156_v7, %v5132_v58  ;;  %v1159_v44 = vstv %s5568_s6  ;;  %v1067_v53 = vadd.f32 %v1066_v5, %v1065_v19  ;;  %v911_v10 = vsel %vm257_vm6, %v909_v59, %v910_v24  ;;  %744 = vrot.lane.b32.xlu0 %v5458_v62, %s7794_s16  ;;  %s4319_s19 = spop %4318 }
 0x142   :  { %690 = vrot.lane.b32.xlu1 %v7798_v41, %s7794_s16  ;;  %v5602_v40 = vsel %vm307_vm4, %v966_v42, %v967_v16  ;;  %v1024_v6 = vrot.slane %v5574_v21, 4  ;;  %v1074_v37 = vadd.f32 %v1073_v55, %v1072_v2  ;;  %v1068_v13 = vsel %vm7707_vm15, %v1060_v20, 0.0 }
 0x143   :  { %v1210_v54 = vstv %s5580_s7  ;;  %v1023_v43 = vrot.slane %v5576_v30, 4  ;;  %v1075_v36 = vsel %vm7750_vm8, %v1061_v52, 0.0  ;;  %v1173_v22 = vsel %vm7737_vm13, %v1164_v14, 0.0 }
 0x144   :  { %v7799_v38 = vrot.slane %v5400_v23, 5  ;;  %v1168_v39 = vmul.f32 %v1159_v44, %v5134_v61  ;;  %v1213_v1 = vstv %s4303_s9  ;;  %vm7710_vm15 = vcmask 113691  }
 0x145   :  { %vm7709_vm10 = vcmask 111640   ;;  %v1181_v11 = vsel %vm7736_vm14, %v1165_v45, 0.0  ;;  %v1174_v9 = vsel %vm7737_vm13, %v1166_v60, 0.0  ;;  %v1182_v34 = vsel %vm7736_vm14, %v1167_v18, 0.0  ;;  %855 = vrot.lane.b32.xlu0 %v5464_v27, %s7791_s11 }
 0x146   :  { %746 = vrot.lane.b32.xlu1 %v7799_v38, %s7794_s16  ;;  %v1169_v23 = vmul.f32 %v1159_v44, %v5136_v56  ;;  %v5624_v3 = vadd.f32 %v1068_v13, %v1067_v53  ;;  %v1162_v62 = vstv %s5571_s2  ;;  %v1221_v12 = vmul.f32 %v1210_v54, %v5114_v8 }
 0x147   :  { %v1222_v59 = vmul.f32 %v1210_v54, %v5125_v25  ;;  %v1223_v7 = vmul.f32 %v1213_v1, %v5130_v57  ;;  %v1224_v42 = vmul.f32 %v1213_v1, %v5132_v58  ;;  %v1216_v19 = vstv %s5597_s10 }
 0x148   :  { %v5632_v5 = vadd.f32 %v1075_v36, %v1074_v37  ;;  %v1175_v20 = vadd.f32 %v1174_v9, %v1173_v22  ;;  %v1183_v2 = vadd.f32 %v1182_v34, %v1181_v11  ;;  %v1176_v55 = vsel %vm7737_vm13, %v1168_v39, 0.0 }
 0x149   :  { %v7800_v52 = vrot.slane %v5406_v28, 1  ;;  %v1267_v41 = vstv %s5618_s8  ;;  %v1184_v14 = vsel %vm7736_vm14, %v1169_v23, 0.0  ;;  %v1170_v45 = vmul.f32 %v1162_v62, %v5143_v4  ;;  %912 = vrot.lane.b32.xlu0 %v911_v10, %s7791_s11 }
 0x14a   :  { %v1171_v60 = vmul.f32 %v1162_v62, %v5140_v0  ;;  %v1270_v18 = vstv %s4311_s13  ;;  %v1230_v44 = vsel %vm7735_vm3, %v1221_v12, 0.0  ;;  %v1238_v53 = vsel %vm7715_vm2, %v1222_v59, 0.0 }
 0x14b   :  { %857 = vrot.lane.b32.xlu1 %v7800_v52, %s7791_s11  ;;  %v1225_v37 = vmul.f32 %v1216_v19, %v5134_v61  ;;  %v1226_v28 = vmul.f32 %v1216_v19, %v5136_v56  ;;  %v1231_v27 = vsel %vm7735_vm3, %v1223_v7, 0.0  ;;  %v1239_v13 = vsel %vm7715_vm2, %v1224_v42, 0.0 }
 0x14c   :  { %v1278_v54 = vmul.f32 %v1267_v41, %v5114_v8  ;;  %v1279_v36 = vmul.f32 %v1267_v41, %v5125_v25  ;;  %v1177_v22 = vadd.f32 %v1176_v55, %v1175_v20  ;;  %v1219_v38 = vstv %s5607_s12  ;;  %s4754_s12 = smov 124  }
 0x14d   :  { %v1280_v39 = vmul.f32 %v1270_v18, %v5130_v57  ;;  %v1281_v1 = vmul.f32 %v1270_v18, %v5132_v58  ;;  %v1185_v11 = vadd.f32 %v1184_v14, %v1183_v2  ;;  %v1178_v9 = vsel %vm7737_vm13, %v1170_v45, 0.0  ;;  %969 = vrot.lane.b32.xlu0 %v5602_v40, %s7791_s11 }
 0x14e   :  { %v1186_v34 = vsel %vm7736_vm14, %v1171_v60, 0.0  ;;  %v1273_v23 = vstv %s4313_s14  ;;  %v1232_v62 = vadd.f32 %v1231_v27, %v1230_v44  ;;  %v1240_v12 = vadd.f32 %v1239_v13, %v1238_v53 }
 0x14f   :  { %914 = vrot.lane.b32.xlu1 %v910_v24, %s7791_s11  ;;  %v1233_v59 = vsel %vm7735_vm3, %v1225_v37, 0.0  ;;  %v1241_v17 = vsel %vm7715_vm2, %v1226_v28, 0.0  ;;  %v1227_v24 = vmul.f32 %v1219_v38, %v5143_v4  ;;  %v1228_v10 = vmul.f32 %v1219_v38, %v5140_v0 }
 0x150   :  { %v1287_v7 = vsel %vm7710_vm15, %v1278_v54, 0.0  ;;  %v1295_v42 = vsel %vm7709_vm10, %v1279_v36, 0.0  ;;  %v1288_v19 = vsel %vm7710_vm15, %v1280_v39, 0.0  ;;  %v1296_v20 = vsel %vm7709_vm10, %v1281_v1, 0.0 }
 0x151   :  { %v1282_v2 = vmul.f32 %v1273_v23, %v5134_v61  ;;  %v1283_v55 = vmul.f32 %v1273_v23, %v5136_v56  ;;  %v1025_v52 = vsel %vm357_vm5, %v1023_v43, %v1024_v6  ;;  %v1276_v41 = vstv %s4315_s15 }
 0x152   :  { %v1080_v63 = vrot.slane %v5632_v5, 5  ;;  %v1179_v40 = vadd.f32 %v1178_v9, %v1177_v22  ;;  %v1234_v14 = vadd.f32 %v1233_v59, %v1232_v62  ;;  %v1242_v45 = vadd.f32 %v1241_v17, %v1240_v12  ;;  %1026 = vrot.lane.b32.xlu0 %v1025_v52, %s7791_s11  ;;  %v5711_v17 = vpop.permute.xlu1 %462 }
 0x153   :  { %971 = vrot.lane.b32.xlu1 %v967_v16, %s7791_s11  ;;  %v1079_v16 = vrot.slane %v5624_v3, 5  ;;  %v1187_v60 = vadd.f32 %v1186_v34, %v1185_v11  ;;  %v1235_v18 = vsel %vm7735_vm3, %v1227_v24, 0.0  ;;  %v1243_v44 = vsel %vm7715_vm2, %v1228_v10, 0.0  ;;  %v5713_v24 = vpop.permute.xlu0 %460 }
 0x154   :  { %v1289_v53 = vadd.f32 %v1288_v19, %v1287_v7  ;;  %v1297_v37 = vadd.f32 %v1296_v20, %v1295_v42  ;;  %v1290_v30 = vsel %vm7710_vm15, %v1282_v2, 0.0  ;;  %v1298_v43 = vsel %vm7709_vm10, %v1283_v55, 0.0 }
 0x155   :  { %v1284_v3 = vmul.f32 %v1276_v41, %v5143_v4  ;;  %v1285_v5 = vmul.f32 %v1276_v41, %v5140_v0  ;;  %v1081_v28 = vsel %vm7766_vm12, %v1079_v16, %v1080_v63  ;;  %v1191_v27 = vrot.slane %v1187_v60, 1 }
 0x156   :  { %v1190_v13 = vrot.slane %v1179_v40, 1  ;;  %v1236_v54 = vadd.f32 %v1235_v18, %v1234_v14  ;;  %v1291_v36 = vadd.f32 %v1290_v30, %v1289_v53  ;;  %v1299_v22 = vadd.f32 %v1298_v43, %v1297_v37  ;;  %1082 = vrot.lane.b32.xlu0 %v1081_v28, %s7791_s11 }
 0x157   :  { %1028 = vrot.lane.b32.xlu1 %v1024_v6, %s7791_s11  ;;  %v1244_v38 = vadd.f32 %v1243_v44, %v1242_v45  ;;  %v1292_v21 = vsel %vm7710_vm15, %v1284_v3, 0.0  ;;  %v1300_v6 = vsel %vm7709_vm10, %v1285_v5, 0.0  ;;  %vm7713_vm10 = vcmask 113692  }
 0x158   :  { %v1192_v39 = vsel %vm207_vm7, %v1190_v13, %v1191_v27  ;;  %v1293_v1 = vadd.f32 %v1292_v21, %v1291_v36  ;;  %v1247_v9 = vrot.slane %v1236_v54, 2  ;;  %v1301_v34 = vadd.f32 %v1300_v6, %v1299_v22 }
 0x159   :  { %v1248_v11 = vrot.slane %v1244_v38, 2  ;;  %vm7711_vm15 = vcmask 112664   ;;  %vm7716_vm2 = vcmask 117792   ;;  %vm7751_vm3 = vcmask 89089  }
 0x15a   :  { %1193 = vrot.lane.b32.xlu0 %v1192_v39, %s7793_s17  ;;  %v1305_v62 = vrot.slane %v1301_v34, 3  ;;  %v1304_v12 = vrot.slane %v1293_v1, 3  ;;  %v1324_v39 = vstv %s4317_s20  ;;  %v1327_v1 = vstv %s4319_s19 }
 0x15b   :  { %1084 = vrot.lane.b32.xlu1 %v1080_v63, %s7791_s11  ;;  %v1249_v23 = vsel %vm257_vm6, %v1247_v9, %v1248_v11  ;;  %v1336_v9 = vmul.f32 %v1324_v39, %v5125_v25  ;;  %v1337_v34 = vmul.f32 %v1327_v1, %v5130_v57  ;;  %vm197_vm14 = vcmask 84992  }
 0x15c   :  { %v1306_v59 = vsel %vm307_vm4, %v1304_v12, %v1305_v62  ;;  %vm239_vm13 = vcmask 89090   ;;  %vm297_vm11 = vcmask 87040   ;;  %vm339_vm8 = vcmask 89092  }
 0x15d   :  { %v1352_v12 = vsel %vm7711_vm15, %v1336_v9, 0.0 }
 0x15e   :  { %1250 = vrot.lane.b32.xlu0 %v1249_v23, %s7793_s17  ;;  %v1338_v23 = vmul.f32 %v1327_v1, %v5132_v58 }
 0x15f   :  { %1195 = vrot.lane.b32.xlu1 %v1191_v27, %s7793_s17 }
 0x162   :  { %1307 = vrot.lane.b32.xlu0 %v1306_v59, %s7793_s17  ;;  %v1345_v59 = vsel %vm7713_vm10, %v1337_v34, 0.0 }
 0x163   :  { %1252 = vrot.lane.b32.xlu1 %v1248_v11, %s7793_s17  ;;  %v1335_v11 = vmul.f32 %v1324_v39, %v5114_v8 }
 0x166   :  { %1319 = vrot.lane.b32.xlu0 %v4920_v46, %s7793_s17 }
 0x167   :  { %1309 = vrot.lane.b32.xlu1 %v1305_v62, %s7793_s17  ;;  %v1344_v62 = vsel %vm7713_vm10, %v1335_v11, 0.0 }
 0x16b   :  { %1321 = vrot.lane.b32.xlu1 %v4924_v47, %s7793_s17 }
 0x16f   :  { %v5715_v10 = vpop.permute.xlu1 %800  ;;  %v5717_v7 = vpop.permute.xlu0 %798 }
 0x170   :  { %7801 = vst [vmem:[#allocation26_spill] sm:$0xff] %v5715_v10  ;;  %7802 = vst [vmem:[#allocation27_spill] sm:$0xff] %v5717_v7 }
 0x19f   :  { %v5721_v19 = vpop.permute.xlu0 %1136 }
 0x1a0   :  { %v5719_v42 = vpop.permute.xlu1 %1138  ;;  %7804 = vst [vmem:[#allocation29_spill] sm:$0xff] %v5721_v19 }
 0x1a1   :  { %7803 = vst [vmem:[#allocation28_spill] sm:$0xff] %v5719_v42 }
 0x1a3   :  { %v5725_v2 = vpop.permute.xlu0 %517 }
 0x1a6   :  { %v5723_v20 = vpop.permute.xlu1 %519 }
 0x1a7   :  { %v5729_v52 = vpop.permute.xlu0 %574 }
 0x1aa   :  { %v5727_v55 = vpop.permute.xlu1 %576 }
 0x1ab   :  { %v5733_v63 = vpop.permute.xlu0 %631 }
 0x1af   :  { %v5731_v41 = vpop.permute.xlu1 %633  ;;  %v5737_v40 = vpop.permute.xlu0 %688 }
 0x1b3   :  { %v5741_v45 = vpop.permute.xlu0 %744 }
 0x1b4   :  { %v5735_v16 = vpop.permute.xlu1 %690 }
 0x1b7   :  { %v5745_v18 = vpop.permute.xlu0 %855 }
 0x1b8   :  { %v5739_v14 = vpop.permute.xlu1 %746  ;;  %7806 = vst [vmem:[#allocation31_spill] sm:$0xff] %v5745_v18 }
 0x1bb   :  { %v5749_v53 = vpop.permute.xlu0 %912 }
 0x1bc   :  { %7808 = vst [vmem:[#allocation33_spill] sm:$0xff] %v5749_v53 }
 0x1bd   :  { %v5743_v60 = vpop.permute.xlu1 %857 }
 0x1be   :  { %7805 = vst [vmem:[#allocation30_spill] sm:$0xff] %v5743_v60 }
 0x1bf   :  { %v5753_v30 = vpop.permute.xlu0 %969 }
 0x1c0   :  { %7810 = vst [vmem:[#allocation35_spill] sm:$0xff] %v5753_v30 }
 0x1c1   :  { %v5747_v44 = vpop.permute.xlu1 %914 }
 0x1c2   :  { %7807 = vst [vmem:[#allocation32_spill] sm:$0xff] %v5747_v44 }
 0x1c4   :  { %v5757_v3 = vpop.permute.xlu0 %1026 }
 0x1c5   :  { %v5751_v37 = vpop.permute.xlu1 %971  ;;  %7812 = vst [vmem:[#allocation37_spill] sm:$0xff] %v5757_v3 }
 0x1c6   :  { %7809 = vst [vmem:[#allocation34_spill] sm:$0xff] %v5751_v37 }
 0x1c8   :  { %v5761_v28 = vpop.permute.xlu0 %1082 }
 0x1c9   :  { %v5755_v43 = vpop.permute.xlu1 %1028  ;;  %7814 = vst [vmem:[#allocation39_spill] sm:$0xff] %v5761_v28 }
 0x1ca   :  { %7811 = vst [vmem:[#allocation36_spill] sm:$0xff] %v5755_v43 }
 0x1cc   :  { %v5765_v13 = vpop.permute.xlu0 %1193 }
 0x1cd   :  { %v5759_v5 = vpop.permute.xlu1 %1084  ;;  %7816 = vst [vmem:[#allocation41_spill] sm:$0xff] %v5765_v13 }
 0x1ce   :  { %7813 = vst [vmem:[#allocation38_spill] sm:$0xff] %v5759_v5 }
 0x1d0   :  { %v5769_v36 = vpop.permute.xlu0 %1250 }
 0x1d1   :  { %v5763_v27 = vpop.permute.xlu1 %1195  ;;  %7818 = vst [vmem:[#allocation43_spill] sm:$0xff] %v5769_v36  ;;  %v1346_v36 = vadd.f32 %v1345_v59, %v1344_v62 }
 0x1d2   :  { %7815 = vst [vmem:[#allocation40_spill] sm:$0xff] %v5763_v27 }
 0x1d4   :  { %v5773_v38 = vpop.permute.xlu0 %1307 }
 0x1d5   :  { %v5767_v54 = vpop.permute.xlu1 %1252  ;;  %7820 = vst [vmem:[#allocation45_spill] sm:$0xff] %v5773_v38 }
 0x1d6   :  { %7817 = vst [vmem:[#allocation42_spill] sm:$0xff] %v5767_v54 }
 0x1d8   :  { %v1320_v21 = vpop.permute.xlu0 %1319 }
 0x1d9   :  { %v5771_v22 = vpop.permute.xlu1 %1309  ;;  %4320 = vpush %v1320_v21  ;;  %v1353_v21 = vsel %vm7711_vm15, %v1338_v23, 0.0 }
 0x1da   :  { %7819 = vst [vmem:[#allocation44_spill] sm:$0xff] %v5771_v22  ;;  %v1354_v1 = vadd.f32 %v1353_v21, %v1352_v12 }
 0x1dd   :  { %v1322_v6 = vpop.permute.xlu1 %1321 }
 0x1de   :  { %4322 = vpush %v1322_v6 }
 0x20a   :  { %s4321_s18 = spop %4320 }
 0x20b   :  { %v1330_v6 = vstv %s4321_s18 }
 0x20c   :  { %v1339_v38 = vmul.f32 %v1330_v6, %v5134_v61  ;;  %v1340_v39 = vmul.f32 %v1330_v6, %v5136_v56 }
 0x20e   :  { %v1347_v9 = vsel %vm7713_vm10, %v1339_v38, 0.0  ;;  %v1355_v34 = vsel %vm7711_vm15, %v1340_v39, 0.0 }
 0x20f   :  { %s4323_s6 = spop %4322  ;;  %v1348_v13 = vadd.f32 %v1347_v9, %v1346_v36  ;;  %v1356_v23 = vadd.f32 %v1355_v34, %v1354_v1 }
 0x210   :  { %v1333_v22 = vstv %s4323_s6 }
 0x211   :  { %v1341_v54 = vmul.f32 %v1333_v22, %v5143_v4  ;;  %v1342_v11 = vmul.f32 %v1333_v22, %v5140_v0 }
 0x213   :  { %v1349_v27 = vsel %vm7713_vm10, %v1341_v54, 0.0  ;;  %v1357_v19 = vsel %vm7711_vm15, %v1342_v11, 0.0  ;;  %vm7712_vm15 = vcmask 113693   ;;  %vm7714_vm10 = vcmask 116768  }
 0x214   :  { %v1350_v42 = vadd.f32 %v1349_v27, %v1348_v13  ;;  %v1358_v28 = vadd.f32 %v1357_v19, %v1356_v23 }
 0x216   :  { %v1361_v6 = vrot.slane %v1350_v42, 4  ;;  %v1362_v5 = vrot.slane %v1358_v28, 4 }
 0x218   :  { %1366 = vrot.lane.b32.xlu1 %v1362_v5, %s7793_s17  ;;  %v1363_v62 = vsel %vm357_vm5, %v1361_v6, %v1362_v5 }
 0x219   :  { %1364 = vrot.lane.b32.xlu0 %v1363_v62, %s7793_s17 }
 0x21c   :  { %1374 = vrot.lane.b32.xlu1 %v4934_v49, %s7793_s17 }
 0x21d   :  { %1372 = vrot.lane.b32.xlu0 %v4930_v48, %s7793_s17 }
 0x220   :  { %1378 = vrot.lane.b32.xlu1 %v4944_v51, %s7793_s17 }
 0x221   :  { %1376 = vrot.lane.b32.xlu0 %v4940_v50, %s7793_s17 }
 0x28a   :  { %v5802_v42 = vpop.permute.xlu1 %1366 }
 0x28b   :  { %7821 = vst [vmem:[#allocation46_spill] sm:$0xff] %v5802_v42  ;;  %v5804_v19 = vpop.permute.xlu0 %1364 }
 0x28c   :  { %7822 = vst [vmem:[#allocation47_spill] sm:$0xff] %v5804_v19 }
 0x28e   :  { %v1375_v28 = vpop.permute.xlu1 %1374 }
 0x28f   :  { %v1373_v5 = vpop.permute.xlu0 %1372 }
 0x290   :  { %4324 = vpush %v1373_v5 }
 0x291   :  { %4326 = vpush %v1375_v28 }
 0x292   :  { %v1379_v27 = vpop.permute.xlu1 %1378 }
 0x293   :  { %v1377_v13 = vpop.permute.xlu0 %1376 }
 0x294   :  { %4328 = vpush %v1377_v13 }
 0x295   :  { %4330 = vpush %v1379_v27 }
 0x2c1   :  { %s4325_s2 = spop %4324 }
 0x2c2   :  { %v1381_v54 = vstv %s4325_s2  ;;  %s4327_s7 = spop %4326 }
 0x2c3   :  { %v1392_v36 = vmul.f32 %v1381_v54, %v5114_v8  ;;  %v1393_v22 = vmul.f32 %v1381_v54, %v5125_v25  ;;  %v1384_v38 = vstv %s4327_s7 }
 0x2c4   :  { %v1394_v12 = vmul.f32 %v1384_v38, %v5130_v57  ;;  %v1395_v59 = vmul.f32 %v1384_v38, %v5132_v58 }
 0x2c5   :  { %v1401_v21 = vsel %vm7712_vm15, %v1392_v36, 0.0  ;;  %v1408_v39 = vsel %vm7742_vm9, %v1393_v22, 0.0  ;;  %s4329_s9 = spop %4328 }
 0x2c6   :  { %v1402_v1 = vsel %vm7712_vm15, %v1394_v12, 0.0  ;;  %v1409_v11 = vsel %vm7742_vm9, %v1395_v59, 0.0  ;;  %v1387_v9 = vstv %s4329_s9  ;;  %s4331_s10 = spop %4330 }
 0x2c7   :  { %v1396_v34 = vmul.f32 %v1387_v9, %v5134_v61  ;;  %v1397_v23 = vmul.f32 %v1387_v9, %v5136_v56  ;;  %v1403_v6 = vadd.f32 %v1402_v1, %v1401_v21  ;;  %v1410_v62 = vadd.f32 %v1409_v11, %v1408_v39 }
 0x2c8   :  { %v1390_v28 = vstv %s4331_s10 }
 0x2c9   :  { %v1404_v5 = vsel %vm7712_vm15, %v1396_v34, 0.0  ;;  %v1411_v27 = vsel %vm7742_vm9, %v1397_v23, 0.0  ;;  %v1398_v13 = vmul.f32 %v1390_v28, %v5143_v4  ;;  %v1399_v54 = vmul.f32 %v1390_v28, %v5140_v0 }
 0x2ca   :  { %v1405_v36 = vadd.f32 %v1404_v5, %v1403_v6  ;;  %v1412_v22 = vadd.f32 %v1411_v27, %v1410_v62 }
 0x2cb   :  { %v1406_v38 = vsel %vm7712_vm15, %v1398_v13, 0.0  ;;  %v1413_v12 = vsel %vm7742_vm9, %v1399_v54, 0.0  ;;  %vm7726_vm15 = vcmask 121888   ;;  %vm289_vm9 = vcmask 89091  }
 0x2cc   :  { %v1407_v59 = vadd.f32 %v1406_v38, %v1405_v36  ;;  %v1414_v19 = vadd.f32 %v1413_v12, %v1412_v22 }
 0x2ce   :  { %v1417_v9 = vrot.slane %v1407_v59, 5  ;;  %v1418_v21 = vrot.slane %v1414_v19, 5 }
 0x2d0   :  { %1422 = vrot.lane.b32.xlu1 %v1418_v21, %s7793_s17  ;;  %v1419_v39 = vsel %vm7766_vm12, %v1417_v9, %v1418_v21 }
 0x2d1   :  { %1420 = vrot.lane.b32.xlu0 %v1419_v39, %s7793_s17 }
 0x2d4   :  { %1430 = vrot.lane.b32.xlu1 %v4842_v31, %s4754_s12 }
 0x2d5   :  { %1428 = vrot.lane.b32.xlu0 %v4833_v26, %s4754_s12 }
 0x2d8   :  { %1434 = vrot.lane.b32.xlu1 %v4837_v29, %s4754_s12 }
 0x2d9   :  { %1432 = vrot.lane.b32.xlu0 %v4813_v15, %s4754_s12 }
 0x342   :  { %v5833_v19 = vpop.permute.xlu1 %1422 }
 0x343   :  { %7823 = vst [vmem:[#allocation48_spill] sm:$0xff] %v5833_v19  ;;  %v5835_v1 = vpop.permute.xlu0 %1420 }
 0x344   :  { %7824 = vst [vmem:[#allocation49_spill] sm:$0xff] %v5835_v1 }
 0x346   :  { %v1431_v11 = vpop.permute.xlu1 %1430 }
 0x347   :  { %v1429_v34 = vpop.permute.xlu0 %1428 }
 0x348   :  { %4332 = vpush %v1429_v34 }
 0x349   :  { %4334 = vpush %v1431_v11 }
 0x34a   :  { %v1435_v23 = vpop.permute.xlu1 %1434 }
 0x34b   :  { %v1433_v6 = vpop.permute.xlu0 %1432 }
 0x34c   :  { %4336 = vpush %v1433_v6 }
 0x34d   :  { %4338 = vpush %v1435_v23 }
 0x379   :  { %s4333_s8 = spop %4332 }
 0x37a   :  { %v1437_v62 = vstv %s4333_s8  ;;  %s4335_s13 = spop %4334 }
 0x37b   :  { %v1448_v28 = vmul.f32 %v1437_v62, %v5114_v8  ;;  %v1449_v5 = vmul.f32 %v1437_v62, %v5125_v25  ;;  %v1440_v27 = vstv %s4335_s13 }
 0x37c   :  { %v1450_v13 = vmul.f32 %v1440_v27, %v5130_v57  ;;  %v1451_v54 = vmul.f32 %v1440_v27, %v5132_v58 }
 0x37d   :  { %v1457_v36 = vsel %vm7726_vm15, %v1448_v28, 0.0  ;;  %v1465_v22 = vsel %vm7714_vm10, %v1449_v5, 0.0  ;;  %s4337_s14 = spop %4336 }
 0x37e   :  { %v1458_v38 = vsel %vm7726_vm15, %v1450_v13, 0.0  ;;  %v1466_v12 = vsel %vm7714_vm10, %v1451_v54, 0.0  ;;  %v1443_v59 = vstv %s4337_s14  ;;  %s4339_s15 = spop %4338 }
 0x37f   :  { %v1452_v9 = vmul.f32 %v1443_v59, %v5134_v61  ;;  %v1453_v21 = vmul.f32 %v1443_v59, %v5136_v56  ;;  %v1459_v39 = vadd.f32 %v1458_v38, %v1457_v36  ;;  %v1467_v11 = vadd.f32 %v1466_v12, %v1465_v22  ;;  %v7825_v36 = vld [vmem:[#allocation5_spill] sm:$0xff] }
 0x380   :  { %v1446_v34 = vstv %s4339_s15 }
 0x381   :  { %v1460_v23 = vsel %vm7726_vm15, %v1452_v9, 0.0  ;;  %v1468_v6 = vsel %vm7714_vm10, %v1453_v21, 0.0  ;;  %v1454_v62 = vmul.f32 %v1446_v34, %v5143_v4  ;;  %v1455_v28 = vmul.f32 %v1446_v34, %v5140_v0 }
 0x382   :  { %v1461_v5 = vadd.f32 %v1460_v23, %v1459_v39  ;;  %v1469_v27 = vadd.f32 %v1468_v6, %v1467_v11 }
 0x383   :  { %v1462_v13 = vsel %vm7726_vm15, %v1454_v62, 0.0  ;;  %v1470_v54 = vsel %vm7714_vm10, %v1455_v28, 0.0  ;;  %vm7717_vm10 = vcmask 121889  }
 0x384   :  { %v1463_v1 = vadd.f32 %v1462_v13, %v1461_v5  ;;  %v1471_v19 = vadd.f32 %v1470_v54, %v1469_v27 }
 0x386   :  { %1476 = vrot.lane.b32.xlu1 %v1471_v19, %s4754_s12  ;;  %1474 = vrot.lane.b32.xlu0 %v1463_v1, %s4754_s12 }
 0x38a   :  { %1484 = vrot.lane.b32.xlu1 %v4847_v32, %s4754_s12  ;;  %1482 = vrot.lane.b32.xlu0 %v4853_v33, %s4754_s12 }
 0x38e   :  { %1486 = vrot.lane.b32.xlu0 %v4863_v35, %s4754_s12  ;;  %1488 = vrot.lane.b32.xlu1 %v7825_v36, %s4754_s12 }
 0x3f8   :  { %v5863_v22 = vpop.permute.xlu1 %1476  ;;  %v5865_v38 = vpop.permute.xlu0 %1474 }
 0x3f9   :  { %7826 = vst [vmem:[#allocation5_spill] sm:$0xff] %v5863_v22  ;;  %7827 = vst [vmem:[#allocation50_spill] sm:$0xff] %v5865_v38 }
 0x3fc   :  { %v1485_v12 = vpop.permute.xlu1 %1484  ;;  %v1483_v19 = vpop.permute.xlu0 %1482 }
 0x3fd   :  { %4340 = vpush %v1483_v19 }
 0x3fe   :  { %4342 = vpush %v1485_v12 }
 0x400   :  { %v1487_v1 = vpop.permute.xlu0 %1486  ;;  %v1489_v59 = vpop.permute.xlu1 %1488 }
 0x401   :  { %4344 = vpush %v1487_v1 }
 0x402   :  { %4346 = vpush %v1489_v59 }
 0x42e   :  { %s4341_s20 = spop %4340 }
 0x42f   :  { %v1491_v9 = vstv %s4341_s20  ;;  %s4343_s19 = spop %4342 }
 0x430   :  { %v1502_v21 = vmul.f32 %v1491_v9, %v5114_v8  ;;  %v1503_v39 = vmul.f32 %v1491_v9, %v5125_v25  ;;  %v1494_v11 = vstv %s4343_s19 }
 0x431   :  { %v1504_v34 = vmul.f32 %v1494_v11, %v5130_v57  ;;  %v1505_v23 = vmul.f32 %v1494_v11, %v5132_v58 }
 0x432   :  { %v1511_v6 = vsel %vm7717_vm10, %v1502_v21, 0.0  ;;  %v1519_v62 = vsel %vm7716_vm2, %v1503_v39, 0.0  ;;  %s4345_s18 = spop %4344 }
 0x433   :  { %v1512_v28 = vsel %vm7717_vm10, %v1504_v34, 0.0  ;;  %v1520_v5 = vsel %vm7716_vm2, %v1505_v23, 0.0  ;;  %v1497_v27 = vstv %s4345_s18  ;;  %s4347_s6 = spop %4346 }
 0x434   :  { %v1506_v13 = vmul.f32 %v1497_v27, %v5134_v61  ;;  %v1507_v54 = vmul.f32 %v1497_v27, %v5136_v56  ;;  %v1513_v12 = vadd.f32 %v1512_v28, %v1511_v6  ;;  %v1521_v19 = vadd.f32 %v1520_v5, %v1519_v62  ;;  %v7828_v28 = vld [vmem:[#allocation7_spill] sm:$0xff]  ;;  %v7829_v5 = vld [vmem:[#allocation6_spill] sm:$0xff] }
 0x435   :  { %v1500_v1 = vstv %s4347_s6 }
 0x436   :  { %v1514_v59 = vsel %vm7717_vm10, %v1506_v13, 0.0  ;;  %v1522_v9 = vsel %vm7716_vm2, %v1507_v54, 0.0  ;;  %v1508_v21 = vmul.f32 %v1500_v1, %v5143_v4  ;;  %v1509_v39 = vmul.f32 %v1500_v1, %v5140_v0  ;;  %v7830_v13 = vld [vmem:[#allocation9_spill] sm:$0xff]  ;;  %v7831_v54 = vld [vmem:[#allocation8_spill] sm:$0xff] }
 0x437   :  { %v1515_v11 = vadd.f32 %v1514_v59, %v1513_v12  ;;  %v1523_v34 = vadd.f32 %v1522_v9, %v1521_v19 }
 0x438   :  { %v1516_v23 = vsel %vm7717_vm10, %v1508_v21, 0.0  ;;  %v1524_v38 = vsel %vm7716_vm2, %v1509_v39, 0.0  ;;  %vm7719_vm2 = vcmask 121890   ;;  %vm7718_vm10 = vcmask 118816  }
 0x439   :  { %v1517_v22 = vadd.f32 %v1516_v23, %v1515_v11  ;;  %v1525_v42 = vadd.f32 %v1524_v38, %v1523_v34 }
 0x43b   :  { %v1528_v27 = vrot.slane %v1517_v22, 1  ;;  %v1529_v6 = vrot.slane %v1525_v42, 1 }
 0x43d   :  { %1533 = vrot.lane.b32.xlu1 %v1529_v6, %s4754_s12  ;;  %v1530_v62 = vsel %vm207_vm7, %v1528_v27, %v1529_v6 }
 0x43e   :  { %1531 = vrot.lane.b32.xlu0 %v1530_v62, %s4754_s12 }
 0x441   :  { %1541 = vrot.lane.b32.xlu1 %v7828_v28, %s4754_s12 }
 0x442   :  { %1539 = vrot.lane.b32.xlu0 %v7829_v5, %s4754_s12 }
 0x445   :  { %1545 = vrot.lane.b32.xlu1 %v7830_v13, %s4754_s12 }
 0x446   :  { %1543 = vrot.lane.b32.xlu0 %v7831_v54, %s4754_s12 }
 0x4af   :  { %v5894_v22 = vpop.permute.xlu1 %1533 }
 0x4b0   :  { %7832 = vst [vmem:[#allocation7_spill] sm:$0xff] %v5894_v22  ;;  %v5896_v42 = vpop.permute.xlu0 %1531 }
 0x4b1   :  { %7833 = vst [vmem:[#allocation6_spill] sm:$0xff] %v5896_v42 }
 0x4b3   :  { %v1542_v38 = vpop.permute.xlu1 %1541 }
 0x4b4   :  { %v1540_v12 = vpop.permute.xlu0 %1539 }
 0x4b5   :  { %4348 = vpush %v1540_v12 }
 0x4b6   :  { %4350 = vpush %v1542_v38 }
 0x4b7   :  { %v1546_v19 = vpop.permute.xlu1 %1545 }
 0x4b8   :  { %v1544_v1 = vpop.permute.xlu0 %1543 }
 0x4b9   :  { %4352 = vpush %v1544_v1 }
 0x4ba   :  { %4354 = vpush %v1546_v19 }
 0x4e6   :  { %s4349_s2 = spop %4348 }
 0x4e7   :  { %v1548_v59 = vstv %s4349_s2  ;;  %s4351_s7 = spop %4350 }
 0x4e8   :  { %v1559_v9 = vmul.f32 %v1548_v59, %v5114_v8  ;;  %v1560_v21 = vmul.f32 %v1548_v59, %v5125_v25  ;;  %v1551_v39 = vstv %s4351_s7 }
 0x4e9   :  { %v1561_v11 = vmul.f32 %v1551_v39, %v5130_v57  ;;  %v1562_v34 = vmul.f32 %v1551_v39, %v5132_v58 }
 0x4ea   :  { %v1568_v23 = vsel %vm7719_vm2, %v1559_v9, 0.0  ;;  %v1576_v27 = vsel %vm7718_vm10, %v1560_v21, 0.0  ;;  %s4353_s9 = spop %4352 }
 0x4eb   :  { %v1569_v6 = vsel %vm7719_vm2, %v1561_v11, 0.0  ;;  %v1577_v62 = vsel %vm7718_vm10, %v1562_v34, 0.0  ;;  %v1554_v38 = vstv %s4353_s9  ;;  %s4355_s10 = spop %4354 }
 0x4ec   :  { %v1563_v12 = vmul.f32 %v1554_v38, %v5134_v61  ;;  %v1564_v19 = vmul.f32 %v1554_v38, %v5136_v56  ;;  %v1570_v1 = vadd.f32 %v1569_v6, %v1568_v23  ;;  %v1578_v59 = vadd.f32 %v1577_v62, %v1576_v27  ;;  %v7834_v6 = vld [vmem:[#allocation11_spill] sm:$0xff]  ;;  %v7836_v62 = vld [vmem:[#allocation13_spill] sm:$0xff] }
 0x4ed   :  { %v1557_v42 = vstv %s4355_s10 }
 0x4ee   :  { %v1571_v39 = vsel %vm7719_vm2, %v1563_v12, 0.0  ;;  %v1579_v9 = vsel %vm7718_vm10, %v1564_v19, 0.0  ;;  %v1565_v21 = vmul.f32 %v1557_v42, %v5143_v4  ;;  %v1566_v22 = vmul.f32 %v1557_v42, %v5140_v0  ;;  %v7835_v42 = vld [vmem:[#allocation10_spill] sm:$0xff] }
 0x4ef   :  { %v1572_v11 = vadd.f32 %v1571_v39, %v1570_v1  ;;  %v1580_v3 = vadd.f32 %v1579_v9, %v1578_v59 }
 0x4f0   :  { %v1573_v34 = vsel %vm7719_vm2, %v1565_v21, 0.0  ;;  %v1581_v43 = vsel %vm7718_vm10, %v1566_v22, 0.0  ;;  %v7837_v22 = vld [vmem:[#allocation12_spill] sm:$0xff]  ;;  %vm7721_vm10 = vcmask 121891   ;;  %vm7720_vm2 = vcmask 119840  }
 0x4f1   :  { %v1574_v30 = vadd.f32 %v1573_v34, %v1572_v11  ;;  %v1582_v37 = vadd.f32 %v1581_v43, %v1580_v3 }
 0x4f3   :  { %v1585_v38 = vrot.slane %v1574_v30, 2  ;;  %v1586_v23 = vrot.slane %v1582_v37, 2 }
 0x4f5   :  { %1590 = vrot.lane.b32.xlu1 %v1586_v23, %s4754_s12  ;;  %v1587_v27 = vsel %vm257_vm6, %v1585_v38, %v1586_v23 }
 0x4f6   :  { %1588 = vrot.lane.b32.xlu0 %v1587_v27, %s4754_s12 }
 0x4f9   :  { %1598 = vrot.lane.b32.xlu1 %v7834_v6, %s4754_s12 }
 0x4fa   :  { %1596 = vrot.lane.b32.xlu0 %v7835_v42, %s4754_s12 }
 0x4fd   :  { %1602 = vrot.lane.b32.xlu1 %v7836_v62, %s4754_s12 }
 0x4fe   :  { %1600 = vrot.lane.b32.xlu0 %v7837_v22, %s4754_s12 }
 0x567   :  { %v5925_v30 = vpop.permute.xlu1 %1590 }
 0x568   :  { %7838 = vst [vmem:[#allocation9_spill] sm:$0xff] %v5925_v30  ;;  %v5927_v37 = vpop.permute.xlu0 %1588 }
 0x569   :  { %7839 = vst [vmem:[#allocation8_spill] sm:$0xff] %v5927_v37 }
 0x56b   :  { %v1599_v43 = vpop.permute.xlu1 %1598 }
 0x56c   :  { %v1597_v3 = vpop.permute.xlu0 %1596 }
 0x56d   :  { %4356 = vpush %v1597_v3 }
 0x56e   :  { %4358 = vpush %v1599_v43 }
 0x56f   :  { %v1603_v12 = vpop.permute.xlu1 %1602 }
 0x570   :  { %v1601_v19 = vpop.permute.xlu0 %1600 }
 0x571   :  { %4360 = vpush %v1601_v19 }
 0x572   :  { %4362 = vpush %v1603_v12 }
 0x59e   :  { %s4357_s8 = spop %4356 }
 0x59f   :  { %v1605_v1 = vstv %s4357_s8  ;;  %s4359_s13 = spop %4358  ;;  %s4755_s8 = smov 123  }
 0x5a0   :  { %v1616_v59 = vmul.f32 %v1605_v1, %v5114_v8  ;;  %v1617_v39 = vmul.f32 %v1605_v1, %v5125_v25  ;;  %v1608_v9 = vstv %s4359_s13 }
 0x5a1   :  { %v1618_v21 = vmul.f32 %v1608_v9, %v5130_v57  ;;  %v1619_v11 = vmul.f32 %v1608_v9, %v5132_v58 }
 0x5a2   :  { %v1625_v34 = vsel %vm7721_vm10, %v1616_v59, 0.0  ;;  %v1633_v38 = vsel %vm7720_vm2, %v1617_v39, 0.0  ;;  %s4361_s14 = spop %4360 }
 0x5a3   :  { %v1626_v23 = vsel %vm7721_vm10, %v1618_v21, 0.0  ;;  %v1634_v27 = vsel %vm7720_vm2, %v1619_v11, 0.0  ;;  %v1611_v43 = vstv %s4361_s14  ;;  %s4363_s15 = spop %4362 }
 0x5a4   :  { %v1620_v3 = vmul.f32 %v1611_v43, %v5134_v61  ;;  %v1621_v12 = vmul.f32 %v1611_v43, %v5136_v56  ;;  %v1627_v19 = vadd.f32 %v1626_v23, %v1625_v34  ;;  %v1635_v1 = vadd.f32 %v1634_v27, %v1633_v38  ;;  %v7840_v23 = vld [vmem:[#allocation15_spill] sm:$0xff] }
 0x5a5   :  { %v1614_v37 = vstv %s4363_s15 }
 0x5a6   :  { %v1628_v9 = vsel %vm7721_vm10, %v1620_v3, 0.0  ;;  %v1636_v59 = vsel %vm7720_vm2, %v1621_v12, 0.0  ;;  %v1622_v39 = vmul.f32 %v1614_v37, %v5143_v4  ;;  %v1623_v30 = vmul.f32 %v1614_v37, %v5140_v0  ;;  %v7841_v37 = vld [vmem:[#allocation14_spill] sm:$0xff] }
 0x5a7   :  { %v1629_v21 = vadd.f32 %v1628_v9, %v1627_v19  ;;  %v1637_v53 = vadd.f32 %v1636_v59, %v1635_v1 }
 0x5a8   :  { %v1630_v11 = vsel %vm7721_vm10, %v1622_v39, 0.0  ;;  %v1638_v44 = vsel %vm7720_vm2, %v1623_v30, 0.0  ;;  %vm7724_vm2 = vcmask 121892   ;;  %vm7722_vm10 = vcmask 120864  }
 0x5a9   :  { %v1631_v18 = vadd.f32 %v1630_v11, %v1629_v21  ;;  %v1639_v60 = vadd.f32 %v1638_v44, %v1637_v53 }
 0x5ab   :  { %v1642_v43 = vrot.slane %v1631_v18, 3  ;;  %v1643_v34 = vrot.slane %v1639_v60, 3 }
 0x5ad   :  { %1647 = vrot.lane.b32.xlu1 %v1643_v34, %s4754_s12  ;;  %v1644_v38 = vsel %vm307_vm4, %v1642_v43, %v1643_v34 }
 0x5ae   :  { %1645 = vrot.lane.b32.xlu0 %v1644_v38, %s4754_s12 }
 0x5b1   :  { %1655 = vrot.lane.b32.xlu1 %v7840_v23, %s4754_s12 }
 0x5b2   :  { %1653 = vrot.lane.b32.xlu0 %v7841_v37, %s4754_s12 }
 0x5b5   :  { %1659 = vrot.lane.b32.xlu1 %v4924_v47, %s4754_s12 }
 0x5b6   :  { %1657 = vrot.lane.b32.xlu0 %v4920_v46, %s4754_s12 }
 0x61f   :  { %v5956_v18 = vpop.permute.xlu1 %1647 }
 0x620   :  { %7842 = vst [vmem:[#allocation11_spill] sm:$0xff] %v5956_v18  ;;  %v5958_v60 = vpop.permute.xlu0 %1645 }
 0x621   :  { %7843 = vst [vmem:[#allocation10_spill] sm:$0xff] %v5958_v60 }
 0x623   :  { %v1656_v44 = vpop.permute.xlu1 %1655 }
 0x624   :  { %v1654_v53 = vpop.permute.xlu0 %1653 }
 0x625   :  { %4364 = vpush %v1654_v53 }
 0x626   :  { %4366 = vpush %v1656_v44 }
 0x627   :  { %v1660_v30 = vpop.permute.xlu1 %1659 }
 0x628   :  { %v1658_v27 = vpop.permute.xlu0 %1657 }
 0x629   :  { %4368 = vpush %v1658_v27 }
 0x62a   :  { %4370 = vpush %v1660_v30 }
 0x656   :  { %s4365_s20 = spop %4364 }
 0x657   :  { %v1662_v3 = vstv %s4365_s20  ;;  %s4367_s19 = spop %4366 }
 0x658   :  { %v1673_v12 = vmul.f32 %v1662_v3, %v5114_v8  ;;  %v1674_v19 = vmul.f32 %v1662_v3, %v5125_v25  ;;  %v1665_v1 = vstv %s4367_s19 }
 0x659   :  { %v1675_v9 = vmul.f32 %v1665_v1, %v5130_v57  ;;  %v1676_v59 = vmul.f32 %v1665_v1, %v5132_v58 }
 0x65a   :  { %v1682_v39 = vsel %vm7724_vm2, %v1673_v12, 0.0  ;;  %v1690_v21 = vsel %vm7722_vm10, %v1674_v19, 0.0  ;;  %s4369_s18 = spop %4368 }
 0x65b   :  { %v1683_v11 = vsel %vm7724_vm2, %v1675_v9, 0.0  ;;  %v1691_v43 = vsel %vm7722_vm10, %v1676_v59, 0.0  ;;  %v1668_v34 = vstv %s4369_s18  ;;  %s4371_s6 = spop %4370 }
 0x65c   :  { %v1677_v38 = vmul.f32 %v1668_v34, %v5134_v61  ;;  %v1678_v44 = vmul.f32 %v1668_v34, %v5136_v56  ;;  %v1684_v53 = vadd.f32 %v1683_v11, %v1682_v39  ;;  %v1692_v30 = vadd.f32 %v1691_v43, %v1690_v21 }
 0x65d   :  { %v1671_v27 = vstv %s4371_s6 }
 0x65e   :  { %v1685_v3 = vsel %vm7724_vm2, %v1677_v38, 0.0  ;;  %v1693_v12 = vsel %vm7722_vm10, %v1678_v44, 0.0  ;;  %v1679_v19 = vmul.f32 %v1671_v27, %v5143_v4  ;;  %v1680_v1 = vmul.f32 %v1671_v27, %v5140_v0 }
 0x65f   :  { %v1686_v9 = vadd.f32 %v1685_v3, %v1684_v53  ;;  %v1694_v60 = vadd.f32 %v1693_v12, %v1692_v30 }
 0x660   :  { %v1687_v59 = vsel %vm7724_vm2, %v1679_v19, 0.0  ;;  %v1695_v18 = vsel %vm7722_vm10, %v1680_v1, 0.0  ;;  %vm7723_vm10 = vcmask 121893   ;;  %vm7725_vm2 = vcmask 124968  }
 0x661   :  { %v1688_v7 = vadd.f32 %v1687_v59, %v1686_v9  ;;  %v1696_v10 = vadd.f32 %v1695_v18, %v1694_v60 }
 0x663   :  { %v1699_v34 = vrot.slane %v1688_v7, 4  ;;  %v1700_v39 = vrot.slane %v1696_v10, 4 }
 0x665   :  { %1704 = vrot.lane.b32.xlu1 %v1700_v39, %s4754_s12  ;;  %v1701_v21 = vsel %vm357_vm5, %v1699_v34, %v1700_v39 }
 0x666   :  { %1702 = vrot.lane.b32.xlu0 %v1701_v21, %s4754_s12 }
 0x669   :  { %1712 = vrot.lane.b32.xlu1 %v4934_v49, %s4754_s12 }
 0x66a   :  { %1710 = vrot.lane.b32.xlu0 %v4930_v48, %s4754_s12 }
 0x66d   :  { %1716 = vrot.lane.b32.xlu1 %v4944_v51, %s4754_s12 }
 0x66e   :  { %1714 = vrot.lane.b32.xlu0 %v4940_v50, %s4754_s12 }
 0x6d7   :  { %v5987_v7 = vpop.permute.xlu1 %1704 }
 0x6d8   :  { %7844 = vst [vmem:[#allocation13_spill] sm:$0xff] %v5987_v7  ;;  %v5989_v10 = vpop.permute.xlu0 %1702 }
 0x6d9   :  { %7845 = vst [vmem:[#allocation12_spill] sm:$0xff] %v5989_v10 }
 0x6db   :  { %v1713_v18 = vpop.permute.xlu1 %1712 }
 0x6dc   :  { %v1711_v60 = vpop.permute.xlu0 %1710 }
 0x6dd   :  { %4372 = vpush %v1711_v60 }
 0x6de   :  { %4374 = vpush %v1713_v18 }
 0x6df   :  { %v1717_v11 = vpop.permute.xlu1 %1716 }
 0x6e0   :  { %v1715_v43 = vpop.permute.xlu0 %1714 }
 0x6e1   :  { %4376 = vpush %v1715_v43 }
 0x6e2   :  { %4378 = vpush %v1717_v11 }
 0x70e   :  { %s4373_s2 = spop %4372 }
 0x70f   :  { %v1719_v38 = vstv %s4373_s2  ;;  %s4375_s7 = spop %4374 }
 0x710   :  { %v1730_v44 = vmul.f32 %v1719_v38, %v5114_v8  ;;  %v1731_v53 = vmul.f32 %v1719_v38, %v5125_v25  ;;  %v1722_v30 = vstv %s4375_s7 }
 0x711   :  { %v1732_v27 = vmul.f32 %v1722_v30, %v5130_v57  ;;  %v1733_v3 = vmul.f32 %v1722_v30, %v5132_v58 }
 0x712   :  { %v1739_v12 = vsel %vm7723_vm10, %v1730_v44, 0.0  ;;  %v1746_v19 = vsel %vm7726_vm15, %v1731_v53, 0.0  ;;  %s4377_s9 = spop %4376 }
 0x713   :  { %v1740_v1 = vsel %vm7723_vm10, %v1732_v27, 0.0  ;;  %v1747_v9 = vsel %vm7726_vm15, %v1733_v3, 0.0  ;;  %v1725_v59 = vstv %s4377_s9  ;;  %s4379_s10 = spop %4378 }
 0x714   :  { %v1734_v34 = vmul.f32 %v1725_v59, %v5134_v61  ;;  %v1735_v39 = vmul.f32 %v1725_v59, %v5136_v56  ;;  %v1741_v21 = vadd.f32 %v1740_v1, %v1739_v12  ;;  %v1748_v18 = vadd.f32 %v1747_v9, %v1746_v19 }
 0x715   :  { %v1728_v60 = vstv %s4379_s10 }
 0x716   :  { %v1742_v11 = vsel %vm7723_vm10, %v1734_v34, 0.0  ;;  %v1749_v43 = vsel %vm7726_vm15, %v1735_v39, 0.0  ;;  %v1736_v38 = vmul.f32 %v1728_v60, %v5143_v4  ;;  %v1737_v44 = vmul.f32 %v1728_v60, %v5140_v0 }
 0x717   :  { %v1743_v53 = vadd.f32 %v1742_v11, %v1741_v21  ;;  %v1750_v30 = vadd.f32 %v1749_v43, %v1748_v18 }
 0x718   :  { %v1744_v27 = vsel %vm7723_vm10, %v1736_v38, 0.0  ;;  %v1751_v3 = vsel %vm7726_vm15, %v1737_v44, 0.0  ;;  %vm7765_vm10 = vcmask 130088   ;;  %vm7727_vm15 = vcmask 125992  }
 0x719   :  { %v1745_v10 = vadd.f32 %v1744_v27, %v1743_v53  ;;  %v1752_v7 = vadd.f32 %v1751_v3, %v1750_v30 }
 0x71b   :  { %v1755_v59 = vrot.slane %v1745_v10, 5  ;;  %v1756_v12 = vrot.slane %v1752_v7, 5 }
 0x71d   :  { %1760 = vrot.lane.b32.xlu1 %v1756_v12, %s4754_s12  ;;  %v1757_v19 = vsel %vm7766_vm12, %v1755_v59, %v1756_v12 }
 0x71e   :  { %1758 = vrot.lane.b32.xlu0 %v1757_v19, %s4754_s12 }
 0x721   :  { %1768 = vrot.lane.b32.xlu1 %v4842_v31, %s4755_s8 }
 0x722   :  { %1766 = vrot.lane.b32.xlu0 %v4833_v26, %s4755_s8 }
 0x725   :  { %1772 = vrot.lane.b32.xlu1 %v4837_v29, %s4755_s8 }
 0x726   :  { %1770 = vrot.lane.b32.xlu0 %v4813_v15, %s4755_s8 }
 0x78f   :  { %v6018_v7 = vpop.permute.xlu1 %1760 }
 0x790   :  { %v6020_v10 = vpop.permute.xlu0 %1758 }
 0x793   :  { %v1769_v1 = vpop.permute.xlu1 %1768 }
 0x794   :  { %v1767_v9 = vpop.permute.xlu0 %1766 }
 0x795   :  { %4380 = vpush %v1767_v9 }
 0x796   :  { %4382 = vpush %v1769_v1 }
 0x797   :  { %v1773_v34 = vpop.permute.xlu1 %1772 }
 0x798   :  { %v1771_v39 = vpop.permute.xlu0 %1770 }
 0x799   :  { %4384 = vpush %v1771_v39 }
 0x79a   :  { %4386 = vpush %v1773_v34 }
 0x7c6   :  { %s4381_s13 = spop %4380 }
 0x7c7   :  { %v1775_v26 = vstv %s4381_s13  ;;  %s4383_s14 = spop %4382 }
 0x7c8   :  { %v1786_v29 = vmul.f32 %v1775_v26, %v5114_v8  ;;  %v1787_v15 = vmul.f32 %v1775_v26, %v5125_v25  ;;  %v1778_v31 = vstv %s4383_s14 }
 0x7c9   :  { %v1788_v21 = vmul.f32 %v1778_v31, %v5130_v57  ;;  %v1789_v18 = vmul.f32 %v1778_v31, %v5132_v58 }
 0x7ca   :  { %v1795_v60 = vsel %vm7765_vm10, %v1786_v29, 0.0  ;;  %v1803_v11 = vsel %vm7725_vm2, %v1787_v15, 0.0  ;;  %s4385_s15 = spop %4384 }
 0x7cb   :  { %v1796_v43 = vsel %vm7765_vm10, %v1788_v21, 0.0  ;;  %v1804_v38 = vsel %vm7725_vm2, %v1789_v18, 0.0  ;;  %v1781_v44 = vstv %s4385_s15  ;;  %s4387_s20 = spop %4386 }
 0x7cc   :  { %v1790_v53 = vmul.f32 %v1781_v44, %v5134_v61  ;;  %v1791_v30 = vmul.f32 %v1781_v44, %v5136_v56  ;;  %v1797_v27 = vadd.f32 %v1796_v43, %v1795_v60  ;;  %v1805_v3 = vadd.f32 %v1804_v38, %v1803_v11 }
 0x7cd   :  { %v1784_v59 = vstv %s4387_s20 }
 0x7ce   :  { %v1798_v12 = vsel %vm7765_vm10, %v1790_v53, 0.0  ;;  %v1806_v19 = vsel %vm7725_vm2, %v1791_v30, 0.0  ;;  %v1792_v1 = vmul.f32 %v1784_v59, %v5143_v4  ;;  %v1793_v9 = vmul.f32 %v1784_v59, %v5140_v0 }
 0x7cf   :  { %v1799_v34 = vadd.f32 %v1798_v12, %v1797_v27  ;;  %v1807_v39 = vadd.f32 %v1806_v19, %v1805_v3 }
 0x7d0   :  { %v1800_v26 = vsel %vm7765_vm10, %v1792_v1, 0.0  ;;  %v1808_v29 = vsel %vm7725_vm2, %v1793_v9, 0.0  ;;  %vm7728_vm2 = vcmask 130089  }
 0x7d1   :  { %v1801_v15 = vadd.f32 %v1800_v26, %v1799_v34  ;;  %v1809_v31 = vadd.f32 %v1808_v29, %v1807_v39 }
 0x7d3   :  { %1814 = vrot.lane.b32.xlu1 %v1809_v31, %s4755_s8  ;;  %1812 = vrot.lane.b32.xlu0 %v1801_v15, %s4755_s8 }
 0x7d7   :  { %1822 = vrot.lane.b32.xlu1 %v4847_v32, %s4755_s8  ;;  %1820 = vrot.lane.b32.xlu0 %v4853_v33, %s4755_s8 }
 0x7db   :  { %1824 = vrot.lane.b32.xlu0 %v4863_v35, %s4755_s8  ;;  %1826 = vrot.lane.b32.xlu1 %v7825_v36, %s4755_s8 }
 0x845   :  { %v6048_v21 = vpop.permute.xlu1 %1814  ;;  %v6050_v18 = vpop.permute.xlu0 %1812 }
 0x846   :  { %7846 = vst [vmem:[#allocation15_spill] sm:$0xff] %v6048_v21  ;;  %7847 = vst [vmem:[#allocation14_spill] sm:$0xff] %v6050_v18 }
 0x849   :  { %v1823_v60 = vpop.permute.xlu1 %1822  ;;  %v1821_v11 = vpop.permute.xlu0 %1820 }
 0x84a   :  { %4388 = vpush %v1821_v11 }
 0x84b   :  { %4390 = vpush %v1823_v60 }
 0x84d   :  { %v1825_v43 = vpop.permute.xlu0 %1824  ;;  %v1827_v38 = vpop.permute.xlu1 %1826 }
 0x84e   :  { %4392 = vpush %v1825_v43 }
 0x84f   :  { %4394 = vpush %v1827_v38 }
 0x87b   :  { %s4389_s19 = spop %4388 }
 0x87c   :  { %v1829_v32 = vstv %s4389_s19  ;;  %s4391_s18 = spop %4390 }
 0x87d   :  { %v1840_v33 = vmul.f32 %v1829_v32, %v5114_v8  ;;  %v1841_v35 = vmul.f32 %v1829_v32, %v5125_v25  ;;  %v1832_v36 = vstv %s4391_s18 }
 0x87e   :  { %v1842_v44 = vmul.f32 %v1832_v36, %v5130_v57  ;;  %v1843_v53 = vmul.f32 %v1832_v36, %v5132_v58 }
 0x87f   :  { %v1849_v30 = vsel %vm7728_vm2, %v1840_v33, 0.0  ;;  %v1857_v27 = vsel %vm7727_vm15, %v1841_v35, 0.0  ;;  %s4393_s6 = spop %4392 }
 0x880   :  { %v1850_v3 = vsel %vm7728_vm2, %v1842_v44, 0.0  ;;  %v1858_v59 = vsel %vm7727_vm15, %v1843_v53, 0.0  ;;  %v1835_v12 = vstv %s4393_s6  ;;  %s4395_s2 = spop %4394 }
 0x881   :  { %v1844_v19 = vmul.f32 %v1835_v12, %v5134_v61  ;;  %v1845_v1 = vmul.f32 %v1835_v12, %v5136_v56  ;;  %v1851_v9 = vadd.f32 %v1850_v3, %v1849_v30  ;;  %v1859_v34 = vadd.f32 %v1858_v59, %v1857_v27 }
 0x882   :  { %v1838_v39 = vstv %s4395_s2 }
 0x883   :  { %v1852_v26 = vsel %vm7728_vm2, %v1844_v19, 0.0  ;;  %v1860_v29 = vsel %vm7727_vm15, %v1845_v1, 0.0  ;;  %v1846_v15 = vmul.f32 %v1838_v39, %v5143_v4  ;;  %v1847_v31 = vmul.f32 %v1838_v39, %v5140_v0 }
 0x884   :  { %v1853_v60 = vadd.f32 %v1852_v26, %v1851_v9  ;;  %v1861_v11 = vadd.f32 %v1860_v29, %v1859_v34 }
 0x885   :  { %v1854_v43 = vsel %vm7728_vm2, %v1846_v15, 0.0  ;;  %v1862_v38 = vsel %vm7727_vm15, %v1847_v31, 0.0  ;;  %vm7730_vm15 = vcmask 130090   ;;  %vm7729_vm2 = vcmask 127016  }
 0x886   :  { %v1855_v32 = vadd.f32 %v1854_v43, %v1853_v60  ;;  %v1863_v33 = vadd.f32 %v1862_v38, %v1861_v11 }
 0x888   :  { %v1866_v35 = vrot.slane %v1855_v32, 1  ;;  %v1867_v36 = vrot.slane %v1863_v33, 1 }
 0x88a   :  { %1871 = vrot.lane.b32.xlu1 %v1867_v36, %s4755_s8  ;;  %v1868_v44 = vsel %vm207_vm7, %v1866_v35, %v1867_v36 }
 0x88b   :  { %1869 = vrot.lane.b32.xlu0 %v1868_v44, %s4755_s8 }
 0x88e   :  { %1879 = vrot.lane.b32.xlu1 %v7828_v28, %s4755_s8 }
 0x88f   :  { %1877 = vrot.lane.b32.xlu0 %v7829_v5, %s4755_s8 }
 0x892   :  { %1883 = vrot.lane.b32.xlu1 %v7830_v13, %s4755_s8 }
 0x893   :  { %1881 = vrot.lane.b32.xlu0 %v7831_v54, %s4755_s8 }
 0x8fc   :  { %v6079_v53 = vpop.permute.xlu1 %1871 }
 0x8fd   :  { %7848 = vst [vmem:[#allocation51_spill] sm:$0xff] %v6079_v53  ;;  %v6081_v30 = vpop.permute.xlu0 %1869 }
 0x8fe   :  { %7849 = vst [vmem:[#allocation52_spill] sm:$0xff] %v6081_v30 }
 0x900   :  { %v1880_v27 = vpop.permute.xlu1 %1879 }
 0x901   :  { %v1878_v3 = vpop.permute.xlu0 %1877 }
 0x902   :  { %4396 = vpush %v1878_v3 }
 0x903   :  { %4398 = vpush %v1880_v27 }
 0x904   :  { %v1884_v59 = vpop.permute.xlu1 %1883 }
 0x905   :  { %v1882_v12 = vpop.permute.xlu0 %1881 }
 0x906   :  { %4400 = vpush %v1882_v12 }
 0x907   :  { %4402 = vpush %v1884_v59 }
 0x933   :  { %s4397_s7 = spop %4396 }
 0x934   :  { %v1886_v28 = vstv %s4397_s7  ;;  %s4399_s9 = spop %4398 }
 0x935   :  { %v1897_v5 = vmul.f32 %v1886_v28, %v5114_v8  ;;  %v1898_v13 = vmul.f32 %v1886_v28, %v5125_v25  ;;  %v1889_v54 = vstv %s4399_s9 }
 0x936   :  { %v1899_v19 = vmul.f32 %v1889_v54, %v5130_v57  ;;  %v1900_v1 = vmul.f32 %v1889_v54, %v5132_v58 }
 0x937   :  { %v1906_v9 = vsel %vm7730_vm15, %v1897_v5, 0.0  ;;  %v1914_v34 = vsel %vm7729_vm2, %v1898_v13, 0.0  ;;  %s4401_s10 = spop %4400 }
 0x938   :  { %v1907_v39 = vsel %vm7730_vm15, %v1899_v19, 0.0  ;;  %v1915_v26 = vsel %vm7729_vm2, %v1900_v1, 0.0  ;;  %v1892_v29 = vstv %s4401_s10  ;;  %s4403_s13 = spop %4402 }
 0x939   :  { %v1901_v15 = vmul.f32 %v1892_v29, %v5134_v61  ;;  %v1902_v31 = vmul.f32 %v1892_v29, %v5136_v56  ;;  %v1908_v60 = vadd.f32 %v1907_v39, %v1906_v9  ;;  %v1916_v11 = vadd.f32 %v1915_v26, %v1914_v34 }
 0x93a   :  { %v1895_v43 = vstv %s4403_s13 }
 0x93b   :  { %v1909_v38 = vsel %vm7730_vm15, %v1901_v15, 0.0  ;;  %v1917_v32 = vsel %vm7729_vm2, %v1902_v31, 0.0  ;;  %v1903_v33 = vmul.f32 %v1895_v43, %v5143_v4  ;;  %v1904_v35 = vmul.f32 %v1895_v43, %v5140_v0 }
 0x93c   :  { %v1910_v36 = vadd.f32 %v1909_v38, %v1908_v60  ;;  %v1918_v44 = vadd.f32 %v1917_v32, %v1916_v11 }
 0x93d   :  { %v1911_v27 = vsel %vm7730_vm15, %v1903_v33, 0.0  ;;  %v1919_v3 = vsel %vm7729_vm2, %v1904_v35, 0.0  ;;  %vm7732_vm2 = vcmask 130091   ;;  %vm7731_vm15 = vcmask 128040  }
 0x93e   :  { %v1912_v59 = vadd.f32 %v1911_v27, %v1910_v36  ;;  %v1920_v12 = vadd.f32 %v1919_v3, %v1918_v44 }
 0x940   :  { %v1923_v28 = vrot.slane %v1912_v59, 2  ;;  %v1924_v5 = vrot.slane %v1920_v12, 2 }
 0x942   :  { %1928 = vrot.lane.b32.xlu1 %v1924_v5, %s4755_s8  ;;  %v1925_v13 = vsel %vm257_vm6, %v1923_v28, %v1924_v5 }
 0x943   :  { %1926 = vrot.lane.b32.xlu0 %v1925_v13, %s4755_s8 }
 0x946   :  { %1936 = vrot.lane.b32.xlu1 %v7834_v6, %s4755_s8 }
 0x947   :  { %1934 = vrot.lane.b32.xlu0 %v7835_v42, %s4755_s8 }
 0x94a   :  { %1940 = vrot.lane.b32.xlu1 %v7836_v62, %s4755_s8 }
 0x94b   :  { %1938 = vrot.lane.b32.xlu0 %v7837_v22, %s4755_s8 }
 0x9b4   :  { %v6110_v54 = vpop.permute.xlu1 %1928 }
 0x9b5   :  { %7850 = vst [vmem:[#allocation53_spill] sm:$0xff] %v6110_v54  ;;  %v6112_v19 = vpop.permute.xlu0 %1926 }
 0x9b6   :  { %7851 = vst [vmem:[#allocation54_spill] sm:$0xff] %v6112_v19 }
 0x9b8   :  { %v1937_v1 = vpop.permute.xlu1 %1936 }
 0x9b9   :  { %v1935_v9 = vpop.permute.xlu0 %1934 }
 0x9ba   :  { %4404 = vpush %v1935_v9 }
 0x9bb   :  { %4406 = vpush %v1937_v1 }
 0x9bc   :  { %v1941_v34 = vpop.permute.xlu1 %1940 }
 0x9bd   :  { %v1939_v39 = vpop.permute.xlu0 %1938 }
 0x9be   :  { %4408 = vpush %v1939_v39 }
 0x9bf   :  { %4410 = vpush %v1941_v34 }
 0x9eb   :  { %s4405_s14 = spop %4404 }
 0x9ec   :  { %v1943_v6 = vstv %s4405_s14  ;;  %s4407_s15 = spop %4406 }
 0x9ed   :  { %v1954_v42 = vmul.f32 %v1943_v6, %v5114_v8  ;;  %v1955_v62 = vmul.f32 %v1943_v6, %v5125_v25  ;;  %v1946_v22 = vstv %s4407_s15 }
 0x9ee   :  { %v1956_v26 = vmul.f32 %v1946_v22, %v5130_v57  ;;  %v1957_v29 = vmul.f32 %v1946_v22, %v5132_v58 }
 0x9ef   :  { %v1963_v15 = vsel %vm7732_vm2, %v1954_v42, 0.0  ;;  %v1971_v31 = vsel %vm7731_vm15, %v1955_v62, 0.0  ;;  %s4409_s20 = spop %4408 }
 0x9f0   :  { %v1964_v60 = vsel %vm7732_vm2, %v1956_v26, 0.0  ;;  %v1972_v11 = vsel %vm7731_vm15, %v1957_v29, 0.0  ;;  %v1949_v43 = vstv %s4409_s20  ;;  %s4411_s19 = spop %4410 }
 0x9f1   :  { %v1958_v38 = vmul.f32 %v1949_v43, %v5134_v61  ;;  %v1959_v32 = vmul.f32 %v1949_v43, %v5136_v56  ;;  %v1965_v33 = vadd.f32 %v1964_v60, %v1963_v15  ;;  %v1973_v35 = vadd.f32 %v1972_v11, %v1971_v31 }
 0x9f2   :  { %v1952_v36 = vstv %s4411_s19 }
 0x9f3   :  { %v1966_v44 = vsel %vm7732_vm2, %v1958_v38, 0.0  ;;  %v1974_v27 = vsel %vm7731_vm15, %v1959_v32, 0.0  ;;  %v1960_v3 = vmul.f32 %v1952_v36, %v5143_v4  ;;  %v1961_v59 = vmul.f32 %v1952_v36, %v5140_v0 }
 0x9f4   :  { %v1967_v12 = vadd.f32 %v1966_v44, %v1965_v33  ;;  %v1975_v28 = vadd.f32 %v1974_v27, %v1973_v35 }
 0x9f5   :  { %v1968_v5 = vsel %vm7732_vm2, %v1960_v3, 0.0  ;;  %v1976_v13 = vsel %vm7731_vm15, %v1961_v59, 0.0  ;;  %vm7734_vm15 = vcmask 130092   ;;  %vm7733_vm2 = vcmask 129064  }
 0x9f6   :  { %v1969_v1 = vadd.f32 %v1968_v5, %v1967_v12  ;;  %v1977_v9 = vadd.f32 %v1976_v13, %v1975_v28 }
 0x9f8   :  { %v1980_v34 = vrot.slane %v1969_v1, 3  ;;  %v1981_v39 = vrot.slane %v1977_v9, 3 }
 0x9fa   :  { %1985 = vrot.lane.b32.xlu1 %v1981_v39, %s4755_s8  ;;  %v1982_v6 = vsel %vm307_vm4, %v1980_v34, %v1981_v39 }
 0x9fb   :  { %1983 = vrot.lane.b32.xlu0 %v1982_v6, %s4755_s8 }
 0x9fe   :  { %1993 = vrot.lane.b32.xlu1 %v7840_v23, %s4755_s8 }
 0x9ff   :  { %1991 = vrot.lane.b32.xlu0 %v7841_v37, %s4755_s8 }
 0xa02   :  { %1997 = vrot.lane.b32.xlu1 %v4924_v47, %s4755_s8 }
 0xa03   :  { %1995 = vrot.lane.b32.xlu0 %v4920_v46, %s4755_s8 }
 0xa6c   :  { %v6141_v42 = vpop.permute.xlu1 %1985 }
 0xa6d   :  { %7852 = vst [vmem:[#allocation55_spill] sm:$0xff] %v6141_v42  ;;  %v6143_v62 = vpop.permute.xlu0 %1983 }
 0xa6e   :  { %7853 = vst [vmem:[#allocation56_spill] sm:$0xff] %v6143_v62 }
 0xa70   :  { %v1994_v22 = vpop.permute.xlu1 %1993 }
 0xa71   :  { %v1992_v26 = vpop.permute.xlu0 %1991 }
 0xa72   :  { %4412 = vpush %v1992_v26 }
 0xa73   :  { %4414 = vpush %v1994_v22 }
 0xa74   :  { %v1998_v29 = vpop.permute.xlu1 %1997 }
 0xa75   :  { %v1996_v15 = vpop.permute.xlu0 %1995 }
 0xa76   :  { %4416 = vpush %v1996_v15  ;;  %v125_v15 = vstv %s5043_s21 }
 0xa77   :  { %4418 = vpush %v1998_v29 }
 0xaa3   :  { %s4413_s18 = spop %4412 }
 0xaa4   :  { %v2000_v23 = vstv %s4413_s18  ;;  %s4415_s6 = spop %4414 }
 0xaa5   :  { %v2011_v47 = vmul.f32 %v2000_v23, %v5114_v8  ;;  %v2012_v46 = vmul.f32 %v2000_v23, %v5125_v25  ;;  %v2003_v37 = vstv %s4415_s6 }
 0xaa6   :  { %v2013_v31 = vmul.f32 %v2003_v37, %v5130_v57  ;;  %v2014_v60 = vmul.f32 %v2003_v37, %v5132_v58  ;;  %v4133_v37 = vld [vmem:[%s7651_s0 + $0x98] sm:$0x3f] }
 0xaa7   :  { %v2020_v11 = vsel %vm7734_vm15, %v2011_v47, 0.0  ;;  %v2028_v43 = vsel %vm7733_vm2, %v2012_v46, 0.0  ;;  %s4417_s2 = spop %4416  ;;  %v4126_v47 = vld [vmem:[%s7651_s0 + $0x60] sm:$0x3f] }
 0xaa8   :  { %v2021_v38 = vsel %vm7734_vm15, %v2013_v31, 0.0  ;;  %v2029_v32 = vsel %vm7733_vm2, %v2014_v60, 0.0  ;;  %v2006_v33 = vstv %s4417_s2  ;;  %s4419_s7 = spop %4418  ;;  %v139_v31 = vmul.f32 %v125_v15, %v5114_v8 }
 0xaa9   :  { %v2015_v35 = vmul.f32 %v2006_v33, %v5134_v61  ;;  %v2016_v36 = vmul.f32 %v2006_v33, %v5136_v56  ;;  %v2022_v44 = vadd.f32 %v2021_v38, %v2020_v11  ;;  %v2030_v27 = vadd.f32 %v2029_v32, %v2028_v43  ;;  %v4135_v43 = vld [vmem:[%s7651_s0 + $0xa8] sm:$0x3f]  ;;  %v4136_v38 = vld [vmem:[%s7651_s0 + $0xb0] sm:$0x3f] }
 0xaaa   :  { %v2009_v3 = vstv %s4419_s7  ;;  %v2121_v60 = vsel %vm37_vm0, %v4126_v47, -inf  ;;  %v140_v32 = vmul.f32 %v125_v15, %v5125_v25  ;;  %v170_v33 = vstv %s5059_s25  ;;  %v4137_v15 = vld [vmem:[%s7651_s0 + $0xb8] sm:$0x3f] }
 0xaab   :  { %v2023_v59 = vsel %vm7734_vm15, %v2015_v35, 0.0  ;;  %v2031_v12 = vsel %vm7733_vm2, %v2016_v36, 0.0  ;;  %v2017_v28 = vmul.f32 %v2009_v3, %v5143_v4  ;;  %v2018_v5 = vmul.f32 %v2009_v3, %v5140_v0 }
 0xaac   :  { %v2024_v13 = vadd.f32 %v2023_v59, %v2022_v44  ;;  %v2032_v1 = vadd.f32 %v2031_v12, %v2030_v27  ;;  %v4128_v27 = vld [vmem:[%s7651_s0 + $0x70] sm:$0x3f]  ;;  %v173_v3 = vstv %s5061_s26  ;;  %v4131_v12 = vld [vmem:[%s7651_s0 + $0x88] sm:$0x3f] }
 0xaad   :  { %v2025_v9 = vsel %vm7734_vm15, %v2017_v28, 0.0  ;;  %v2033_v34 = vsel %vm7733_vm2, %v2018_v5, 0.0  ;;  %vm147_vm2 = vcmask 89088   ;;  %vm7760_vm15 = vcmask 83968  }
 0xaae   :  { %v2026_v39 = vadd.f32 %v2025_v9, %v2024_v13  ;;  %v2034_v6 = vadd.f32 %v2033_v34, %v2032_v1  ;;  %v2132_v5 = vsel %vm37_vm0, %v4133_v37, -inf  ;;  %v129_v13 = vstv %s5047_s22  ;;  %v4134_v9 = vld [vmem:[%s7651_s0 + $0xa0] sm:$0x3f] }
 0xaaf   :  { %v2136_v34 = vsel %vm37_vm0, %v4135_v43, -inf  ;;  %v156_v47 = vsel %vm7760_vm15, %v140_v32, 0.0  ;;  %v142_v37 = vmul.f32 %v129_v13, %v5132_v58  ;;  %v2139_v32 = vsel %vm37_vm0, %v4137_v15, -inf }
 0xab0   :  { %v2037_v22 = vrot.slane %v2026_v39, 4  ;;  %v2038_v26 = vrot.slane %v2034_v6, 4  ;;  %v2137_v39 = vsel %vm37_vm0, %v4136_v38, -inf  ;;  %v6224_v6 = vsel %vm147_vm2, %v139_v31, 0.0 }
 0xab1   :  { %v176_v31 = vstv %s5065_s27  ;;  %v2138_v43 = vmax.f32 %v2136_v34, %v2137_v39  ;;  %v133_v38 = vstv %s5051_s23  ;;  %v157_v39 = vsel %vm7760_vm15, %v142_v37, 0.0  ;;  %s7868_s23 = sld [smem:[#allocation18_spill]]  ;;  %s7870_s27 = sld [smem:[#allocation17_spill]] }
 0xab2   :  { %2042 = vrot.lane.b32.xlu1 %v2038_v26, %s4755_s8  ;;  %v2039_v29 = vsel %vm357_vm5, %v2037_v22, %v2038_v26  ;;  %v182_v22 = vmul.f32 %v170_v33, %v5125_v25 }
 0xab3   :  { %2040 = vrot.lane.b32.xlu0 %v2039_v29, %s4755_s8  ;;  %v2124_v29 = vsel %vm37_vm0, %v4128_v27, -inf  ;;  %v6257_v34 = vmax.f32 %v2138_v43, %v2139_v32  ;;  %v158_v43 = vadd.f32 %v157_v39, %v156_v47 }
 0xab4   :  { %v198_v27 = vsel %vm197_vm14, %v182_v22, 0.0  ;;  %v137_v22 = vstv %s5055_s24  ;;  %s7869_s24 = sld [smem:[#allocation19_spill]] }
 0xab6   :  { %2050 = vrot.lane.b32.xlu1 %v4934_v49, %s4755_s8  ;;  %v4127_v49 = vld [vmem:[%s7651_s0 + $0x68] sm:$0x3f] }
 0xab7   :  { %2048 = vrot.lane.b32.xlu0 %v4930_v48, %s4755_s8  ;;  %v4129_v48 = vld [vmem:[%s7651_s0 + $0x78] sm:$0x3f]  ;;  %v2122_v11 = vsel %vm37_vm0, %v4127_v49, -inf  ;;  %v184_v49 = vmul.f32 %v173_v3, %v5132_v58 }
 0xab8   :  { %v2126_v36 = vsel %vm37_vm0, %v4129_v48, -inf  ;;  %v2123_v1 = vmax.f32 %v2121_v60, %v2122_v11  ;;  %v2134_v11 = vsel %vm37_vm0, %v4134_v9, -inf  ;;  %v179_v9 = vstv %s5069_s28  ;;  %s7872_s28 = sld [smem:[#allocation20_spill]] }
 0xab9   :  { %v187_v47 = vmul.f32 %v179_v9, %v5143_v4 }
 0xaba   :  { %2054 = vrot.lane.b32.xlu1 %v4944_v51, %s4755_s8  ;;  %v4132_v51 = vld [vmem:[%s7651_s0 + $0x90] sm:$0x3f] }
 0xabb   :  { %2052 = vrot.lane.b32.xlu0 %v4940_v50, %s4755_s8  ;;  %v4130_v50 = vld [vmem:[%s7651_s0 + $0x80] sm:$0x3f]  ;;  %v2131_v28 = vsel %vm37_vm0, %v4132_v51, -inf  ;;  %s7867_s0 = sld [smem:[#allocation16_spill]] }
 0xabc   :  { %v2127_v44 = vsel %vm37_vm0, %v4130_v50, -inf  ;;  %v2129_v50 = vsel %vm37_vm0, %v4131_v12, -inf  ;;  %v2133_v51 = vmax.f32 %v2131_v28, %v2132_v5  ;;  %v199_v28 = vsel %vm197_vm14, %v184_v49, 0.0 }
 0xabd   :  { %v2128_v26 = vmax.f32 %v2126_v36, %v2127_v44  ;;  %v6239_v36 = vmax.f32 %v2123_v1, %v2124_v29  ;;  %v141_v44 = vmul.f32 %v129_v13, %v5130_v57  ;;  %v186_v5 = vmul.f32 %v176_v31, %v5136_v56 }
 0xabe   :  { %v143_v13 = vmul.f32 %v133_v38, %v5134_v61  ;;  %vm247_vm0 = vcmask 86016   ;;  %v200_v49 = vadd.f32 %v199_v28, %v198_v27  ;;  %v220_v27 = vstv %s5071_s1  ;;  %s7873_s1 = sld [smem:[#allocation22_spill]] }
 0xabf   :  { %v6245_v12 = vmax.f32 %v2128_v26, %v2129_v50  ;;  %v6253_v1 = vrot.slane %v6239_v36, 1  ;;  %v6274_v50 = vrot.slane %v6257_v34, 1  ;;  %v201_v37 = vsel %vm197_vm14, %v186_v5, 0.0 }
 0xac1   :  { %7857 = vst [vmem:[#allocation60_spill] sm:$0xff] %v6253_v1  ;;  %7860 = vst [vmem:[#allocation63_spill] sm:$0xff] %v6274_v50  ;;  %v6287_v32 = vrot.slane %v6245_v12, 2 }
 0xac3   :  { %7862 = vst [vmem:[#allocation65_spill] sm:$0xff] %v6287_v32 }
 0xb24   :  { %v6173_v23 = vpop.permute.xlu1 %2042 }
 0xb25   :  { %7854 = vst [vmem:[#allocation57_spill] sm:$0xff] %v6173_v23  ;;  %v6181_v46 = vpop.permute.xlu0 %2040  ;;  %v370_v23 = vstv %s7873_s1 }
 0xb26   :  { %7855 = vst [vmem:[#allocation58_spill] sm:$0xff] %v6181_v46 }
 0xb28   :  { %v2051_v35 = vpop.permute.xlu1 %2050 }
 0xb29   :  { %v2049_v59 = vpop.permute.xlu0 %2048 }
 0xb2a   :  { %4420 = vpush %v2049_v59  ;;  %v183_v59 = vmul.f32 %v173_v3, %v5130_v57  ;;  %v6261_v3 = vrot.slane %v6245_v12, 1 }
 0xb2b   :  { %4422 = vpush %v2051_v35  ;;  %v181_v35 = vmul.f32 %v170_v33, %v5114_v8  ;;  %v6249_v33 = vmax.f32 %v2133_v51, %v2134_v11  ;;  %v144_v51 = vmul.f32 %v133_v38, %v5136_v56  ;;  %v6281_v11 = vrot.slane %v6239_v36, 2 }
 0xb2c   :  { %v2055_v48 = vpop.permute.xlu1 %2054  ;;  %7858 = vst [vmem:[#allocation61_spill] sm:$0xff] %v6261_v3  ;;  %v191_v15 = vsel %vm7751_vm3, %v183_v59, 0.0  ;;  %v223_v59 = vstv %s5073_s29  ;;  %s7874_s29 = sld [smem:[#allocation23_spill]] }
 0xb2d   :  { %v2053_v60 = vpop.permute.xlu0 %2052  ;;  %7856 = vst [vmem:[#allocation59_spill] sm:$0xff] %v6249_v33  ;;  %v190_v26 = vsel %vm7751_vm3, %v181_v35, 0.0  ;;  %v6268_v29 = vrot.slane %v6249_v33, 1  ;;  %7861 = vst [vmem:[#allocation64_spill] sm:$0xff] %v6281_v11  ;;  %v146_v35 = vmul.f32 %v137_v22, %v5140_v0  ;;  %v6293_v28 = vrot.slane %v6249_v33, 2 }
 0xb2e   :  { %4424 = vpush %v2053_v60  ;;  %v188_v60 = vmul.f32 %v179_v9, %v5140_v0  ;;  %v192_v38 = vadd.f32 %v191_v15, %v190_v26  ;;  %v159_v26 = vsel %vm7760_vm15, %v144_v51, 0.0  ;;  %v232_v9 = vmul.f32 %v220_v27, %v5125_v25 }
 0xb2f   :  { %4426 = vpush %v2055_v48  ;;  %7859 = vst [vmem:[#allocation62_spill] sm:$0xff] %v6268_v29  ;;  %v185_v48 = vmul.f32 %v176_v31, %v5134_v61  ;;  %v149_v31 = vsel %vm147_vm2, %v141_v44, 0.0  ;;  %v6299_v44 = vrot.slane %v6257_v34, 2 }
 0xb30   :  { %4428 = vpush %v6239_v36  ;;  %7863 = vst [vmem:[#allocation66_spill] sm:$0xff] %v6293_v28  ;;  %v150_v39 = vadd.f32 %v149_v31, %v6224_v6  ;;  %v203_v15 = vsel %vm197_vm14, %v188_v60, 0.0  ;;  %v145_v6 = vmul.f32 %v137_v22, %v5143_v4  ;;  %v226_v60 = vstv %s5075_s30  ;;  %s7875_s30 = sld [smem:[#allocation21_spill]] }
 0xb31   :  { %4430 = vpush %v6245_v12  ;;  %v193_v5 = vsel %vm7751_vm3, %v185_v48, 0.0  ;;  %7864 = vst [vmem:[#allocation67_spill] sm:$0xff] %v6299_v44  ;;  %v234_v48 = vmul.f32 %v223_v59, %v5132_v58  ;;  %v160_v31 = vadd.f32 %v159_v26, %v158_v43  ;;  %v161_v22 = vsel %vm7760_vm15, %v146_v35, 0.0 }
 0xb32   :  { %4432 = vpush %v6249_v33  ;;  %v194_v51 = vadd.f32 %v193_v5, %v192_v38  ;;  %v233_v38 = vmul.f32 %v223_v59, %v5130_v57  ;;  %v248_v43 = vsel %vm247_vm0, %v232_v9, 0.0  ;;  %v273_v35 = vstv %s5081_s5 }
 0xb33   :  { %4434 = vpush %v6257_v34  ;;  %v249_v5 = vsel %vm247_vm0, %v234_v48, 0.0  ;;  %v235_v9 = vmul.f32 %v226_v60, %v5134_v61  ;;  %vm7763_vm15 = vcmask 89093   ;;  %v373_v42 = vstv %s7874_s29 }
 0xb34   :  { %4436 = vpush %v6253_v1  ;;  %v202_v1 = vadd.f32 %v201_v37, %v200_v49  ;;  %v151_v49 = vsel %vm147_vm2, %v143_v13, 0.0  ;;  %v6313_v37 = vrot.slane %v6245_v12, 3  ;;  %v195_v13 = vsel %vm7751_vm3, %v187_v47, 0.0 }
 0xb35   :  { %4438 = vpush %v6261_v3  ;;  %v229_v47 = vstv %s5077_s3  ;;  %v6332_v26 = vadd.f32 %v195_v13, %v194_v51  ;;  %vm347_vm3 = vcmask 88064   ;;  %v241_v48 = vsel %vm239_vm13, %v233_v38, 0.0  ;;  %s7876_s3 = sld [smem:[#allocation24_spill]] }
 0xb36   :  { %4440 = vpush %v6268_v29  ;;  %v6306_v29 = vrot.slane %v6239_v36, 3  ;;  %7866 = vst [vmem:[#allocation69_spill] sm:$0xff] %v6313_v37  ;;  %v238_v51 = vmul.f32 %v229_v47, %v5140_v0  ;;  %v284_v38 = vmul.f32 %v273_v35, %v5132_v58 }
 0xb37   :  { %4442 = vpush %v6274_v50  ;;  %v152_v50 = vadd.f32 %v151_v49, %v150_v39  ;;  %v270_v39 = vstv %s5079_s4  ;;  %s7877_s4 = sld [smem:[#allocation25_spill]] }
 0xb38   :  { %4444 = vpush %v6281_v11  ;;  %7865 = vst [vmem:[#allocation68_spill] sm:$0xff] %v6306_v29  ;;  %v6319_v11 = vadd.f32 %v203_v15, %v202_v1  ;;  %v236_v1 = vmul.f32 %v226_v60, %v5136_v56  ;;  %v162_v15 = vadd.f32 %v161_v22, %v160_v31  ;;  %v253_v60 = vsel %vm247_vm0, %v238_v51, 0.0 }
 0xb39   :  { %4446 = vpush %v6287_v32  ;;  %v231_v32 = vmul.f32 %v220_v27, %v5114_v8  ;;  %v153_v27 = vsel %vm147_vm2, %v145_v6, 0.0  ;;  %v237_v6 = vmul.f32 %v229_v47, %v5143_v4  ;;  %v281_v22 = vmul.f32 %v270_v39, %v5114_v8 }
 0xb3a   :  { %4448 = vpush %v6293_v28  ;;  %v6342_v13 = vadd.f32 %v153_v27, %v152_v50  ;;  %v251_v31 = vsel %vm247_vm0, %v236_v1, 0.0  ;;  %v282_v59 = vmul.f32 %v270_v39, %v5125_v25  ;;  %v243_v27 = vsel %vm239_vm13, %v235_v9, 0.0 }
 0xb3b   :  { %4450 = vpush %v6299_v44  ;;  %v240_v49 = vsel %vm239_vm13, %v231_v32, 0.0  ;;  %v283_v32 = vmul.f32 %v273_v35, %v5130_v57  ;;  %v320_v1 = vstv %s7868_s23  ;;  %v245_v28 = vsel %vm239_vm13, %v237_v6, 0.0 }
 0xb3c   :  { %4452 = vpush %v6306_v29  ;;  %v250_v29 = vadd.f32 %v249_v5, %v248_v43  ;;  %v276_v43 = vstv %s7867_s0  ;;  %v7871_v5 = vrot.slane %v6319_v11, 1  ;;  %v242_v50 = vadd.f32 %v241_v48, %v240_v49 }
 0xb3d   :  { %4454 = vpush %v6313_v37  ;;  %v323_v44 = vstv %s7869_s24  ;;  %v290_v39 = vsel %vm289_vm9, %v281_v22, 0.0  ;;  %v291_v35 = vsel %vm289_vm9, %v283_v32, 0.0  ;;  %v298_v49 = vsel %vm297_vm11, %v282_v59, 0.0 }
 0xb3e   :  { %v6353_v47 = vadd.f32 %v7871_v5, %v162_v15  ;;  %v252_v37 = vadd.f32 %v251_v31, %v250_v29  ;;  %v286_v15 = vmul.f32 %v276_v43, %v5136_v56  ;;  %v279_v5 = vstv %s7870_s27 }
 0xb3f   :  { %v299_v29 = vsel %vm297_vm11, %v284_v38, 0.0  ;;  %v331_v9 = vmul.f32 %v320_v1, %v5114_v8  ;;  %v332_v48 = vmul.f32 %v320_v1, %v5125_v25  ;;  %v244_v6 = vadd.f32 %v243_v27, %v242_v50 }
 0xb40   :  { %v333_v51 = vmul.f32 %v323_v44, %v5130_v57  ;;  %v334_v31 = vmul.f32 %v323_v44, %v5132_v58  ;;  %v326_v22 = vstv %s7872_s28  ;;  %v6371_v3 = vadd.f32 %v253_v60, %v252_v37 }
 0xb41   :  { %v292_v32 = vadd.f32 %v291_v35, %v290_v39  ;;  %v285_v46 = vmul.f32 %v276_v43, %v5134_v61  ;;  %v300_v59 = vadd.f32 %v299_v29, %v298_v49  ;;  %v301_v38 = vsel %vm297_vm11, %v286_v15, 0.0 }
 0xb42   :  { %v288_v62 = vmul.f32 %v279_v5, %v5140_v0  ;;  %v340_v50 = vsel %vm339_vm8, %v331_v9, 0.0  ;;  %v348_v27 = vsel %vm347_vm3, %v332_v48, 0.0  ;;  %v335_v44 = vmul.f32 %v326_v22, %v5134_v61 }
 0xb43   :  { %v336_v37 = vmul.f32 %v326_v22, %v5136_v56  ;;  %v341_v60 = vsel %vm339_vm8, %v333_v51, 0.0  ;;  %v349_v43 = vsel %vm347_vm3, %v334_v31, 0.0  ;;  %v381_v1 = vmul.f32 %v370_v23, %v5114_v8 }
 0xb44   :  { %v382_v39 = vmul.f32 %v370_v23, %v5125_v25  ;;  %v293_v35 = vsel %vm289_vm9, %v285_v46, 0.0  ;;  %v329_v15 = vstv %s7875_s30  ;;  %v383_v49 = vmul.f32 %v373_v42, %v5130_v57 }
 0xb45   :  { %v384_v29 = vmul.f32 %v373_v42, %v5132_v58  ;;  %v302_v9 = vadd.f32 %v301_v38, %v300_v59  ;;  %v287_v48 = vmul.f32 %v279_v5, %v5143_v4  ;;  %v303_v22 = vsel %vm297_vm11, %v288_v62, 0.0 }
 0xb46   :  { %v376_v19 = vstv %s7876_s3  ;;  %v342_v51 = vadd.f32 %v341_v60, %v340_v50  ;;  %v350_v31 = vadd.f32 %v349_v43, %v348_v27  ;;  %v343_v54 = vsel %vm339_vm8, %v335_v44, 0.0 }
 0xb47   :  { %v351_v23 = vsel %vm347_vm3, %v336_v37, 0.0  ;;  %v337_v46 = vmul.f32 %v329_v15, %v5143_v4  ;;  %v338_v30 = vmul.f32 %v329_v15, %v5140_v0  ;;  %v390_v53 = vsel %vm7763_vm15, %v381_v1, 0.0 }
 0xb48   :  { %v397_v42 = vsel %vm147_vm2, %v382_v39, 0.0  ;;  %v391_v5 = vsel %vm7763_vm15, %v383_v49, 0.0  ;;  %v398_v62 = vsel %vm147_vm2, %v384_v29, 0.0  ;;  %v385_v59 = vmul.f32 %v376_v19, %v5134_v61 }
 0xb49   :  { %v386_v38 = vmul.f32 %v376_v19, %v5136_v56  ;;  %v246_v50 = vadd.f32 %v245_v28, %v244_v6  ;;  %v259_v27 = vrot.slane %v6371_v3, 2  ;;  %v294_v44 = vadd.f32 %v293_v35, %v292_v32 }
 0xb4a   :  { %v379_v37 = vstv %s7877_s4  ;;  %v295_v60 = vsel %vm289_vm9, %v287_v48, 0.0  ;;  %v304_v43 = vadd.f32 %v303_v22, %v302_v9  ;;  %v344_v15 = vadd.f32 %v343_v54, %v342_v51 }
 0xb4b   :  { %v352_v1 = vadd.f32 %v351_v23, %v350_v31  ;;  %v345_v39 = vsel %vm339_vm8, %v337_v46, 0.0  ;;  %v353_v49 = vsel %vm347_vm3, %v338_v30, 0.0  ;;  %v392_v18 = vadd.f32 %v391_v5, %v390_v53 }
 0xb4c   :  { %v399_v29 = vadd.f32 %v398_v62, %v397_v42  ;;  %v393_v21 = vsel %vm7763_vm15, %v385_v59, 0.0  ;;  %v400_v19 = vsel %vm147_vm2, %v386_v38, 0.0  ;;  %v387_v28 = vmul.f32 %v379_v37, %v5143_v4 }
 0xb4d   :  { %v388_v3 = vmul.f32 %v379_v37, %v5140_v0  ;;  %v7878_v6 = vrot.slane %v6319_v11, 1  ;;  %v7879_v32 = vrot.slane %v6332_v26, 1  ;;  %v258_v35 = vrot.slane %v246_v50, 2 }
 0xb4e   :  { %v296_v9 = vadd.f32 %v295_v60, %v294_v44  ;;  %v264_v30 = vadd.f32 %v259_v27, %v6353_v47  ;;  %v6418_v53 = vadd.f32 %v345_v39, %v344_v15  ;;  %v6420_v48 = vadd.f32 %v353_v49, %v352_v1 }
 0xb4f   :  { %v210_v54 = vsel %vm207_vm7, %v7879_v32, %v7878_v6  ;;  %v394_v22 = vadd.f32 %v393_v21, %v392_v18  ;;  %v401_v51 = vadd.f32 %v400_v19, %v399_v29  ;;  %v309_v31 = vrot.slane %v304_v43, 3 }
 0xb50   :  { %v395_v23 = vsel %vm7763_vm15, %v387_v28, 0.0  ;;  %v402_v46 = vsel %vm147_vm2, %v388_v3, 0.0  ;;  %v213_v11 = vadd.f32 %v210_v54, %v6342_v13  ;;  %v308_v26 = vrot.slane %v296_v9, 3 }
 0xb51   :  { %v260_v42 = vsel %vm257_vm6, %v258_v35, %v259_v27  ;;  %v358_v5 = vrot.slane %v6418_v53, 4  ;;  %v359_v47 = vrot.slane %v6420_v48, 4  ;;  %v6428_v62 = vadd.f32 %v395_v23, %v394_v22 }
 0xb52   :  { %v6430_v59 = vadd.f32 %v402_v46, %v401_v51  ;;  %v314_v21 = vadd.f32 %v309_v31, %v264_v30  ;;  %v263_v18 = vadd.f32 %v260_v42, %v213_v11  ;;  %vm7764_vm15 = vcmask 130093  }
 0xb53   :  { %v310_v50 = vsel %vm307_vm4, %v308_v26, %v309_v31  ;;  %v6438_v43 = vrot.slane %v6249_v33, 3  ;;  %v6441_v15 = vrot.slane %v6257_v34, 3  ;;  %v6455_v29 = vrot.slane %v6249_v33, 4 }
 0xb54   :  { %v6462_v54 = vrot.slane %v6257_v34, 4  ;;  %v6465_v35 = vrot.slane %v6239_v36, 5  ;;  %v6468_v9 = vrot.slane %v6245_v12, 5  ;;  %v6477_v51 = vrot.slane %v6249_v33, 5 }
 0xb55   :  { %4456 = vpush %v6438_v43  ;;  %v6483_v46 = vrot.slane %v6257_v34, 5  ;;  %v407_v26 = vrot.slane %v6428_v62, 5  ;;  %v364_v42 = vadd.f32 %v359_v47, %v314_v21 }
 0xb56   :  { %4458 = vpush %v6441_v15 }
 0xb5b   :  { %s4421_s5 = spop %4420 }
 0xb5c   :  { %v2057_v38 = vstv %s4421_s5  ;;  %s4423_s6 = spop %4422 }
 0xb5d   :  { %v2068_v13 = vmul.f32 %v2057_v38, %v5114_v8  ;;  %v2069_v27 = vmul.f32 %v2057_v38, %v5125_v25  ;;  %v2060_v44 = vstv %s4423_s6  ;;  %v6446_v8 = vrot.slane %v6239_v36, 4 }
 0xb5e   :  { %v2070_v37 = vmul.f32 %v2060_v44, %v5130_v57  ;;  %v2071_v60 = vmul.f32 %v2060_v44, %v5132_v58  ;;  %v6449_v25 = vrot.slane %v6245_v12, 4  ;;  %v408_v38 = vrot.slane %v6430_v59, 5 }
 0xb5f   :  { %v2077_v1 = vsel %vm7764_vm15, %v2068_v13, 0.0  ;;  %v2084_v39 = vsel %vm7765_vm10, %v2069_v27, 0.0  ;;  %s4425_s2 = spop %4424  ;;  %4460 = vpush %v6446_v8  ;;  %v360_v13 = vsel %vm357_vm5, %v358_v5, %v359_v47  ;;  %v2149_v5 = vld [vmem:[#allocation2 + $0xf8] sm:$0xff]  ;;  %v2151_v47 = vld [vmem:[#allocation2 + $0x108] sm:$0xff] }
 0xb60   :  { %v2078_v57 = vsel %vm7764_vm15, %v2070_v37, 0.0  ;;  %v2085_v58 = vsel %vm7765_vm10, %v2071_v60, 0.0  ;;  %v2063_v49 = vstv %s4425_s2  ;;  %s4427_s7 = spop %4426  ;;  %4462 = vpush %v6449_v25  ;;  %v2142_v37 = vld [vmem:[#allocation2 + $0xc0] sm:$0xff]  ;;  %v2145_v60 = vld [vmem:[#allocation2 + $0xd8] sm:$0xff]  ;;  %v413_v59 = vadd.f32 %v408_v38, %v364_v42 }
 0xb61   :  { %v2079_v19 = vadd.f32 %v2078_v57, %v2077_v1  ;;  %v2086_v28 = vadd.f32 %v2085_v58, %v2084_v39  ;;  %v2072_v3 = vmul.f32 %v2063_v49, %v5134_v61  ;;  %v2073_v6 = vmul.f32 %v2063_v49, %v5136_v56  ;;  %4464 = vpush %v6455_v29  ;;  %s6494_s9 = spop %4428 }
 0xb62   :  { %v2066_v32 = vstv %s4427_s7  ;;  %4466 = vpush %v6462_v54  ;;  %v409_v21 = vsel %vm7766_vm12, %v407_v26, %v408_v38  ;;  %v2166_v39 = vsel %vm82_vm1, %v2142_v37, -inf  ;;  %v2172_v49 = vsel %vm82_vm1, %v2145_v60, -inf  ;;  %s6502_s10 = spop %4430  ;;  %v2161_v60 = vld [vmem:[#allocation2 + $0x158] sm:$0xff] }
 0xb63   :  { %v2080_v30 = vsel %vm7764_vm15, %v2072_v3, 0.0  ;;  %v2087_v61 = vsel %vm7765_vm10, %v2073_v6, 0.0  ;;  %v2074_v56 = vmul.f32 %v2066_v32, %v5143_v4  ;;  %v2075_v53 = vmul.f32 %v2066_v32, %v5140_v0  ;;  %4468 = vpush %v6465_v35  ;;  %v2146_v3 = vld [vmem:[#allocation2 + $0xe0] sm:$0xff]  ;;  %v2147_v6 = vld [vmem:[#allocation2 + $0xe8] sm:$0xff]  ;;  %s6509_s13 = spop %4432 }
 0xb64   :  { %v2081_v48 = vadd.f32 %v2080_v30, %v2079_v19  ;;  %v2088_v22 = vadd.f32 %v2087_v61, %v2086_v28  ;;  %v313_v4 = vadd.f32 %v310_v50, %v263_v18  ;;  %4470 = vpush %v6468_v9  ;;  %v2143_v18 = vld [vmem:[#allocation2 + $0xc8] sm:$0xff]  ;;  %v2144_v50 = vld [vmem:[#allocation2 + $0xd0] sm:$0xff]  ;;  %v2150_v28 = vld [vmem:[#allocation2 + $0x100] sm:$0xff]  ;;  %v2181_v32 = vsel %vm82_vm1, %v2149_v5, -inf  ;;  %s6518_s14 = spop %4434 }
 0xb65   :  { %v2082_v31 = vsel %vm7764_vm15, %v2074_v56, 0.0  ;;  %v2089_v23 = vsel %vm7765_vm10, %v2075_v53, 0.0  ;;  %4472 = vpush %v6477_v51  ;;  %v2167_v57 = vsel %vm82_vm1, %v2144_v50, -inf  ;;  %v2171_v58 = vsel %vm82_vm1, %v2143_v18, -inf  ;;  %v2148_v19 = vld [vmem:[#allocation2 + $0xf0] sm:$0xff]  ;;  %v2154_v61 = vld [vmem:[#allocation2 + $0x120] sm:$0xff]  ;;  %s6531_s15 = spop %4436 }
 0xb66   :  { %v2083_v0 = vadd.f32 %v2082_v31, %v2081_v48  ;;  %v2090_v11 = vadd.f32 %v2089_v23, %v2088_v22  ;;  %4474 = vpush %v6483_v46  ;;  %v363_v1 = vadd.f32 %v360_v13, %v313_v4  ;;  %v2182_v30 = vsel %vm82_vm1, %v2151_v47, -inf  ;;  %v2155_v48 = vld [vmem:[#allocation2 + $0x128] sm:$0xff]  ;;  %v2156_v22 = vld [vmem:[#allocation2 + $0x130] sm:$0xff]  ;;  %v2157_v31 = vld [vmem:[#allocation2 + $0x138] sm:$0xff]  ;;  %s4439_s20 = spop %4438 }
 0xb67   :  { %v467_v56 = vadd.f32 %v5711_v17, %v413_v59  ;;  %v2168_v23 = vmax.f32 %v2166_v39, %v2167_v57  ;;  %v2173_v4 = vmax.f32 %v2171_v58, %v2172_v49  ;;  %v2177_v26 = vsel %vm82_vm1, %v2150_v28, -inf  ;;  %v2152_v13 = vld [vmem:[#allocation2 + $0x110] sm:$0xff]  ;;  %v2158_v47 = vld [vmem:[#allocation2 + $0x140] sm:$0xff]  ;;  %v2159_v59 = vld [vmem:[#allocation2 + $0x148] sm:$0xff]  ;;  %s6548_s19 = spop %4440 }
 0xb68   :  { %v2093_v27 = vrot.slane %v2083_v0, 5  ;;  %v2094_v44 = vrot.slane %v2090_v11, 5  ;;  %v412_v53 = vadd.f32 %v409_v21, %v363_v1  ;;  %v2153_v0 = vld [vmem:[#allocation2 + $0x118] sm:$0xff]  ;;  %v2176_v11 = vsel %vm82_vm1, %v2148_v19, -inf  ;;  %v2163_v21 = vld [vmem:[#allocation2 + $0x168] sm:$0xff]  ;;  %v2160_v58 = vld [vmem:[#allocation2 + $0x150] sm:$0xff]  ;;  %s6557_s18 = spop %4442 }
 0xb69   :  { %v2169_v42 = vsel %vm82_vm1, %v2146_v3, -inf  ;;  %v2174_v38 = vsel %vm82_vm1, %v2147_v6, -inf  ;;  %v2187_v37 = vsel %vm82_vm1, %v2156_v22, -inf  ;;  %v2191_v18 = vsel %vm82_vm1, %v2155_v48, -inf  ;;  %v2162_v49 = vld [vmem:[#allocation2 + $0x160] sm:$0xff]  ;;  %v2165_v6 = vld [vmem:[#allocation2 + $0x178] sm:$0xff]  ;;  %s4445_s25 = spop %4444 }
 0xb6a   :  { %2098 = vrot.lane.b32.xlu1 %v2094_v44, %s4755_s8  ;;  %v2095_v62 = vsel %vm7766_vm12, %v2093_v27, %v2094_v44  ;;  %v466_v17 = vadd.f32 %v5713_v24, %v412_v53  ;;  %v2183_v27 = vmax.f32 %v2181_v32, %v2182_v30  ;;  %v2186_v44 = vsel %vm82_vm1, %v2154_v61, -inf  ;;  %s4447_s21 = spop %4446 }
 0xb6b   :  { %2096 = vrot.lane.b32.xlu0 %v2095_v62, %s4755_s8  ;;  %v2192_v50 = vsel %vm82_vm1, %v2157_v31, -inf  ;;  %v524_v24 = vadd.f32 %v5723_v20, %v467_v56  ;;  %v2178_v62 = vmax.f32 %v2176_v11, %v2177_v26  ;;  %v2184_v5 = vsel %vm82_vm1, %v2153_v0, -inf  ;;  %v2164_v0 = vld [vmem:[#allocation2 + $0x170] sm:$0xff]  ;;  %s6583_s22 = spop %4448 }
 0xb6c   :  { %v6526_v1 = vadd.f32 %v5725_v2, %v466_v17  ;;  %v6535_v39 = vmax.f32 %v2168_v23, %v2169_v42  ;;  %v6537_v20 = vmax.f32 %v2173_v4, %v2174_v38  ;;  %v2208_v2 = vstv %s6494_s9  ;;  %s4451_s26 = spop %4450  ;;  %s7937_s9 = sld [smem:[#allocation70_spill]] }
 0xb6d   :  { %v2179_v57 = vsel %vm82_vm1, %v2152_v13, -inf  ;;  %v2212_v19 = vstv %s6502_s10  ;;  %v2188_v28 = vmax.f32 %v2186_v44, %v2187_v37  ;;  %v2193_v3 = vmax.f32 %v2191_v18, %v2192_v50  ;;  %s6608_s0 = spop %4452 }
 0xb6e   :  { %2483 = vrot.lane.b32.xlu1 %v6245_v12, %s7794_s16  ;;  %v2201_v32 = vsel %vm82_vm1, %v2161_v60, -inf  ;;  %v6543_v30 = vmax.f32 %v2183_v27, %v2184_v5  ;;  %v2189_v61 = vsel %vm82_vm1, %v2158_v47, -inf  ;;  %v2194_v56 = vsel %vm82_vm1, %v2159_v59, -inf  ;;  %s4455_s23 = spop %4454 }
 0xb6f   :  { %2481 = vrot.lane.b32.xlu0 %v6239_v36, %s7794_s16  ;;  %v2202_v53 = vsel %vm82_vm1, %v2163_v21, -inf  ;;  %v6550_v48 = vmax.f32 %v2178_v62, %v2179_v57  ;;  %v2196_v22 = vsel %vm82_vm1, %v2160_v58, -inf  ;;  %v2197_v31 = vsel %vm82_vm1, %v2162_v49, -inf }
 0xb70   :  { %v2203_v23 = vmax.f32 %v2201_v32, %v2202_v53  ;;  %v2223_v4 = vmul.f32 %v2208_v2, %v6537_v20  ;;  %v2204_v11 = vsel %vm82_vm1, %v2165_v6, -inf  ;;  %v2251_v26 = vstv %s6531_s15 }
 0xb71   :  { %v2254_v17 = vstv %s4439_s20  ;;  %v2225_v42 = vmul.f32 %v2212_v19, %v6543_v30  ;;  %v6560_v38 = vmax.f32 %v2188_v28, %v2189_v61  ;;  %v6562_v13 = vmax.f32 %v2193_v3, %v2194_v56 }
 0xb72   :  { %2487 = vrot.lane.b32.xlu1 %v6257_v34, %s7794_s16  ;;  %v2216_v27 = vstv %s6509_s13  ;;  %v2198_v44 = vmax.f32 %v2196_v22, %v2197_v31  ;;  %v2263_v37 = vmul.f32 %v2251_v26, %v6537_v20  ;;  %v2265_v18 = vmul.f32 %v2254_v17, %v6543_v30 }
 0xb73   :  { %2485 = vrot.lane.b32.xlu0 %v6249_v33, %s7794_s16  ;;  %v2257_v50 = vstv %s6548_s19  ;;  %v2199_v60 = vsel %vm82_vm1, %v2164_v0, -inf  ;;  %v6569_v62 = vmax.f32 %v2203_v23, %v2204_v11  ;;  %v2262_v5 = vmul.f32 %v2251_v26, %v6535_v39 }
 0xb74   :  { %v2264_v47 = vmul.f32 %v2254_v17, %v6550_v48  ;;  %v6574_v59 = vadd.f32 %v5727_v55, %v524_v24  ;;  %v2222_v21 = vmul.f32 %v2208_v2, %v6535_v39  ;;  %v2277_v57 = vsel %vm197_vm14, %v2263_v37, 0.0 }
 0xb75   :  { %v2278_v58 = vsel %vm197_vm14, %v2265_v18, 0.0  ;;  %vm7880_vm15 = vcmask 83968   ;;  %v2227_v3 = vmul.f32 %v2216_v27, %v6562_v13  ;;  %v2267_v6 = vmul.f32 %v2257_v50, %v6562_v13 }
 0xb76   :  { %v2237_v49 = vsel %vm7880_vm15, %v2223_v4, 0.0  ;;  %vm7881_vm1 = vmmov %vm7880_vm15  ;;  %v6585_v55 = vmax.f32 %v2198_v44, %v2199_v60  ;;  %v2266_v24 = vmul.f32 %v2257_v50, %v6560_v38  ;;  %v2260_v2 = vstv %s6557_s18 }
 0xb77   :  { %v2238_v28 = vsel %vm7881_vm1, %v2225_v42, 0.0  ;;  %v2298_v32 = vstv %s4445_s25  ;;  %vm7882_vm10 = vcmask 89089   ;;  %v2279_v53 = vadd.f32 %v2278_v58, %v2277_v57  ;;  %vm7886_vm15 = vmmov %vm7881_vm1 }
 0xb78   :  { %v2270_v61 = vsel %vm7882_vm10, %v2262_v5, 0.0  ;;  %vm7883_vm12 = vmmov %vm7882_vm10  ;;  %v2269_v22 = vmul.f32 %v2260_v2, %v6569_v62  ;;  %v2309_v31 = vmul.f32 %v2298_v32, %v6535_v39  ;;  %v2310_v23 = vmul.f32 %v2298_v32, %v6537_v20 }
 0xb79   :  { %v2271_v56 = vsel %vm7883_vm12, %v2264_v47, 0.0  ;;  %v2301_v4 = vstv %s4447_s21  ;;  %v2304_v0 = vstv %s6583_s22  ;;  %v2224_v11 = vmul.f32 %v2212_v19, %v6550_v48  ;;  %vm7884_vm10 = vmmov %vm7881_vm1 }
 0xb7a   :  { %v2280_v26 = vsel %vm197_vm14, %v2267_v6, 0.0  ;;  %v2311_v17 = vmul.f32 %v2301_v4, %v6550_v48  ;;  %v2312_v42 = vmul.f32 %v2301_v4, %v6543_v30  ;;  %v2239_v44 = vadd.f32 %v2238_v28, %v2237_v49 }
 0xb7b   :  { %v2240_v37 = vsel %vm7884_vm10, %v2227_v3, 0.0  ;;  %v2220_v18 = vstv %s6518_s14  ;;  %v2324_v50 = vsel %vm247_vm0, %v2310_v23, 0.0  ;;  %v2272_v60 = vadd.f32 %v2271_v56, %v2270_v61 }
 0xb7c   :  { %v2273_v5 = vsel %vm7883_vm12, %v2266_v24, 0.0  ;;  %v2325_v47 = vsel %vm247_vm0, %v2312_v42, 0.0  ;;  %v2314_v19 = vmul.f32 %v2304_v0, %v6562_v13  ;;  %v2281_v57 = vadd.f32 %v2280_v26, %v2279_v53 }
 0xb7d   :  { %v2268_v58 = vmul.f32 %v2260_v2, %v6585_v55  ;;  %v2282_v6 = vsel %vm197_vm14, %v2269_v22, 0.0  ;;  %v2317_v49 = vsel %vm239_vm13, %v2309_v31, 0.0  ;;  %v2318_v28 = vsel %vm239_vm13, %v2311_v17, 0.0  ;;  %vm7885_vm14 = vmmov %vm7883_vm12 }
 0xb7e   :  { %v2326_v3 = vadd.f32 %v2325_v47, %v2324_v50  ;;  %v2313_v32 = vmul.f32 %v2304_v0, %v6560_v38  ;;  %v2307_v24 = vstv %s4451_s26  ;;  %v2230_v61 = vsel %vm147_vm2, %v2222_v21, 0.0 }
 0xb7f   :  { %v2231_v56 = vsel %vm147_vm2, %v2224_v11, 0.0  ;;  %v2229_v53 = vmul.f32 %v2220_v18, %v6569_v62  ;;  %v2327_v2 = vsel %vm247_vm0, %v2314_v19, 0.0  ;;  %v2226_v22 = vmul.f32 %v2216_v27, %v6560_v38 }
 0xb80   :  { %v2241_v31 = vadd.f32 %v2240_v37, %v2239_v44  ;;  %v2274_v23 = vadd.f32 %v2273_v5, %v2272_v60  ;;  %v2316_v4 = vmul.f32 %v2307_v24, %v6569_v62  ;;  %v2275_v26 = vsel %vm7885_vm14, %v2268_v58, 0.0 }
 0xb81   :  { %v2283_v17 = vadd.f32 %v2282_v6, %v2281_v57  ;;  %v2319_v0 = vadd.f32 %v2318_v28, %v2317_v49  ;;  %v2345_v42 = vstv %s6608_s0  ;;  %v2320_v21 = vsel %vm239_vm13, %v2313_v32, 0.0 }
 0xb82   :  { %v2328_v50 = vadd.f32 %v2327_v2, %v2326_v3  ;;  %v2315_v11 = vmul.f32 %v2307_v24, %v6585_v55  ;;  %v2348_v47 = vstv %s4455_s23  ;;  %v580_v19 = vadd.f32 %v5729_v52, %v6526_v1 }
 0xb83   :  { %v2232_v33 = vadd.f32 %v2231_v56, %v2230_v61  ;;  %v2242_v27 = vsel %vm7886_vm15, %v2229_v53, 0.0  ;;  %v2329_v44 = vsel %vm247_vm0, %v2316_v4, 0.0  ;;  %v2233_v37 = vsel %vm147_vm2, %v2226_v22, 0.0  ;;  %vm7936_vm0 = vmmov %vm7881_vm1 }
 0xb84   :  { %v2228_v60 = vmul.f32 %v2220_v18, %v6585_v55  ;;  %v2276_v5 = vadd.f32 %v2275_v26, %v2274_v23  ;;  %v2356_v57 = vmul.f32 %v2345_v42, %v6535_v39  ;;  %v2321_v58 = vadd.f32 %v2320_v21, %v2319_v0 }
 0xb85   :  { %v2357_v6 = vmul.f32 %v2345_v42, %v6537_v20  ;;  %v2358_v49 = vmul.f32 %v2348_v47, %v6550_v48  ;;  %v2359_v28 = vmul.f32 %v2348_v47, %v6543_v30  ;;  %v2243_v52 = vadd.f32 %v2242_v27, %v2241_v31 }
 0xb86   :  { %v2287_v1 = vrot.slane %v2283_v17, 1  ;;  %v2322_v3 = vsel %vm239_vm13, %v2315_v11, 0.0  ;;  %v6633_v32 = vadd.f32 %v2329_v44, %v2328_v50  ;;  %v638_v24 = vadd.f32 %v5731_v41, %v6574_v59  ;;  %s4457_s24 = spop %4456 }
 0xb87   :  { %v2234_v18 = vadd.f32 %v2233_v37, %v2232_v33  ;;  %v637_v61 = vadd.f32 %v5733_v63, %v580_v19  ;;  %v2235_v56 = vsel %vm147_vm2, %v2228_v60, 0.0  ;;  %v2286_v53 = vrot.slane %v2276_v5, 1  ;;  %s4459_s27 = spop %4458 }
 0xb88   :  { %v2364_v2 = vsel %vm289_vm9, %v2356_v57, 0.0  ;;  %v6640_v22 = vadd.f32 %v2322_v3, %v2321_v58  ;;  %v2371_v31 = vsel %vm297_vm11, %v2357_v6, 0.0  ;;  %v2365_v23 = vsel %vm289_vm9, %v2358_v49, 0.0 }
 0xb89   :  { %v2372_v4 = vsel %vm297_vm11, %v2359_v28, 0.0  ;;  %v2292_v26 = vadd.f32 %v2287_v1, %v2243_v52  ;;  %v2334_v17 = vrot.slane %v6633_v32, 2  ;;  %v6647_v41 = vadd.f32 %v5735_v16, %v638_v24 }
 0xb8a   :  { %v6650_v63 = vadd.f32 %v5737_v40, %v637_v61  ;;  %v6652_v33 = vadd.f32 %v2235_v56, %v2234_v18  ;;  %v6655_v59 = vsel %vm207_vm7, %v2286_v53, %v2287_v1  ;;  %v2366_v0 = vadd.f32 %v2365_v23, %v2364_v2 }
 0xb8b   :  { %v2373_v42 = vadd.f32 %v2372_v4, %v2371_v31  ;;  %v2351_v21 = vstv %s4457_s24  ;;  %v2333_v50 = vrot.slane %v6640_v22, 2  ;;  %v2354_v47 = vstv %s4459_s27 }
 0xb8c   :  { %v2360_v11 = vmul.f32 %v2351_v21, %v6560_v38  ;;  %v2361_v16 = vmul.f32 %v2351_v21, %v6562_v13  ;;  %v2339_v40 = vadd.f32 %v2334_v17, %v2292_v26  ;;  %v2362_v19 = vmul.f32 %v2354_v47, %v6585_v55 }
 0xb8d   :  { %v2363_v27 = vmul.f32 %v2354_v47, %v6569_v62  ;;  %vm7893_vm13 = vcmask 1042432   ;;  %vm7938_vm1 = vcmask 97288   ;;  %vm7939_vm10 = vcmask 92168  }
 0xb8e   :  { %v2367_v37 = vsel %vm289_vm9, %v2360_v11, 0.0  ;;  %v2374_v60 = vsel %vm297_vm11, %v2361_v16, 0.0  ;;  %v2369_v49 = vsel %vm289_vm9, %v2362_v19, 0.0  ;;  %vm7887_vm9 = vcmask 89093   ;;  %vm7940_vm12 = vmmov %vm7938_vm1 }
 0xb8f   :  { %v2368_v58 = vadd.f32 %v2367_v37, %v2366_v0  ;;  %v2375_v6 = vadd.f32 %v2374_v60, %v2373_v42  ;;  %v2376_v28 = vsel %vm297_vm11, %v2363_v27, 0.0  ;;  %vm7941_vm14 = vmmov %vm7939_vm10 }
 0xb90   :  { %s4461_s28 = spop %4460  ;;  %vm7942_vm15 = vmmov %vm7938_vm1 }
 0xb91   :  { %v2392_v44 = vstv %s4461_s28  ;;  %s4463_s1 = spop %4462  ;;  %v2370_v18 = vadd.f32 %v2369_v49, %v2368_v58  ;;  %v2377_v61 = vadd.f32 %v2376_v28, %v2375_v6 }
 0xb92   :  { %v2403_v5 = vmul.f32 %v2392_v44, %v6535_v39  ;;  %v2404_v57 = vmul.f32 %v2392_v44, %v6537_v20  ;;  %s4465_s29 = spop %4464  ;;  %v2395_v3 = vstv %s4463_s1 }
 0xb93   :  { %s4467_s30 = spop %4466  ;;  %v2398_v24 = vstv %s4465_s29  ;;  %v2405_v56 = vmul.f32 %v2395_v3, %v6550_v48  ;;  %v2406_v53 = vmul.f32 %v2395_v3, %v6543_v30  ;;  %v2380_v26 = vrot.slane %v2370_v18, 3 }
 0xb94   :  { %v2411_v52 = vsel %vm339_vm8, %v2403_v5, 0.0  ;;  %v2418_v1 = vsel %vm347_vm3, %v2404_v57, 0.0  ;;  %s4469_s3 = spop %4468  ;;  %v2407_v2 = vmul.f32 %v2398_v24, %v6560_v38  ;;  %v2408_v31 = vmul.f32 %v2398_v24, %v6562_v13 }
 0xb95   :  { %v2401_v23 = vstv %s4467_s30  ;;  %v2439_v4 = vstv %s4469_s3  ;;  %s4471_s4 = spop %4470  ;;  %v2381_v0 = vrot.slane %v2377_v61, 3  ;;  %v2412_v42 = vsel %vm339_vm8, %v2405_v56, 0.0 }
 0xb96   :  { %v2419_v21 = vsel %vm347_vm3, %v2406_v53, 0.0  ;;  %s4473_s5 = spop %4472  ;;  %v2413_v11 = vadd.f32 %v2412_v42, %v2411_v52  ;;  %v2414_v47 = vsel %vm339_vm8, %v2407_v2, 0.0  ;;  %v2421_v19 = vsel %vm347_vm3, %v2408_v31, 0.0 }
 0xb97   :  { %v2420_v16 = vadd.f32 %v2419_v21, %v2418_v1  ;;  %v2409_v27 = vmul.f32 %v2401_v23, %v6585_v55  ;;  %v2410_v44 = vmul.f32 %v2401_v23, %v6569_v62  ;;  %v2450_v37 = vmul.f32 %v2439_v4, %v6535_v39  ;;  %s4475_s6 = spop %4474 }
 0xb98   :  { %v2451_v60 = vmul.f32 %v2439_v4, %v6537_v20  ;;  %v2415_v5 = vadd.f32 %v2414_v47, %v2413_v11  ;;  %v2442_v58 = vstv %s4471_s4  ;;  %v2445_v6 = vstv %s4473_s5 }
 0xb99   :  { %v2422_v57 = vadd.f32 %v2421_v19, %v2420_v16  ;;  %v2416_v49 = vsel %vm339_vm8, %v2409_v27, 0.0  ;;  %v2423_v28 = vsel %vm347_vm3, %v2410_v44, 0.0  ;;  %v2458_v52 = vsel %vm7887_vm9, %v2450_v37, 0.0  ;;  %vm7888_vm3 = vmmov %vm7887_vm9 }
 0xb9a   :  { %v2465_v1 = vsel %vm147_vm2, %v2451_v60, 0.0  ;;  %v2417_v3 = vadd.f32 %v2416_v49, %v2415_v5  ;;  %v2452_v18 = vmul.f32 %v2442_v58, %v6550_v48  ;;  %v2453_v61 = vmul.f32 %v2442_v58, %v6543_v30  ;;  %vm7889_vm8 = vmmov %vm7888_vm3 }
 0xb9b   :  { %v2424_v24 = vadd.f32 %v2423_v28, %v2422_v57  ;;  %v2454_v56 = vmul.f32 %v2445_v6, %v6560_v38  ;;  %v2455_v53 = vmul.f32 %v2445_v6, %v6562_v13  ;;  %v2448_v2 = vstv %s4475_s6  ;;  %vm7890_vm11 = vmmov %vm7888_vm3 }
 0xb9c   :  { %v2386_v31 = vadd.f32 %v2381_v0, %v2339_v40  ;;  %v2427_v23 = vrot.slane %v2417_v3, 4  ;;  %v2459_v42 = vsel %vm7888_vm3, %v2452_v18, 0.0  ;;  %v2466_v21 = vsel %vm147_vm2, %v2453_v61, 0.0  ;;  %v7891_v3 = vld [vmem:[#allocation26_spill] sm:$0xff]  ;;  %vm7943_vm9 = vmmov %vm7939_vm10 }
 0xb9d   :  { %v2428_v4 = vrot.slane %v2424_v24, 4  ;;  %v2460_v11 = vadd.f32 %v2459_v42, %v2458_v52  ;;  %v2467_v16 = vadd.f32 %v2466_v21, %v2465_v1  ;;  %v2461_v47 = vsel %vm7889_vm8, %v2454_v56, 0.0  ;;  %v7894_v56 = vld [vmem:[#allocation30_spill] sm:$0xff]  ;;  %vm7944_vm3 = vmmov %vm7938_vm1 }
 0xb9e   :  { %v2468_v19 = vsel %vm147_vm2, %v2455_v53, 0.0  ;;  %v751_v27 = vadd.f32 %v5739_v14, %v6647_v41  ;;  %v2456_v44 = vmul.f32 %v2448_v2, %v6585_v55  ;;  %v2457_v37 = vmul.f32 %v2448_v2, %v6569_v62  ;;  %v7896_v2 = vld [vmem:[#allocation32_spill] sm:$0xff]  ;;  %v7898_v42 = vld [vmem:[#allocation34_spill] sm:$0xff]  ;;  %vm7945_vm8 = vmmov %vm7943_vm9 }
 0xb9f   :  { %v2291_v40 = vadd.f32 %v6655_v59, %v6652_v33  ;;  %v2462_v60 = vadd.f32 %v2461_v47, %v2460_v11  ;;  %v2469_v5 = vadd.f32 %v2468_v19, %v2467_v16  ;;  %v2335_v57 = vsel %vm257_vm6, %v2333_v50, %v2334_v17  ;;  %v7899_v11 = vld [vmem:[#allocation35_spill] sm:$0xff]  ;;  %v7900_v47 = vld [vmem:[#allocation36_spill] sm:$0xff] }
 0xba0   :  { %v2382_v58 = vsel %vm307_vm4, %v2380_v26, %v2381_v0  ;;  %v2463_v6 = vsel %vm7890_vm11, %v2456_v44, 0.0  ;;  %v2470_v14 = vsel %vm147_vm2, %v2457_v37, 0.0  ;;  %v2429_v49 = vsel %vm357_vm5, %v2427_v23, %v2428_v4  ;;  %v7892_v26 = vld [vmem:[#allocation27_spill] sm:$0xff]  ;;  %v7897_v23 = vld [vmem:[#allocation33_spill] sm:$0xff]  ;;  %v7902_v37 = vld [vmem:[#allocation38_spill] sm:$0xff] }
 0xba1   :  { %v2338_v41 = vadd.f32 %v2335_v57, %v2291_v40  ;;  %v750_v33 = vadd.f32 %v5741_v45, %v6650_v63  ;;  %v2464_v59 = vadd.f32 %v2463_v6, %v2462_v60  ;;  %v2471_v28 = vadd.f32 %v2470_v14, %v2469_v5  ;;  %v7895_v45 = vld [vmem:[#allocation31_spill] sm:$0xff]  ;;  %v7904_v57 = vld [vmem:[#allocation28_spill] sm:$0xff]  ;;  %v7905_v6 = vld [vmem:[#allocation29_spill] sm:$0xff] }
 0xba2   :  { %v2433_v52 = vadd.f32 %v2428_v4, %v2386_v31  ;;  %v805_v17 = vadd.f32 %v7891_v3, %v751_v27  ;;  %v7901_v27 = vld [vmem:[#allocation37_spill] sm:$0xff]  ;;  %v7903_v60 = vld [vmem:[#allocation39_spill] sm:$0xff]  ;;  %vm7950_vm11 = vcmask 97289  }
 0xba3   :  { %v2385_v32 = vadd.f32 %v2382_v58, %v2338_v41  ;;  %v2474_v1 = vrot.slane %v2464_v59, 5  ;;  %v2475_v22 = vrot.slane %v2471_v28, 5  ;;  %v804_v0 = vadd.f32 %v7892_v26, %v750_v33  ;;  %v7906_v41 = vld [vmem:[#allocation40_spill] sm:$0xff]  ;;  %v7907_v33 = vld [vmem:[#allocation41_spill] sm:$0xff]  ;;  %v7908_v28 = vld [vmem:[#allocation42_spill] sm:$0xff] }
 0xba4   :  { %v862_v53 = vadd.f32 %v7894_v56, %v805_v17  ;;  %v7911_v17 = vld [vmem:[#allocation45_spill] sm:$0xff]  ;;  %v7912_v26 = vld [vmem:[#allocation46_spill] sm:$0xff] }
 0xba5   :  { %v2432_v50 = vadd.f32 %v2429_v49, %v2385_v32  ;;  %v6715_v24 = vadd.f32 %v2475_v22, %v2433_v52  ;;  %v2476_v18 = vsel %vm7893_vm13, %v2474_v1, %v2475_v22  ;;  %v861_v63 = vadd.f32 %v7895_v45, %v804_v0  ;;  %v7909_v32 = vld [vmem:[#allocation43_spill] sm:$0xff]  ;;  %v7910_v22 = vld [vmem:[#allocation44_spill] sm:$0xff] }
 0xba6   :  { %v919_v31 = vadd.f32 %v7896_v2, %v862_v53  ;;  %v7914_v53 = vld [vmem:[#allocation48_spill] sm:$0xff]  ;;  %vm7951_vm13 = vcmask 93192  }
 0xba7   :  { %v6718_v61 = vadd.f32 %v2476_v18, %v2432_v50  ;;  %v918_v4 = vadd.f32 %v7897_v23, %v861_v63  ;;  %v7913_v18 = vld [vmem:[#allocation47_spill] sm:$0xff]  ;;  %v7915_v63 = vld [vmem:[#allocation49_spill] sm:$0xff] }
 0xba8   :  { %v976_v21 = vadd.f32 %v7898_v42, %v919_v31  ;;  %v7916_v31 = vld [vmem:[#allocation5_spill] sm:$0xff] }
 0xba9   :  { %v975_v16 = vadd.f32 %v7899_v11, %v918_v4  ;;  %v7917_v4 = vld [vmem:[#allocation50_spill] sm:$0xff] }
 0xbaa   :  { %v1033_v19 = vadd.f32 %v7900_v47, %v976_v21  ;;  %v7918_v21 = vld [vmem:[#allocation7_spill] sm:$0xff] }
 0xbab   :  { %v1032_v44 = vadd.f32 %v7901_v27, %v975_v16  ;;  %v7919_v16 = vld [vmem:[#allocation6_spill] sm:$0xff] }
 0xbac   :  { %v1089_v40 = vadd.f32 %v7902_v37, %v1033_v19  ;;  %v7920_v19 = vld [vmem:[#allocation9_spill] sm:$0xff] }
 0xbad   :  { %v1088_v5 = vadd.f32 %v7903_v60, %v1032_v44  ;;  %v7921_v44 = vld [vmem:[#allocation8_spill] sm:$0xff] }
 0xbae   :  { %v1143_v58 = vadd.f32 %v7904_v57, %v1089_v40  ;;  %v7922_v40 = vld [vmem:[#allocation11_spill] sm:$0xff] }
 0xbaf   :  { %v1142_v14 = vadd.f32 %v7905_v6, %v1088_v5  ;;  %v7923_v5 = vld [vmem:[#allocation10_spill] sm:$0xff] }
 0xbb0   :  { %v1200_v49 = vadd.f32 %v7906_v41, %v1143_v58  ;;  %v7924_v58 = vld [vmem:[#allocation13_spill] sm:$0xff] }
 0xbb1   :  { %v1199_v59 = vadd.f32 %v7907_v33, %v1142_v14  ;;  %v7925_v14 = vld [vmem:[#allocation12_spill] sm:$0xff] }
 0xbb2   :  { %v1257_v52 = vadd.f32 %v7908_v28, %v1200_v49 }
 0xbb3   :  { %v1256_v1 = vadd.f32 %v7909_v32, %v1199_v59  ;;  %v7926_v59 = vld [vmem:[#allocation15_spill] sm:$0xff] }
 0xbb4   :  { %v1314_v3 = vadd.f32 %v7910_v22, %v1257_v52  ;;  %v7927_v52 = vld [vmem:[#allocation14_spill] sm:$0xff] }
 0xbb5   :  { %v1313_v50 = vadd.f32 %v7911_v17, %v1256_v1  ;;  %v7928_v1 = vld [vmem:[#allocation51_spill] sm:$0xff] }
 0xbb6   :  { %v1371_v0 = vadd.f32 %v7912_v26, %v1314_v3  ;;  %v7929_v3 = vld [vmem:[#allocation52_spill] sm:$0xff] }
 0xbb7   :  { %v1370_v56 = vadd.f32 %v7913_v18, %v1313_v50  ;;  %v7930_v50 = vld [vmem:[#allocation53_spill] sm:$0xff] }
 0xbb8   :  { %v1427_v45 = vadd.f32 %v7914_v53, %v1371_v0  ;;  %v7931_v0 = vld [vmem:[#allocation54_spill] sm:$0xff] }
 0xbb9   :  { %v1426_v2 = vadd.f32 %v7915_v63, %v1370_v56  ;;  %v7932_v56 = vld [vmem:[#allocation55_spill] sm:$0xff] }
 0xbba   :  { %v1481_v23 = vadd.f32 %v7916_v31, %v1427_v45  ;;  %v7933_v45 = vld [vmem:[#allocation56_spill] sm:$0xff]  ;;  %v7935_v31 = vld [vmem:[#allocation58_spill] sm:$0xff] }
 0xbbb   :  { %v1480_v42 = vadd.f32 %v7917_v4, %v1426_v2  ;;  %v7934_v2 = vld [vmem:[#allocation57_spill] sm:$0xff] }
 0xbbc   :  { %v1538_v11 = vadd.f32 %v7918_v21, %v1481_v23 }
 0xbbd   :  { %v1537_v47 = vadd.f32 %v7919_v16, %v1480_v42 }
 0xbbe   :  { %v1595_v27 = vadd.f32 %v7920_v19, %v1538_v11 }
 0xbbf   :  { %v1594_v37 = vadd.f32 %v7921_v44, %v1537_v47 }
 0xbc0   :  { %v1652_v60 = vadd.f32 %v7922_v40, %v1595_v27 }
 0xbc1   :  { %v1651_v57 = vadd.f32 %v7923_v5, %v1594_v37 }
 0xbc2   :  { %v1709_v6 = vadd.f32 %v7924_v58, %v1652_v60 }
 0xbc3   :  { %v1708_v41 = vadd.f32 %v7925_v14, %v1651_v57 }
 0xbc4   :  { %v1765_v49 = vadd.f32 %v6018_v7, %v1709_v6 }
 0xbc5   :  { %v1764_v33 = vadd.f32 %v6020_v10, %v1708_v41 }
 0xbc6   :  { %v1819_v28 = vadd.f32 %v7926_v59, %v1765_v49 }
 0xbc7   :  { %v1818_v32 = vadd.f32 %v7927_v52, %v1764_v33 }
 0xbc8   :  { %v1876_v22 = vadd.f32 %v7928_v1, %v1819_v28 }
 0xbc9   :  { %v1875_v17 = vadd.f32 %v7929_v3, %v1818_v32 }
 0xbca   :  { %v1933_v26 = vadd.f32 %v7930_v50, %v1876_v22 }
 0xbcb   :  { %v1932_v18 = vadd.f32 %v7931_v0, %v1875_v17 }
 0xbcc   :  { %v1990_v53 = vadd.f32 %v7932_v56, %v1933_v26 }
 0xbcd   :  { %v1989_v63 = vadd.f32 %v7933_v45, %v1932_v18 }
 0xbce   :  { %v2047_v7 = vadd.f32 %v7934_v2, %v1990_v53  ;;  %v7947_v2 = vld [vmem:[#allocation60_spill] sm:$0xff] }
 0xbcf   :  { %v2046_v10 = vadd.f32 %v7935_v31, %v1989_v63  ;;  %v7946_v63 = vld [vmem:[#allocation61_spill] sm:$0xff]  ;;  %v7949_v31 = vld [vmem:[#allocation63_spill] sm:$0xff] }
 0xbdc   :  { %v2099_v23 = vpop.permute.xlu1 %2098 }
 0xbdd   :  { %v2103_v4 = vadd.f32 %v2099_v23, %v2047_v7  ;;  %v2097_v42 = vpop.permute.xlu0 %2096  ;;  %v7948_v7 = vld [vmem:[#allocation62_spill] sm:$0xff] }
 0xbde   :  { %v2102_v21 = vadd.f32 %v2097_v42, %v2046_v10 }
 0xbdf   :  { %v2105_v11 = vmul.f32 0.2, %v2103_v4 }
 0xbe0   :  { %v2104_v16 = vmul.f32 0.2, %v2102_v21  ;;  %v2484_v47 = vpop.permute.xlu1 %2483 }
 0xbe1   :  { %2107 = vst.msk [vmem:[%s7937_s9 + $0x8] sm:$0x7] %vm7936_vm0, %v2105_v11  ;;  %v2482_v19 = vpop.permute.xlu0 %2481  ;;  %vm7952_vm0 = vmmov %vm7950_vm11 }
 0xbe2   :  { %2106 = vst.msk [vmem:[%s7937_s9] sm:$0xff] %vm147_vm2, %v2104_v16 }
 0xbe3   :  { %4476 = vpush %v2482_v19 }
 0xbe4   :  { %4478 = vpush %v2484_v47  ;;  %v2488_v27 = vpop.permute.xlu1 %2487 }
 0xbe5   :  { %v2486_v44 = vpop.permute.xlu0 %2485 }
 0xbe6   :  { %4480 = vpush %v2486_v44 }
 0xbe7   :  { %4482 = vpush %v2488_v27 }
 0xc14   :  { %s4477_s14 = spop %4476 }
 0xc15   :  { %v2490_v37 = vstv %s4477_s14  ;;  %s4479_s15 = spop %4478 }
 0xc16   :  { %v2501_v40 = vmul.f32 %v2490_v37, %v6535_v39  ;;  %v2502_v60 = vmul.f32 %v2490_v37, %v6537_v20  ;;  %v2493_v5 = vstv %s4479_s15 }
 0xc17   :  { %v2503_v57 = vmul.f32 %v2493_v5, %v6550_v48  ;;  %v2504_v58 = vmul.f32 %v2493_v5, %v6543_v30  ;;  %s4481_s20 = spop %4480 }
 0xc18   :  { %v2509_v6 = vsel %vm7938_vm1, %v2501_v40, 0.0  ;;  %v2516_v14 = vsel %vm7939_vm10, %v2502_v60, 0.0  ;;  %v2496_v33 = vstv %s4481_s20  ;;  %s4483_s19 = spop %4482  ;;  %vm7953_vm1 = vmmov %vm7951_vm13 }
 0xc19   :  { %v2510_v41 = vsel %vm7940_vm12, %v2503_v57, 0.0  ;;  %v2517_v49 = vsel %vm7941_vm14, %v2504_v58, 0.0  ;;  %v2505_v59 = vmul.f32 %v2496_v33, %v6560_v38  ;;  %v2506_v28 = vmul.f32 %v2496_v33, %v6562_v13  ;;  %vm7954_vm10 = vmmov %vm7952_vm0 }
 0xc1a   :  { %v2511_v52 = vadd.f32 %v2510_v41, %v2509_v6  ;;  %v2518_v32 = vadd.f32 %v2517_v49, %v2516_v14  ;;  %v2499_v1 = vstv %s4483_s19  ;;  %vm7955_vm12 = vmmov %vm7953_vm1 }
 0xc1b   :  { %v2512_v22 = vsel %vm7942_vm15, %v2505_v59, 0.0  ;;  %v2519_v3 = vsel %vm7943_vm9, %v2506_v28, 0.0  ;;  %v2507_v17 = vmul.f32 %v2499_v1, %v6585_v55  ;;  %v2508_v50 = vmul.f32 %v2499_v1, %v6569_v62  ;;  %vm7956_vm14 = vmmov %vm7952_vm0 }
 0xc1c   :  { %v2513_v26 = vadd.f32 %v2512_v22, %v2511_v52  ;;  %v2520_v0 = vadd.f32 %v2519_v3, %v2518_v32  ;;  %vm7957_vm15 = vmmov %vm7953_vm1  ;;  %vm7962_vm9 = vcmask 97290  }
 0xc1d   :  { %v2514_v18 = vsel %vm7944_vm3, %v2507_v17, 0.0  ;;  %v2521_v56 = vsel %vm7945_vm8, %v2508_v50, 0.0  ;;  %vm7963_vm3 = vcmask 94216   ;;  %vm7964_vm8 = vmmov %vm7962_vm9 }
 0xc1e   :  { %v2515_v53 = vadd.f32 %v2514_v18, %v2513_v26  ;;  %v2522_v45 = vadd.f32 %v2521_v56, %v2520_v0 }
 0xc20   :  { %2527 = vrot.lane.b32.xlu1 %v2522_v45, %s7794_s16  ;;  %2525 = vrot.lane.b32.xlu0 %v2515_v53, %s7794_s16  ;;  %v7958_v53 = vld [vmem:[#allocation65_spill] sm:$0xff]  ;;  %v7959_v45 = vld [vmem:[#allocation64_spill] sm:$0xff] }
 0xc24   :  { %2535 = vrot.lane.b32.xlu1 %v7946_v63, %s7794_s16  ;;  %2533 = vrot.lane.b32.xlu0 %v7947_v2, %s7794_s16 }
 0xc28   :  { %2537 = vrot.lane.b32.xlu0 %v7948_v7, %s7794_s16  ;;  %2539 = vrot.lane.b32.xlu1 %v7949_v31, %s7794_s16 }
 0xc92   :  { %v6798_v10 = vpop.permute.xlu1 %2527  ;;  %v6800_v23 = vpop.permute.xlu0 %2525 }
 0xc96   :  { %v2536_v4 = vpop.permute.xlu1 %2535  ;;  %v2534_v42 = vpop.permute.xlu0 %2533 }
 0xc97   :  { %4484 = vpush %v2534_v42  ;;  %v7961_v42 = vld [vmem:[#allocation66_spill] sm:$0xff] }
 0xc98   :  { %4486 = vpush %v2536_v4  ;;  %v7960_v4 = vld [vmem:[#allocation67_spill] sm:$0xff] }
 0xc9a   :  { %v2538_v21 = vpop.permute.xlu0 %2537  ;;  %v2540_v11 = vpop.permute.xlu1 %2539 }
 0xc9b   :  { %4488 = vpush %v2538_v21 }
 0xc9c   :  { %4490 = vpush %v2540_v11 }
 0xcc8   :  { %s4485_s18 = spop %4484 }
 0xcc9   :  { %v2542_v16 = vstv %s4485_s18  ;;  %s4487_s25 = spop %4486 }
 0xcca   :  { %v2553_v47 = vmul.f32 %v2542_v16, %v6535_v39  ;;  %v2554_v19 = vmul.f32 %v2542_v16, %v6537_v20  ;;  %v2545_v27 = vstv %s4487_s25 }
 0xccb   :  { %v2555_v44 = vmul.f32 %v2545_v27, %v6550_v48  ;;  %v2556_v37 = vmul.f32 %v2545_v27, %v6543_v30 }
 0xccc   :  { %v2561_v40 = vsel %vm7950_vm11, %v2553_v47, 0.0  ;;  %v2568_v60 = vsel %vm7951_vm13, %v2554_v19, 0.0  ;;  %s4489_s21 = spop %4488  ;;  %vm7965_vm11 = vmmov %vm7963_vm3 }
 0xccd   :  { %v2562_v5 = vsel %vm7952_vm0, %v2555_v44, 0.0  ;;  %v2569_v57 = vsel %vm7953_vm1, %v2556_v37, 0.0  ;;  %v2548_v58 = vstv %s4489_s21  ;;  %s4491_s22 = spop %4490  ;;  %vm7966_vm13 = vmmov %vm7964_vm8 }
 0xcce   :  { %v2557_v6 = vmul.f32 %v2548_v58, %v6560_v38  ;;  %v2558_v14 = vmul.f32 %v2548_v58, %v6562_v13  ;;  %v2563_v41 = vadd.f32 %v2562_v5, %v2561_v40  ;;  %v2570_v49 = vadd.f32 %v2569_v57, %v2568_v60  ;;  %vm7967_vm0 = vmmov %vm7963_vm3 }
 0xccf   :  { %v2551_v33 = vstv %s4491_s22  ;;  %vm7968_vm1 = vmmov %vm7964_vm8 }
 0xcd0   :  { %v2564_v59 = vsel %vm7954_vm10, %v2557_v6, 0.0  ;;  %v2571_v28 = vsel %vm7955_vm12, %v2558_v14, 0.0  ;;  %v2559_v52 = vmul.f32 %v2551_v33, %v6585_v55  ;;  %v2560_v32 = vmul.f32 %v2551_v33, %v6569_v62  ;;  %vm7969_vm10 = vmmov %vm7967_vm0 }
 0xcd1   :  { %v2565_v1 = vadd.f32 %v2564_v59, %v2563_v41  ;;  %v2572_v22 = vadd.f32 %v2571_v28, %v2570_v49  ;;  %vm7972_vm12 = vcmask 97291  }
 0xcd2   :  { %v2566_v3 = vsel %vm7956_vm14, %v2559_v52, 0.0  ;;  %v2573_v17 = vsel %vm7957_vm15, %v2560_v32, 0.0  ;;  %vm7973_vm14 = vcmask 95240   ;;  %vm7974_vm15 = vmmov %vm7972_vm12 }
 0xcd3   :  { %v2567_v50 = vadd.f32 %v2566_v3, %v2565_v1  ;;  %v2574_v26 = vadd.f32 %v2573_v17, %v2572_v22 }
 0xcd5   :  { %v2577_v0 = vrot.slane %v2567_v50, 1  ;;  %v2578_v18 = vrot.slane %v2574_v26, 1 }
 0xcd7   :  { %2582 = vrot.lane.b32.xlu1 %v2578_v18, %s7794_s16  ;;  %v2579_v56 = vsel %vm207_vm7, %v2577_v0, %v2578_v18 }
 0xcd8   :  { %2580 = vrot.lane.b32.xlu0 %v2579_v56, %s7794_s16 }
 0xcdb   :  { %2590 = vrot.lane.b32.xlu1 %v7958_v53, %s7794_s16 }
 0xcdc   :  { %2588 = vrot.lane.b32.xlu0 %v7959_v45, %s7794_s16 }
 0xcdf   :  { %2594 = vrot.lane.b32.xlu1 %v7960_v4, %s7794_s16 }
 0xce0   :  { %2592 = vrot.lane.b32.xlu0 %v7961_v42, %s7794_s16 }
 0xd49   :  { %v6829_v21 = vpop.permute.xlu1 %2582 }
 0xd4a   :  { %v6831_v11 = vpop.permute.xlu0 %2580 }
 0xd4d   :  { %v2591_v16 = vpop.permute.xlu1 %2590 }
 0xd4e   :  { %v2589_v47 = vpop.permute.xlu0 %2588 }
 0xd4f   :  { %4492 = vpush %v2589_v47 }
 0xd50   :  { %4494 = vpush %v2591_v16 }
 0xd51   :  { %v2595_v19 = vpop.permute.xlu1 %2594 }
 0xd52   :  { %v2593_v27 = vpop.permute.xlu0 %2592 }
 0xd53   :  { %4496 = vpush %v2593_v27 }
 0xd54   :  { %4498 = vpush %v2595_v19 }
 0xd80   :  { %s4493_s26 = spop %4492 }
 0xd81   :  { %v2597_v44 = vstv %s4493_s26  ;;  %s4495_s0 = spop %4494 }
 0xd82   :  { %v2608_v37 = vmul.f32 %v2597_v44, %v6535_v39  ;;  %v2609_v40 = vmul.f32 %v2597_v44, %v6537_v20  ;;  %v2600_v60 = vstv %s4495_s0  ;;  %v7970_v44 = vld [vmem:[#allocation69_spill] sm:$0xff] }
 0xd83   :  { %v2610_v5 = vmul.f32 %v2600_v60, %v6550_v48  ;;  %v2611_v57 = vmul.f32 %v2600_v60, %v6543_v30 }
 0xd84   :  { %v2616_v58 = vsel %vm7962_vm9, %v2608_v37, 0.0  ;;  %v2623_v6 = vsel %vm7963_vm3, %v2609_v40, 0.0  ;;  %s4497_s23 = spop %4496  ;;  %v7971_v37 = vld [vmem:[#allocation68_spill] sm:$0xff]  ;;  %vm7975_vm9 = vmmov %vm7973_vm14 }
 0xd85   :  { %v2617_v14 = vsel %vm7964_vm8, %v2610_v5, 0.0  ;;  %v2624_v41 = vsel %vm7965_vm11, %v2611_v57, 0.0  ;;  %v2603_v49 = vstv %s4497_s23  ;;  %s4499_s24 = spop %4498  ;;  %vm7976_vm3 = vmmov %vm7972_vm12 }
 0xd86   :  { %v2612_v33 = vmul.f32 %v2603_v49, %v6560_v38  ;;  %v2613_v59 = vmul.f32 %v2603_v49, %v6562_v13  ;;  %v2618_v28 = vadd.f32 %v2617_v14, %v2616_v58  ;;  %v2625_v52 = vadd.f32 %v2624_v41, %v2623_v6  ;;  %vm7977_vm8 = vmmov %vm7975_vm9 }
 0xd87   :  { %v2606_v32 = vstv %s4499_s24  ;;  %vm7978_vm11 = vmmov %vm7976_vm3 }
 0xd88   :  { %v2619_v1 = vsel %vm7966_vm13, %v2612_v33, 0.0  ;;  %v2626_v22 = vsel %vm7967_vm0, %v2613_v59, 0.0  ;;  %v2614_v3 = vmul.f32 %v2606_v32, %v6585_v55  ;;  %v2615_v17 = vmul.f32 %v2606_v32, %v6569_v62  ;;  %vm7979_vm13 = vmmov %vm7977_vm8 }
 0xd89   :  { %v2620_v50 = vadd.f32 %v2619_v1, %v2618_v28  ;;  %v2627_v26 = vadd.f32 %v2626_v22, %v2625_v52  ;;  %vm7980_vm0 = vcmask 97292  }
 0xd8a   :  { %v2621_v0 = vsel %vm7968_vm1, %v2614_v3, 0.0  ;;  %v2628_v18 = vsel %vm7969_vm10, %v2615_v17, 0.0  ;;  %vm7981_vm1 = vcmask 96264   ;;  %vm7982_vm10 = vmmov %vm7980_vm0 }
 0xd8b   :  { %v2622_v56 = vadd.f32 %v2621_v0, %v2620_v50  ;;  %v2629_v16 = vadd.f32 %v2628_v18, %v2627_v26 }
 0xd8d   :  { %v2632_v47 = vrot.slane %v2622_v56, 2  ;;  %v2633_v19 = vrot.slane %v2629_v16, 2 }
 0xd8f   :  { %2637 = vrot.lane.b32.xlu1 %v2633_v19, %s7794_s16  ;;  %v2634_v27 = vsel %vm257_vm6, %v2632_v47, %v2633_v19 }
 0xd90   :  { %2635 = vrot.lane.b32.xlu0 %v2634_v27, %s7794_s16 }
 0xd93   :  { %2645 = vrot.lane.b32.xlu1 %v7970_v44, %s7794_s16 }
 0xd94   :  { %2643 = vrot.lane.b32.xlu0 %v7971_v37, %s7794_s16 }
 0xd97   :  { %2649 = vrot.lane.b32.xlu1 %v6441_v15, %s7794_s16 }
 0xd98   :  { %2647 = vrot.lane.b32.xlu0 %v6438_v43, %s7794_s16 }
 0xe01   :  { %v6860_v40 = vpop.permute.xlu1 %2637 }
 0xe02   :  { %v6862_v60 = vpop.permute.xlu0 %2635 }
 0xe05   :  { %v2646_v5 = vpop.permute.xlu1 %2645 }
 0xe06   :  { %v2644_v57 = vpop.permute.xlu0 %2643 }
 0xe07   :  { %4500 = vpush %v2644_v57 }
 0xe08   :  { %4502 = vpush %v2646_v5 }
 0xe09   :  { %v2650_v58 = vpop.permute.xlu1 %2649 }
 0xe0a   :  { %v2648_v6 = vpop.permute.xlu0 %2647 }
 0xe0b   :  { %4504 = vpush %v2648_v6 }
 0xe0c   :  { %4506 = vpush %v2650_v58 }
 0xe38   :  { %s4501_s27 = spop %4500 }
 0xe39   :  { %v2652_v14 = vstv %s4501_s27  ;;  %s4503_s28 = spop %4502 }
 0xe3a   :  { %v2663_v41 = vmul.f32 %v2652_v14, %v6535_v39  ;;  %v2664_v49 = vmul.f32 %v2652_v14, %v6537_v20  ;;  %v2655_v33 = vstv %s4503_s28 }
 0xe3b   :  { %v2665_v59 = vmul.f32 %v2655_v33, %v6550_v48  ;;  %v2666_v28 = vmul.f32 %v2655_v33, %v6543_v30 }
 0xe3c   :  { %v2671_v52 = vsel %vm7972_vm12, %v2663_v41, 0.0  ;;  %v2678_v32 = vsel %vm7973_vm14, %v2664_v49, 0.0  ;;  %s4505_s1 = spop %4504  ;;  %vm7983_vm12 = vmmov %vm7981_vm1 }
 0xe3d   :  { %v2672_v1 = vsel %vm7974_vm15, %v2665_v59, 0.0  ;;  %v2679_v22 = vsel %vm7975_vm9, %v2666_v28, 0.0  ;;  %v2658_v3 = vstv %s4505_s1  ;;  %s4507_s29 = spop %4506  ;;  %vm7984_vm14 = vmmov %vm7980_vm0 }
 0xe3e   :  { %v2667_v17 = vmul.f32 %v2658_v3, %v6560_v38  ;;  %v2668_v50 = vmul.f32 %v2658_v3, %v6562_v13  ;;  %v2673_v26 = vadd.f32 %v2672_v1, %v2671_v52  ;;  %v2680_v0 = vadd.f32 %v2679_v22, %v2678_v32  ;;  %vm7985_vm15 = vmmov %vm7981_vm1 }
 0xe3f   :  { %v2661_v18 = vstv %s4507_s29  ;;  %vm7986_vm9 = vmmov %vm7980_vm0 }
 0xe40   :  { %v2674_v56 = vsel %vm7976_vm3, %v2667_v17, 0.0  ;;  %v2681_v16 = vsel %vm7977_vm8, %v2668_v50, 0.0  ;;  %v2669_v47 = vmul.f32 %v2661_v18, %v6585_v55  ;;  %v2670_v19 = vmul.f32 %v2661_v18, %v6569_v62  ;;  %vm7987_vm3 = vmmov %vm7981_vm1 }
 0xe41   :  { %v2675_v27 = vadd.f32 %v2674_v56, %v2673_v26  ;;  %v2682_v5 = vadd.f32 %v2681_v16, %v2680_v0  ;;  %vm7988_vm8 = vcmask 97293  }
 0xe42   :  { %v2676_v57 = vsel %vm7978_vm11, %v2669_v47, 0.0  ;;  %v2683_v58 = vsel %vm7979_vm13, %v2670_v19, 0.0  ;;  %vm7989_vm11 = vcmask 97288   ;;  %vm7990_vm13 = vmmov %vm7988_vm8 }
 0xe43   :  { %v2677_v6 = vadd.f32 %v2676_v57, %v2675_v27  ;;  %v2684_v14 = vadd.f32 %v2683_v58, %v2682_v5 }
 0xe45   :  { %v2687_v41 = vrot.slane %v2677_v6, 3  ;;  %v2688_v49 = vrot.slane %v2684_v14, 3 }
 0xe47   :  { %2692 = vrot.lane.b32.xlu1 %v2688_v49, %s7794_s16  ;;  %v2689_v33 = vsel %vm307_vm4, %v2687_v41, %v2688_v49 }
 0xe48   :  { %2690 = vrot.lane.b32.xlu0 %v2689_v33, %s7794_s16 }
 0xe4b   :  { %2700 = vrot.lane.b32.xlu1 %v6449_v25, %s7794_s16 }
 0xe4c   :  { %2698 = vrot.lane.b32.xlu0 %v6446_v8, %s7794_s16 }
 0xe4f   :  { %2704 = vrot.lane.b32.xlu1 %v6462_v54, %s7794_s16 }
 0xe50   :  { %2702 = vrot.lane.b32.xlu0 %v6455_v29, %s7794_s16 }
 0xeb9   :  { %v6891_v59 = vpop.permute.xlu1 %2692 }
 0xeba   :  { %v6893_v28 = vpop.permute.xlu0 %2690 }
 0xebd   :  { %v2701_v52 = vpop.permute.xlu1 %2700 }
 0xebe   :  { %v2699_v32 = vpop.permute.xlu0 %2698 }
 0xebf   :  { %4508 = vpush %v2699_v32 }
 0xec0   :  { %4510 = vpush %v2701_v52 }
 0xec1   :  { %v2705_v1 = vpop.permute.xlu1 %2704 }
 0xec2   :  { %v2703_v22 = vpop.permute.xlu0 %2702 }
 0xec3   :  { %4512 = vpush %v2703_v22 }
 0xec4   :  { %4514 = vpush %v2705_v1 }
 0xef0   :  { %s4509_s30 = spop %4508 }
 0xef1   :  { %v2707_v3 = vstv %s4509_s30  ;;  %s4511_s3 = spop %4510 }
 0xef2   :  { %v2718_v17 = vmul.f32 %v2707_v3, %v6535_v39  ;;  %v2719_v50 = vmul.f32 %v2707_v3, %v6537_v20  ;;  %v2710_v26 = vstv %s4511_s3 }
 0xef3   :  { %v2720_v0 = vmul.f32 %v2710_v26, %v6550_v48  ;;  %v2721_v18 = vmul.f32 %v2710_v26, %v6543_v30 }
 0xef4   :  { %v2726_v56 = vsel %vm7980_vm0, %v2718_v17, 0.0  ;;  %v2733_v16 = vsel %vm7981_vm1, %v2719_v50, 0.0  ;;  %s4513_s4 = spop %4512  ;;  %vm7991_vm0 = vmmov %vm7989_vm11 }
 0xef5   :  { %v2727_v47 = vsel %vm7982_vm10, %v2720_v0, 0.0  ;;  %v2734_v19 = vsel %vm7983_vm12, %v2721_v18, 0.0  ;;  %v2713_v27 = vstv %s4513_s4  ;;  %s4515_s5 = spop %4514  ;;  %vm7992_vm1 = vmmov %vm7988_vm8 }
 0xef6   :  { %v2722_v5 = vmul.f32 %v2713_v27, %v6560_v38  ;;  %v2723_v57 = vmul.f32 %v2713_v27, %v6562_v13  ;;  %v2728_v58 = vadd.f32 %v2727_v47, %v2726_v56  ;;  %v2735_v6 = vadd.f32 %v2734_v19, %v2733_v16  ;;  %vm7993_vm10 = vmmov %vm7991_vm0 }
 0xef7   :  { %v2716_v14 = vstv %s4515_s5  ;;  %vm7994_vm12 = vmmov %vm7992_vm1 }
 0xef8   :  { %v2729_v41 = vsel %vm7984_vm14, %v2722_v5, 0.0  ;;  %v2736_v49 = vsel %vm7985_vm15, %v2723_v57, 0.0  ;;  %v2724_v33 = vmul.f32 %v2716_v14, %v6585_v55  ;;  %v2725_v52 = vmul.f32 %v2716_v14, %v6569_v62  ;;  %vm7995_vm14 = vmmov %vm7991_vm0 }
 0xef9   :  { %v2730_v32 = vadd.f32 %v2729_v41, %v2728_v58  ;;  %v2737_v1 = vadd.f32 %v2736_v49, %v2735_v6  ;;  %vm7996_vm15 = vcmask 1042432  }
 0xefa   :  { %v2731_v22 = vsel %vm7986_vm9, %v2724_v33, 0.0  ;;  %v2738_v3 = vsel %vm7987_vm3, %v2725_v52, 0.0  ;;  %vm8000_vm9 = vcmask 105488   ;;  %vm8001_vm3 = vcmask 100368  }
 0xefb   :  { %v2732_v17 = vadd.f32 %v2731_v22, %v2730_v32  ;;  %v2739_v50 = vadd.f32 %v2738_v3, %v2737_v1 }
 0xefd   :  { %v2742_v26 = vrot.slane %v2732_v17, 4  ;;  %v2743_v0 = vrot.slane %v2739_v50, 4 }
 0xeff   :  { %2747 = vrot.lane.b32.xlu1 %v2743_v0, %s7794_s16  ;;  %v2744_v18 = vsel %vm357_vm5, %v2742_v26, %v2743_v0 }
 0xf00   :  { %2745 = vrot.lane.b32.xlu0 %v2744_v18, %s7794_s16 }
 0xf03   :  { %2755 = vrot.lane.b32.xlu1 %v6468_v9, %s7794_s16 }
 0xf04   :  { %2753 = vrot.lane.b32.xlu0 %v6465_v35, %s7794_s16 }
 0xf07   :  { %2759 = vrot.lane.b32.xlu1 %v6483_v46, %s7794_s16 }
 0xf08   :  { %2757 = vrot.lane.b32.xlu0 %v6477_v51, %s7794_s16 }
 0xf71   :  { %v6922_v56 = vpop.permute.xlu1 %2747 }
 0xf72   :  { %v6924_v16 = vpop.permute.xlu0 %2745 }
 0xf75   :  { %v2756_v47 = vpop.permute.xlu1 %2755 }
 0xf76   :  { %v2754_v19 = vpop.permute.xlu0 %2753 }
 0xf77   :  { %4516 = vpush %v2754_v19 }
 0xf78   :  { %4518 = vpush %v2756_v47 }
 0xf79   :  { %v2760_v27 = vpop.permute.xlu1 %2759 }
 0xf7a   :  { %v2758_v5 = vpop.permute.xlu0 %2757 }
 0xf7b   :  { %4520 = vpush %v2758_v5 }
 0xf7c   :  { %4522 = vpush %v2760_v27 }
 0xfa8   :  { %s4517_s6 = spop %4516 }
 0xfa9   :  { %v2762_v57 = vstv %s4517_s6  ;;  %s4519_s2 = spop %4518 }
 0xfaa   :  { %v2773_v58 = vmul.f32 %v2762_v57, %v6535_v39  ;;  %v2774_v6 = vmul.f32 %v2762_v57, %v6537_v20  ;;  %v2765_v14 = vstv %s4519_s2 }
 0xfab   :  { %v2775_v41 = vmul.f32 %v2765_v14, %v6550_v48  ;;  %v2776_v49 = vmul.f32 %v2765_v14, %v6543_v30 }
 0xfac   :  { %v2781_v33 = vsel %vm7988_vm8, %v2773_v58, 0.0  ;;  %v2788_v52 = vsel %vm7989_vm11, %v2774_v6, 0.0  ;;  %s4521_s7 = spop %4520  ;;  %vm8002_vm8 = vmmov %vm8000_vm9 }
 0xfad   :  { %v2782_v32 = vsel %vm7990_vm13, %v2775_v41, 0.0  ;;  %v2789_v1 = vsel %vm7991_vm0, %v2776_v49, 0.0  ;;  %v2768_v22 = vstv %s4521_s7  ;;  %s4523_s10 = spop %4522  ;;  %vm8003_vm11 = vmmov %vm8001_vm3 }
 0xfae   :  { %v2777_v3 = vmul.f32 %v2768_v22, %v6560_v38  ;;  %v2778_v17 = vmul.f32 %v2768_v22, %v6562_v13  ;;  %v2783_v50 = vadd.f32 %v2782_v32, %v2781_v33  ;;  %v2790_v26 = vadd.f32 %v2789_v1, %v2788_v52  ;;  %v7997_v32 = vld [vmem:[#allocation59_spill] sm:$0xff]  ;;  %vm8004_vm13 = vmmov %vm8002_vm8 }
 0xfaf   :  { %v2771_v0 = vstv %s4523_s10  ;;  %vm8005_vm0 = vmmov %vm8001_vm3 }
 0xfb0   :  { %v2784_v18 = vsel %vm7992_vm1, %v2777_v3, 0.0  ;;  %v2791_v47 = vsel %vm7993_vm10, %v2778_v17, 0.0  ;;  %v2779_v19 = vmul.f32 %v2771_v0, %v6585_v55  ;;  %v2780_v27 = vmul.f32 %v2771_v0, %v6569_v62  ;;  %vm8006_vm1 = vmmov %vm8002_vm8 }
 0xfb1   :  { %v2785_v5 = vadd.f32 %v2784_v18, %v2783_v50  ;;  %v2792_v57 = vadd.f32 %v2791_v47, %v2790_v26  ;;  %vm8007_vm10 = vmmov %vm8005_vm0 }
 0xfb2   :  { %v2786_v58 = vsel %vm7994_vm12, %v2779_v19, 0.0  ;;  %v2793_v6 = vsel %vm7995_vm14, %v2780_v27, 0.0  ;;  %vm8010_vm12 = vcmask 105489   ;;  %vm8011_vm14 = vcmask 101392  }
 0xfb3   :  { %v2787_v14 = vadd.f32 %v2786_v58, %v2785_v5  ;;  %v2794_v41 = vadd.f32 %v2793_v6, %v2792_v57 }
 0xfb5   :  { %v2797_v49 = vrot.slane %v2787_v14, 5  ;;  %v2798_v33 = vrot.slane %v2794_v41, 5 }
 0xfb7   :  { %2802 = vrot.lane.b32.xlu1 %v2798_v33, %s7794_s16  ;;  %v2799_v52 = vsel %vm7996_vm15, %v2797_v49, %v2798_v33  ;;  %vm8012_vm15 = vmmov %vm8010_vm12 }
 0xfb8   :  { %2800 = vrot.lane.b32.xlu0 %v2799_v52, %s7794_s16 }
 0xfbb   :  { %2810 = vrot.lane.b32.xlu1 %v6245_v12, %s7791_s11 }
 0xfbc   :  { %2808 = vrot.lane.b32.xlu0 %v6239_v36, %s7791_s11 }
 0xfbf   :  { %2814 = vrot.lane.b32.xlu1 %v6257_v34, %s7791_s11 }
 0xfc0   :  { %2812 = vrot.lane.b32.xlu0 %v7997_v32, %s7791_s11 }
0x1029   :  { %v6953_v1 = vpop.permute.xlu1 %2802 }
0x102a   :  { %7998 = vst [vmem:[#allocation26_spill] sm:$0xff] %v6953_v1  ;;  %v6955_v22 = vpop.permute.xlu0 %2800 }
0x102b   :  { %7999 = vst [vmem:[#allocation27_spill] sm:$0xff] %v6955_v22 }
0x102d   :  { %v2811_v3 = vpop.permute.xlu1 %2810 }
0x102e   :  { %v2809_v17 = vpop.permute.xlu0 %2808 }
0x102f   :  { %4524 = vpush %v2809_v17 }
0x1030   :  { %4526 = vpush %v2811_v3 }
0x1031   :  { %v2815_v50 = vpop.permute.xlu1 %2814 }
0x1032   :  { %v2813_v26 = vpop.permute.xlu0 %2812 }
0x1033   :  { %4528 = vpush %v2813_v26 }
0x1034   :  { %4530 = vpush %v2815_v50 }
0x1060   :  { %s4525_s16 = spop %4524 }
0x1061   :  { %v2817_v0 = vstv %s4525_s16  ;;  %s4527_s13 = spop %4526 }
0x1062   :  { %v2828_v18 = vmul.f32 %v2817_v0, %v6535_v39  ;;  %v2829_v47 = vmul.f32 %v2817_v0, %v6537_v20  ;;  %v2820_v19 = vstv %s4527_s13 }
0x1063   :  { %v2830_v27 = vmul.f32 %v2820_v19, %v6550_v48  ;;  %v2831_v5 = vmul.f32 %v2820_v19, %v6543_v30 }
0x1064   :  { %v2836_v57 = vsel %vm8000_vm9, %v2828_v18, 0.0  ;;  %v2843_v58 = vsel %vm8001_vm3, %v2829_v47, 0.0  ;;  %s4529_s14 = spop %4528  ;;  %vm8013_vm9 = vmmov %vm8011_vm14 }
0x1065   :  { %v2837_v6 = vsel %vm8002_vm8, %v2830_v27, 0.0  ;;  %v2844_v14 = vsel %vm8003_vm11, %v2831_v5, 0.0  ;;  %v2823_v41 = vstv %s4529_s14  ;;  %s4531_s15 = spop %4530  ;;  %vm8014_vm3 = vmmov %vm8010_vm12 }
0x1066   :  { %v2832_v49 = vmul.f32 %v2823_v41, %v6560_v38  ;;  %v2833_v33 = vmul.f32 %v2823_v41, %v6562_v13  ;;  %v2838_v52 = vadd.f32 %v2837_v6, %v2836_v57  ;;  %v2845_v3 = vadd.f32 %v2844_v14, %v2843_v58  ;;  %vm8015_vm8 = vmmov %vm8013_vm9 }
0x1067   :  { %v2826_v17 = vstv %s4531_s15  ;;  %vm8016_vm11 = vmmov %vm8014_vm3 }
0x1068   :  { %v2839_v50 = vsel %vm8004_vm13, %v2832_v49, 0.0  ;;  %v2846_v26 = vsel %vm8005_vm0, %v2833_v33, 0.0  ;;  %v2834_v0 = vmul.f32 %v2826_v17, %v6585_v55  ;;  %v2835_v18 = vmul.f32 %v2826_v17, %v6569_v62  ;;  %vm8017_vm13 = vmmov %vm8015_vm8 }
0x1069   :  { %v2840_v47 = vadd.f32 %v2839_v50, %v2838_v52  ;;  %v2847_v19 = vadd.f32 %v2846_v26, %v2845_v3  ;;  %vm8020_vm0 = vcmask 105490  }
0x106a   :  { %v2841_v27 = vsel %vm8006_vm1, %v2834_v0, 0.0  ;;  %v2848_v5 = vsel %vm8007_vm10, %v2835_v18, 0.0  ;;  %vm8021_vm1 = vcmask 102416   ;;  %vm8022_vm10 = vmmov %vm8020_vm0 }
0x106b   :  { %v2842_v22 = vadd.f32 %v2841_v27, %v2840_v47  ;;  %v2849_v1 = vadd.f32 %v2848_v5, %v2847_v19 }
0x106d   :  { %2854 = vrot.lane.b32.xlu1 %v2849_v1, %s7791_s11  ;;  %2852 = vrot.lane.b32.xlu0 %v2842_v22, %s7791_s11 }
0x1071   :  { %2862 = vrot.lane.b32.xlu1 %v7946_v63, %s7791_s11  ;;  %2860 = vrot.lane.b32.xlu0 %v7947_v2, %s7791_s11 }
0x1075   :  { %2864 = vrot.lane.b32.xlu0 %v7948_v7, %s7791_s11  ;;  %2866 = vrot.lane.b32.xlu1 %v7949_v31, %s7791_s11 }
0x10df   :  { %v6983_v57 = vpop.permute.xlu1 %2854  ;;  %v6985_v58 = vpop.permute.xlu0 %2852 }
0x10e0   :  { %8008 = vst [vmem:[#allocation30_spill] sm:$0xff] %v6983_v57  ;;  %8009 = vst [vmem:[#allocation31_spill] sm:$0xff] %v6985_v58 }
0x10e3   :  { %v2863_v6 = vpop.permute.xlu1 %2862  ;;  %v2861_v1 = vpop.permute.xlu0 %2860 }
0x10e4   :  { %4532 = vpush %v2861_v1 }
0x10e5   :  { %4534 = vpush %v2863_v6 }
0x10e7   :  { %v2865_v22 = vpop.permute.xlu0 %2864  ;;  %v2867_v14 = vpop.permute.xlu1 %2866 }
0x10e8   :  { %4536 = vpush %v2865_v22 }
0x10e9   :  { %4538 = vpush %v2867_v14 }
0x1115   :  { %s4533_s20 = spop %4532 }
0x1116   :  { %v2869_v41 = vstv %s4533_s20  ;;  %s4535_s19 = spop %4534 }
0x1117   :  { %v2880_v49 = vmul.f32 %v2869_v41, %v6535_v39  ;;  %v2881_v33 = vmul.f32 %v2869_v41, %v6537_v20  ;;  %v2872_v52 = vstv %s4535_s19 }
0x1118   :  { %v2882_v3 = vmul.f32 %v2872_v52, %v6550_v48  ;;  %v2883_v17 = vmul.f32 %v2872_v52, %v6543_v30 }
0x1119   :  { %v2888_v50 = vsel %vm8010_vm12, %v2880_v49, 0.0  ;;  %v2895_v26 = vsel %vm8011_vm14, %v2881_v33, 0.0  ;;  %s4537_s18 = spop %4536  ;;  %vm8023_vm12 = vmmov %vm8021_vm1 }
0x111a   :  { %v2889_v0 = vsel %vm8012_vm15, %v2882_v3, 0.0  ;;  %v2896_v18 = vsel %vm8013_vm9, %v2883_v17, 0.0  ;;  %v2875_v47 = vstv %s4537_s18  ;;  %s4539_s25 = spop %4538  ;;  %vm8024_vm14 = vmmov %vm8020_vm0 }
0x111b   :  { %v2884_v19 = vmul.f32 %v2875_v47, %v6560_v38  ;;  %v2885_v27 = vmul.f32 %v2875_v47, %v6562_v13  ;;  %v2890_v5 = vadd.f32 %v2889_v0, %v2888_v50  ;;  %v2897_v6 = vadd.f32 %v2896_v18, %v2895_v26  ;;  %vm8025_vm15 = vmmov %vm8021_vm1 }
0x111c   :  { %v2878_v1 = vstv %s4539_s25  ;;  %vm8026_vm9 = vmmov %vm8020_vm0 }
0x111d   :  { %v2891_v22 = vsel %vm8014_vm3, %v2884_v19, 0.0  ;;  %v2898_v14 = vsel %vm8015_vm8, %v2885_v27, 0.0  ;;  %v2886_v41 = vmul.f32 %v2878_v1, %v6585_v55  ;;  %v2887_v49 = vmul.f32 %v2878_v1, %v6569_v62  ;;  %vm8027_vm3 = vmmov %vm8021_vm1 }
0x111e   :  { %v2892_v33 = vadd.f32 %v2891_v22, %v2890_v5  ;;  %v2899_v52 = vadd.f32 %v2898_v14, %v2897_v6  ;;  %vm8030_vm8 = vcmask 105491  }
0x111f   :  { %v2893_v3 = vsel %vm8016_vm11, %v2886_v41, 0.0  ;;  %v2900_v17 = vsel %vm8017_vm13, %v2887_v49, 0.0  ;;  %vm8031_vm11 = vcmask 103440   ;;  %vm8032_vm13 = vmmov %vm8030_vm8 }
0x1120   :  { %v2894_v58 = vadd.f32 %v2893_v3, %v2892_v33  ;;  %v2901_v57 = vadd.f32 %v2900_v17, %v2899_v52 }
0x1122   :  { %v2904_v47 = vrot.slane %v2894_v58, 1  ;;  %v2905_v50 = vrot.slane %v2901_v57, 1 }
0x1124   :  { %2909 = vrot.lane.b32.xlu1 %v2905_v50, %s7791_s11  ;;  %v2906_v26 = vsel %vm207_vm7, %v2904_v47, %v2905_v50 }
0x1125   :  { %2907 = vrot.lane.b32.xlu0 %v2906_v26, %s7791_s11 }
0x1128   :  { %2917 = vrot.lane.b32.xlu1 %v7958_v53, %s7791_s11 }
0x1129   :  { %2915 = vrot.lane.b32.xlu0 %v7959_v45, %s7791_s11 }
0x112c   :  { %2921 = vrot.lane.b32.xlu1 %v7960_v4, %s7791_s11 }
0x112d   :  { %2919 = vrot.lane.b32.xlu0 %v7961_v42, %s7791_s11 }
0x1196   :  { %v7014_v58 = vpop.permute.xlu1 %2909 }
0x1197   :  { %8018 = vst [vmem:[#allocation32_spill] sm:$0xff] %v7014_v58  ;;  %v7016_v57 = vpop.permute.xlu0 %2907 }
0x1198   :  { %8019 = vst [vmem:[#allocation33_spill] sm:$0xff] %v7016_v57 }
0x119a   :  { %v2918_v0 = vpop.permute.xlu1 %2917 }
0x119b   :  { %v2916_v18 = vpop.permute.xlu0 %2915 }
0x119c   :  { %4540 = vpush %v2916_v18 }
0x119d   :  { %4542 = vpush %v2918_v0 }
0x119e   :  { %v2922_v19 = vpop.permute.xlu1 %2921 }
0x119f   :  { %v2920_v27 = vpop.permute.xlu0 %2919 }
0x11a0   :  { %4544 = vpush %v2920_v27 }
0x11a1   :  { %4546 = vpush %v2922_v19 }
0x11cd   :  { %s4541_s21 = spop %4540 }
0x11ce   :  { %v2924_v5 = vstv %s4541_s21  ;;  %s4543_s22 = spop %4542 }
0x11cf   :  { %v2935_v6 = vmul.f32 %v2924_v5, %v6535_v39  ;;  %v2936_v1 = vmul.f32 %v2924_v5, %v6537_v20  ;;  %v2927_v22 = vstv %s4543_s22 }
0x11d0   :  { %v2937_v14 = vmul.f32 %v2927_v22, %v6550_v48  ;;  %v2938_v41 = vmul.f32 %v2927_v22, %v6543_v30 }
0x11d1   :  { %v2943_v49 = vsel %vm8020_vm0, %v2935_v6, 0.0  ;;  %v2950_v33 = vsel %vm8021_vm1, %v2936_v1, 0.0  ;;  %s4545_s26 = spop %4544  ;;  %vm8033_vm0 = vmmov %vm8031_vm11 }
0x11d2   :  { %v2944_v52 = vsel %vm8022_vm10, %v2937_v14, 0.0  ;;  %v2951_v3 = vsel %vm8023_vm12, %v2938_v41, 0.0  ;;  %v2930_v17 = vstv %s4545_s26  ;;  %s4547_s0 = spop %4546  ;;  %vm8034_vm1 = vmmov %vm8030_vm8 }
0x11d3   :  { %v2939_v47 = vmul.f32 %v2930_v17, %v6560_v38  ;;  %v2940_v50 = vmul.f32 %v2930_v17, %v6562_v13  ;;  %v2945_v26 = vadd.f32 %v2944_v52, %v2943_v49  ;;  %v2952_v0 = vadd.f32 %v2951_v3, %v2950_v33  ;;  %vm8035_vm10 = vmmov %vm8033_vm0 }
0x11d4   :  { %v2933_v18 = vstv %s4547_s0  ;;  %vm8036_vm12 = vmmov %vm8034_vm1 }
0x11d5   :  { %v2946_v19 = vsel %vm8024_vm14, %v2939_v47, 0.0  ;;  %v2953_v27 = vsel %vm8025_vm15, %v2940_v50, 0.0  ;;  %v2941_v5 = vmul.f32 %v2933_v18, %v6585_v55  ;;  %v2942_v6 = vmul.f32 %v2933_v18, %v6569_v62  ;;  %vm8037_vm14 = vmmov %vm8033_vm0 }
0x11d6   :  { %v2947_v1 = vadd.f32 %v2946_v19, %v2945_v26  ;;  %v2954_v22 = vadd.f32 %v2953_v27, %v2952_v0  ;;  %vm8040_vm15 = vcmask 105492  }
0x11d7   :  { %v2948_v14 = vsel %vm8026_vm9, %v2941_v5, 0.0  ;;  %v2955_v41 = vsel %vm8027_vm3, %v2942_v6, 0.0  ;;  %vm8041_vm9 = vcmask 104464   ;;  %vm8042_vm3 = vmmov %vm8040_vm15 }
0x11d8   :  { %v2949_v57 = vadd.f32 %v2948_v14, %v2947_v1  ;;  %v2956_v58 = vadd.f32 %v2955_v41, %v2954_v22 }
0x11da   :  { %v2959_v17 = vrot.slane %v2949_v57, 2  ;;  %v2960_v49 = vrot.slane %v2956_v58, 2 }
0x11dc   :  { %2964 = vrot.lane.b32.xlu1 %v2960_v49, %s7791_s11  ;;  %v2961_v33 = vsel %vm257_vm6, %v2959_v17, %v2960_v49 }
0x11dd   :  { %2962 = vrot.lane.b32.xlu0 %v2961_v33, %s7791_s11 }
0x11e0   :  { %2972 = vrot.lane.b32.xlu1 %v7970_v44, %s7791_s11 }
0x11e1   :  { %2970 = vrot.lane.b32.xlu0 %v7971_v37, %s7791_s11 }
0x11e4   :  { %2976 = vrot.lane.b32.xlu1 %v6441_v15, %s7791_s11 }
0x11e5   :  { %2974 = vrot.lane.b32.xlu0 %v6438_v43, %s7791_s11 }
0x124e   :  { %v7045_v57 = vpop.permute.xlu1 %2964 }
0x124f   :  { %8028 = vst [vmem:[#allocation34_spill] sm:$0xff] %v7045_v57  ;;  %v7047_v58 = vpop.permute.xlu0 %2962 }
0x1250   :  { %8029 = vst [vmem:[#allocation35_spill] sm:$0xff] %v7047_v58 }
0x1252   :  { %v2973_v52 = vpop.permute.xlu1 %2972 }
0x1253   :  { %v2971_v3 = vpop.permute.xlu0 %2970 }
0x1254   :  { %4548 = vpush %v2971_v3 }
0x1255   :  { %4550 = vpush %v2973_v52 }
0x1256   :  { %v2977_v47 = vpop.permute.xlu1 %2976 }
0x1257   :  { %v2975_v50 = vpop.permute.xlu0 %2974 }
0x1258   :  { %4552 = vpush %v2975_v50 }
0x1259   :  { %4554 = vpush %v2977_v47 }
0x1285   :  { %s4549_s23 = spop %4548 }
0x1286   :  { %v2979_v26 = vstv %s4549_s23  ;;  %s4551_s24 = spop %4550 }
0x1287   :  { %v2990_v0 = vmul.f32 %v2979_v26, %v6535_v39  ;;  %v2991_v18 = vmul.f32 %v2979_v26, %v6537_v20  ;;  %v2982_v19 = vstv %s4551_s24 }
0x1288   :  { %v2992_v27 = vmul.f32 %v2982_v19, %v6550_v48  ;;  %v2993_v5 = vmul.f32 %v2982_v19, %v6543_v30 }
0x1289   :  { %v2998_v6 = vsel %vm8030_vm8, %v2990_v0, 0.0  ;;  %v3005_v1 = vsel %vm8031_vm11, %v2991_v18, 0.0  ;;  %s4553_s27 = spop %4552  ;;  %vm8043_vm8 = vmmov %vm8041_vm9 }
0x128a   :  { %v2999_v22 = vsel %vm8032_vm13, %v2992_v27, 0.0  ;;  %v3006_v14 = vsel %vm8033_vm0, %v2993_v5, 0.0  ;;  %v2985_v41 = vstv %s4553_s27  ;;  %s4555_s28 = spop %4554  ;;  %vm8044_vm11 = vmmov %vm8042_vm3 }
0x128b   :  { %v2994_v17 = vmul.f32 %v2985_v41, %v6560_v38  ;;  %v2995_v49 = vmul.f32 %v2985_v41, %v6562_v13  ;;  %v3000_v33 = vadd.f32 %v2999_v22, %v2998_v6  ;;  %v3007_v52 = vadd.f32 %v3006_v14, %v3005_v1  ;;  %vm8045_vm13 = vmmov %vm8043_vm8 }
0x128c   :  { %v2988_v3 = vstv %s4555_s28  ;;  %vm8046_vm0 = vmmov %vm8042_vm3 }
0x128d   :  { %v3001_v47 = vsel %vm8034_vm1, %v2994_v17, 0.0  ;;  %v3008_v50 = vsel %vm8035_vm10, %v2995_v49, 0.0  ;;  %v2996_v26 = vmul.f32 %v2988_v3, %v6585_v55  ;;  %v2997_v0 = vmul.f32 %v2988_v3, %v6569_v62  ;;  %vm8047_vm1 = vmmov %vm8043_vm8 }
0x128e   :  { %v3002_v18 = vadd.f32 %v3001_v47, %v3000_v33  ;;  %v3009_v19 = vadd.f32 %v3008_v50, %v3007_v52  ;;  %vm8050_vm10 = vcmask 105493  }
0x128f   :  { %v3003_v27 = vsel %vm8036_vm12, %v2996_v26, 0.0  ;;  %v3010_v5 = vsel %vm8037_vm14, %v2997_v0, 0.0  ;;  %vm8051_vm12 = vcmask 105488   ;;  %vm8052_vm14 = vmmov %vm8050_vm10 }
0x1290   :  { %v3004_v58 = vadd.f32 %v3003_v27, %v3002_v18  ;;  %v3011_v57 = vadd.f32 %v3010_v5, %v3009_v19 }
0x1292   :  { %v3014_v41 = vrot.slane %v3004_v58, 3  ;;  %v3015_v6 = vrot.slane %v3011_v57, 3 }
0x1294   :  { %3019 = vrot.lane.b32.xlu1 %v3015_v6, %s7791_s11  ;;  %v3016_v1 = vsel %vm307_vm4, %v3014_v41, %v3015_v6 }
0x1295   :  { %3017 = vrot.lane.b32.xlu0 %v3016_v1, %s7791_s11 }
0x1298   :  { %3027 = vrot.lane.b32.xlu1 %v6449_v25, %s7791_s11 }
0x1299   :  { %3025 = vrot.lane.b32.xlu0 %v6446_v8, %s7791_s11 }
0x129c   :  { %3031 = vrot.lane.b32.xlu1 %v6462_v54, %s7791_s11 }
0x129d   :  { %3029 = vrot.lane.b32.xlu0 %v6455_v29, %s7791_s11 }
0x1306   :  { %v7076_v58 = vpop.permute.xlu1 %3019 }
0x1307   :  { %8038 = vst [vmem:[#allocation36_spill] sm:$0xff] %v7076_v58  ;;  %v7078_v57 = vpop.permute.xlu0 %3017 }
0x1308   :  { %8039 = vst [vmem:[#allocation37_spill] sm:$0xff] %v7078_v57 }
0x130a   :  { %v3028_v22 = vpop.permute.xlu1 %3027 }
0x130b   :  { %v3026_v14 = vpop.permute.xlu0 %3025 }
0x130c   :  { %4556 = vpush %v3026_v14 }
0x130d   :  { %4558 = vpush %v3028_v22 }
0x130e   :  { %v3032_v17 = vpop.permute.xlu1 %3031 }
0x130f   :  { %v3030_v49 = vpop.permute.xlu0 %3029 }
0x1310   :  { %4560 = vpush %v3030_v49 }
0x1311   :  { %4562 = vpush %v3032_v17 }
0x133d   :  { %s4557_s1 = spop %4556 }
0x133e   :  { %v3034_v33 = vstv %s4557_s1  ;;  %s4559_s29 = spop %4558 }
0x133f   :  { %v3045_v52 = vmul.f32 %v3034_v33, %v6535_v39  ;;  %v3046_v3 = vmul.f32 %v3034_v33, %v6537_v20  ;;  %v3037_v47 = vstv %s4559_s29 }
0x1340   :  { %v3047_v50 = vmul.f32 %v3037_v47, %v6550_v48  ;;  %v3048_v26 = vmul.f32 %v3037_v47, %v6543_v30 }
0x1341   :  { %v3053_v0 = vsel %vm8040_vm15, %v3045_v52, 0.0  ;;  %v3060_v18 = vsel %vm8041_vm9, %v3046_v3, 0.0  ;;  %s4561_s30 = spop %4560  ;;  %vm8053_vm15 = vmmov %vm8051_vm12 }
0x1342   :  { %v3054_v19 = vsel %vm8042_vm3, %v3047_v50, 0.0  ;;  %v3061_v27 = vsel %vm8043_vm8, %v3048_v26, 0.0  ;;  %v3040_v5 = vstv %s4561_s30  ;;  %s4563_s3 = spop %4562  ;;  %vm8054_vm9 = vmmov %vm8050_vm10 }
0x1343   :  { %v3049_v41 = vmul.f32 %v3040_v5, %v6560_v38  ;;  %v3050_v6 = vmul.f32 %v3040_v5, %v6562_v13  ;;  %v3055_v1 = vadd.f32 %v3054_v19, %v3053_v0  ;;  %v3062_v22 = vadd.f32 %v3061_v27, %v3060_v18  ;;  %vm8055_vm3 = vmmov %vm8051_vm12 }
0x1344   :  { %v3043_v14 = vstv %s4563_s3  ;;  %vm8056_vm8 = vmmov %vm8054_vm9 }
0x1345   :  { %v3056_v17 = vsel %vm8044_vm11, %v3049_v41, 0.0  ;;  %v3063_v49 = vsel %vm8045_vm13, %v3050_v6, 0.0  ;;  %v3051_v33 = vmul.f32 %v3043_v14, %v6585_v55  ;;  %v3052_v52 = vmul.f32 %v3043_v14, %v6569_v62  ;;  %vm8057_vm11 = vmmov %vm8055_vm3 }
0x1346   :  { %v3057_v3 = vadd.f32 %v3056_v17, %v3055_v1  ;;  %v3064_v47 = vadd.f32 %v3063_v49, %v3062_v22  ;;  %vm8058_vm13 = vcmask 1042432  }
0x1347   :  { %v3058_v50 = vsel %vm8046_vm0, %v3051_v33, 0.0  ;;  %v3065_v26 = vsel %vm8047_vm1, %v3052_v52, 0.0  ;;  %vm8059_vm0 = vcmask 113688   ;;  %vm8060_vm1 = vcmask 108568  }
0x1348   :  { %v3059_v57 = vadd.f32 %v3058_v50, %v3057_v3  ;;  %v3066_v58 = vadd.f32 %v3065_v26, %v3064_v47 }
0x134a   :  { %v3069_v5 = vrot.slane %v3059_v57, 4  ;;  %v3070_v0 = vrot.slane %v3066_v58, 4 }
0x134c   :  { %3074 = vrot.lane.b32.xlu1 %v3070_v0, %s7791_s11  ;;  %v3071_v18 = vsel %vm357_vm5, %v3069_v5, %v3070_v0 }
0x134d   :  { %3072 = vrot.lane.b32.xlu0 %v3071_v18, %s7791_s11 }
0x1350   :  { %3082 = vrot.lane.b32.xlu1 %v6468_v9, %s7791_s11 }
0x1351   :  { %3080 = vrot.lane.b32.xlu0 %v6465_v35, %s7791_s11 }
0x1354   :  { %3086 = vrot.lane.b32.xlu1 %v6483_v46, %s7791_s11 }
0x1355   :  { %3084 = vrot.lane.b32.xlu0 %v6477_v51, %s7791_s11 }
0x13be   :  { %v7107_v57 = vpop.permute.xlu1 %3074 }
0x13bf   :  { %8048 = vst [vmem:[#allocation38_spill] sm:$0xff] %v7107_v57  ;;  %v7109_v58 = vpop.permute.xlu0 %3072 }
0x13c0   :  { %8049 = vst [vmem:[#allocation39_spill] sm:$0xff] %v7109_v58 }
0x13c2   :  { %v3083_v19 = vpop.permute.xlu1 %3082 }
0x13c3   :  { %v3081_v27 = vpop.permute.xlu0 %3080 }
0x13c4   :  { %4564 = vpush %v3081_v27 }
0x13c5   :  { %4566 = vpush %v3083_v19 }
0x13c6   :  { %v3087_v41 = vpop.permute.xlu1 %3086 }
0x13c7   :  { %v3085_v6 = vpop.permute.xlu0 %3084 }
0x13c8   :  { %4568 = vpush %v3085_v6 }
0x13c9   :  { %4570 = vpush %v3087_v41 }
0x13f5   :  { %s4565_s4 = spop %4564 }
0x13f6   :  { %v3089_v1 = vstv %s4565_s4  ;;  %s4567_s5 = spop %4566 }
0x13f7   :  { %v3100_v22 = vmul.f32 %v3089_v1, %v6535_v39  ;;  %v3101_v14 = vmul.f32 %v3089_v1, %v6537_v20  ;;  %v3092_v17 = vstv %s4567_s5 }
0x13f8   :  { %v3102_v49 = vmul.f32 %v3092_v17, %v6550_v48  ;;  %v3103_v33 = vmul.f32 %v3092_v17, %v6543_v30 }
0x13f9   :  { %v3108_v52 = vsel %vm8050_vm10, %v3100_v22, 0.0  ;;  %v3115_v3 = vsel %vm8051_vm12, %v3101_v14, 0.0  ;;  %s4569_s6 = spop %4568  ;;  %vm8061_vm10 = vmmov %vm8059_vm0 }
0x13fa   :  { %v3109_v47 = vsel %vm8052_vm14, %v3102_v49, 0.0  ;;  %v3116_v50 = vsel %vm8053_vm15, %v3103_v33, 0.0  ;;  %v3095_v26 = vstv %s4569_s6  ;;  %s4571_s2 = spop %4570  ;;  %vm8062_vm12 = vmmov %vm8060_vm1 }
0x13fb   :  { %v3104_v5 = vmul.f32 %v3095_v26, %v6560_v38  ;;  %v3105_v0 = vmul.f32 %v3095_v26, %v6562_v13  ;;  %v3110_v18 = vadd.f32 %v3109_v47, %v3108_v52  ;;  %v3117_v19 = vadd.f32 %v3116_v50, %v3115_v3  ;;  %vm8063_vm14 = vmmov %vm8059_vm0 }
0x13fc   :  { %v3098_v27 = vstv %s4571_s2  ;;  %vm8064_vm15 = vmmov %vm8060_vm1 }
0x13fd   :  { %v3111_v41 = vsel %vm8054_vm9, %v3104_v5, 0.0  ;;  %v3118_v6 = vsel %vm8055_vm3, %v3105_v0, 0.0  ;;  %v3106_v1 = vmul.f32 %v3098_v27, %v6585_v55  ;;  %v3107_v22 = vmul.f32 %v3098_v27, %v6569_v62  ;;  %vm8065_vm9 = vmmov %vm8059_vm0 }
0x13fe   :  { %v3112_v14 = vadd.f32 %v3111_v41, %v3110_v18  ;;  %v3119_v17 = vadd.f32 %v3118_v6, %v3117_v19  ;;  %vm8066_vm3 = vmmov %vm8060_vm1 }
0x13ff   :  { %v3113_v49 = vsel %vm8056_vm8, %v3106_v1, 0.0  ;;  %v3120_v33 = vsel %vm8057_vm11, %v3107_v22, 0.0  ;;  %vm8067_vm8 = vcmask 113689   ;;  %vm8068_vm11 = vcmask 109592  }
0x1400   :  { %v3114_v58 = vadd.f32 %v3113_v49, %v3112_v14  ;;  %v3121_v57 = vadd.f32 %v3120_v33, %v3119_v17 }
0x1402   :  { %v3124_v26 = vrot.slane %v3114_v58, 5  ;;  %v3125_v52 = vrot.slane %v3121_v57, 5 }
0x1404   :  { %3129 = vrot.lane.b32.xlu1 %v3125_v52, %s7791_s11  ;;  %v3126_v3 = vsel %vm8058_vm13, %v3124_v26, %v3125_v52  ;;  %vm8069_vm13 = vmmov %vm8067_vm8 }
0x1405   :  { %3127 = vrot.lane.b32.xlu0 %v3126_v3, %s7791_s11 }
0x1408   :  { %3137 = vrot.lane.b32.xlu1 %v6245_v12, %s7793_s17 }
0x1409   :  { %3135 = vrot.lane.b32.xlu0 %v6239_v36, %s7793_s17 }
0x140c   :  { %3141 = vrot.lane.b32.xlu1 %v6257_v34, %s7793_s17 }
0x140d   :  { %3139 = vrot.lane.b32.xlu0 %v7997_v32, %s7793_s17 }
0x1410   :  { %3189 = vrot.lane.b32.xlu1 %v7946_v63, %s7793_s17 }
0x1411   :  { %3187 = vrot.lane.b32.xlu0 %v7947_v2, %s7793_s17 }
0x1414   :  { %3193 = vrot.lane.b32.xlu1 %v7949_v31, %s7793_s17 }
0x1415   :  { %3191 = vrot.lane.b32.xlu0 %v7948_v7, %s7793_s17 }
0x1418   :  { %3244 = vrot.lane.b32.xlu1 %v7958_v53, %s7793_s17 }
0x1419   :  { %3242 = vrot.lane.b32.xlu0 %v7959_v45, %s7793_s17 }
0x141c   :  { %3248 = vrot.lane.b32.xlu1 %v7960_v4, %s7793_s17 }
0x141d   :  { %3246 = vrot.lane.b32.xlu0 %v7961_v42, %s7793_s17 }
0x1420   :  { %3299 = vrot.lane.b32.xlu1 %v7970_v44, %s7793_s17 }
0x1421   :  { %3297 = vrot.lane.b32.xlu0 %v7971_v37, %s7793_s17 }
0x1424   :  { %3303 = vrot.lane.b32.xlu1 %v6441_v15, %s7793_s17 }
0x1425   :  { %3301 = vrot.lane.b32.xlu0 %v6438_v43, %s7793_s17 }
0x1428   :  { %3354 = vrot.lane.b32.xlu1 %v6449_v25, %s7793_s17 }
0x1429   :  { %3352 = vrot.lane.b32.xlu0 %v6446_v8, %s7793_s17 }
0x142c   :  { %3358 = vrot.lane.b32.xlu1 %v6462_v54, %s7793_s17 }
0x142d   :  { %3356 = vrot.lane.b32.xlu0 %v6455_v29, %s7793_s17 }
0x1430   :  { %3409 = vrot.lane.b32.xlu1 %v6468_v9, %s7793_s17 }
0x1431   :  { %3407 = vrot.lane.b32.xlu0 %v6465_v35, %s7793_s17 }
0x1434   :  { %3413 = vrot.lane.b32.xlu1 %v6483_v46, %s7793_s17 }
0x1435   :  { %3411 = vrot.lane.b32.xlu0 %v6477_v51, %s7793_s17 }
0x1438   :  { %3464 = vrot.lane.b32.xlu1 %v6245_v12, %s4754_s12 }
0x1439   :  { %3462 = vrot.lane.b32.xlu0 %v6239_v36, %s4754_s12 }
0x143c   :  { %3468 = vrot.lane.b32.xlu1 %v6257_v34, %s4754_s12 }
0x143d   :  { %3466 = vrot.lane.b32.xlu0 %v7997_v32, %s4754_s12 }
0x1440   :  { %3516 = vrot.lane.b32.xlu1 %v7946_v63, %s4754_s12 }
0x1441   :  { %3514 = vrot.lane.b32.xlu0 %v7947_v2, %s4754_s12 }
0x1444   :  { %3520 = vrot.lane.b32.xlu1 %v7949_v31, %s4754_s12 }
0x1445   :  { %3518 = vrot.lane.b32.xlu0 %v7948_v7, %s4754_s12 }
0x1448   :  { %3571 = vrot.lane.b32.xlu1 %v7958_v53, %s4754_s12 }
0x1449   :  { %3569 = vrot.lane.b32.xlu0 %v7959_v45, %s4754_s12 }
0x144c   :  { %3575 = vrot.lane.b32.xlu1 %v7960_v4, %s4754_s12 }
0x144d   :  { %3573 = vrot.lane.b32.xlu0 %v7961_v42, %s4754_s12 }
0x1450   :  { %3626 = vrot.lane.b32.xlu1 %v7970_v44, %s4754_s12 }
0x1451   :  { %3624 = vrot.lane.b32.xlu0 %v7971_v37, %s4754_s12 }
0x1454   :  { %3630 = vrot.lane.b32.xlu1 %v6441_v15, %s4754_s12 }
0x1455   :  { %3628 = vrot.lane.b32.xlu0 %v6438_v43, %s4754_s12 }
0x1458   :  { %3681 = vrot.lane.b32.xlu1 %v6449_v25, %s4754_s12 }
0x1459   :  { %3679 = vrot.lane.b32.xlu0 %v6446_v8, %s4754_s12 }
0x145c   :  { %3685 = vrot.lane.b32.xlu1 %v6462_v54, %s4754_s12 }
0x145d   :  { %3683 = vrot.lane.b32.xlu0 %v6455_v29, %s4754_s12 }
0x1460   :  { %3736 = vrot.lane.b32.xlu1 %v6468_v9, %s4754_s12 }
0x1461   :  { %3734 = vrot.lane.b32.xlu0 %v6465_v35, %s4754_s12 }
0x1464   :  { %3740 = vrot.lane.b32.xlu1 %v6483_v46, %s4754_s12 }
0x1465   :  { %3738 = vrot.lane.b32.xlu0 %v6477_v51, %s4754_s12 }
0x1468   :  { %3791 = vrot.lane.b32.xlu1 %v6245_v12, %s4755_s8 }
0x1469   :  { %3789 = vrot.lane.b32.xlu0 %v6239_v36, %s4755_s8 }
0x146c   :  { %3795 = vrot.lane.b32.xlu1 %v6257_v34, %s4755_s8 }
0x146d   :  { %3793 = vrot.lane.b32.xlu0 %v7997_v32, %s4755_s8 }
0x1470   :  { %3843 = vrot.lane.b32.xlu1 %v7946_v63, %s4755_s8 }
0x1471   :  { %3841 = vrot.lane.b32.xlu0 %v7947_v2, %s4755_s8 }
0x1474   :  { %3847 = vrot.lane.b32.xlu1 %v7949_v31, %s4755_s8 }
0x1475   :  { %3845 = vrot.lane.b32.xlu0 %v7948_v7, %s4755_s8 }
0x1476   :  { %v7242_v12 = vpop.permute.xlu1 %3129 }
0x1477   :  { %v7244_v36 = vpop.permute.xlu0 %3127 }
0x1478   :  { %3898 = vrot.lane.b32.xlu1 %v7958_v53, %s4755_s8 }
0x1479   :  { %3896 = vrot.lane.b32.xlu0 %v7959_v45, %s4755_s8 }
0x147a   :  { %v3138_v34 = vpop.permute.xlu1 %3137 }
0x147b   :  { %v3136_v63 = vpop.permute.xlu0 %3135 }
0x147c   :  { %4572 = vpush %v3136_v63  ;;  %3902 = vrot.lane.b32.xlu1 %v7960_v4, %s4755_s8 }
0x147d   :  { %4574 = vpush %v3138_v34  ;;  %3900 = vrot.lane.b32.xlu0 %v7961_v42, %s4755_s8 }
0x147e   :  { %v3142_v2 = vpop.permute.xlu1 %3141 }
0x147f   :  { %v3140_v7 = vpop.permute.xlu0 %3139 }
0x1480   :  { %4576 = vpush %v3140_v7  ;;  %3953 = vrot.lane.b32.xlu1 %v7970_v44, %s4755_s8 }
0x1481   :  { %3951 = vrot.lane.b32.xlu0 %v7971_v37, %s4755_s8  ;;  %4578 = vpush %v3142_v2 }
0x1482   :  { %v3190_v31 = vpop.permute.xlu1 %3189 }
0x1483   :  { %v3188_v53 = vpop.permute.xlu0 %3187 }
0x1484   :  { %4580 = vpush %v3188_v53  ;;  %3957 = vrot.lane.b32.xlu1 %v6441_v15, %s4755_s8 }
0x1485   :  { %4582 = vpush %v3190_v31  ;;  %3955 = vrot.lane.b32.xlu0 %v6438_v43, %s4755_s8 }
0x1486   :  { %v3194_v45 = vpop.permute.xlu1 %3193 }
0x1487   :  { %v3192_v4 = vpop.permute.xlu0 %3191 }
0x1488   :  { %4584 = vpush %v3192_v4  ;;  %4008 = vrot.lane.b32.xlu1 %v6449_v25, %s4755_s8 }
0x1489   :  { %4006 = vrot.lane.b32.xlu0 %v6446_v8, %s4755_s8  ;;  %4586 = vpush %v3194_v45 }
0x148a   :  { %v3245_v42 = vpop.permute.xlu1 %3244 }
0x148b   :  { %v3243_v44 = vpop.permute.xlu0 %3242 }
0x148c   :  { %4588 = vpush %v3243_v44  ;;  %4012 = vrot.lane.b32.xlu1 %v6462_v54, %s4755_s8 }
0x148d   :  { %4590 = vpush %v3245_v42  ;;  %4010 = vrot.lane.b32.xlu0 %v6455_v29, %s4755_s8 }
0x148e   :  { %v3249_v43 = vpop.permute.xlu1 %3248 }
0x148f   :  { %v3247_v15 = vpop.permute.xlu0 %3246 }
0x1490   :  { %4592 = vpush %v3247_v15  ;;  %4063 = vrot.lane.b32.xlu1 %v6468_v9, %s4755_s8 }
0x1491   :  { %4061 = vrot.lane.b32.xlu0 %v6465_v35, %s4755_s8  ;;  %4594 = vpush %v3249_v43 }
0x1492   :  { %v3300_v8 = vpop.permute.xlu1 %3299 }
0x1493   :  { %v3298_v25 = vpop.permute.xlu0 %3297 }
0x1494   :  { %4596 = vpush %v3298_v25  ;;  %4067 = vrot.lane.b32.xlu1 %v6483_v46, %s4755_s8 }
0x1495   :  { %4598 = vpush %v3300_v8  ;;  %4065 = vrot.lane.b32.xlu0 %v6477_v51, %s4755_s8 }
0x1496   :  { %v3304_v29 = vpop.permute.xlu1 %3303 }
0x1497   :  { %v3302_v54 = vpop.permute.xlu0 %3301 }
0x1498   :  { %4600 = vpush %v3302_v54 }
0x1499   :  { %4602 = vpush %v3304_v29 }
0x149a   :  { %v3355_v37 = vpop.permute.xlu1 %3354 }
0x149b   :  { %v3353_v9 = vpop.permute.xlu0 %3352 }
0x149c   :  { %4604 = vpush %v3353_v9 }
0x149d   :  { %4606 = vpush %v3355_v37 }
0x149e   :  { %v3359_v35 = vpop.permute.xlu1 %3358 }
0x149f   :  { %v3357_v32 = vpop.permute.xlu0 %3356 }
0x14a0   :  { %4608 = vpush %v3357_v32 }
0x14a1   :  { %4610 = vpush %v3359_v35 }
0x14a2   :  { %v3410_v57 = vpop.permute.xlu1 %3409 }
0x14a3   :  { %v3408_v58 = vpop.permute.xlu0 %3407 }
0x14a4   :  { %4612 = vpush %v3408_v58 }
0x14a5   :  { %4614 = vpush %v3410_v57 }
0x14a6   :  { %v3414_v46 = vpop.permute.xlu1 %3413 }
0x14a7   :  { %v3412_v47 = vpop.permute.xlu0 %3411 }
0x14a8   :  { %4616 = vpush %v3412_v47 }
0x14a9   :  { %4618 = vpush %v3414_v46 }
0x14aa   :  { %v3465_v51 = vpop.permute.xlu1 %3464 }
0x14ab   :  { %v3463_v50 = vpop.permute.xlu0 %3462 }
0x14ac   :  { %4620 = vpush %v3463_v50 }
0x14ad   :  { %4622 = vpush %v3465_v51  ;;  %s4573_s11 = spop %4572 }
0x14ae   :  { %v3144_v5 = vstv %s4573_s11  ;;  %s4575_s7 = spop %4574  ;;  %v3469_v0 = vpop.permute.xlu1 %3468 }
0x14af   :  { %v3155_v18 = vmul.f32 %v3144_v5, %v6535_v39  ;;  %v3156_v19 = vmul.f32 %v3144_v5, %v6537_v20  ;;  %v3147_v27 = vstv %s4575_s7  ;;  %v3467_v41 = vpop.permute.xlu0 %3466 }
0x14b0   :  { %v3157_v6 = vmul.f32 %v3147_v27, %v6550_v48  ;;  %v3158_v1 = vmul.f32 %v3147_v27, %v6543_v30  ;;  %4624 = vpush %v3467_v41 }
0x14b1   :  { %v3163_v22 = vsel %vm8059_vm0, %v3155_v18, 0.0  ;;  %v3170_v14 = vsel %vm8060_vm1, %v3156_v19, 0.0  ;;  %s4577_s10 = spop %4576  ;;  %4626 = vpush %v3469_v0  ;;  %vm8070_vm0 = vmmov %vm8068_vm11 }
0x14b2   :  { %v3164_v17 = vsel %vm8061_vm10, %v3157_v6, 0.0  ;;  %v3171_v49 = vsel %vm8062_vm12, %v3158_v1, 0.0  ;;  %v3150_v33 = vstv %s4577_s10  ;;  %v3517_v26 = vpop.permute.xlu1 %3516  ;;  %s4579_s16 = spop %4578  ;;  %vm8071_vm1 = vmmov %vm8067_vm8 }
0x14b3   :  { %v3159_v52 = vmul.f32 %v3150_v33, %v6560_v38  ;;  %v3160_v3 = vmul.f32 %v3150_v33, %v6562_v13  ;;  %v3515_v34 = vpop.permute.xlu0 %3514  ;;  %v3165_v63 = vadd.f32 %v3164_v17, %v3163_v22  ;;  %v3172_v2 = vadd.f32 %v3171_v49, %v3170_v14  ;;  %vm8072_vm10 = vmmov %vm8070_vm0 }
0x14b4   :  { %v3153_v7 = vstv %s4579_s16  ;;  %4628 = vpush %v3515_v34  ;;  %vm8073_vm12 = vmmov %vm8071_vm1 }
0x14b5   :  { %v3166_v31 = vsel %vm8063_vm14, %v3159_v52, 0.0  ;;  %v3173_v53 = vsel %vm8064_vm15, %v3160_v3, 0.0  ;;  %v3161_v45 = vmul.f32 %v3153_v7, %v6585_v55  ;;  %v3162_v4 = vmul.f32 %v3153_v7, %v6569_v62  ;;  %4630 = vpush %v3517_v26  ;;  %s4581_s13 = spop %4580  ;;  %vm8074_vm14 = vmmov %vm8070_vm0 }
0x14b6   :  { %v3167_v42 = vadd.f32 %v3166_v31, %v3165_v63  ;;  %v3174_v44 = vadd.f32 %v3173_v53, %v3172_v2  ;;  %v3196_v43 = vstv %s4581_s13  ;;  %s4583_s14 = spop %4582  ;;  %v3521_v15 = vpop.permute.xlu1 %3520  ;;  %vm8075_vm15 = vcmask 113690  }
0x14b7   :  { %v3168_v8 = vsel %vm8065_vm9, %v3161_v45, 0.0  ;;  %v3175_v25 = vsel %vm8066_vm3, %v3162_v4, 0.0  ;;  %v3207_v29 = vmul.f32 %v3196_v43, %v6535_v39  ;;  %v3208_v54 = vmul.f32 %v3196_v43, %v6537_v20  ;;  %v3519_v37 = vpop.permute.xlu0 %3518  ;;  %vm8077_vm3 = vmmov %vm8075_vm15 }
0x14b8   :  { %v3169_v9 = vadd.f32 %v3168_v8, %v3167_v42  ;;  %v3176_v35 = vadd.f32 %v3175_v25, %v3174_v44  ;;  %v3199_v32 = vstv %s4583_s14  ;;  %4632 = vpush %v3519_v37  ;;  %vm8076_vm9 = vcmask 110616  }
0x14b9   :  { %v3215_v57 = vsel %vm8067_vm8, %v3207_v29, 0.0  ;;  %v3222_v58 = vsel %vm8068_vm11, %v3208_v54, 0.0  ;;  %v3209_v46 = vmul.f32 %v3199_v32, %v6550_v48  ;;  %v3210_v47 = vmul.f32 %v3199_v32, %v6543_v30  ;;  %s4585_s15 = spop %4584  ;;  %4634 = vpush %v3521_v15  ;;  %vm8078_vm8 = vmmov %vm8076_vm9 }
0x14ba   :  { %v3202_v51 = vstv %s4585_s15  ;;  %3181 = vrot.lane.b32.xlu1 %v3176_v35, %s7793_s17  ;;  %3179 = vrot.lane.b32.xlu0 %v3169_v9, %s7793_s17  ;;  %v3572_v50 = vpop.permute.xlu1 %3571  ;;  %s4587_s20 = spop %4586  ;;  %vm8079_vm11 = vmmov %vm8077_vm3 }
0x14bb   :  { %v3216_v5 = vsel %vm8069_vm13, %v3209_v46, 0.0  ;;  %v3223_v0 = vsel %vm8070_vm0, %v3210_v47, 0.0  ;;  %v3211_v18 = vmul.f32 %v3202_v51, %v6560_v38  ;;  %v3212_v19 = vmul.f32 %v3202_v51, %v6562_v13  ;;  %v3570_v27 = vpop.permute.xlu0 %3569  ;;  %vm8080_vm13 = vmmov %vm8078_vm8 }
0x14bc   :  { %v3217_v41 = vadd.f32 %v3216_v5, %v3215_v57  ;;  %v3224_v6 = vadd.f32 %v3223_v0, %v3222_v58  ;;  %v3205_v1 = vstv %s4587_s20  ;;  %4636 = vpush %v3570_v27  ;;  %vm8081_vm0 = vmmov %vm8077_vm3 }
0x14bd   :  { %v3218_v22 = vsel %vm8071_vm1, %v3211_v18, 0.0  ;;  %v3225_v14 = vsel %vm8072_vm10, %v3212_v19, 0.0  ;;  %v3213_v17 = vmul.f32 %v3205_v1, %v6585_v55  ;;  %v3214_v49 = vmul.f32 %v3205_v1, %v6569_v62  ;;  %4638 = vpush %v3572_v50  ;;  %s4589_s19 = spop %4588  ;;  %vm8082_vm1 = vmmov %vm8078_vm8 }
0x14be   :  { %v3219_v33 = vadd.f32 %v3218_v22, %v3217_v41  ;;  %v3226_v26 = vadd.f32 %v3225_v14, %v3224_v6  ;;  %v3251_v52 = vstv %s4589_s19  ;;  %s4591_s18 = spop %4590  ;;  %v3576_v3 = vpop.permute.xlu1 %3575  ;;  %vm8083_vm10 = vcmask 113691  }
0x14bf   :  { %v3220_v34 = vsel %vm8073_vm12, %v3213_v17, 0.0  ;;  %v3227_v63 = vsel %vm8074_vm14, %v3214_v49, 0.0  ;;  %v3262_v2 = vmul.f32 %v3251_v52, %v6535_v39  ;;  %v3263_v7 = vmul.f32 %v3251_v52, %v6537_v20  ;;  %v3574_v31 = vpop.permute.xlu0 %3573  ;;  %vm8085_vm14 = vmmov %vm8083_vm10 }
0x14c0   :  { %v3221_v53 = vadd.f32 %v3220_v34, %v3219_v33  ;;  %v3228_v45 = vadd.f32 %v3227_v63, %v3226_v26  ;;  %v3254_v4 = vstv %s4591_s18  ;;  %4640 = vpush %v3574_v31  ;;  %vm8084_vm12 = vcmask 111640  }
0x14c1   :  { %v3270_v42 = vsel %vm8075_vm15, %v3262_v2, 0.0  ;;  %v3277_v44 = vsel %vm8076_vm9, %v3263_v7, 0.0  ;;  %v3264_v43 = vmul.f32 %v3254_v4, %v6550_v48  ;;  %v3265_v15 = vmul.f32 %v3254_v4, %v6543_v30  ;;  %s4593_s25 = spop %4592  ;;  %4642 = vpush %v3576_v3  ;;  %vm8086_vm15 = vmmov %vm8084_vm12 }
0x14c2   :  { %v3231_v8 = vrot.slane %v3221_v53, 1  ;;  %v3232_v25 = vrot.slane %v3228_v45, 1  ;;  %v3257_v29 = vstv %s4593_s25  ;;  %v3627_v54 = vpop.permute.xlu1 %3626  ;;  %s4595_s21 = spop %4594  ;;  %vm8087_vm9 = vmmov %vm8083_vm10 }
0x14c3   :  { %v3271_v37 = vsel %vm8077_vm3, %v3264_v43, 0.0  ;;  %v3278_v9 = vsel %vm8078_vm8, %v3265_v15, 0.0  ;;  %v3266_v35 = vmul.f32 %v3257_v29, %v6560_v38  ;;  %v3267_v32 = vmul.f32 %v3257_v29, %v6562_v13  ;;  %v3625_v57 = vpop.permute.xlu0 %3624  ;;  %vm8088_vm3 = vmmov %vm8084_vm12 }
0x14c4   :  { %v3272_v58 = vadd.f32 %v3271_v37, %v3270_v42  ;;  %v3279_v46 = vadd.f32 %v3278_v9, %v3277_v44  ;;  %v3260_v47 = vstv %s4595_s21  ;;  %3236 = vrot.lane.b32.xlu1 %v3232_v25, %s7793_s17  ;;  %4644 = vpush %v3625_v57  ;;  %v3233_v51 = vsel %vm207_vm7, %v3231_v8, %v3232_v25  ;;  %vm8089_vm8 = vmmov %vm8087_vm9 }
0x14c5   :  { %v3273_v50 = vsel %vm8079_vm11, %v3266_v35, 0.0  ;;  %v3280_v5 = vsel %vm8080_vm13, %v3267_v32, 0.0  ;;  %v3268_v0 = vmul.f32 %v3260_v47, %v6585_v55  ;;  %v3269_v18 = vmul.f32 %v3260_v47, %v6569_v62  ;;  %4646 = vpush %v3627_v54  ;;  %3234 = vrot.lane.b32.xlu0 %v3233_v51, %s7793_s17  ;;  %s4597_s22 = spop %4596  ;;  %vm8090_vm11 = vmmov %vm8088_vm3 }
0x14c6   :  { %v3274_v19 = vadd.f32 %v3273_v50, %v3272_v58  ;;  %v3281_v27 = vadd.f32 %v3280_v5, %v3279_v46  ;;  %v3306_v41 = vstv %s4597_s22  ;;  %s4599_s26 = spop %4598  ;;  %v3631_v6 = vpop.permute.xlu1 %3630  ;;  %vm8091_vm13 = vcmask 113692  }
0x14c7   :  { %v3275_v1 = vsel %vm8081_vm0, %v3268_v0, 0.0  ;;  %v3282_v22 = vsel %vm8082_vm1, %v3269_v18, 0.0  ;;  %v3317_v14 = vmul.f32 %v3306_v41, %v6535_v39  ;;  %v3318_v17 = vmul.f32 %v3306_v41, %v6537_v20  ;;  %v3629_v49 = vpop.permute.xlu0 %3628  ;;  %vm8093_vm1 = vmmov %vm8091_vm13 }
0x14c8   :  { %v3276_v33 = vadd.f32 %v3275_v1, %v3274_v19  ;;  %v3283_v26 = vadd.f32 %v3282_v22, %v3281_v27  ;;  %v3309_v52 = vstv %s4599_s26  ;;  %4648 = vpush %v3629_v49  ;;  %vm8092_vm0 = vcmask 112664  }
0x14c9   :  { %v3325_v3 = vsel %vm8083_vm10, %v3317_v14, 0.0  ;;  %v3332_v34 = vsel %vm8084_vm12, %v3318_v17, 0.0  ;;  %v3319_v63 = vmul.f32 %v3309_v52, %v6550_v48  ;;  %v3320_v2 = vmul.f32 %v3309_v52, %v6543_v30  ;;  %s4601_s0 = spop %4600  ;;  %4650 = vpush %v3631_v6  ;;  %vm8094_vm10 = vmmov %vm8092_vm0 }
0x14ca   :  { %v3286_v7 = vrot.slane %v3276_v33, 2  ;;  %v3287_v31 = vrot.slane %v3283_v26, 2  ;;  %v3312_v53 = vstv %s4601_s0  ;;  %v3682_v45 = vpop.permute.xlu1 %3681  ;;  %s4603_s23 = spop %4602  ;;  %vm8095_vm12 = vmmov %vm8093_vm1 }
0x14cb   :  { %v3326_v4 = vsel %vm8085_vm14, %v3319_v63, 0.0  ;;  %v3333_v42 = vsel %vm8086_vm15, %v3320_v2, 0.0  ;;  %v3321_v44 = vmul.f32 %v3312_v53, %v6560_v38  ;;  %v3322_v43 = vmul.f32 %v3312_v53, %v6562_v13  ;;  %v3680_v15 = vpop.permute.xlu0 %3679  ;;  %vm8096_vm14 = vmmov %vm8092_vm0 }
0x14cc   :  { %v3327_v8 = vadd.f32 %v3326_v4, %v3325_v3  ;;  %v3334_v25 = vadd.f32 %v3333_v42, %v3332_v34  ;;  %v3315_v29 = vstv %s4603_s23  ;;  %3291 = vrot.lane.b32.xlu1 %v3287_v31, %s7793_s17  ;;  %4652 = vpush %v3680_v15  ;;  %v3288_v54 = vsel %vm257_vm6, %v3286_v7, %v3287_v31  ;;  %vm8097_vm15 = vmmov %vm8093_vm1 }
0x14cd   :  { %v3328_v37 = vsel %vm8087_vm9, %v3321_v44, 0.0  ;;  %v3335_v9 = vsel %vm8088_vm3, %v3322_v43, 0.0  ;;  %v3323_v35 = vmul.f32 %v3315_v29, %v6585_v55  ;;  %v3324_v32 = vmul.f32 %v3315_v29, %v6569_v62  ;;  %4654 = vpush %v3682_v45  ;;  %3289 = vrot.lane.b32.xlu0 %v3288_v54, %s7793_s17  ;;  %s4605_s24 = spop %4604  ;;  %vm8098_vm9 = vmmov %vm8092_vm0 }
0x14ce   :  { %v3329_v57 = vadd.f32 %v3328_v37, %v3327_v8  ;;  %v3336_v58 = vadd.f32 %v3335_v9, %v3334_v25  ;;  %v3361_v46 = vstv %s4605_s24  ;;  %s4607_s27 = spop %4606  ;;  %v3686_v47 = vpop.permute.xlu1 %3685  ;;  %vm8099_vm3 = vcmask 113693  }
0x14cf   :  { %v3330_v51 = vsel %vm8089_vm8, %v3323_v35, 0.0  ;;  %v3337_v50 = vsel %vm8090_vm11, %v3324_v32, 0.0  ;;  %v3372_v5 = vmul.f32 %v3361_v46, %v6535_v39  ;;  %v3373_v0 = vmul.f32 %v3361_v46, %v6537_v20  ;;  %v3684_v18 = vpop.permute.xlu0 %3683  ;;  %vm8101_vm11 = vmmov %vm8099_vm3 }
0x14d0   :  { %v3331_v19 = vadd.f32 %v3330_v51, %v3329_v57  ;;  %v3338_v27 = vadd.f32 %v3337_v50, %v3336_v58  ;;  %v3364_v41 = vstv %s4607_s27  ;;  %4656 = vpush %v3684_v18  ;;  %vm8100_vm8 = vcmask 113688  }
0x14d1   :  { %v3380_v6 = vsel %vm8091_vm13, %v3372_v5, 0.0  ;;  %v3387_v1 = vsel %vm8092_vm0, %v3373_v0, 0.0  ;;  %v3374_v22 = vmul.f32 %v3364_v41, %v6550_v48  ;;  %v3375_v14 = vmul.f32 %v3364_v41, %v6543_v30  ;;  %s4609_s28 = spop %4608  ;;  %4658 = vpush %v3686_v47  ;;  %vm8102_vm13 = vmmov %vm8100_vm8 }
0x14d2   :  { %v3341_v17 = vrot.slane %v3331_v19, 3  ;;  %v3342_v49 = vrot.slane %v3338_v27, 3  ;;  %v3367_v33 = vstv %s4609_s28  ;;  %v3737_v26 = vpop.permute.xlu1 %3736  ;;  %s4611_s1 = spop %4610  ;;  %vm8103_vm0 = vmmov %vm8099_vm3 }
0x14d3   :  { %v3381_v52 = vsel %vm8093_vm1, %v3374_v22, 0.0  ;;  %v3388_v3 = vsel %vm8094_vm10, %v3375_v14, 0.0  ;;  %v3376_v34 = vmul.f32 %v3367_v33, %v6560_v38  ;;  %v3377_v63 = vmul.f32 %v3367_v33, %v6562_v13  ;;  %v3735_v2 = vpop.permute.xlu0 %3734  ;;  %vm8104_vm1 = vmmov %vm8100_vm8 }
0x14d4   :  { %v3382_v7 = vadd.f32 %v3381_v52, %v3380_v6  ;;  %v3389_v31 = vadd.f32 %v3388_v3, %v3387_v1  ;;  %v3370_v53 = vstv %s4611_s1  ;;  %3346 = vrot.lane.b32.xlu1 %v3342_v49, %s7793_s17  ;;  %4660 = vpush %v3735_v2  ;;  %v3343_v45 = vsel %vm307_vm4, %v3341_v17, %v3342_v49  ;;  %vm8105_vm10 = vmmov %vm8103_vm0 }
0x14d5   :  { %v3383_v4 = vsel %vm8095_vm12, %v3376_v34, 0.0  ;;  %v3390_v42 = vsel %vm8096_vm14, %v3377_v63, 0.0  ;;  %v3378_v44 = vmul.f32 %v3370_v53, %v6585_v55  ;;  %v3379_v43 = vmul.f32 %v3370_v53, %v6569_v62  ;;  %4662 = vpush %v3737_v26  ;;  %3344 = vrot.lane.b32.xlu0 %v3343_v45, %s7793_s17  ;;  %s4613_s29 = spop %4612  ;;  %vm8106_vm12 = vmmov %vm8104_vm1 }
0x14d6   :  { %v3384_v15 = vadd.f32 %v3383_v4, %v3382_v7  ;;  %v3391_v8 = vadd.f32 %v3390_v42, %v3389_v31  ;;  %v3416_v25 = vstv %s4613_s29  ;;  %s4615_s30 = spop %4614  ;;  %v3741_v29 = vpop.permute.xlu1 %3740  ;;  %vm8107_vm14 = vcmask 121888  }
0x14d7   :  { %v3385_v54 = vsel %vm8097_vm15, %v3378_v44, 0.0  ;;  %v3392_v37 = vsel %vm8098_vm9, %v3379_v43, 0.0  ;;  %v3427_v9 = vmul.f32 %v3416_v25, %v6535_v39  ;;  %v3428_v35 = vmul.f32 %v3416_v25, %v6537_v20  ;;  %v3739_v32 = vpop.permute.xlu0 %3738  ;;  %vm8109_vm9 = vmmov %vm8107_vm14 }
0x14d8   :  { %v3386_v57 = vadd.f32 %v3385_v54, %v3384_v15  ;;  %v3393_v58 = vadd.f32 %v3392_v37, %v3391_v8  ;;  %v3419_v46 = vstv %s4615_s30  ;;  %4664 = vpush %v3739_v32  ;;  %vm8108_vm15 = vcmask 116768  }
0x14d9   :  { %v3435_v47 = vsel %vm8099_vm3, %v3427_v9, 0.0  ;;  %v3442_v51 = vsel %vm8100_vm8, %v3428_v35, 0.0  ;;  %v3429_v50 = vmul.f32 %v3419_v46, %v6550_v48  ;;  %v3430_v5 = vmul.f32 %v3419_v46, %v6543_v30  ;;  %s4617_s3 = spop %4616  ;;  %4666 = vpush %v3741_v29  ;;  %vm8110_vm3 = vmmov %vm8108_vm15 }
0x14da   :  { %v3396_v0 = vrot.slane %v3386_v57, 4  ;;  %v3397_v18 = vrot.slane %v3393_v58, 4  ;;  %v3422_v19 = vstv %s4617_s3  ;;  %v3792_v27 = vpop.permute.xlu1 %3791  ;;  %s4619_s4 = spop %4618  ;;  %vm8111_vm8 = vcmask 1042432  }
0x14db   :  { %v3436_v41 = vsel %vm8101_vm11, %v3429_v50, 0.0  ;;  %v3443_v6 = vsel %vm8102_vm13, %v3430_v5, 0.0  ;;  %v3431_v1 = vmul.f32 %v3422_v19, %v6560_v38  ;;  %v3432_v22 = vmul.f32 %v3422_v19, %v6562_v13  ;;  %v3790_v14 = vpop.permute.xlu0 %3789  ;;  %vm8112_vm11 = vmmov %vm8109_vm9 }
0x14dc   :  { %v3437_v17 = vadd.f32 %v3436_v41, %v3435_v47  ;;  %v3444_v49 = vadd.f32 %v3443_v6, %v3442_v51  ;;  %v3425_v33 = vstv %s4619_s4  ;;  %3401 = vrot.lane.b32.xlu1 %v3397_v18, %s7793_s17  ;;  %4668 = vpush %v3790_v14  ;;  %v3398_v26 = vsel %vm357_vm5, %v3396_v0, %v3397_v18  ;;  %vm8113_vm13 = vmmov %vm8110_vm3 }
0x14dd   :  { %v3438_v52 = vsel %vm8103_vm0, %v3431_v1, 0.0  ;;  %v3445_v3 = vsel %vm8104_vm1, %v3432_v22, 0.0  ;;  %v3433_v34 = vmul.f32 %v3425_v33, %v6585_v55  ;;  %v3434_v63 = vmul.f32 %v3425_v33, %v6569_v62  ;;  %4670 = vpush %v3792_v27  ;;  %3399 = vrot.lane.b32.xlu0 %v3398_v26, %s7793_s17  ;;  %s4621_s5 = spop %4620  ;;  %vm8114_vm0 = vmmov %vm8109_vm9 }
0x14de   :  { %v3439_v2 = vadd.f32 %v3438_v52, %v3437_v17  ;;  %v3446_v7 = vadd.f32 %v3445_v3, %v3444_v49  ;;  %v3471_v31 = vstv %s4621_s5  ;;  %s4623_s6 = spop %4622  ;;  %v3796_v53 = vpop.permute.xlu1 %3795  ;;  %vm8115_vm1 = vmmov %vm8110_vm3 }
0x14df   :  { %v3440_v45 = vsel %vm8105_vm10, %v3433_v34, 0.0  ;;  %v3447_v4 = vsel %vm8106_vm12, %v3434_v63, 0.0  ;;  %v3482_v42 = vmul.f32 %v3471_v31, %v6535_v39  ;;  %v3483_v44 = vmul.f32 %v3471_v31, %v6537_v20  ;;  %v3794_v43 = vpop.permute.xlu0 %3793 }
0x14e0   :  { %v3441_v15 = vadd.f32 %v3440_v45, %v3439_v2  ;;  %v3448_v8 = vadd.f32 %v3447_v4, %v3446_v7  ;;  %v3474_v25 = vstv %s4623_s6  ;;  %4672 = vpush %v3794_v43  ;;  %vm8116_vm10 = vcmask 121889  }
0x14e1   :  { %v3490_v29 = vsel %vm8107_vm14, %v3482_v42, 0.0  ;;  %v3497_v54 = vsel %vm8108_vm15, %v3483_v44, 0.0  ;;  %v3484_v37 = vmul.f32 %v3474_v25, %v6550_v48  ;;  %v3485_v9 = vmul.f32 %v3474_v25, %v6543_v30  ;;  %s4625_s2 = spop %4624  ;;  %4674 = vpush %v3796_v53  ;;  %vm8118_vm14 = vmmov %vm8116_vm10 }
0x14e2   :  { %v3451_v35 = vrot.slane %v3441_v15, 5  ;;  %v3452_v32 = vrot.slane %v3448_v8, 5  ;;  %v3477_v57 = vstv %s4625_s2  ;;  %v3844_v58 = vpop.permute.xlu1 %3843  ;;  %s4627_s11 = spop %4626  ;;  %vm8117_vm12 = vcmask 117792  }
0x14e3   :  { %v3491_v46 = vsel %vm8109_vm9, %v3484_v37, 0.0  ;;  %v3498_v47 = vsel %vm8110_vm3, %v3485_v9, 0.0  ;;  %v3486_v51 = vmul.f32 %v3477_v57, %v6560_v38  ;;  %v3487_v50 = vmul.f32 %v3477_v57, %v6562_v13  ;;  %v3842_v5 = vpop.permute.xlu0 %3841  ;;  %vm8119_vm15 = vmmov %vm8117_vm12 }
0x14e4   :  { %v3492_v0 = vadd.f32 %v3491_v46, %v3490_v29  ;;  %v3499_v18 = vadd.f32 %v3498_v47, %v3497_v54  ;;  %v3480_v19 = vstv %s4627_s11  ;;  %3456 = vrot.lane.b32.xlu1 %v3452_v32, %s7793_s17  ;;  %4676 = vpush %v3842_v5  ;;  %v3453_v27 = vsel %vm8111_vm8, %v3451_v35, %v3452_v32  ;;  %vm8120_vm9 = vmmov %vm8116_vm10 }
0x14e5   :  { %v3493_v41 = vsel %vm8112_vm11, %v3486_v51, 0.0  ;;  %v3500_v6 = vsel %vm8113_vm13, %v3487_v50, 0.0  ;;  %v3488_v1 = vmul.f32 %v3480_v19, %v6585_v55  ;;  %v3489_v22 = vmul.f32 %v3480_v19, %v6569_v62  ;;  %4678 = vpush %v3844_v58  ;;  %3454 = vrot.lane.b32.xlu0 %v3453_v27, %s7793_s17  ;;  %s4629_s7 = spop %4628  ;;  %vm8121_vm3 = vmmov %vm8117_vm12 }
0x14e6   :  { %v3494_v14 = vadd.f32 %v3493_v41, %v3492_v0  ;;  %v3501_v17 = vadd.f32 %v3500_v6, %v3499_v18  ;;  %v3523_v49 = vstv %s4629_s7  ;;  %s4631_s10 = spop %4630  ;;  %v3848_v33 = vpop.permute.xlu1 %3847  ;;  %vm8122_vm8 = vmmov %vm8120_vm9  ;;  %vm8124_vm13 = vcmask 121890  }
0x14e7   :  { %v3495_v26 = vsel %vm8114_vm0, %v3488_v1, 0.0  ;;  %v3502_v52 = vsel %vm8115_vm1, %v3489_v22, 0.0  ;;  %v3534_v3 = vmul.f32 %v3523_v49, %v6535_v39  ;;  %v3535_v34 = vmul.f32 %v3523_v49, %v6537_v20  ;;  %v3846_v63 = vpop.permute.xlu0 %3845  ;;  %vm8123_vm11 = vmmov %vm8121_vm3 }
0x14e8   :  { %v3496_v2 = vadd.f32 %v3495_v26, %v3494_v14  ;;  %v3503_v7 = vadd.f32 %v3502_v52, %v3501_v17  ;;  %v3526_v31 = vstv %s4631_s10  ;;  %4680 = vpush %v3846_v63  ;;  %vm8125_vm0 = vcmask 118816   ;;  %vm8126_vm1 = vmmov %vm8124_vm13 }
0x14e9   :  { %v3542_v53 = vsel %vm8116_vm10, %v3534_v3, 0.0  ;;  %v3549_v45 = vsel %vm8117_vm12, %v3535_v34, 0.0  ;;  %v3536_v4 = vmul.f32 %v3526_v31, %v6550_v48  ;;  %v3537_v42 = vmul.f32 %v3526_v31, %v6543_v30  ;;  %s4633_s17 = spop %4632  ;;  %4682 = vpush %v3848_v33  ;;  %vm8127_vm10 = vmmov %vm8125_vm0 }
0x14ea   :  { %v3529_v44 = vstv %s4633_s17  ;;  %3508 = vrot.lane.b32.xlu1 %v3503_v7, %s4754_s12  ;;  %3506 = vrot.lane.b32.xlu0 %v3496_v2, %s4754_s12  ;;  %v3899_v43 = vpop.permute.xlu1 %3898  ;;  %s4635_s16 = spop %4634  ;;  %vm8128_vm12 = vmmov %vm8126_vm1 }
0x14eb   :  { %v3543_v15 = vsel %vm8118_vm14, %v3536_v4, 0.0  ;;  %v3550_v8 = vsel %vm8119_vm15, %v3537_v42, 0.0  ;;  %v3538_v25 = vmul.f32 %v3529_v44, %v6560_v38  ;;  %v3539_v29 = vmul.f32 %v3529_v44, %v6562_v13  ;;  %v3897_v54 = vpop.permute.xlu0 %3896  ;;  %vm8129_vm14 = vmmov %vm8125_vm0 }
0x14ec   :  { %v3544_v37 = vadd.f32 %v3543_v15, %v3542_v53  ;;  %v3551_v9 = vadd.f32 %v3550_v8, %v3549_v45  ;;  %v3532_v35 = vstv %s4635_s16  ;;  %4684 = vpush %v3897_v54  ;;  %vm8130_vm15 = vmmov %vm8126_vm1 }
0x14ed   :  { %v3545_v32 = vsel %vm8120_vm9, %v3538_v25, 0.0  ;;  %v3552_v57 = vsel %vm8121_vm3, %v3539_v29, 0.0  ;;  %v3540_v58 = vmul.f32 %v3532_v35, %v6585_v55  ;;  %v3541_v46 = vmul.f32 %v3532_v35, %v6569_v62  ;;  %4686 = vpush %v3899_v43  ;;  %s4637_s13 = spop %4636  ;;  %vm8131_vm9 = vmmov %vm8125_vm0 }
0x14ee   :  { %v3546_v47 = vadd.f32 %v3545_v32, %v3544_v37  ;;  %v3553_v51 = vadd.f32 %v3552_v57, %v3551_v9  ;;  %v3578_v50 = vstv %s4637_s13  ;;  %s4639_s14 = spop %4638  ;;  %v3903_v5 = vpop.permute.xlu1 %3902  ;;  %vm8132_vm3 = vcmask 121891  }
0x14ef   :  { %v3547_v0 = vsel %vm8122_vm8, %v3540_v58, 0.0  ;;  %v3554_v18 = vsel %vm8123_vm11, %v3541_v46, 0.0  ;;  %v3589_v19 = vmul.f32 %v3578_v50, %v6535_v39  ;;  %v3590_v27 = vmul.f32 %v3578_v50, %v6537_v20  ;;  %v3901_v41 = vpop.permute.xlu0 %3900  ;;  %vm8134_vm11 = vmmov %vm8132_vm3 }
0x14f0   :  { %v3548_v6 = vadd.f32 %v3547_v0, %v3546_v47  ;;  %v3555_v1 = vadd.f32 %v3554_v18, %v3553_v51  ;;  %v3581_v22 = vstv %s4639_s14  ;;  %4688 = vpush %v3901_v41  ;;  %vm8133_vm8 = vcmask 119840  }
0x14f1   :  { %v3597_v14 = vsel %vm8124_vm13, %v3589_v19, 0.0  ;;  %v3604_v17 = vsel %vm8125_vm0, %v3590_v27, 0.0  ;;  %v3591_v49 = vmul.f32 %v3581_v22, %v6550_v48  ;;  %v3592_v33 = vmul.f32 %v3581_v22, %v6543_v30  ;;  %s4641_s15 = spop %4640  ;;  %4690 = vpush %v3903_v5  ;;  %vm8135_vm13 = vmmov %vm8133_vm8 }
0x14f2   :  { %v3558_v26 = vrot.slane %v3548_v6, 1  ;;  %v3559_v52 = vrot.slane %v3555_v1, 1  ;;  %v3584_v3 = vstv %s4641_s15  ;;  %v3954_v34 = vpop.permute.xlu1 %3953  ;;  %s4643_s20 = spop %4642  ;;  %vm8136_vm0 = vmmov %vm8132_vm3 }
0x14f3   :  { %v3598_v63 = vsel %vm8126_vm1, %v3591_v49, 0.0  ;;  %v3605_v2 = vsel %vm8127_vm10, %v3592_v33, 0.0  ;;  %v3593_v7 = vmul.f32 %v3584_v3, %v6560_v38  ;;  %v3594_v31 = vmul.f32 %v3584_v3, %v6562_v13  ;;  %v3952_v53 = vpop.permute.xlu0 %3951  ;;  %vm8137_vm1 = vmmov %vm8133_vm8 }
0x14f4   :  { %v3599_v45 = vadd.f32 %v3598_v63, %v3597_v14  ;;  %v3606_v4 = vadd.f32 %v3605_v2, %v3604_v17  ;;  %v3587_v42 = vstv %s4643_s20  ;;  %3563 = vrot.lane.b32.xlu1 %v3559_v52, %s4754_s12  ;;  %4692 = vpush %v3952_v53  ;;  %v3560_v44 = vsel %vm207_vm7, %v3558_v26, %v3559_v52  ;;  %vm8138_vm10 = vmmov %vm8136_vm0 }
0x14f5   :  { %v3600_v43 = vsel %vm8128_vm12, %v3593_v7, 0.0  ;;  %v3607_v15 = vsel %vm8129_vm14, %v3594_v31, 0.0  ;;  %v3595_v8 = vmul.f32 %v3587_v42, %v6585_v55  ;;  %v3596_v25 = vmul.f32 %v3587_v42, %v6569_v62  ;;  %4694 = vpush %v3954_v34  ;;  %3561 = vrot.lane.b32.xlu0 %v3560_v44, %s4754_s12  ;;  %s4645_s19 = spop %4644  ;;  %vm8139_vm12 = vmmov %vm8137_vm1 }
0x14f6   :  { %v3601_v29 = vadd.f32 %v3600_v43, %v3599_v45  ;;  %v3608_v54 = vadd.f32 %v3607_v15, %v3606_v4  ;;  %v3633_v37 = vstv %s4645_s19  ;;  %s4647_s18 = spop %4646  ;;  %v3958_v9 = vpop.permute.xlu1 %3957  ;;  %vm8140_vm14 = vcmask 121892  }
0x14f7   :  { %v3602_v35 = vsel %vm8130_vm15, %v3595_v8, 0.0  ;;  %v3609_v32 = vsel %vm8131_vm9, %v3596_v25, 0.0  ;;  %v3644_v57 = vmul.f32 %v3633_v37, %v6535_v39  ;;  %v3645_v58 = vmul.f32 %v3633_v37, %v6537_v20  ;;  %v3956_v46 = vpop.permute.xlu0 %3955  ;;  %vm8142_vm9 = vmmov %vm8140_vm14 }
0x14f8   :  { %v3603_v47 = vadd.f32 %v3602_v35, %v3601_v29  ;;  %v3610_v51 = vadd.f32 %v3609_v32, %v3608_v54  ;;  %v3636_v50 = vstv %s4647_s18  ;;  %4696 = vpush %v3956_v46  ;;  %vm8141_vm15 = vcmask 120864  }
0x14f9   :  { %v3652_v5 = vsel %vm8132_vm3, %v3644_v57, 0.0  ;;  %v3659_v0 = vsel %vm8133_vm8, %v3645_v58, 0.0  ;;  %v3646_v18 = vmul.f32 %v3636_v50, %v6550_v48  ;;  %v3647_v19 = vmul.f32 %v3636_v50, %v6543_v30  ;;  %s4649_s25 = spop %4648  ;;  %4698 = vpush %v3958_v9  ;;  %vm8143_vm3 = vmmov %vm8141_vm15 }
0x14fa   :  { %v3613_v27 = vrot.slane %v3603_v47, 2  ;;  %v3614_v41 = vrot.slane %v3610_v51, 2  ;;  %v3639_v6 = vstv %s4649_s25  ;;  %v4009_v1 = vpop.permute.xlu1 %4008  ;;  %s4651_s21 = spop %4650  ;;  %vm8144_vm8 = vmmov %vm8142_vm9 }
0x14fb   :  { %v3653_v22 = vsel %vm8134_vm11, %v3646_v18, 0.0  ;;  %v3660_v14 = vsel %vm8135_vm13, %v3647_v19, 0.0  ;;  %v3648_v17 = vmul.f32 %v3639_v6, %v6560_v38  ;;  %v3649_v49 = vmul.f32 %v3639_v6, %v6562_v13  ;;  %v4007_v33 = vpop.permute.xlu0 %4006  ;;  %vm8145_vm11 = vmmov %vm8143_vm3 }
0x14fc   :  { %v3654_v26 = vadd.f32 %v3653_v22, %v3652_v5  ;;  %v3661_v52 = vadd.f32 %v3660_v14, %v3659_v0  ;;  %v3642_v3 = vstv %s4651_s21  ;;  %3618 = vrot.lane.b32.xlu1 %v3614_v41, %s4754_s12  ;;  %4700 = vpush %v4007_v33  ;;  %v3615_v34 = vsel %vm257_vm6, %v3613_v27, %v3614_v41  ;;  %vm8146_vm13 = vmmov %vm8144_vm8 }
0x14fd   :  { %v3655_v63 = vsel %vm8136_vm0, %v3648_v17, 0.0  ;;  %v3662_v2 = vsel %vm8137_vm1, %v3649_v49, 0.0  ;;  %v3650_v7 = vmul.f32 %v3642_v3, %v6585_v55  ;;  %v3651_v31 = vmul.f32 %v3642_v3, %v6569_v62  ;;  %4702 = vpush %v4009_v1  ;;  %3616 = vrot.lane.b32.xlu0 %v3615_v34, %s4754_s12  ;;  %s4653_s22 = spop %4652  ;;  %vm8147_vm0 = vmmov %vm8143_vm3 }
0x14fe   :  { %v3656_v53 = vadd.f32 %v3655_v63, %v3654_v26  ;;  %v3663_v45 = vadd.f32 %v3662_v2, %v3661_v52  ;;  %v3688_v4 = vstv %s4653_s22  ;;  %s4655_s26 = spop %4654  ;;  %v4013_v42 = vpop.permute.xlu1 %4012  ;;  %vm8148_vm1 = vcmask 121893  }
0x14ff   :  { %v3657_v44 = vsel %vm8138_vm10, %v3650_v7, 0.0  ;;  %v3664_v43 = vsel %vm8139_vm12, %v3651_v31, 0.0  ;;  %v3699_v15 = vmul.f32 %v3688_v4, %v6535_v39  ;;  %v3700_v8 = vmul.f32 %v3688_v4, %v6537_v20  ;;  %v4011_v25 = vpop.permute.xlu0 %4010  ;;  %vm8150_vm12 = vmmov %vm8148_vm1 }
0x1500   :  { %v3658_v29 = vadd.f32 %v3657_v44, %v3656_v53  ;;  %v3665_v54 = vadd.f32 %v3664_v43, %v3663_v45  ;;  %v3691_v37 = vstv %s4655_s26  ;;  %4704 = vpush %v4011_v25  ;;  %vm8149_vm10 = vcmask 121888  }
0x1501   :  { %v3707_v9 = vsel %vm8140_vm14, %v3699_v15, 0.0  ;;  %v3714_v35 = vsel %vm8141_vm15, %v3700_v8, 0.0  ;;  %v3701_v32 = vmul.f32 %v3691_v37, %v6550_v48  ;;  %v3702_v57 = vmul.f32 %v3691_v37, %v6543_v30  ;;  %s4657_s0 = spop %4656  ;;  %4706 = vpush %v4013_v42  ;;  %vm8151_vm14 = vmmov %vm8149_vm10 }
0x1502   :  { %v3668_v58 = vrot.slane %v3658_v29, 3  ;;  %v3669_v46 = vrot.slane %v3665_v54, 3  ;;  %v3694_v47 = vstv %s4657_s0  ;;  %v4064_v51 = vpop.permute.xlu1 %4063  ;;  %s4659_s23 = spop %4658  ;;  %vm8152_vm15 = vmmov %vm8148_vm1 }
0x1503   :  { %v3708_v50 = vsel %vm8142_vm9, %v3701_v32, 0.0  ;;  %v3715_v5 = vsel %vm8143_vm3, %v3702_v57, 0.0  ;;  %v3703_v0 = vmul.f32 %v3694_v47, %v6560_v38  ;;  %v3704_v18 = vmul.f32 %v3694_v47, %v6562_v13  ;;  %v4062_v19 = vpop.permute.xlu0 %4061  ;;  %vm8153_vm9 = vmmov %vm8149_vm10 }
0x1504   :  { %v3709_v27 = vadd.f32 %v3708_v50, %v3707_v9  ;;  %v3716_v41 = vadd.f32 %v3715_v5, %v3714_v35  ;;  %v3697_v6 = vstv %s4659_s23  ;;  %3673 = vrot.lane.b32.xlu1 %v3669_v46, %s4754_s12  ;;  %4708 = vpush %v4062_v19  ;;  %v3670_v1 = vsel %vm307_vm4, %v3668_v58, %v3669_v46  ;;  %vm8154_vm3 = vmmov %vm8148_vm1 }
0x1505   :  { %v3710_v22 = vsel %vm8144_vm8, %v3703_v0, 0.0  ;;  %v3717_v14 = vsel %vm8145_vm11, %v3704_v18, 0.0  ;;  %v3705_v17 = vmul.f32 %v3697_v6, %v6585_v55  ;;  %v3706_v49 = vmul.f32 %v3697_v6, %v6569_v62  ;;  %4710 = vpush %v4064_v51  ;;  %3671 = vrot.lane.b32.xlu0 %v3670_v1, %s4754_s12  ;;  %s4661_s24 = spop %4660  ;;  %vm8155_vm8 = vmmov %vm8153_vm9 }
0x1506   :  { %v3711_v33 = vadd.f32 %v3710_v22, %v3709_v27  ;;  %v3718_v26 = vadd.f32 %v3717_v14, %v3716_v41  ;;  %v3743_v52 = vstv %s4661_s24  ;;  %s4663_s27 = spop %4662  ;;  %v4068_v3 = vpop.permute.xlu1 %4067  ;;  %vm8156_vm11 = vcmask 130088  }
0x1507   :  { %v3712_v34 = vsel %vm8146_vm13, %v3705_v17, 0.0  ;;  %v3719_v63 = vsel %vm8147_vm0, %v3706_v49, 0.0  ;;  %v3754_v2 = vmul.f32 %v3743_v52, %v6535_v39  ;;  %v3755_v7 = vmul.f32 %v3743_v52, %v6537_v20  ;;  %v4066_v31 = vpop.permute.xlu0 %4065  ;;  %vm8158_vm0 = vmmov %vm8156_vm11 }
0x1508   :  { %v3713_v53 = vadd.f32 %v3712_v34, %v3711_v33  ;;  %v3720_v45 = vadd.f32 %v3719_v63, %v3718_v26  ;;  %v3746_v4 = vstv %s4663_s27  ;;  %4712 = vpush %v4066_v31  ;;  %vm8157_vm13 = vcmask 124968  }
0x1509   :  { %v3762_v42 = vsel %vm8148_vm1, %v3754_v2, 0.0  ;;  %v3769_v44 = vsel %vm8149_vm10, %v3755_v7, 0.0  ;;  %v3756_v43 = vmul.f32 %v3746_v4, %v6550_v48  ;;  %v3757_v15 = vmul.f32 %v3746_v4, %v6543_v30  ;;  %s4665_s28 = spop %4664  ;;  %4714 = vpush %v4068_v3  ;;  %vm8159_vm1 = vmmov %vm8157_vm13 }
0x150a   :  { %v3723_v8 = vrot.slane %v3713_v53, 4  ;;  %v3724_v25 = vrot.slane %v3720_v45, 4  ;;  %v3749_v29 = vstv %s4665_s28  ;;  %s4667_s1 = spop %4666  ;;  %vm8160_vm10 = vcmask 1042432  }
0x150b   :  { %v3763_v54 = vsel %vm8150_vm12, %v3756_v43, 0.0  ;;  %v3770_v37 = vsel %vm8151_vm14, %v3757_v15, 0.0  ;;  %v3758_v9 = vmul.f32 %v3749_v29, %v6560_v38  ;;  %v3759_v35 = vmul.f32 %v3749_v29, %v6562_v13  ;;  %vm8161_vm12 = vmmov %vm8158_vm0 }
0x150c   :  { %v3764_v32 = vadd.f32 %v3763_v54, %v3762_v42  ;;  %v3771_v57 = vadd.f32 %v3770_v37, %v3769_v44  ;;  %v3752_v58 = vstv %s4667_s1  ;;  %3728 = vrot.lane.b32.xlu1 %v3724_v25, %s4754_s12  ;;  %v3725_v46 = vsel %vm357_vm5, %v3723_v8, %v3724_v25  ;;  %vm8162_vm14 = vmmov %vm8159_vm1 }
0x150d   :  { %v3765_v47 = vsel %vm8152_vm15, %v3758_v9, 0.0  ;;  %v3772_v51 = vsel %vm8153_vm9, %v3759_v35, 0.0  ;;  %v3760_v50 = vmul.f32 %v3752_v58, %v6585_v55  ;;  %v3761_v5 = vmul.f32 %v3752_v58, %v6569_v62  ;;  %3726 = vrot.lane.b32.xlu0 %v3725_v46, %s4754_s12  ;;  %s4669_s29 = spop %4668  ;;  %vm8163_vm15 = vmmov %vm8158_vm0 }
0x150e   :  { %v3766_v0 = vadd.f32 %v3765_v47, %v3764_v32  ;;  %v3773_v18 = vadd.f32 %v3772_v51, %v3771_v57  ;;  %v3798_v19 = vstv %s4669_s29  ;;  %s4671_s30 = spop %4670  ;;  %vm8164_vm9 = vmmov %vm8159_vm1 }
0x150f   :  { %v3767_v27 = vsel %vm8154_vm3, %v3760_v50, 0.0  ;;  %v3774_v41 = vsel %vm8155_vm8, %v3761_v5, 0.0  ;;  %v3809_v6 = vmul.f32 %v3798_v19, %v6535_v39  ;;  %v3810_v1 = vmul.f32 %v3798_v19, %v6537_v20 }
0x1510   :  { %v3768_v22 = vadd.f32 %v3767_v27, %v3766_v0  ;;  %v3775_v14 = vadd.f32 %v3774_v41, %v3773_v18  ;;  %v3801_v17 = vstv %s4671_s30  ;;  %vm8165_vm3 = vcmask 130089  }
0x1511   :  { %v3817_v49 = vsel %vm8156_vm11, %v3809_v6, 0.0  ;;  %v3824_v33 = vsel %vm8157_vm13, %v3810_v1, 0.0  ;;  %v3811_v26 = vmul.f32 %v3801_v17, %v6550_v48  ;;  %v3812_v52 = vmul.f32 %v3801_v17, %v6543_v30  ;;  %s4673_s3 = spop %4672  ;;  %vm8167_vm11 = vmmov %vm8165_vm3 }
0x1512   :  { %v3778_v3 = vrot.slane %v3768_v22, 5  ;;  %v3779_v34 = vrot.slane %v3775_v14, 5  ;;  %v3804_v63 = vstv %s4673_s3  ;;  %s4675_s4 = spop %4674  ;;  %vm8166_vm8 = vcmask 125992  }
0x1513   :  { %v3818_v2 = vsel %vm8158_vm0, %v3811_v26, 0.0  ;;  %v3825_v7 = vsel %vm8159_vm1, %v3812_v52, 0.0  ;;  %v3813_v31 = vmul.f32 %v3804_v63, %v6560_v38  ;;  %v3814_v53 = vmul.f32 %v3804_v63, %v6562_v13  ;;  %vm8168_vm13 = vmmov %vm8166_vm8 }
0x1514   :  { %v3819_v45 = vadd.f32 %v3818_v2, %v3817_v49  ;;  %v3826_v4 = vadd.f32 %v3825_v7, %v3824_v33  ;;  %v3807_v42 = vstv %s4675_s4  ;;  %3783 = vrot.lane.b32.xlu1 %v3779_v34, %s4754_s12  ;;  %v3780_v44 = vsel %vm8160_vm10, %v3778_v3, %v3779_v34  ;;  %vm8169_vm0 = vmmov %vm8165_vm3 }
0x1515   :  { %v3820_v43 = vsel %vm8161_vm12, %v3813_v31, 0.0  ;;  %v3827_v15 = vsel %vm8162_vm14, %v3814_v53, 0.0  ;;  %v3815_v8 = vmul.f32 %v3807_v42, %v6585_v55  ;;  %v3816_v25 = vmul.f32 %v3807_v42, %v6569_v62  ;;  %3781 = vrot.lane.b32.xlu0 %v3780_v44, %s4754_s12  ;;  %s4677_s5 = spop %4676  ;;  %vm8170_vm1 = vmmov %vm8166_vm8 }
0x1516   :  { %v3821_v29 = vadd.f32 %v3820_v43, %v3819_v45  ;;  %v3828_v54 = vadd.f32 %v3827_v15, %v3826_v4  ;;  %v3850_v37 = vstv %s4677_s5  ;;  %s4679_s6 = spop %4678  ;;  %vm8171_vm10 = vmmov %vm8169_vm0  ;;  %vm8173_vm14 = vcmask 130090  }
0x1517   :  { %v3822_v9 = vsel %vm8163_vm15, %v3815_v8, 0.0  ;;  %v3829_v35 = vsel %vm8164_vm9, %v3816_v25, 0.0  ;;  %v3861_v32 = vmul.f32 %v3850_v37, %v6535_v39  ;;  %v3862_v57 = vmul.f32 %v3850_v37, %v6537_v20  ;;  %vm8172_vm12 = vmmov %vm8170_vm1 }
0x1518   :  { %v3823_v58 = vadd.f32 %v3822_v9, %v3821_v29  ;;  %v3830_v46 = vadd.f32 %v3829_v35, %v3828_v54  ;;  %v3853_v47 = vstv %s4679_s6  ;;  %vm8174_vm15 = vcmask 127016   ;;  %vm8175_vm9 = vmmov %vm8173_vm14 }
0x1519   :  { %v3869_v51 = vsel %vm8165_vm3, %v3861_v32, 0.0  ;;  %v3876_v50 = vsel %vm8166_vm8, %v3862_v57, 0.0  ;;  %v3863_v5 = vmul.f32 %v3853_v47, %v6550_v48  ;;  %v3864_v0 = vmul.f32 %v3853_v47, %v6543_v30  ;;  %s4681_s12 = spop %4680  ;;  %vm8176_vm3 = vmmov %vm8174_vm15 }
0x151a   :  { %v3856_v18 = vstv %s4681_s12  ;;  %3835 = vrot.lane.b32.xlu1 %v3830_v46, %s4755_s8  ;;  %3833 = vrot.lane.b32.xlu0 %v3823_v58, %s4755_s8  ;;  %s4683_s2 = spop %4682  ;;  %vm8177_vm8 = vmmov %vm8175_vm9 }
0x151b   :  { %v3870_v19 = vsel %vm8167_vm11, %v3863_v5, 0.0  ;;  %v3877_v27 = vsel %vm8168_vm13, %v3864_v0, 0.0  ;;  %v3865_v41 = vmul.f32 %v3856_v18, %v6560_v38  ;;  %v3866_v6 = vmul.f32 %v3856_v18, %v6562_v13  ;;  %vm8178_vm11 = vmmov %vm8176_vm3 }
0x151c   :  { %v3871_v1 = vadd.f32 %v3870_v19, %v3869_v51  ;;  %v3878_v22 = vadd.f32 %v3877_v27, %v3876_v50  ;;  %v3859_v14 = vstv %s4683_s2  ;;  %vm8179_vm13 = vmmov %vm8177_vm8 }
0x151d   :  { %v3872_v17 = vsel %vm8169_vm0, %v3865_v41, 0.0  ;;  %v3879_v49 = vsel %vm8170_vm1, %v3866_v6, 0.0  ;;  %v3867_v33 = vmul.f32 %v3859_v14, %v6585_v55  ;;  %v3868_v26 = vmul.f32 %v3859_v14, %v6569_v62  ;;  %s4685_s11 = spop %4684  ;;  %vm8180_vm0 = vmmov %vm8176_vm3 }
0x151e   :  { %v3873_v52 = vadd.f32 %v3872_v17, %v3871_v1  ;;  %v3880_v3 = vadd.f32 %v3879_v49, %v3878_v22  ;;  %v3905_v34 = vstv %s4685_s11  ;;  %s4687_s7 = spop %4686  ;;  %vm8182_vm1 = vcmask 128040  }
0x151f   :  { %v3874_v63 = vsel %vm8171_vm10, %v3867_v33, 0.0  ;;  %v3881_v2 = vsel %vm8172_vm12, %v3868_v26, 0.0  ;;  %v3916_v7 = vmul.f32 %v3905_v34, %v6535_v39  ;;  %v3917_v31 = vmul.f32 %v3905_v34, %v6537_v20  ;;  %vm8184_vm12 = vmmov %vm8182_vm1 }
0x1520   :  { %v3875_v53 = vadd.f32 %v3874_v63, %v3873_v52  ;;  %v3882_v45 = vadd.f32 %v3881_v2, %v3880_v3  ;;  %v3908_v4 = vstv %s4687_s7 }
0x1521   :  { %v3924_v42 = vsel %vm8173_vm14, %v3916_v7, 0.0  ;;  %v3931_v44 = vsel %vm8174_vm15, %v3917_v31, 0.0  ;;  %v3918_v43 = vmul.f32 %v3908_v4, %v6550_v48  ;;  %v3919_v15 = vmul.f32 %v3908_v4, %v6543_v30  ;;  %s4689_s10 = spop %4688  ;;  %vm8186_vm15 = vmmov %vm8182_vm1 }
0x1522   :  { %v3885_v8 = vrot.slane %v3875_v53, 1  ;;  %v3886_v25 = vrot.slane %v3882_v45, 1  ;;  %v3911_v29 = vstv %s4689_s10  ;;  %s4691_s17 = spop %4690 }
0x1523   :  { %v3925_v54 = vsel %vm8175_vm9, %v3918_v43, 0.0  ;;  %v3932_v37 = vsel %vm8176_vm3, %v3919_v15, 0.0  ;;  %v3920_v9 = vmul.f32 %v3911_v29, %v6560_v38  ;;  %v3921_v35 = vmul.f32 %v3911_v29, %v6562_v13  ;;  %vm8188_vm3 = vmmov %vm8182_vm1 }
0x1524   :  { %v3926_v32 = vadd.f32 %v3925_v54, %v3924_v42  ;;  %v3933_v57 = vadd.f32 %v3932_v37, %v3931_v44  ;;  %v3914_v58 = vstv %s4691_s17  ;;  %3890 = vrot.lane.b32.xlu1 %v3886_v25, %s4755_s8  ;;  %v3887_v46 = vsel %vm207_vm7, %v3885_v8, %v3886_v25 }
0x1525   :  { %v3927_v47 = vsel %vm8177_vm8, %v3920_v9, 0.0  ;;  %v3934_v51 = vsel %vm8178_vm11, %v3921_v35, 0.0  ;;  %v3922_v50 = vmul.f32 %v3914_v58, %v6585_v55  ;;  %v3923_v5 = vmul.f32 %v3914_v58, %v6569_v62  ;;  %3888 = vrot.lane.b32.xlu0 %v3887_v46, %s4755_s8  ;;  %s4693_s16 = spop %4692 }
0x1526   :  { %v3928_v0 = vadd.f32 %v3927_v47, %v3926_v32  ;;  %v3935_v18 = vadd.f32 %v3934_v51, %v3933_v57  ;;  %v3960_v19 = vstv %s4693_s16  ;;  %s4695_s13 = spop %4694  ;;  %vm8181_vm7 = vcmask 130091  }
0x1527   :  { %v3929_v27 = vsel %vm8179_vm13, %v3922_v50, 0.0  ;;  %v3936_v41 = vsel %vm8180_vm0, %v3923_v5, 0.0  ;;  %v3971_v6 = vmul.f32 %v3960_v19, %v6535_v39  ;;  %v3972_v1 = vmul.f32 %v3960_v19, %v6537_v20  ;;  %vm8183_vm10 = vmmov %vm8181_vm7 }
0x1528   :  { %v3930_v22 = vadd.f32 %v3929_v27, %v3928_v0  ;;  %v3937_v14 = vadd.f32 %v3936_v41, %v3935_v18  ;;  %v3963_v17 = vstv %s4695_s13  ;;  %vm8185_vm14 = vmmov %vm8181_vm7  ;;  %vm8190_vm8 = vcmask 129064  }
0x1529   :  { %v3979_v49 = vsel %vm8181_vm7, %v3971_v6, 0.0  ;;  %v3986_v33 = vsel %vm8182_vm1, %v3972_v1, 0.0  ;;  %v3973_v26 = vmul.f32 %v3963_v17, %v6550_v48  ;;  %v3974_v52 = vmul.f32 %v3963_v17, %v6543_v30  ;;  %s4697_s14 = spop %4696  ;;  %vm8187_vm9 = vmmov %vm8181_vm7 }
0x152a   :  { %v3940_v3 = vrot.slane %v3930_v22, 2  ;;  %v3941_v34 = vrot.slane %v3937_v14, 2  ;;  %v3966_v63 = vstv %s4697_s14  ;;  %s4699_s15 = spop %4698  ;;  %vm8192_vm13 = vmmov %vm8190_vm8 }
0x152b   :  { %v3980_v2 = vsel %vm8183_vm10, %v3973_v26, 0.0  ;;  %v3987_v7 = vsel %vm8184_vm12, %v3974_v52, 0.0  ;;  %v3975_v31 = vmul.f32 %v3966_v63, %v6560_v38  ;;  %v3976_v53 = vmul.f32 %v3966_v63, %v6562_v13  ;;  %vm8194_vm7 = vmmov %vm8190_vm8 }
0x152c   :  { %v3981_v45 = vadd.f32 %v3980_v2, %v3979_v49  ;;  %v3988_v4 = vadd.f32 %v3987_v7, %v3986_v33  ;;  %v3969_v42 = vstv %s4699_s15  ;;  %3945 = vrot.lane.b32.xlu1 %v3941_v34, %s4755_s8  ;;  %v3942_v44 = vsel %vm257_vm6, %v3940_v3, %v3941_v34  ;;  %vm8196_vm10 = vmmov %vm8194_vm7 }
0x152d   :  { %v3982_v43 = vsel %vm8185_vm14, %v3975_v31, 0.0  ;;  %v3989_v15 = vsel %vm8186_vm15, %v3976_v53, 0.0  ;;  %v3977_v8 = vmul.f32 %v3969_v42, %v6585_v55  ;;  %v3978_v25 = vmul.f32 %v3969_v42, %v6569_v62  ;;  %3943 = vrot.lane.b32.xlu0 %v3942_v44, %s4755_s8  ;;  %s4701_s20 = spop %4700 }
0x152e   :  { %v3983_v29 = vadd.f32 %v3982_v43, %v3981_v45  ;;  %v3990_v54 = vadd.f32 %v3989_v15, %v3988_v4  ;;  %s4703_s19 = spop %4702  ;;  %v4015_v35 = vstv %s4701_s20  ;;  %vm8189_vm6 = vcmask 130092  }
0x152f   :  { %v3984_v37 = vsel %vm8187_vm9, %v3977_v8, 0.0  ;;  %v3991_v9 = vsel %vm8188_vm3, %v3978_v25, 0.0  ;;  %v4018_v32 = vstv %s4703_s19  ;;  %v4026_v46 = vmul.f32 %v4015_v35, %v6535_v39  ;;  %vm8191_vm11 = vmmov %vm8189_vm6 }
0x1530   :  { %v3985_v57 = vadd.f32 %v3984_v37, %v3983_v29  ;;  %v3992_v58 = vadd.f32 %v3991_v9, %v3990_v54  ;;  %v4027_v47 = vmul.f32 %v4015_v35, %v6537_v20  ;;  %v4028_v51 = vmul.f32 %v4018_v32, %v6550_v48  ;;  %vm8193_vm0 = vmmov %vm8189_vm6 }
0x1531   :  { %v4029_v50 = vmul.f32 %v4018_v32, %v6543_v30  ;;  %s4705_s18 = spop %4704  ;;  %v4034_v18 = vsel %vm8189_vm6, %v4026_v46, 0.0  ;;  %vm8195_vm1 = vmmov %vm8193_vm0  ;;  %vm8198_vm12 = vcmask 130088  }
0x1532   :  { %v3995_v5 = vrot.slane %v3985_v57, 3  ;;  %v3996_v0 = vrot.slane %v3992_v58, 3  ;;  %v4041_v19 = vsel %vm8190_vm8, %v4027_v47, 0.0  ;;  %s4707_s25 = spop %4706  ;;  %v4035_v27 = vsel %vm8191_vm11, %v4028_v51, 0.0  ;;  %vm8200_vm15 = vmmov %vm8198_vm12 }
0x1533   :  { %v4042_v41 = vsel %vm8192_vm13, %v4029_v50, 0.0  ;;  %v4021_v6 = vstv %s4705_s18  ;;  %v4024_v1 = vstv %s4707_s25  ;;  %v4036_v22 = vadd.f32 %v4035_v27, %v4034_v18  ;;  %vm8202_vm3 = vmmov %vm8198_vm12 }
0x1534   :  { %v4030_v14 = vmul.f32 %v4021_v6, %v6560_v38  ;;  %v4031_v17 = vmul.f32 %v4021_v6, %v6562_v13  ;;  %4000 = vrot.lane.b32.xlu1 %v3996_v0, %s4755_s8  ;;  %v4043_v49 = vadd.f32 %v4042_v41, %v4041_v19  ;;  %v4032_v33 = vmul.f32 %v4024_v1, %v6585_v55  ;;  %vm8204_vm8 = vmmov %vm8202_vm3 }
0x1535   :  { %v4033_v26 = vmul.f32 %v4024_v1, %v6569_v62  ;;  %v3997_v52 = vsel %vm307_vm4, %v3995_v5, %v3996_v0  ;;  %s4709_s21 = spop %4708  ;;  %vm8197_vm4 = vcmask 130093   ;;  %vm8218_vm11 = vcmask 83968  }
0x1536   :  { %v4037_v3 = vsel %vm8193_vm0, %v4030_v14, 0.0  ;;  %v4044_v34 = vsel %vm8194_vm7, %v4031_v17, 0.0  ;;  %3998 = vrot.lane.b32.xlu0 %v3997_v52, %s4755_s8  ;;  %v4070_v63 = vstv %s4709_s21  ;;  %s4711_s22 = spop %4710  ;;  %v4039_v31 = vsel %vm8195_vm1, %v4032_v33, 0.0  ;;  %vm8199_vm14 = vmmov %vm8197_vm4 }
0x1537   :  { %v4038_v2 = vadd.f32 %v4037_v3, %v4036_v22  ;;  %v4045_v7 = vadd.f32 %v4044_v34, %v4043_v49  ;;  %v4046_v53 = vsel %vm8196_vm10, %v4033_v26, 0.0  ;;  %v4081_v45 = vmul.f32 %v4070_v63, %v6535_v39  ;;  %vm8201_vm9 = vmmov %vm8197_vm4 }
0x1538   :  { %v4082_v4 = vmul.f32 %v4070_v63, %v6537_v20  ;;  %v4073_v42 = vstv %s4711_s22  ;;  %vm8203_vm6 = vmmov %vm8197_vm4  ;;  %v2532_v33 = vadd.f32 %v6798_v10, %v6715_v24  ;;  %v2531_v26 = vadd.f32 %v6800_v23, %v6718_v61  ;;  %v8206_v23 = vld [vmem:[#allocation26_spill] sm:$0xff] }
0x1539   :  { %v4040_v44 = vadd.f32 %v4039_v31, %v4038_v2  ;;  %v4047_v43 = vadd.f32 %v4046_v53, %v4045_v7  ;;  %v4083_v15 = vmul.f32 %v4073_v42, %v6550_v48  ;;  %v4084_v8 = vmul.f32 %v4073_v42, %v6543_v30  ;;  %s4713_s26 = spop %4712  ;;  %v8207_v42 = vld [vmem:[#allocation27_spill] sm:$0xff] }
0x153a   :  { %v4089_v25 = vsel %vm8197_vm4, %v4081_v45, 0.0  ;;  %v4096_v29 = vsel %vm8198_vm12, %v4082_v4, 0.0  ;;  %v4076_v54 = vstv %s4713_s26  ;;  %s4715_s0 = spop %4714  ;;  %v2587_v3 = vadd.f32 %v6829_v21, %v2532_v33 }
0x153b   :  { %v4050_v37 = vrot.slane %v4040_v44, 4  ;;  %v4051_v9 = vrot.slane %v4047_v43, 4  ;;  %v4090_v39 = vsel %vm8199_vm14, %v4083_v15, 0.0  ;;  %v4097_v20 = vsel %vm8200_vm15, %v4084_v8, 0.0  ;;  %v8209_v15 = vld [vmem:[#allocation31_spill] sm:$0xff] }
0x153c   :  { %v4085_v35 = vmul.f32 %v4076_v54, %v6560_v38  ;;  %v4086_v32 = vmul.f32 %v4076_v54, %v6562_v13  ;;  %v4091_v48 = vadd.f32 %v4090_v39, %v4089_v25  ;;  %v4098_v57 = vadd.f32 %v4097_v20, %v4096_v29  ;;  %v8210_v25 = vld [vmem:[#allocation32_spill] sm:$0xff]  ;;  %v8211_v29 = vld [vmem:[#allocation33_spill] sm:$0xff] }
0x153d   :  { %v4079_v30 = vstv %s4715_s0  ;;  %4055 = vrot.lane.b32.xlu1 %v4051_v9, %s4755_s8  ;;  %v4052_v58 = vsel %vm357_vm5, %v4050_v37, %v4051_v9  ;;  %vm8205_vm5 = vcmask 1042432   ;;  %v2586_v63 = vadd.f32 %v6831_v11, %v2531_v26  ;;  %v8208_v11 = vld [vmem:[#allocation30_spill] sm:$0xff]  ;;  %v8213_v9 = vld [vmem:[#allocation35_spill] sm:$0xff]  ;;  %v8214_v20 = vld [vmem:[#allocation36_spill] sm:$0xff] }
0x153e   :  { %v4092_v46 = vsel %vm8201_vm9, %v4085_v35, 0.0  ;;  %v4099_v47 = vsel %vm8202_vm3, %v4086_v32, 0.0  ;;  %v4087_v51 = vmul.f32 %v4079_v30, %v6585_v55  ;;  %v4088_v50 = vmul.f32 %v4079_v30, %v6569_v62  ;;  %4053 = vrot.lane.b32.xlu0 %v4052_v58, %s4755_s8  ;;  %v3180_v55 = vpop.permute.xlu0 %3179  ;;  %v3182_v62 = vpop.permute.xlu1 %3181  ;;  %v8215_v32 = vld [vmem:[#allocation37_spill] sm:$0xff] }
0x153f   :  { %v4093_v38 = vadd.f32 %v4092_v46, %v4091_v48  ;;  %v4100_v5 = vadd.f32 %v4099_v47, %v4098_v57  ;;  %v2642_v2 = vadd.f32 %v6860_v40, %v2587_v3  ;;  %v2641_v7 = vadd.f32 %v6862_v60, %v2586_v63  ;;  %v8216_v57 = vld [vmem:[#allocation38_spill] sm:$0xff]  ;;  %v8217_v46 = vld [vmem:[#allocation39_spill] sm:$0xff] }
0x1540   :  { %v4094_v13 = vsel %vm8203_vm6, %v4087_v51, 0.0  ;;  %v4101_v0 = vsel %vm8204_vm8, %v4088_v50, 0.0 }
0x1541   :  { %v4095_v18 = vadd.f32 %v4094_v13, %v4093_v38  ;;  %v4102_v19 = vadd.f32 %v4101_v0, %v4100_v5  ;;  %v2697_v53 = vadd.f32 %v6891_v59, %v2642_v2  ;;  %v2696_v4 = vadd.f32 %v6893_v28, %v2641_v7  ;;  %v8212_v28 = vld [vmem:[#allocation34_spill] sm:$0xff] }
0x1542   :  { %v3235_v1 = vpop.permute.xlu0 %3234  ;;  %v3237_v22 = vpop.permute.xlu1 %3236 }
0x1543   :  { %v4105_v27 = vrot.slane %v4095_v18, 5  ;;  %v4106_v41 = vrot.slane %v4102_v19, 5  ;;  %v2752_v24 = vadd.f32 %v6922_v56, %v2697_v53  ;;  %v2751_v61 = vadd.f32 %v6924_v16, %v2696_v4 }
0x1545   :  { %4110 = vrot.lane.b32.xlu1 %v4106_v41, %s4755_s8  ;;  %v4107_v6 = vsel %vm8205_vm5, %v4105_v27, %v4106_v41  ;;  %v2807_v21 = vadd.f32 %v8206_v23, %v2752_v24  ;;  %v2806_v44 = vadd.f32 %v8207_v42, %v2751_v61 }
0x1546   :  { %4108 = vrot.lane.b32.xlu0 %v4107_v6, %s4755_s8  ;;  %v3290_v14 = vpop.permute.xlu0 %3289  ;;  %v3292_v17 = vpop.permute.xlu1 %3291 }
0x1547   :  { %v2859_v43 = vadd.f32 %v8208_v11, %v2807_v21  ;;  %v2858_v60 = vadd.f32 %v8209_v15, %v2806_v44 }
0x1549   :  { %v2914_v59 = vadd.f32 %v8210_v25, %v2859_v43  ;;  %v2913_v54 = vadd.f32 %v8211_v29, %v2858_v60 }
0x154a   :  { %v3345_v49 = vpop.permute.xlu0 %3344  ;;  %v3347_v52 = vpop.permute.xlu1 %3346 }
0x154b   :  { %v2969_v37 = vadd.f32 %v8212_v28, %v2914_v59  ;;  %v2968_v16 = vadd.f32 %v8213_v9, %v2913_v54 }
0x154d   :  { %v3024_v35 = vadd.f32 %v8214_v20, %v2969_v37  ;;  %v3023_v48 = vadd.f32 %v8215_v32, %v2968_v16 }
0x154e   :  { %v3402_v31 = vpop.permute.xlu1 %3401 }
0x154f   :  { %v3400_v34 = vpop.permute.xlu0 %3399  ;;  %v3079_v30 = vadd.f32 %v8216_v57, %v3024_v35  ;;  %v3078_v47 = vadd.f32 %v8217_v46, %v3023_v48 }
0x1551   :  { %v3134_v50 = vadd.f32 %v7242_v12, %v3079_v30  ;;  %v3133_v38 = vadd.f32 %v7244_v36, %v3078_v47 }
0x1553   :  { %v3186_v5 = vadd.f32 %v3182_v62, %v3134_v50  ;;  %v3185_v0 = vadd.f32 %v3180_v55, %v3133_v38 }
0x1555   :  { %v3241_v19 = vadd.f32 %v3237_v22, %v3186_v5  ;;  %v3240_v27 = vadd.f32 %v3235_v1, %v3185_v0 }
0x1556   :  { %v3457_v10 = vpop.permute.xlu1 %3456 }
0x1557   :  { %v3455_v45 = vpop.permute.xlu0 %3454  ;;  %v3296_v41 = vadd.f32 %v3292_v17, %v3241_v19  ;;  %v3295_v33 = vadd.f32 %v3290_v14, %v3240_v27 }
0x1559   :  { %v3351_v3 = vadd.f32 %v3347_v52, %v3296_v41  ;;  %v3350_v63 = vadd.f32 %v3345_v49, %v3295_v33 }
0x155b   :  { %v3406_v2 = vadd.f32 %v3402_v31, %v3351_v3  ;;  %v3405_v53 = vadd.f32 %v3400_v34, %v3350_v63 }
0x155c   :  { %v3507_v40 = vpop.permute.xlu0 %3506  ;;  %v3509_v8 = vpop.permute.xlu1 %3508 }
0x155d   :  { %v3461_v24 = vadd.f32 %v3457_v10, %v3406_v2  ;;  %v3460_v12 = vadd.f32 %v3455_v45, %v3405_v53 }
0x155f   :  { %v3513_v61 = vadd.f32 %v3509_v8, %v3461_v24  ;;  %v3512_v36 = vadd.f32 %v3507_v40, %v3460_v12 }
0x1566   :  { %v3564_v39 = vpop.permute.xlu1 %3563 }
0x1567   :  { %v3562_v56 = vpop.permute.xlu0 %3561  ;;  %v3568_v23 = vadd.f32 %v3564_v39, %v3513_v61 }
0x1568   :  { %v3567_v21 = vadd.f32 %v3562_v56, %v3512_v36 }
0x156e   :  { %v3619_v51 = vpop.permute.xlu1 %3618 }
0x156f   :  { %v3617_v58 = vpop.permute.xlu0 %3616  ;;  %v3623_v22 = vadd.f32 %v3619_v51, %v3568_v23 }
0x1570   :  { %v3622_v1 = vadd.f32 %v3617_v58, %v3567_v21 }
0x1576   :  { %v3674_v18 = vpop.permute.xlu1 %3673 }
0x1577   :  { %v3672_v13 = vpop.permute.xlu0 %3671  ;;  %v3678_v42 = vadd.f32 %v3674_v18, %v3623_v22 }
0x1578   :  { %v3677_v44 = vadd.f32 %v3672_v13, %v3622_v1 }
0x157e   :  { %v3729_v26 = vpop.permute.xlu1 %3728 }
0x157f   :  { %v3727_v6 = vpop.permute.xlu0 %3726  ;;  %v3733_v52 = vadd.f32 %v3729_v26, %v3678_v42 }
0x1580   :  { %v3732_v49 = vadd.f32 %v3727_v6, %v3677_v44 }
0x1586   :  { %v3784_v4 = vpop.permute.xlu1 %3783 }
0x1587   :  { %v3782_v7 = vpop.permute.xlu0 %3781  ;;  %v3788_v11 = vadd.f32 %v3784_v4, %v3733_v52 }
0x1588   :  { %v3787_v43 = vadd.f32 %v3782_v7, %v3732_v49 }
0x158c   :  { %v3836_v62 = vpop.permute.xlu1 %3835  ;;  %v3834_v55 = vpop.permute.xlu0 %3833 }
0x158d   :  { %v3840_v10 = vadd.f32 %v3836_v62, %v3788_v11  ;;  %v3839_v45 = vadd.f32 %v3834_v55, %v3787_v43 }
0x1596   :  { %v3891_v17 = vpop.permute.xlu1 %3890 }
0x1597   :  { %v3889_v14 = vpop.permute.xlu0 %3888  ;;  %v3895_v40 = vadd.f32 %v3891_v17, %v3840_v10 }
0x1598   :  { %v3894_v8 = vadd.f32 %v3889_v14, %v3839_v45 }
0x159e   :  { %v3946_v31 = vpop.permute.xlu1 %3945 }
0x159f   :  { %v3944_v34 = vpop.permute.xlu0 %3943  ;;  %v3950_v25 = vadd.f32 %v3946_v31, %v3895_v40 }
0x15a0   :  { %v3949_v59 = vadd.f32 %v3944_v34, %v3894_v8 }
0x15a6   :  { %v4001_v15 = vpop.permute.xlu1 %4000 }
0x15a7   :  { %v4005_v54 = vadd.f32 %v4001_v15, %v3950_v25 }
0x15a8   :  { %v3999_v60 = vpop.permute.xlu0 %3998 }
0x15a9   :  { %v4004_v37 = vadd.f32 %v3999_v60, %v3949_v59 }
0x15af   :  { %v4056_v29 = vpop.permute.xlu1 %4055 }
0x15b0   :  { %v4054_v28 = vpop.permute.xlu0 %4053  ;;  %v4060_v56 = vadd.f32 %v4056_v29, %v4005_v54 }
0x15b1   :  { %v4059_v9 = vadd.f32 %v4054_v28, %v4004_v37 }
0x15b7   :  { %v4111_v16 = vpop.permute.xlu1 %4110 }
0x15b8   :  { %v4115_v39 = vadd.f32 %v4111_v16, %v4060_v56  ;;  %v4109_v20 = vpop.permute.xlu0 %4108 }
0x15b9   :  { %v4114_v35 = vadd.f32 %v4109_v20, %v4059_v9 }
0x15ba   :  { %v4117_v32 = vmul.f32 0.2, %v4115_v39 }
0x15bb   :  { %v4116_v48 = vmul.f32 0.2, %v4114_v35 }
0x15bc   :  { %4139 = vst.msk [vmem:[%s7937_s9 + $0x18] sm:$0x7] %vm8218_vm11, %v4117_v32 }
0x15bd   :  { %4138 = vst.msk [vmem:[%s7937_s9 + $0x10] sm:$0xff] %vm147_vm2, %v4116_v48 }
0x15be   :  { %4125 = vsyncpa [#allocation3], 1 }

</bundles_post_ra>
